<compile_context>
chip_gen: v7x
topology: tpu7x:2x2x1
jax: 0.10.0
libtpu: 0.0.40
codegen_flags: <defaults>
</compile_context>

<pallas_src>
import jax
import jax.numpy as jnp
from jax.experimental import pallas as pl
from jax.experimental.pallas import tpu as pltpu

MLPS = [[[64, 128, 1024], [64, 128, 1024]]]
NSAMPLE = [[16, 32]]
RADIUS = [[0.5, 1.0]]
BN_EPS = 1e-5
VMEM_LIMIT = 40 << 20     # below v7x's 64 MiB physical VMEM; plenty for these tiles


def _round_up(x, m):
    return -(-x // m) * m


# ---------------------------------------------------------------------------
# Pallas kernels (the hot path: matmuls, bias+ReLU, fused max-pool)
# ---------------------------------------------------------------------------
def msg_mlp_kernel(x_ref, w1_ref, b1_ref, w2_ref, b2_ref, w3_ref, b3_ref, o_ref):
    # x_ref: (K, TR, Cin) grouped xyz-centered neighbors, sample-major, bf16.
    k, tr, cin = x_ref.shape
    x = x_ref[...].reshape(k * tr, cin)                       # merge leading dims (layout no-op)
    h = jnp.dot(x, w1_ref[...], preferred_element_type=jnp.float32)
    h = jnp.maximum(h + b1_ref[...], 0.0).astype(jnp.bfloat16)
    h = jnp.dot(h, w2_ref[...], preferred_element_type=jnp.float32)
    h = jnp.maximum(h + b2_ref[...], 0.0).astype(jnp.bfloat16)       # (K*TR, 128)
    w3 = w3_ref[...]
    # Fused third matmul + max over nsample: per-sample (TR,128)x(128,1024) dot, running max.
    # relu/bias commute with the max (monotone + per-channel constant), applied once at end.
    acc = jnp.dot(h[0:tr], w3, preferred_element_type=jnp.float32)
    for s in range(1, k):                                      # static unroll over nsample
        acc = jnp.maximum(
            acc, jnp.dot(h[s * tr:(s + 1) * tr], w3, preferred_element_type=jnp.float32))
    o_ref[...] = jnp.maximum(acc + b3_ref[...], 0.0).astype(o_ref.dtype)


def head_kernel(f0_ref, f1_ref, w1a_ref, w1b_ref, b1_ref, w2_ref, b2_ref, o_ref):
    # f0/f1: (TR, 1024) per-scale features (bf16); equivalent to relu(cat(f0,f1) @ w1 + b1).
    h = jnp.dot(f0_ref[...], w1a_ref[...], preferred_element_type=jnp.float32)
    h = h + jnp.dot(f1_ref[...], w1b_ref[...], preferred_element_type=jnp.float32)
    h = jnp.maximum(h + b1_ref[...], 0.0).astype(jnp.bfloat16)
    h = jnp.dot(h, w2_ref[...], preferred_element_type=jnp.float32)
    o_ref[...] = jnp.maximum(h + b2_ref[...], 0.0).astype(o_ref.dtype)


# ---------------------------------------------------------------------------
# pallas_call wrappers
# ---------------------------------------------------------------------------
def run_msg_mlp(grouped, w1, b1, w2, b2, w3, b3, tile_rows=128):
    # grouped: (K, R, cin) bf16, sample-major
    k, r, cin = grouped.shape
    cin_w = w1.shape[0]
    if cin < cin_w:                       # pad tiny xyz channel dim (zero rows in w1 keep math exact)
        grouped = jnp.pad(grouped, ((0, 0), (0, 0), (0, cin_w - cin)))
        cin = cin_w
    tr = min(tile_rows, _round_up(r, 8))
    rpad = _round_up(r, tr)
    if rpad != r:
        grouped = jnp.pad(grouped, ((0, 0), (0, rpad - r), (0, 0)))
    cout = w3.shape[1]
    out = pl.pallas_call(
        msg_mlp_kernel,
        out_shape=jax.ShapeDtypeStruct((rpad, cout), jnp.bfloat16),
        grid=(rpad // tr,),
        in_specs=[
            pl.BlockSpec((k, tr, cin), lambda i: (0, i, 0)),
            pl.BlockSpec(w1.shape, lambda i: (0, 0)),
            pl.BlockSpec(b1.shape, lambda i: (0, 0)),
            pl.BlockSpec(w2.shape, lambda i: (0, 0)),
            pl.BlockSpec(b2.shape, lambda i: (0, 0)),
            pl.BlockSpec(w3.shape, lambda i: (0, 0)),
            pl.BlockSpec(b3.shape, lambda i: (0, 0)),
        ],
        out_specs=pl.BlockSpec((tr, cout), lambda i: (i, 0)),
        compiler_params=pltpu.CompilerParams(
            dimension_semantics=("parallel",), vmem_limit_bytes=VMEM_LIMIT),
    )(grouped, w1, b1, w2, b2, w3, b3)
    return out[:r]


def run_head(f0, f1, w1a, w1b, b1, w2, b2, tile_rows=256):
    r, c = f0.shape
    tr = min(tile_rows, _round_up(r, 8))
    rpad = _round_up(r, tr)
    if rpad != r:
        f0 = jnp.pad(f0, ((0, rpad - r), (0, 0)))
        f1 = jnp.pad(f1, ((0, rpad - r), (0, 0)))
    cout = w2.shape[1]
    out = pl.pallas_call(
        head_kernel,
        out_shape=jax.ShapeDtypeStruct((rpad, cout), jnp.float32),
        grid=(rpad // tr,),
        in_specs=[
            pl.BlockSpec((tr, c), lambda i: (i, 0)),
            pl.BlockSpec((tr, c), lambda i: (i, 0)),
            pl.BlockSpec(w1a.shape, lambda i: (0, 0)),
            pl.BlockSpec(w1b.shape, lambda i: (0, 0)),
            pl.BlockSpec(b1.shape, lambda i: (0, 0)),
            pl.BlockSpec(w2.shape, lambda i: (0, 0)),
            pl.BlockSpec(b2.shape, lambda i: (0, 0)),
        ],
        out_specs=pl.BlockSpec((tr, cout), lambda i: (i, 0)),
        compiler_params=pltpu.CompilerParams(
            dimension_semantics=("parallel",), vmem_limit_bytes=VMEM_LIMIT),
    )(f0, f1, w1a, w1b, b1, w2, b2)
    return out[:r]


# ---------------------------------------------------------------------------
# Glue: ball query + grouping (data-dependent gather, single pass in plain JAX)
# TODO(synk): ideally fuse ball-query + gather + MSG MLP into one Pallas kernel so the
#             grouped xyz never hits HBM; kept as a single-pass cumsum-rank scatter here.
# ---------------------------------------------------------------------------
def ball_query_group(xyz, new_xyz, radius, nsample):
    # xyz: (B, N, 3), new_xyz: (B, M, 3)  ->  (B, M, nsample, 3) centered neighbors
    b, n, _ = xyz.shape
    m = new_xyz.shape[1]
    x2 = jnp.sum(xyz * xyz, axis=-1)                                   # (B, N)
    c2 = jnp.sum(new_xyz * new_xyz, axis=-1)                           # (B, M)
    cross = jnp.einsum("bmd,bnd->bmn", new_xyz, xyz)                   # (B, M, N)
    d2 = jnp.maximum(c2[:, :, None] + x2[:, None, :] - 2.0 * cross, 0.0)
    within = d2 < (radius * radius)
    cnt = jnp.cumsum(within.astype(jnp.int32), axis=-1)                # (B, M, N)
    rank = cnt - 1
    valid = within & (rank < nsample)
    slot = jnp.where(valid, rank, nsample)                             # overflow slot for invalid
    b_ix = jnp.arange(b, dtype=jnp.int32)[:, None, None]
    m_ix = jnp.arange(m, dtype=jnp.int32)[None, :, None]
    n_ix = jnp.broadcast_to(jnp.arange(n, dtype=jnp.int32)[None, None, :], (b, m, n))
    idx_full = jnp.zeros((b, m, nsample + 1), dtype=jnp.int32)
    idx_full = idx_full.at[b_ix, m_ix, slot].set(n_ix, mode="drop")    # rank is unique per (b,m)
    idx = idx_full[..., :nsample]                                      # (B, M, nsample)
    total = cnt[..., -1]                                               # number within radius
    has = jnp.arange(nsample, dtype=jnp.int32)[None, None, :] < total[..., None]
    idx = jnp.where(has, idx, idx[..., 0:1])                           # CUDA ball_query fill rule
    batch_idx = jnp.arange(b)[:, None, None]
    grouped = xyz[batch_idx, idx]                                      # (B, M, nsample, 3)
    grouped = grouped - new_xyz[:, :, None, :]                         # use_xyz=True, features=None
    return grouped


# ---------------------------------------------------------------------------
# Deterministic parameters (Conv2d/Linear weights with folded BatchNorm affine, bf16)
# ---------------------------------------------------------------------------
def _fold_bn(w, b, gamma, beta, mean, var, eps=BN_EPS):
    s = gamma / jnp.sqrt(var + eps)
    return w * s[None, :], (b - mean) * s + beta


def make_params(key):
    def dense(k, cin, cout):
        kw, kb = jax.random.split(k)
        w = jax.random.normal(kw, (cin, cout), jnp.float32) * (cin ** -0.5)
        b = 0.05 * jax.random.normal(kb, (cout,), jnp.float32)
        return w, b

    def bn(k, c):
        k1, k2, k3, k4 = jax.random.split(k, 4)
        gamma = 1.0 + 0.1 * jax.random.normal(k1, (c,), jnp.float32)
        beta = 0.1 * jax.random.normal(k2, (c,), jnp.float32)
        mean = 0.1 * jax.random.normal(k3, (c,), jnp.float32)
        var = 0.5 + jax.random.uniform(k4, (c,), jnp.float32)
        return gamma, beta, mean, var

    params = {"sa": [], "head": None}
    mlps = [[3] + mm for mm in MLPS[0]]          # channel_in = 0 (+3 xyz) per scale
    keys = iter(jax.random.split(key, 32))
    for spec in mlps:
        layer = []
        for li, (cin, cout) in enumerate(zip(spec[:-1], spec[1:])):
            w, bb = dense(next(keys), cin, cout)
            w, bb = _fold_bn(w, bb, *bn(next(keys), cout))
            if li == 0 and cin < 8:              # pad xyz channel dim once (zero rows -> exact)
                w = jnp.pad(w, ((0, 8 - cin), (0, 0)))
            layer.extend([w.astype(jnp.bfloat16), bb.reshape(1, -1)])
        params["sa"].append(tuple(layer))
    w1, b1 = dense(next(keys), 2048, 1024)
    w1, b1 = _fold_bn(w1, b1, *bn(next(keys), 1024))
    w2, b2 = dense(next(keys), 1024, 1024)
    w2, b2 = _fold_bn(w2, b2, *bn(next(keys), 1024))
    params["head"] = (
        w1[:1024].astype(jnp.bfloat16),          # scale-0 half of lin1
        w1[1024:].astype(jnp.bfloat16),          # scale-1 half of lin1
        b1.reshape(1, -1),
        w2.astype(jnp.bfloat16),
        b2.reshape(1, -1),
    )
    return params


# ---------------------------------------------------------------------------
# Full forward pass
# ---------------------------------------------------------------------------
def pointnet2_msg_forward(pointcloud, clean, params):
    xyz = pointcloud[..., 0:3]          # _break_up_pc; input_channels=0 -> features=None
    new_xyz = clean                     # `clean` supplies the MSG query centers
    b, m, _ = new_xyz.shape
    scale_feats = []
    for s, (radius, nsample) in enumerate(zip(RADIUS[0], NSAMPLE[0])):
        grouped = ball_query_group(xyz, new_xyz, radius, nsample)          # (B, M, K, 3)
        # sample-major layout so the kernel can fuse the nsample max-pool
        g = grouped.transpose(2, 0, 1, 3).reshape(nsample, b * m, 3).astype(jnp.bfloat16)
        w1, b1, w2, b2, w3, b3 = params["sa"][s]
        scale_feats.append(run_msg_mlp(g, w1, b1, w2, b2, w3, b3))          # (B*M, 1024) bf16
    # head consumes the two per-scale features directly (== lin1 on the 2048-wide concat)
    f0, f1 = scale_feats
    feat = run_head(f0, f1, *params["head"])                                # (B*M, 1024) f32
    return feat.reshape(b, m, 1024), new_xyz


if __name__ == "__main__":
    B, N, M = 2, 128, 16   # small stand-ins for (batch, n_points, NPOINTS=6144)
    key = jax.random.PRNGKey(0)
    k_pc, k_clean, k_params = jax.random.split(key, 3)
    pointcloud = jax.random.uniform(k_pc, (B, N, 3), jnp.float32, -1.0, 1.0)
    clean = jax.random.uniform(k_clean, (B, M, 3), jnp.float32, -1.0, 1.0)
    params = make_params(k_params)

    feature, li_xyz = pointnet2_msg_forward(pointcloud, clean, params)
    jax.block_until_ready((feature, li_xyz))
    assert feature.shape == (B, M, 1024)
    assert li_xyz.shape == (B, M, 3)
    assert bool(jnp.all(jnp.isfinite(feature)))
    print("KERNEL_OK")
</pallas_src>

<mosaic_0001>
module attributes {stable_mosaic.version = 11 : i64} {
  func.func @msg_mlp_kernel(%arg0: i32, %arg1: memref<16x32x8xbf16, #tpu.memory_space<vmem>>, %arg2: memref<8x64xbf16, #tpu.memory_space<vmem>>, %arg3: memref<1x64xf32, #tpu.memory_space<vmem>>, %arg4: memref<64x128xbf16, #tpu.memory_space<vmem>>, %arg5: memref<1x128xf32, #tpu.memory_space<vmem>>, %arg6: memref<128x1024xbf16, #tpu.memory_space<vmem>>, %arg7: memref<1x1024xf32, #tpu.memory_space<vmem>>, %arg8: memref<32x1024xbf16, #tpu.memory_space<vmem>>) attributes {dimension_semantics = [#tpu.dimension_semantics<parallel>], iteration_bounds = array<i64: 1>, scalar_prefetch = 0 : i64, scratch_operands = 0 : i64, tpu.core_type = #tpu.core_type<tc>, window_params = [{transform_indices = @transform_0, window_bounds = array<i64: 16, 32, 8>}, {pipeline_mode = #tpu.pipeline_mode<synchronous>, transform_indices = @transform_1, window_bounds = array<i64: 8, 64>}, {pipeline_mode = #tpu.pipeline_mode<synchronous>, transform_indices = @transform_2, window_bounds = array<i64: 1, 64>}, {pipeline_mode = #tpu.pipeline_mode<synchronous>, transform_indices = @transform_3, window_bounds = array<i64: 64, 128>}, {pipeline_mode = #tpu.pipeline_mode<synchronous>, transform_indices = @transform_4, window_bounds = array<i64: 1, 128>}, {pipeline_mode = #tpu.pipeline_mode<synchronous>, transform_indices = @transform_5, window_bounds = array<i64: 128, 1024>}, {pipeline_mode = #tpu.pipeline_mode<synchronous>, transform_indices = @transform_6, window_bounds = array<i64: 1, 1024>}, {transform_indices = @transform_7, window_bounds = array<i64: 32, 1024>}]} {
    %c0 = arith.constant 0 : index
    %c0_0 = arith.constant 0 : index
    %c0_1 = arith.constant 0 : index
    %0 = vector.load %arg1[%c0, %c0_0, %c0_1] : memref<16x32x8xbf16, #tpu.memory_space<vmem>>, vector<16x32x8xbf16>
    %1 = vector.shape_cast %0 : vector<16x32x8xbf16> to vector<512x8xbf16>
    %c0_2 = arith.constant 0 : index
    %c0_3 = arith.constant 0 : index
    %2 = vector.load %arg2[%c0_2, %c0_3] : memref<8x64xbf16, #tpu.memory_space<vmem>>, vector<8x64xbf16>
    %cst = arith.constant dense<0.000000e+00> : vector<512x64xf32>
    %3 = tpu.matmul %1, %2, %cst {dimension_numbers = #tpu.dot_dimension_numbers<[1], [0], [0], [1], [0, 0, 1, 1], [], []>} : vector<512x8xbf16>, vector<8x64xbf16>, vector<512x64xf32> -> vector<512x64xf32>
    %c0_4 = arith.constant 0 : index
    %c0_5 = arith.constant 0 : index
    %4 = vector.load %arg3[%c0_4, %c0_5] : memref<1x64xf32, #tpu.memory_space<vmem>>, vector<1x64xf32>
    %5 = vector.broadcast %4 : vector<1x64xf32> to vector<512x64xf32>
    %6 = arith.addf %3, %5 : vector<512x64xf32>
    %cst_6 = arith.constant 0.000000e+00 : f32
    %7 = vector.broadcast %cst_6 : f32 to vector<512x64xf32>
    %8 = arith.maximumf %6, %7 : vector<512x64xf32>
    %9 = arith.truncf %8 : vector<512x64xf32> to vector<512x64xbf16>
    %c0_7 = arith.constant 0 : index
    %c0_8 = arith.constant 0 : index
    %10 = vector.load %arg4[%c0_7, %c0_8] : memref<64x128xbf16, #tpu.memory_space<vmem>>, vector<64x128xbf16>
    %cst_9 = arith.constant dense<0.000000e+00> : vector<512x128xf32>
    %11 = tpu.matmul %9, %10, %cst_9 {dimension_numbers = #tpu.dot_dimension_numbers<[1], [0], [0], [1], [0, 0, 1, 1], [], []>} : vector<512x64xbf16>, vector<64x128xbf16>, vector<512x128xf32> -> vector<512x128xf32>
    %c0_10 = arith.constant 0 : index
    %c0_11 = arith.constant 0 : index
    %12 = vector.load %arg5[%c0_10, %c0_11] : memref<1x128xf32, #tpu.memory_space<vmem>>, vector<1x128xf32>
    %13 = vector.broadcast %12 : vector<1x128xf32> to vector<512x128xf32>
    %14 = arith.addf %11, %13 : vector<512x128xf32>
    %cst_12 = arith.constant 0.000000e+00 : f32
    %15 = vector.broadcast %cst_12 : f32 to vector<512x128xf32>
    %16 = arith.maximumf %14, %15 : vector<512x128xf32>
    %17 = arith.truncf %16 : vector<512x128xf32> to vector<512x128xbf16>
    %c0_13 = arith.constant 0 : index
    %c0_14 = arith.constant 0 : index
    %18 = vector.load %arg6[%c0_13, %c0_14] : memref<128x1024xbf16, #tpu.memory_space<vmem>>, vector<128x1024xbf16>
    %19 = vector.extract_strided_slice %17 {offsets = [0, 0], sizes = [32, 128], strides = [1, 1]} : vector<512x128xbf16> to vector<32x128xbf16>
    %cst_15 = arith.constant dense<0.000000e+00> : vector<32x1024xf32>
    %20 = tpu.matmul %19, %18, %cst_15 {dimension_numbers = #tpu.dot_dimension_numbers<[1], [0], [0], [1], [0, 0, 1, 1], [], []>} : vector<32x128xbf16>, vector<128x1024xbf16>, vector<32x1024xf32> -> vector<32x1024xf32>
    %21 = vector.extract_strided_slice %17 {offsets = [32, 0], sizes = [32, 128], strides = [1, 1]} : vector<512x128xbf16> to vector<32x128xbf16>
    %cst_16 = arith.constant dense<0.000000e+00> : vector<32x1024xf32>
    %22 = tpu.matmul %21, %18, %cst_16 {dimension_numbers = #tpu.dot_dimension_numbers<[1], [0], [0], [1], [0, 0, 1, 1], [], []>} : vector<32x128xbf16>, vector<128x1024xbf16>, vector<32x1024xf32> -> vector<32x1024xf32>
    %23 = arith.maximumf %20, %22 : vector<32x1024xf32>
    %24 = vector.extract_strided_slice %17 {offsets = [64, 0], sizes = [32, 128], strides = [1, 1]} : vector<512x128xbf16> to vector<32x128xbf16>
    %cst_17 = arith.constant dense<0.000000e+00> : vector<32x1024xf32>
    %25 = tpu.matmul %24, %18, %cst_17 {dimension_numbers = #tpu.dot_dimension_numbers<[1], [0], [0], [1], [0, 0, 1, 1], [], []>} : vector<32x128xbf16>, vector<128x1024xbf16>, vector<32x1024xf32> -> vector<32x1024xf32>
    %26 = arith.maximumf %23, %25 : vector<32x1024xf32>
    %27 = vector.extract_strided_slice %17 {offsets = [96, 0], sizes = [32, 128], strides = [1, 1]} : vector<512x128xbf16> to vector<32x128xbf16>
    %cst_18 = arith.constant dense<0.000000e+00> : vector<32x1024xf32>
    %28 = tpu.matmul %27, %18, %cst_18 {dimension_numbers = #tpu.dot_dimension_numbers<[1], [0], [0], [1], [0, 0, 1, 1], [], []>} : vector<32x128xbf16>, vector<128x1024xbf16>, vector<32x1024xf32> -> vector<32x1024xf32>
    %29 = arith.maximumf %26, %28 : vector<32x1024xf32>
    %30 = vector.extract_strided_slice %17 {offsets = [128, 0], sizes = [32, 128], strides = [1, 1]} : vector<512x128xbf16> to vector<32x128xbf16>
    %cst_19 = arith.constant dense<0.000000e+00> : vector<32x1024xf32>
    %31 = tpu.matmul %30, %18, %cst_19 {dimension_numbers = #tpu.dot_dimension_numbers<[1], [0], [0], [1], [0, 0, 1, 1], [], []>} : vector<32x128xbf16>, vector<128x1024xbf16>, vector<32x1024xf32> -> vector<32x1024xf32>
    %32 = arith.maximumf %29, %31 : vector<32x1024xf32>
    %33 = vector.extract_strided_slice %17 {offsets = [160, 0], sizes = [32, 128], strides = [1, 1]} : vector<512x128xbf16> to vector<32x128xbf16>
    %cst_20 = arith.constant dense<0.000000e+00> : vector<32x1024xf32>
    %34 = tpu.matmul %33, %18, %cst_20 {dimension_numbers = #tpu.dot_dimension_numbers<[1], [0], [0], [1], [0, 0, 1, 1], [], []>} : vector<32x128xbf16>, vector<128x1024xbf16>, vector<32x1024xf32> -> vector<32x1024xf32>
    %35 = arith.maximumf %32, %34 : vector<32x1024xf32>
    %36 = vector.extract_strided_slice %17 {offsets = [192, 0], sizes = [32, 128], strides = [1, 1]} : vector<512x128xbf16> to vector<32x128xbf16>
    %cst_21 = arith.constant dense<0.000000e+00> : vector<32x1024xf32>
    %37 = tpu.matmul %36, %18, %cst_21 {dimension_numbers = #tpu.dot_dimension_numbers<[1], [0], [0], [1], [0, 0, 1, 1], [], []>} : vector<32x128xbf16>, vector<128x1024xbf16>, vector<32x1024xf32> -> vector<32x1024xf32>
    %38 = arith.maximumf %35, %37 : vector<32x1024xf32>
    %39 = vector.extract_strided_slice %17 {offsets = [224, 0], sizes = [32, 128], strides = [1, 1]} : vector<512x128xbf16> to vector<32x128xbf16>
    %cst_22 = arith.constant dense<0.000000e+00> : vector<32x1024xf32>
    %40 = tpu.matmul %39, %18, %cst_22 {dimension_numbers = #tpu.dot_dimension_numbers<[1], [0], [0], [1], [0, 0, 1, 1], [], []>} : vector<32x128xbf16>, vector<128x1024xbf16>, vector<32x1024xf32> -> vector<32x1024xf32>
    %41 = arith.maximumf %38, %40 : vector<32x1024xf32>
    %42 = vector.extract_strided_slice %17 {offsets = [256, 0], sizes = [32, 128], strides = [1, 1]} : vector<512x128xbf16> to vector<32x128xbf16>
    %cst_23 = arith.constant dense<0.000000e+00> : vector<32x1024xf32>
    %43 = tpu.matmul %42, %18, %cst_23 {dimension_numbers = #tpu.dot_dimension_numbers<[1], [0], [0], [1], [0, 0, 1, 1], [], []>} : vector<32x128xbf16>, vector<128x1024xbf16>, vector<32x1024xf32> -> vector<32x1024xf32>
    %44 = arith.maximumf %41, %43 : vector<32x1024xf32>
    %45 = vector.extract_strided_slice %17 {offsets = [288, 0], sizes = [32, 128], strides = [1, 1]} : vector<512x128xbf16> to vector<32x128xbf16>
    %cst_24 = arith.constant dense<0.000000e+00> : vector<32x1024xf32>
    %46 = tpu.matmul %45, %18, %cst_24 {dimension_numbers = #tpu.dot_dimension_numbers<[1], [0], [0], [1], [0, 0, 1, 1], [], []>} : vector<32x128xbf16>, vector<128x1024xbf16>, vector<32x1024xf32> -> vector<32x1024xf32>
    %47 = arith.maximumf %44, %46 : vector<32x1024xf32>
    %48 = vector.extract_strided_slice %17 {offsets = [320, 0], sizes = [32, 128], strides = [1, 1]} : vector<512x128xbf16> to vector<32x128xbf16>
    %cst_25 = arith.constant dense<0.000000e+00> : vector<32x1024xf32>
    %49 = tpu.matmul %48, %18, %cst_25 {dimension_numbers = #tpu.dot_dimension_numbers<[1], [0], [0], [1], [0, 0, 1, 1], [], []>} : vector<32x128xbf16>, vector<128x1024xbf16>, vector<32x1024xf32> -> vector<32x1024xf32>
    %50 = arith.maximumf %47, %49 : vector<32x1024xf32>
    %51 = vector.extract_strided_slice %17 {offsets = [352, 0], sizes = [32, 128], strides = [1, 1]} : vector<512x128xbf16> to vector<32x128xbf16>
    %cst_26 = arith.constant dense<0.000000e+00> : vector<32x1024xf32>
    %52 = tpu.matmul %51, %18, %cst_26 {dimension_numbers = #tpu.dot_dimension_numbers<[1], [0], [0], [1], [0, 0, 1, 1], [], []>} : vector<32x128xbf16>, vector<128x1024xbf16>, vector<32x1024xf32> -> vector<32x1024xf32>
    %53 = arith.maximumf %50, %52 : vector<32x1024xf32>
    %54 = vector.extract_strided_slice %17 {offsets = [384, 0], sizes = [32, 128], strides = [1, 1]} : vector<512x128xbf16> to vector<32x128xbf16>
    %cst_27 = arith.constant dense<0.000000e+00> : vector<32x1024xf32>
    %55 = tpu.matmul %54, %18, %cst_27 {dimension_numbers = #tpu.dot_dimension_numbers<[1], [0], [0], [1], [0, 0, 1, 1], [], []>} : vector<32x128xbf16>, vector<128x1024xbf16>, vector<32x1024xf32> -> vector<32x1024xf32>
    %56 = arith.maximumf %53, %55 : vector<32x1024xf32>
    %57 = vector.extract_strided_slice %17 {offsets = [416, 0], sizes = [32, 128], strides = [1, 1]} : vector<512x128xbf16> to vector<32x128xbf16>
    %cst_28 = arith.constant dense<0.000000e+00> : vector<32x1024xf32>
    %58 = tpu.matmul %57, %18, %cst_28 {dimension_numbers = #tpu.dot_dimension_numbers<[1], [0], [0], [1], [0, 0, 1, 1], [], []>} : vector<32x128xbf16>, vector<128x1024xbf16>, vector<32x1024xf32> -> vector<32x1024xf32>
    %59 = arith.maximumf %56, %58 : vector<32x1024xf32>
    %60 = vector.extract_strided_slice %17 {offsets = [448, 0], sizes = [32, 128], strides = [1, 1]} : vector<512x128xbf16> to vector<32x128xbf16>
    %cst_29 = arith.constant dense<0.000000e+00> : vector<32x1024xf32>
    %61 = tpu.matmul %60, %18, %cst_29 {dimension_numbers = #tpu.dot_dimension_numbers<[1], [0], [0], [1], [0, 0, 1, 1], [], []>} : vector<32x128xbf16>, vector<128x1024xbf16>, vector<32x1024xf32> -> vector<32x1024xf32>
    %62 = arith.maximumf %59, %61 : vector<32x1024xf32>
    %63 = vector.extract_strided_slice %17 {offsets = [480, 0], sizes = [32, 128], strides = [1, 1]} : vector<512x128xbf16> to vector<32x128xbf16>
    %cst_30 = arith.constant dense<0.000000e+00> : vector<32x1024xf32>
    %64 = tpu.matmul %63, %18, %cst_30 {dimension_numbers = #tpu.dot_dimension_numbers<[1], [0], [0], [1], [0, 0, 1, 1], [], []>} : vector<32x128xbf16>, vector<128x1024xbf16>, vector<32x1024xf32> -> vector<32x1024xf32>
    %65 = arith.maximumf %62, %64 : vector<32x1024xf32>
    %c0_31 = arith.constant 0 : index
    %c0_32 = arith.constant 0 : index
    %66 = vector.load %arg7[%c0_31, %c0_32] : memref<1x1024xf32, #tpu.memory_space<vmem>>, vector<1x1024xf32>
    %67 = vector.broadcast %66 : vector<1x1024xf32> to vector<32x1024xf32>
    %68 = arith.addf %65, %67 : vector<32x1024xf32>
    %cst_33 = arith.constant 0.000000e+00 : f32
    %69 = vector.broadcast %cst_33 : f32 to vector<32x1024xf32>
    %70 = arith.maximumf %68, %69 : vector<32x1024xf32>
    %71 = arith.truncf %70 : vector<32x1024xf32> to vector<32x1024xbf16>
    %c0_34 = arith.constant 0 : index
    %c0_35 = arith.constant 0 : index
    %72 = vector.load %arg8[%c0_34, %c0_35] : memref<32x1024xbf16, #tpu.memory_space<vmem>>, vector<32x1024xbf16>
    tpu.vector_store %arg8[%c0_34, %c0_35], %71 {strides = array<i32>} : memref<32x1024xbf16, #tpu.memory_space<vmem>>, vector<32x1024xbf16>,
    return
  }
  func.func @transform_0(%arg0: i32) -> (i32, i32, i32) {
    %c0_i32 = arith.constant 0 : i32
    %c0_i32_0 = arith.constant 0 : i32
    %c0_i32_1 = arith.constant 0 : i32
    return %c0_i32, %arg0, %c0_i32_0 : i32, i32, i32
  }
  func.func @transform_1(%arg0: i32) -> (i32, i32) {
    %c0_i32 = arith.constant 0 : i32
    %c0_i32_0 = arith.constant 0 : i32
    %c0_i32_1 = arith.constant 0 : i32
    return %c0_i32, %c0_i32_0 : i32, i32
  }
  func.func @transform_2(%arg0: i32) -> (i32, i32) {
    %c0_i32 = arith.constant 0 : i32
    %c0_i32_0 = arith.constant 0 : i32
    %c0_i32_1 = arith.constant 0 : i32
    return %c0_i32, %c0_i32_0 : i32, i32
  }
  func.func @transform_3(%arg0: i32) -> (i32, i32) {
    %c0_i32 = arith.constant 0 : i32
    %c0_i32_0 = arith.constant 0 : i32
    %c0_i32_1 = arith.constant 0 : i32
    return %c0_i32, %c0_i32_0 : i32, i32
  }
  func.func @transform_4(%arg0: i32) -> (i32, i32) {
    %c0_i32 = arith.constant 0 : i32
    %c0_i32_0 = arith.constant 0 : i32
    %c0_i32_1 = arith.constant 0 : i32
    return %c0_i32, %c0_i32_0 : i32, i32
  }
  func.func @transform_5(%arg0: i32) -> (i32, i32) {
    %c0_i32 = arith.constant 0 : i32
    %c0_i32_0 = arith.constant 0 : i32
    %c0_i32_1 = arith.constant 0 : i32
    return %c0_i32, %c0_i32_0 : i32, i32
  }
  func.func @transform_6(%arg0: i32) -> (i32, i32) {
    %c0_i32 = arith.constant 0 : i32
    %c0_i32_0 = arith.constant 0 : i32
    %c0_i32_1 = arith.constant 0 : i32
    return %c0_i32, %c0_i32_0 : i32, i32
  }
  func.func @transform_7(%arg0: i32) -> (i32, i32) {
    %c0_i32 = arith.constant 0 : i32
    %c0_i32_0 = arith.constant 0 : i32
    return %arg0, %c0_i32 : i32, i32
  }
}

</mosaic_0001>

<bundles_post_ra>
// kernel: tpu_custom_call.1
= control target key start
LH: loop header
LB: loop body
LE: loop exit
PB: predicated region body
PF: predicated region fallthrough
CT: control target
= control target key end

     0   :  { %12 = vsyncpa [#allocation3], 0  ;;  %s10310_s0 = inlined_call_operand.vmem [shape: bf16[16,32,8], index: 0, kind: input, shape index: {}]   ;;  %s10311_s1 = inlined_call_operand.vmem [shape: bf16[8,64], index: 1, kind: input, shape index: {}]   ;;  %s10312_s2 = inlined_call_operand.vmem [shape: f32[1,64], index: 2, kind: input, shape index: {}]   ;;  %s10313_s3 = inlined_call_operand.vmem [shape: bf16[64,128], index: 3, kind: input, shape index: {}]   ;;  %s10314_s4 = inlined_call_operand.vmem [shape: f32[1,128], index: 4, kind: input, shape index: {}]   ;;  %s10315_s5 = inlined_call_operand.hbm [shape: bf16[128,1024], index: 5, kind: input, shape index: {}]   ;;  %s10316_s6 = inlined_call_operand.vmem [shape: f32[1,1024], index: 6, kind: input, shape index: {}]   ;;  %s10317_s7 = inlined_call_operand.hbm [shape: bf16[32,1024], index: 7, kind: output, shape index: {}]  }
   0x1   :  { %13 = vsyncpa [#allocation4], 0  ;;  %s6267_s24 = smov [#allocation2]   ;;  %s6219_s28 = scalar_lea.hbm %s10315_s5, 8192 }
   0x2   :  { %s29_s25 = sshll.u32 %s6267_s24, 4  ;;  %p6220_p0 = scmp.ne.s32.totalorder %s10315_s5, %s6219_s28  ;;  %s30_s25 = int_to_ptr.vmem [resolvable:$true] %s29_s25 }
   0x3   :  { %p6223_p1 = scmp.lt.u32.totalorder %s6219_s28, %s10315_s5 }
   0x5   :  { %p6225_p2 = pnand %p6223_p1, %p6220_p0 }
   0x7   :  { %6228 = shalt.err (!%p6225_p2)
}
   0x8   :  { %s6229_s10 = scalar_lea.vmem %s30_s25, 8192  ;;  %p6234_p4 = scmp.lt.s32.totalorder %s30_s25, %s30_s25 }
   0x9   :  { %p6230_p3 = scmp.ne.s32.totalorder %s30_s25, %s6229_s10  ;;  %p6235_p5 = scmp.lt.s32.totalorder %s6229_s10, %s6229_s10 }
   0xb   :  { %p6236_p6 = por %p6235_p5, %p6234_p4 }
   0xd   :  { %p6237_p7 = pnand %p6236_p6, %p6230_p3 }
   0xf   :  { %6240 = shalt.err (!%p6237_p7)
}
  0x10   :  { %s6268_s11 = smov 512   ;;  %s6269_s12 = smov 32  }
  0x11   :  { %35 = dma.hbm_to_vmem [thread:$0]  %s10315_s5, 8192, %s30_s25, [#allocation3], %s6268_s11, %s6268_s11, %s6269_s12  }
  0x12   :  { %6263 = dma.done.wait [#allocation3], 8192  }
  0x13   :  { %6264 = vsyncadd [#allocation3], 4294959104  ;;  %vm371_vm0 = vcmask 1043456   ;;  %vm274_vm1 = vcmask 64512   ;;  %v106_v0 = vld [vmem:[%s10311_s1] sm:$0xf] }
  0x14   :  { %6177 = vmatprep.subr.msk.bf16.mxu0 %vm371_vm0, %v106_v0  ;;  %v373_v1 = vsel %vm371_vm0, %v106_v0, 0  ;;  %v6183_v2 = vld [vmem:[%s10310_s0] sm:$0xff]   ;;  %v6184_v3 = vld [vmem:[%s10310_s0 + $0x8] sm:$0xff]   ;;  %v6185_v4 = vld [vmem:[%s10310_s0 + $0x10] sm:$0xff]   ;;  %vm799_vm2 = vcmask 523264  }
  0x15   :  { %6040 = vmatpush3.bf16.msra.mxu0 %v373_v1  ;;  %6041 = vmatprep.mubr.msk.bf16.mxu0 %vm274_vm1, %v6183_v2  ;;  %v6186_v5 = vld [vmem:[%s10310_s0 + $0x18] sm:$0xff]   ;;  %v6187_v6 = vld [vmem:[%s10310_s0 + $0x20] sm:$0xff]   ;;  %v6188_v7 = vld [vmem:[%s10310_s0 + $0x28] sm:$0xff]  }
  0x16   :  { %v6189_v8 = vld [vmem:[%s10310_s0 + $0x30] sm:$0xff]   ;;  %v6190_v9 = vld [vmem:[%s10310_s0 + $0x38] sm:$0xff]   ;;  %v6191_v10 = vld [vmem:[%s10310_s0 + $0x40] sm:$0xff]  }
  0x17   :  { %v6192_v11 = vld [vmem:[%s10310_s0 + $0x48] sm:$0xff]   ;;  %v6193_v12 = vld [vmem:[%s10310_s0 + $0x50] sm:$0xff]   ;;  %v6215_v13 = vld [vmem:[%s10313_s3] sm:$0xff]  }
  0x18   :  { %6042 = vmatmul.mubr.msk.bf16.vlgmr.msra.gmra.mrb[0].mxu0 %vm274_vm1, %v6184_v3  ;;  %v6216_v14 = vld [vmem:[%s10313_s3 + $0x8] sm:$0xff]   ;;  %6105 = vmatprep.subr.bf16.mxu1 %v6215_v13  ;;  %v6194_v15 = vld [vmem:[%s10310_s0 + $0x58] sm:$0xff]   ;;  %v6195_v16 = vld [vmem:[%s10310_s0 + $0x60] sm:$0xff]  }
  0x19   :  { %6045 = vmatprep.mubr.msk.bf16.mxu0 %vm274_vm1, %v6185_v4  ;;  %6106 = vmatpush3.bf16.msra.mxu1 %v6215_v13  ;;  %v6196_v17 = vld [vmem:[%s10310_s0 + $0x68] sm:$0xff]   ;;  %v6197_v18 = vld [vmem:[%s10310_s0 + $0x70] sm:$0xff]   ;;  %v6198_v19 = vld [vmem:[%s10310_s0 + $0x78] sm:$0xff]  }
  0x1a   :  { %6107 = vmatprep.subr.bf16.mxu1 %v6216_v14  ;;  %v6199_v20 = vld [vmem:[%s10310_s0 + $0x80] sm:$0xff]   ;;  %v6200_v21 = vld [vmem:[%s10310_s0 + $0x88] sm:$0xff]   ;;  %v6201_v22 = vld [vmem:[%s10310_s0 + $0x90] sm:$0xff]  }
  0x1b   :  { %v6202_v23 = vld [vmem:[%s10310_s0 + $0x98] sm:$0xff]   ;;  %v6203_v24 = vld [vmem:[%s10310_s0 + $0xa0] sm:$0xff]   ;;  %v6204_v25 = vld [vmem:[%s10310_s0 + $0xa8] sm:$0xff]  }
  0x1c   :  { %v6205_v26 = vld [vmem:[%s10310_s0 + $0xb0] sm:$0xff]   ;;  %v6206_v27 = vld [vmem:[%s10310_s0 + $0xb8] sm:$0xff]   ;;  %v6207_v29 = vld [vmem:[%s10310_s0 + $0xc0] sm:$0xff]  }
  0x1d   :  { %6108 = vmatpush3.bf16.msra.mxu1 %v6216_v14  ;;  %v6217_v28 = vld [vmem:[%s10313_s3 + $0x10] sm:$0xff]   ;;  %v6218_v30 = vld [vmem:[%s10313_s3 + $0x18] sm:$0xff]   ;;  %v6208_v31 = vld [vmem:[%s10310_s0 + $0xc8] sm:$0xff]  }
  0x1e   :  { %6109 = vmatprep.subr.bf16.mxu1 %v6217_v28  ;;  %v6209_v32 = vld [vmem:[%s10310_s0 + $0xd0] sm:$0xff]   ;;  %v6210_v33 = vld [vmem:[%s10310_s0 + $0xd8] sm:$0xff]   ;;  %v6211_v34 = vld [vmem:[%s10310_s0 + $0xe0] sm:$0xff]  }
  0x1f   :  { %v1281_v35 = vld [vmem:[#allocation2] sm:$0xff]  ;;  %v1282_v37 = vld [vmem:[#allocation2 + $0x8] sm:$0xff]  ;;  %v6213_v44 = vld [vmem:[%s10310_s0 + $0xf0] sm:$0xff]  }
  0x20   :  { %6046 = vmatmul.mubr.msk.bf16.gmra.mrb[4].mxu0 %vm274_vm1, %v6186_v5  ;;  %v1285_v36 = vld [vmem:[#allocation2 + $0x20] sm:$0xff]  ;;  %v1286_v39 = vld [vmem:[#allocation2 + $0x28] sm:$0xff]  ;;  %v6214_v45 = vld [vmem:[%s10310_s0 + $0xf8] sm:$0xff]  }
  0x21   :  { %6049 = vmatprep.mubr.msk.bf16.mxu0 %vm274_vm1, %v6187_v6  ;;  %6110 = vmatpush3.bf16.msra.mxu1 %v6217_v28  ;;  %v6457_v38 = vcombine.high %v1281_v35, %v1285_v36  ;;  %v6460_v40 = vcombine.high %v1282_v37, %v1286_v39  ;;  %v6463_v41 = vcombine.low %v1281_v35, %v1285_v36  ;;  %v6212_v43 = vld [vmem:[%s10310_s0 + $0xe8] sm:$0xff]   ;;  %v1289_v46 = vld [vmem:[#allocation2 + $0x40] sm:$0xff] }
  0x22   :  { %6111 = vmatprep.subr.bf16.mxu1 %v6218_v30  ;;  %v6465_v42 = vcombine.low %v1282_v37, %v1286_v39  ;;  %v1293_v47 = vld [vmem:[#allocation2 + $0x60] sm:$0xff] }
  0x23   :  { %1665 = vmatprep.subr.bf16.mxu0 %v6457_v38  ;;  %v6481_v48 = vcombine.high %v1289_v46, %v1293_v47  ;;  %v6484_v49 = vcombine.low %v1289_v46, %v1293_v47  ;;  %v1297_v50 = vld [vmem:[#allocation2 + $0x80] sm:$0xff] }
  0x24   :  { %1666 = vmatpush1.bf16.msra.mxu0 %v6463_v41  ;;  %v1301_v51 = vld [vmem:[#allocation2 + $0xa0] sm:$0xff] }
  0x25   :  { %6112 = vmatpush3.bf16.msra.mxu1 %v6218_v30  ;;  %1667 = vmatprep.subr.bf16.mxu0 %v6481_v48  ;;  %10726 = vst [vmem:[#allocation8_spill] sm:$0xff] %v6484_v49  ;;  %v6487_v52 = vcombine.high %v1297_v50, %v1301_v51  ;;  %v6490_v53 = vcombine.low %v1297_v50, %v1301_v51  ;;  %v1305_v54 = vld [vmem:[#allocation2 + $0xc0] sm:$0xff]  ;;  %v1306_v50 = vld [vmem:[#allocation2 + $0xc8] sm:$0xff] }
  0x26   :  { %1718 = vmatprep.subr.bf16.mxu1 %v6460_v40  ;;  %v1309_v55 = vld [vmem:[#allocation2 + $0xe0] sm:$0xff]  ;;  %v1310_v51 = vld [vmem:[#allocation2 + $0xe8] sm:$0xff] }
  0x27   :  { %10727 = vst [vmem:[#allocation9_spill] sm:$0xff] %v6487_v52  ;;  %10728 = vst [vmem:[#allocation10_spill] sm:$0xff] %v6490_v53  ;;  %v6493_v56 = vcombine.high %v1305_v54, %v1309_v55  ;;  %v6496_v57 = vcombine.low %v1305_v54, %v1309_v55  ;;  %v1313_v58 = vld [vmem:[#allocation2 + $0x100] sm:$0xff] }
  0x28   :  { %6050 = vmatmul.mubr.msk.bf16.gmra.mrb[8].mxu0 %vm274_vm1, %v6188_v7  ;;  %v1317_v59 = vld [vmem:[#allocation2 + $0x120] sm:$0xff] }
  0x29   :  { %6053 = vmatprep.mubr.msk.bf16.mxu0 %vm274_vm1, %v6189_v8  ;;  %1668 = vmatpush1.bf16.msra.mxu0 %v6484_v49  ;;  %10729 = vst [vmem:[#allocation11_spill] sm:$0xff] %v6493_v56  ;;  %10730 = vst [vmem:[#allocation12_spill] sm:$0xff] %v6496_v57  ;;  %v6499_v60 = vcombine.high %v1313_v58, %v1317_v59  ;;  %v6502_v61 = vcombine.low %v1313_v58, %v1317_v59  ;;  %v1321_v62 = vld [vmem:[#allocation2 + $0x140] sm:$0xff] }
  0x2a   :  { %1669 = vmatprep.subr.bf16.mxu0 %v6487_v52  ;;  %v1325_v63 = vld [vmem:[#allocation2 + $0x160] sm:$0xff] }
  0x2b   :  { %10731 = vst [vmem:[#allocation13_spill] sm:$0xff] %v6499_v60  ;;  %10732 = vst [vmem:[#allocation14_spill] sm:$0xff] %v6502_v61  ;;  %v6505_v0 = vcombine.high %v1321_v62, %v1325_v63  ;;  %v6508_v1 = vcombine.low %v1321_v62, %v1325_v63  ;;  %v1329_v2 = vld [vmem:[#allocation2 + $0x180] sm:$0xff] }
  0x2c   :  { %v1333_v3 = vld [vmem:[#allocation2 + $0x1a0] sm:$0xff] }
  0x2d   :  { %1670 = vmatpush1.bf16.msra.mxu0 %v6490_v53  ;;  %10733 = vst [vmem:[#allocation15_spill] sm:$0xff] %v6505_v0  ;;  %10734 = vst [vmem:[#allocation16_spill] sm:$0xff] %v6508_v1  ;;  %v6511_v4 = vcombine.high %v1329_v2, %v1333_v3  ;;  %v6514_v5 = vcombine.low %v1329_v2, %v1333_v3  ;;  %v6520_v6 = vld [vmem:[%s10312_s2] ss:$0 sm:$0xff]  ;;  %v6551_v2 = vcombine.high %v1306_v50, %v1310_v51 }
  0x2e   :  { %1671 = vmatprep.subr.bf16.mxu0 %v6493_v56  ;;  %v1337_v8 = vld [vmem:[#allocation2 + $0x1c0] sm:$0xff] }
  0x2f   :  { %10735 = vst [vmem:[#allocation17_spill] sm:$0xff] %v6511_v4  ;;  %10736 = vst [vmem:[#allocation18_spill] sm:$0xff] %v6514_v5 }
  0x30   :  { %6054 = vmatmul.mubr.msk.bf16.gmra.mrb[12].mxu0 %vm274_vm1, %v6190_v9  ;;  %v1341_v9 = vld [vmem:[#allocation2 + $0x1e0] sm:$0xff]  ;;  %10743 = vst [vmem:[#allocation25_spill] sm:$0xff] %v6551_v2 }
  0x31   :  { %6057 = vmatprep.mubr.msk.bf16.mxu0 %vm274_vm1, %v6191_v10  ;;  %1672 = vmatpush1.bf16.msra.mxu0 %v6496_v57 }
  0x32   :  { %1673 = vmatprep.subr.bf16.mxu0 %v6499_v60 }
  0x35   :  { %1674 = vmatpush1.bf16.msra.mxu0 %v6502_v61 }
  0x36   :  { %1675 = vmatprep.subr.bf16.mxu0 %v6505_v0 }
  0x38   :  { %6058 = vmatmul.mubr.msk.bf16.gmra.mrb[16].mxu0 %vm274_vm1, %v6192_v11 }
  0x39   :  { %6061 = vmatprep.mubr.msk.bf16.mxu0 %vm274_vm1, %v6193_v12  ;;  %1676 = vmatpush1.bf16.msra.mxu0 %v6508_v1  ;;  %v6523_v12 = vcombine.high %v1337_v8, %v1341_v9 }
  0x3a   :  { %1677 = vmatprep.subr.bf16.mxu0 %v6511_v4 }
  0x3b   :  { %10737 = vst [vmem:[#allocation19_spill] sm:$0xff] %v6523_v12 }
  0x3d   :  { %1678 = vmatpush1.bf16.msra.mxu0 %v6514_v5 }
  0x3e   :  { %1679 = vmatprep.subr.bf16.mxu0 %v6523_v12 }
  0x40   :  { %6062 = vmatmul.mubr.msk.bf16.gmra.mrb[20].mxu0 %vm274_vm1, %v6194_v15  ;;  %v6526_v15 = vcombine.low %v1337_v8, %v1341_v9  ;;  %v1314_v8 = vld [vmem:[#allocation2 + $0x108] sm:$0xff] }
  0x41   :  { %6065 = vmatprep.mubr.msk.bf16.mxu0 %vm274_vm1, %v6195_v16  ;;  %v1318_v9 = vld [vmem:[#allocation2 + $0x128] sm:$0xff] }
  0x42   :  { %10738 = vst [vmem:[#allocation20_spill] sm:$0xff] %v6526_v15  ;;  %1680 = vmatpush1.bf16.msra.mxu0 %v6526_v15 }
  0x48   :  { %6066 = vmatmul.mubr.msk.bf16.gmra.mrb[24].mxu0 %vm274_vm1, %v6196_v17 }
  0x49   :  { %6069 = vmatprep.mubr.msk.bf16.mxu0 %vm274_vm1, %v6197_v18 }
  0x50   :  { %6070 = vmatmul.mubr.msk.bf16.gmra.mrb[28].mxu0 %vm274_vm1, %v6198_v19 }
  0x51   :  { %6073 = vmatprep.mubr.msk.bf16.mxu0 %vm274_vm1, %v6199_v20 }
  0x58   :  { %6074 = vmatmul.mubr.msk.bf16.gmra.mrb[32].mxu0 %vm274_vm1, %v6200_v21 }
  0x59   :  { %6077 = vmatprep.mubr.msk.bf16.mxu0 %vm274_vm1, %v6201_v22 }
  0x60   :  { %6078 = vmatmul.mubr.msk.bf16.gmra.mrb[36].mxu0 %vm274_vm1, %v6202_v23  ;;  %v1290_v23 = vld [vmem:[#allocation2 + $0x48] sm:$0xff] }
  0x61   :  { %6081 = vmatprep.mubr.msk.bf16.mxu0 %vm274_vm1, %v6203_v24  ;;  %v1294_v24 = vld [vmem:[#allocation2 + $0x68] sm:$0xff] }
  0x62   :  { %v6533_v30 = vcombine.high %v1290_v23, %v1294_v24 }
  0x64   :  { %10739 = vst [vmem:[#allocation21_spill] sm:$0xff] %v6533_v30 }
  0x68   :  { %6082 = vmatmul.mubr.msk.bf16.gmra.mrb[40].mxu0 %vm274_vm1, %v6204_v25 }
  0x69   :  { %6085 = vmatprep.mubr.msk.bf16.mxu0 %vm274_vm1, %v6205_v26 }
  0x70   :  { %6086 = vmatmul.mubr.msk.bf16.gmra.mrb[44].mxu0 %vm274_vm1, %v6206_v27 }
  0x71   :  { %6089 = vmatprep.mubr.msk.bf16.mxu0 %vm274_vm1, %v6207_v29 }
  0x78   :  { %6090 = vmatmul.mubr.msk.bf16.gmra.mrb[48].mxu0 %vm274_vm1, %v6208_v31 }
  0x79   :  { %6093 = vmatprep.mubr.msk.bf16.mxu0 %vm274_vm1, %v6209_v32 }
  0x80   :  { %6094 = vmatmul.mubr.msk.bf16.gmra.mrb[52].mxu0 %vm274_vm1, %v6210_v33  ;;  %v1298_v33 = vld [vmem:[#allocation2 + $0x88] sm:$0xff] }
  0x81   :  { %6097 = vmatprep.mubr.msk.bf16.mxu0 %vm274_vm1, %v6211_v34  ;;  %v1302_v34 = vld [vmem:[#allocation2 + $0xa8] sm:$0xff] }
  0x82   :  { %v6544_v46 = vcombine.high %v1298_v33, %v1302_v34  ;;  %v6547_v59 = vcombine.low %v1298_v33, %v1302_v34  ;;  %v1330_v33 = vld [vmem:[#allocation2 + $0x188] sm:$0xff] }
  0x83   :  { %v1334_v34 = vld [vmem:[#allocation2 + $0x1a8] sm:$0xff] }
  0x84   :  { %10741 = vst [vmem:[#allocation23_spill] sm:$0xff] %v6544_v46  ;;  %10742 = vst [vmem:[#allocation24_spill] sm:$0xff] %v6547_v59 }
  0x88   :  { %6098 = vmatmul.mubr.msk.bf16.gmra.mrb[56].mxu0 %vm274_vm1, %v6212_v43 }
  0x89   :  { %6101 = vmatprep.mubr.msk.bf16.mxu0 %vm274_vm1, %v6213_v44  ;;  %v6541_v44 = vcombine.low %v1290_v23, %v1294_v24 }
  0x8b   :  { %10740 = vst [vmem:[#allocation22_spill] sm:$0xff] %v6541_v44 }
  0x90   :  { %6102 = vmatmul.mubr.msk.bf16.gmra.mrb[60].mxu0 %vm274_vm1, %v6214_v45 }
  0xeb   :  { %v6043_v7 = vpop.f32.mrb[0].mxu0 }
  0xec   :  { %v418_v10 = vadd.f32 %v6043_v7, %v6520_v6  ;;  %v409_v11 = vpop.f32.mrb[1].mxu0 }
  0xed   :  { %v410_v13 = vadd.f32 %v6520_v6, %v409_v11  ;;  %v6044_v14 = vpop.f32.mrb[2].mxu0 }
  0xee   :  { %v421_v16 = vadd.f32 %v6044_v14, %v6520_v6  ;;  %v412_v17 = vpop.f32.mrb[3].mxu0  ;;  %v666_v19 = vmax.f32 %v418_v10, 0.0 }
  0xef   :  { %v413_v18 = vadd.f32 %v6520_v6, %v412_v17  ;;  %v664_v21 = vmax.f32 %v410_v13, 0.0  ;;  %v6559_v17 = vcombine.low %v1306_v50, %v1310_v51  ;;  %v6580_v50 = vcombine.high %v1330_v33, %v1334_v34 }
  0xf0   :  { %v667_v20 = vmax.f32 %v421_v16, 0.0 }
  0xf1   :  { %v665_v22 = vmax.f32 %v413_v18, 0.0  ;;  %10744 = vst [vmem:[#allocation26_spill] sm:$0xff] %v6559_v17  ;;  %10749 = vst [vmem:[#allocation31_spill] sm:$0xff] %v6580_v50 }
  0xf2   :  { %v729_v25 = vpack.c.bf16 %v667_v20, %v666_v19  ;;  %v6562_v19 = vcombine.high %v1314_v8, %v1318_v9 }
  0xf3   :  { %v728_v26 = vpack.c.bf16 %v665_v22, %v664_v21  ;;  %v6047_v27 = vpop.f32.mrb[4].mxu0  ;;  %v1322_v21 = vld [vmem:[#allocation2 + $0x148] sm:$0xff] }
  0xf4   :  { %v434_v28 = vadd.f32 %v6047_v27, %v6520_v6  ;;  %v425_v29 = vpop.f32.mrb[5].mxu0  ;;  %10745 = vst [vmem:[#allocation27_spill] sm:$0xff] %v6562_v19  ;;  %v1326_v22 = vld [vmem:[#allocation2 + $0x168] sm:$0xff] }
  0xf5   :  { %6113 = vmatprep.mubr.msk.bf16.mxu1 %vm799_vm2, %v728_v26  ;;  %v426_v31 = vadd.f32 %v6520_v6, %v425_v29  ;;  %v6048_v32 = vpop.f32.mrb[6].mxu0  ;;  %v6565_v26 = vcombine.low %v1314_v8, %v1318_v9  ;;  %v6569_v29 = vcombine.high %v1322_v21, %v1326_v22 }
  0xf6   :  { %6114 = vmatmul.mubr.msk.bf16.vlgmr.msra.gmra.mrb[0].mxu1 %vm799_vm2, %v729_v25  ;;  %v670_v35 = vmax.f32 %v434_v28, 0.0  ;;  %v437_v36 = vadd.f32 %v6048_v32, %v6520_v6  ;;  %v428_v37 = vpop.f32.mrb[7].mxu0 }
  0xf7   :  { %v668_v39 = vmax.f32 %v426_v31, 0.0  ;;  %v429_v43 = vadd.f32 %v6520_v6, %v428_v37  ;;  %1719 = vmatpush1.bf16.msra.mxu1 %v6465_v42  ;;  %10746 = vst [vmem:[#allocation28_spill] sm:$0xff] %v6565_v26  ;;  %10747 = vst [vmem:[#allocation29_spill] sm:$0xff] %v6569_v29 }
  0xf8   :  { %v671_v45 = vmax.f32 %v437_v36, 0.0  ;;  %1720 = vmatprep.subr.bf16.mxu1 %v6533_v30 }
  0xf9   :  { %v669_v47 = vmax.f32 %v429_v43, 0.0 }
  0xfa   :  { %v731_v54 = vpack.c.bf16 %v671_v45, %v670_v35  ;;  %v6577_v45 = vcombine.low %v1322_v21, %v1326_v22 }
  0xfb   :  { %v730_v55 = vpack.c.bf16 %v669_v47, %v668_v39  ;;  %v6051_v58 = vpop.f32.mrb[8].mxu0  ;;  %1721 = vmatpush1.bf16.msra.mxu1 %v6541_v44 }
  0xfc   :  { %v450_v62 = vadd.f32 %v6051_v58, %v6520_v6  ;;  %v441_v63 = vpop.f32.mrb[9].mxu0  ;;  %1722 = vmatprep.subr.bf16.mxu1 %v6544_v46  ;;  %10748 = vst [vmem:[#allocation30_spill] sm:$0xff] %v6577_v45 }
  0xfd   :  { %6117 = vmatprep.mubr.msk.bf16.mxu1 %vm799_vm2, %v730_v55  ;;  %v442_v3 = vadd.f32 %v6520_v6, %v441_v63  ;;  %v6052_v7 = vpop.f32.mrb[10].mxu0  ;;  %v1342_v55 = vld [vmem:[#allocation2 + $0x1e8] sm:$0xff] }
  0xfe   :  { %6118 = vmatmul.mubr.msk.bf16.gmra.mrb[4].mxu1 %vm799_vm2, %v731_v54  ;;  %v674_v10 = vmax.f32 %v450_v62, 0.0  ;;  %v453_v11 = vadd.f32 %v6052_v7, %v6520_v6  ;;  %v444_v13 = vpop.f32.mrb[11].mxu0  ;;  %v1338_v54 = vld [vmem:[#allocation2 + $0x1c8] sm:$0xff] }
  0xff   :  { %v672_v14 = vmax.f32 %v442_v3, 0.0  ;;  %v445_v16 = vadd.f32 %v6520_v6, %v444_v13  ;;  %1723 = vmatpush1.bf16.msra.mxu1 %v6547_v59  ;;  %v6583_v3 = vcombine.low %v1330_v33, %v1334_v34  ;;  %v6587_v9 = vcombine.high %v1338_v54, %v1342_v55 }
 0x100   :  { %v675_v18 = vmax.f32 %v453_v11, 0.0  ;;  %1724 = vmatprep.subr.bf16.mxu1 %v6551_v2  ;;  %v6595_v21 = vcombine.low %v1338_v54, %v1342_v55 }
 0x101   :  { %v673_v20 = vmax.f32 %v445_v16, 0.0  ;;  %10750 = vst [vmem:[#allocation32_spill] sm:$0xff] %v6583_v3  ;;  %10751 = vst [vmem:[#allocation33_spill] sm:$0xff] %v6587_v9 }
 0x102   :  { %v733_v23 = vpack.c.bf16 %v675_v18, %v674_v10  ;;  %10752 = vst [vmem:[#allocation34_spill] sm:$0xff] %v6595_v21 }
 0x103   :  { %v732_v24 = vpack.c.bf16 %v673_v20, %v672_v14  ;;  %v6055_v25 = vpop.f32.mrb[12].mxu0  ;;  %1725 = vmatpush1.bf16.msra.mxu1 %v6559_v17 }
 0x104   :  { %v466_v27 = vadd.f32 %v6055_v25, %v6520_v6  ;;  %v457_v28 = vpop.f32.mrb[13].mxu0  ;;  %1726 = vmatprep.subr.bf16.mxu1 %v6562_v19 }
 0x105   :  { %v458_v31 = vadd.f32 %v6520_v6, %v457_v28  ;;  %v6056_v32 = vpop.f32.mrb[14].mxu0  ;;  %6121 = vmatprep.mubr.msk.bf16.mxu1 %vm799_vm2, %v732_v24 }
 0x106   :  { %v678_v35 = vmax.f32 %v466_v27, 0.0  ;;  %v469_v36 = vadd.f32 %v6056_v32, %v6520_v6  ;;  %v460_v37 = vpop.f32.mrb[15].mxu0  ;;  %6122 = vmatmul.mubr.msk.bf16.gmra.mrb[8].mxu1 %vm799_vm2, %v733_v23 }
 0x107   :  { %v676_v39 = vmax.f32 %v458_v31, 0.0  ;;  %v461_v43 = vadd.f32 %v6520_v6, %v460_v37  ;;  %1727 = vmatpush1.bf16.msra.mxu1 %v6565_v26 }
 0x108   :  { %v679_v47 = vmax.f32 %v469_v36, 0.0  ;;  %1728 = vmatprep.subr.bf16.mxu1 %v6569_v29 }
 0x109   :  { %v677_v51 = vmax.f32 %v461_v43, 0.0 }
 0x10a   :  { %v735_v58 = vpack.c.bf16 %v679_v47, %v678_v35 }
 0x10b   :  { %v734_v62 = vpack.c.bf16 %v677_v51, %v676_v39  ;;  %v6059_v63 = vpop.f32.mrb[16].mxu0  ;;  %1729 = vmatpush1.bf16.msra.mxu1 %v6577_v45 }
 0x10c   :  { %v482_v7 = vadd.f32 %v6059_v63, %v6520_v6  ;;  %v473_v8 = vpop.f32.mrb[17].mxu0  ;;  %1730 = vmatprep.subr.bf16.mxu1 %v6580_v50 }
 0x10d   :  { %v474_v10 = vadd.f32 %v6520_v6, %v473_v8  ;;  %v6060_v11 = vpop.f32.mrb[18].mxu0  ;;  %6125 = vmatprep.mubr.msk.bf16.mxu1 %vm799_vm2, %v734_v62 }
 0x10e   :  { %v682_v13 = vmax.f32 %v482_v7, 0.0  ;;  %v485_v14 = vadd.f32 %v6060_v11, %v6520_v6  ;;  %v476_v16 = vpop.f32.mrb[19].mxu0  ;;  %6126 = vmatmul.mubr.msk.bf16.gmra.mrb[12].mxu1 %vm799_vm2, %v735_v58 }
 0x10f   :  { %v680_v18 = vmax.f32 %v474_v10, 0.0  ;;  %v477_v20 = vadd.f32 %v6520_v6, %v476_v16  ;;  %1731 = vmatpush1.bf16.msra.mxu1 %v6583_v3 }
 0x110   :  { %v683_v22 = vmax.f32 %v485_v14, 0.0  ;;  %1732 = vmatprep.subr.bf16.mxu1 %v6587_v9 }
 0x111   :  { %v681_v23 = vmax.f32 %v477_v20, 0.0 }
 0x112   :  { %v737_v24 = vpack.c.bf16 %v683_v22, %v682_v13 }
 0x113   :  { %v736_v25 = vpack.c.bf16 %v681_v23, %v680_v18  ;;  %v6063_v27 = vpop.f32.mrb[20].mxu0  ;;  %1733 = vmatpush1.bf16.msra.mxu1 %v6595_v21 }
 0x114   :  { %v498_v28 = vadd.f32 %v6063_v27, %v6520_v6  ;;  %v489_v31 = vpop.f32.mrb[21].mxu0 }
 0x115   :  { %v490_v32 = vadd.f32 %v6520_v6, %v489_v31  ;;  %v6064_v33 = vpop.f32.mrb[22].mxu0  ;;  %6129 = vmatprep.mubr.msk.bf16.mxu1 %vm799_vm2, %v736_v25 }
 0x116   :  { %v686_v34 = vmax.f32 %v498_v28, 0.0  ;;  %v501_v35 = vadd.f32 %v6064_v33, %v6520_v6  ;;  %v492_v36 = vpop.f32.mrb[23].mxu0  ;;  %6130 = vmatmul.mubr.msk.bf16.gmra.mrb[16].mxu1 %vm799_vm2, %v737_v24 }
 0x117   :  { %v684_v37 = vmax.f32 %v490_v32, 0.0  ;;  %v493_v39 = vadd.f32 %v6520_v6, %v492_v36 }
 0x118   :  { %v687_v43 = vmax.f32 %v501_v35, 0.0 }
 0x119   :  { %v685_v47 = vmax.f32 %v493_v39, 0.0 }
 0x11a   :  { %v739_v51 = vpack.c.bf16 %v687_v43, %v686_v34 }
 0x11b   :  { %v738_v54 = vpack.c.bf16 %v685_v47, %v684_v37  ;;  %v6067_v55 = vpop.f32.mrb[24].mxu0 }
 0x11c   :  { %v514_v58 = vadd.f32 %v6067_v55, %v6520_v6  ;;  %v505_v62 = vpop.f32.mrb[25].mxu0 }
 0x11d   :  { %v506_v63 = vadd.f32 %v6520_v6, %v505_v62  ;;  %v6068_v7 = vpop.f32.mrb[26].mxu0  ;;  %6133 = vmatprep.mubr.msk.bf16.mxu1 %vm799_vm2, %v738_v54 }
 0x11e   :  { %v690_v8 = vmax.f32 %v514_v58, 0.0  ;;  %v517_v10 = vadd.f32 %v6068_v7, %v6520_v6  ;;  %v508_v11 = vpop.f32.mrb[27].mxu0  ;;  %6134 = vmatmul.mubr.msk.bf16.gmra.mrb[20].mxu1 %vm799_vm2, %v739_v51 }
 0x11f   :  { %v688_v13 = vmax.f32 %v506_v63, 0.0  ;;  %v509_v14 = vadd.f32 %v6520_v6, %v508_v11 }
 0x120   :  { %v691_v16 = vmax.f32 %v517_v10, 0.0 }
 0x121   :  { %v689_v18 = vmax.f32 %v509_v14, 0.0 }
 0x122   :  { %v741_v20 = vpack.c.bf16 %v691_v16, %v690_v8 }
 0x123   :  { %v740_v22 = vpack.c.bf16 %v689_v18, %v688_v13  ;;  %v6071_v23 = vpop.f32.mrb[28].mxu0 }
 0x124   :  { %v530_v24 = vadd.f32 %v6071_v23, %v6520_v6  ;;  %v521_v25 = vpop.f32.mrb[29].mxu0 }
 0x125   :  { %v522_v27 = vadd.f32 %v6520_v6, %v521_v25  ;;  %v6072_v28 = vpop.f32.mrb[30].mxu0  ;;  %6137 = vmatprep.mubr.msk.bf16.mxu1 %vm799_vm2, %v740_v22 }
 0x126   :  { %v694_v31 = vmax.f32 %v530_v24, 0.0  ;;  %v533_v32 = vadd.f32 %v6072_v28, %v6520_v6  ;;  %v524_v33 = vpop.f32.mrb[31].mxu0  ;;  %6138 = vmatmul.mubr.msk.bf16.gmra.mrb[24].mxu1 %vm799_vm2, %v741_v20 }
 0x127   :  { %v692_v34 = vmax.f32 %v522_v27, 0.0  ;;  %v525_v35 = vadd.f32 %v6520_v6, %v524_v33 }
 0x128   :  { %v695_v36 = vmax.f32 %v533_v32, 0.0 }
 0x129   :  { %v693_v37 = vmax.f32 %v525_v35, 0.0 }
 0x12a   :  { %v743_v39 = vpack.c.bf16 %v695_v36, %v694_v31 }
 0x12b   :  { %v742_v43 = vpack.c.bf16 %v693_v37, %v692_v34  ;;  %v6075_v47 = vpop.f32.mrb[32].mxu0 }
 0x12c   :  { %v546_v51 = vadd.f32 %v6075_v47, %v6520_v6  ;;  %v537_v54 = vpop.f32.mrb[33].mxu0 }
 0x12d   :  { %v538_v55 = vadd.f32 %v6520_v6, %v537_v54  ;;  %v6076_v58 = vpop.f32.mrb[34].mxu0  ;;  %6141 = vmatprep.mubr.msk.bf16.mxu1 %vm799_vm2, %v742_v43 }
 0x12e   :  { %v698_v62 = vmax.f32 %v546_v51, 0.0  ;;  %v549_v63 = vadd.f32 %v6076_v58, %v6520_v6  ;;  %v540_v7 = vpop.f32.mrb[35].mxu0  ;;  %6142 = vmatmul.mubr.msk.bf16.gmra.mrb[28].mxu1 %vm799_vm2, %v743_v39 }
 0x12f   :  { %v696_v8 = vmax.f32 %v538_v55, 0.0  ;;  %v541_v10 = vadd.f32 %v6520_v6, %v540_v7 }
 0x130   :  { %v699_v11 = vmax.f32 %v549_v63, 0.0 }
 0x131   :  { %v697_v13 = vmax.f32 %v541_v10, 0.0 }
 0x132   :  { %v745_v14 = vpack.c.bf16 %v699_v11, %v698_v62 }
 0x133   :  { %v744_v16 = vpack.c.bf16 %v697_v13, %v696_v8  ;;  %v6079_v18 = vpop.f32.mrb[36].mxu0 }
 0x134   :  { %v562_v20 = vadd.f32 %v6079_v18, %v6520_v6  ;;  %v553_v22 = vpop.f32.mrb[37].mxu0 }
 0x135   :  { %v554_v23 = vadd.f32 %v6520_v6, %v553_v22  ;;  %v6080_v24 = vpop.f32.mrb[38].mxu0  ;;  %6145 = vmatprep.mubr.msk.bf16.mxu1 %vm799_vm2, %v744_v16 }
 0x136   :  { %v702_v25 = vmax.f32 %v562_v20, 0.0  ;;  %v565_v27 = vadd.f32 %v6080_v24, %v6520_v6  ;;  %v556_v28 = vpop.f32.mrb[39].mxu0  ;;  %6146 = vmatmul.mubr.msk.bf16.gmra.mrb[32].mxu1 %vm799_vm2, %v745_v14 }
 0x137   :  { %v700_v31 = vmax.f32 %v554_v23, 0.0  ;;  %v557_v32 = vadd.f32 %v6520_v6, %v556_v28 }
 0x138   :  { %v703_v33 = vmax.f32 %v565_v27, 0.0 }
 0x139   :  { %v701_v34 = vmax.f32 %v557_v32, 0.0 }
 0x13a   :  { %v747_v35 = vpack.c.bf16 %v703_v33, %v702_v25 }
 0x13b   :  { %v746_v36 = vpack.c.bf16 %v701_v34, %v700_v31  ;;  %v6083_v37 = vpop.f32.mrb[40].mxu0 }
 0x13c   :  { %v578_v39 = vadd.f32 %v6083_v37, %v6520_v6  ;;  %v569_v43 = vpop.f32.mrb[41].mxu0 }
 0x13d   :  { %v570_v47 = vadd.f32 %v6520_v6, %v569_v43  ;;  %v6084_v51 = vpop.f32.mrb[42].mxu0  ;;  %6149 = vmatprep.mubr.msk.bf16.mxu1 %vm799_vm2, %v746_v36 }
 0x13e   :  { %v706_v54 = vmax.f32 %v578_v39, 0.0  ;;  %v581_v55 = vadd.f32 %v6084_v51, %v6520_v6  ;;  %v572_v58 = vpop.f32.mrb[43].mxu0  ;;  %6150 = vmatmul.mubr.msk.bf16.gmra.mrb[36].mxu1 %vm799_vm2, %v747_v35 }
 0x13f   :  { %v704_v62 = vmax.f32 %v570_v47, 0.0  ;;  %v573_v63 = vadd.f32 %v6520_v6, %v572_v58  ;;  %v1283_v58 = vld [vmem:[#allocation2 + $0x10] sm:$0xff] }
 0x140   :  { %v707_v7 = vmax.f32 %v581_v55, 0.0 }
 0x141   :  { %v705_v8 = vmax.f32 %v573_v63, 0.0  ;;  %v1284_v63 = vld [vmem:[#allocation2 + $0x18] sm:$0xff] }
 0x142   :  { %v749_v10 = vpack.c.bf16 %v707_v7, %v706_v54 }
 0x143   :  { %v748_v11 = vpack.c.bf16 %v705_v8, %v704_v62  ;;  %v6087_v13 = vpop.f32.mrb[44].mxu0  ;;  %v1287_v62 = vld [vmem:[#allocation2 + $0x30] sm:$0xff] }
 0x144   :  { %v594_v14 = vadd.f32 %v6087_v13, %v6520_v6  ;;  %v585_v16 = vpop.f32.mrb[45].mxu0  ;;  %v6647_v8 = vcombine.high %v1283_v58, %v1287_v62 }
 0x145   :  { %v586_v18 = vadd.f32 %v6520_v6, %v585_v16  ;;  %v6088_v20 = vpop.f32.mrb[46].mxu0  ;;  %6153 = vmatprep.mubr.msk.bf16.mxu1 %vm799_vm2, %v748_v11 }
 0x146   :  { %v710_v22 = vmax.f32 %v594_v14, 0.0  ;;  %v597_v23 = vadd.f32 %v6088_v20, %v6520_v6  ;;  %v588_v24 = vpop.f32.mrb[47].mxu0  ;;  %6154 = vmatmul.mubr.msk.bf16.gmra.mrb[40].mxu1 %vm799_vm2, %v749_v10  ;;  %10753 = vst [vmem:[#allocation35_spill] sm:$0xff] %v6647_v8  ;;  %v1288_v10 = vld [vmem:[#allocation2 + $0x38] sm:$0xff]  ;;  %v6651_v14 = vcombine.low %v1283_v58, %v1287_v62  ;;  %1771 = vmatprep.subr.bf16.mxu0 %v6647_v8 }
 0x147   :  { %v708_v25 = vmax.f32 %v586_v18, 0.0  ;;  %v589_v27 = vadd.f32 %v6520_v6, %v588_v24  ;;  %v6649_v13 = vcombine.high %v1284_v63, %v1288_v10  ;;  %v10318_v18 = vmov 0  }
 0x148   :  { %v711_v28 = vmax.f32 %v597_v23, 0.0  ;;  %10755 = vst [vmem:[#allocation37_spill] sm:$0xff] %v6651_v14  ;;  %1697 = vmatprep.mubr.bf16.mxu0 %v10318_v18  ;;  %v6655_v20 = vcombine.low %v1284_v63, %v1288_v10 }
 0x149   :  { %v709_v31 = vmax.f32 %v589_v27, 0.0  ;;  %10754 = vst [vmem:[#allocation36_spill] sm:$0xff] %v6649_v13  ;;  %1824 = vmatprep.subr.bf16.mxu1 %v6649_v13 }
 0x14a   :  { %v751_v32 = vpack.c.bf16 %v711_v28, %v710_v22  ;;  %10756 = vst [vmem:[#allocation38_spill] sm:$0xff] %v6655_v20 }
 0x14b   :  { %v750_v33 = vpack.c.bf16 %v709_v31, %v708_v25  ;;  %v6091_v34 = vpop.f32.mrb[48].mxu0 }
 0x14c   :  { %v610_v35 = vadd.f32 %v6091_v34, %v6520_v6  ;;  %v601_v36 = vpop.f32.mrb[49].mxu0 }
 0x14d   :  { %v602_v37 = vadd.f32 %v6520_v6, %v601_v36  ;;  %v6092_v39 = vpop.f32.mrb[50].mxu0  ;;  %6157 = vmatprep.mubr.msk.bf16.mxu1 %vm799_vm2, %v750_v33 }
 0x14e   :  { %v714_v43 = vmax.f32 %v610_v35, 0.0  ;;  %v613_v47 = vadd.f32 %v6092_v39, %v6520_v6  ;;  %v604_v51 = vpop.f32.mrb[51].mxu0  ;;  %6158 = vmatmul.mubr.msk.bf16.gmra.mrb[44].mxu1 %vm799_vm2, %v751_v32 }
 0x14f   :  { %v712_v54 = vmax.f32 %v602_v37, 0.0  ;;  %v605_v55 = vadd.f32 %v6520_v6, %v604_v51 }
 0x150   :  { %v715_v7 = vmax.f32 %v613_v47, 0.0 }
 0x151   :  { %v713_v11 = vmax.f32 %v605_v55, 0.0 }
 0x152   :  { %v753_v16 = vpack.c.bf16 %v715_v7, %v714_v43 }
 0x153   :  { %v752_v22 = vpack.c.bf16 %v713_v11, %v712_v54  ;;  %v6095_v23 = vpop.f32.mrb[52].mxu0 }
 0x154   :  { %v626_v24 = vadd.f32 %v6095_v23, %v6520_v6  ;;  %v617_v25 = vpop.f32.mrb[53].mxu0 }
 0x155   :  { %v618_v27 = vadd.f32 %v6520_v6, %v617_v25  ;;  %v6096_v28 = vpop.f32.mrb[54].mxu0  ;;  %6161 = vmatprep.mubr.msk.bf16.mxu1 %vm799_vm2, %v752_v22 }
 0x156   :  { %v718_v31 = vmax.f32 %v626_v24, 0.0  ;;  %v629_v32 = vadd.f32 %v6096_v28, %v6520_v6  ;;  %v620_v33 = vpop.f32.mrb[55].mxu0  ;;  %6162 = vmatmul.mubr.msk.bf16.gmra.mrb[48].mxu1 %vm799_vm2, %v753_v16 }
 0x157   :  { %v716_v34 = vmax.f32 %v618_v27, 0.0  ;;  %v621_v35 = vadd.f32 %v6520_v6, %v620_v33 }
 0x158   :  { %v719_v36 = vmax.f32 %v629_v32, 0.0 }
 0x159   :  { %v717_v37 = vmax.f32 %v621_v35, 0.0 }
 0x15a   :  { %v755_v39 = vpack.c.bf16 %v719_v36, %v718_v31 }
 0x15b   :  { %v754_v43 = vpack.c.bf16 %v717_v37, %v716_v34  ;;  %v6099_v47 = vpop.f32.mrb[56].mxu0 }
 0x15c   :  { %v642_v51 = vadd.f32 %v6099_v47, %v6520_v6  ;;  %v633_v54 = vpop.f32.mrb[57].mxu0 }
 0x15d   :  { %v634_v55 = vadd.f32 %v6520_v6, %v633_v54  ;;  %v6100_v58 = vpop.f32.mrb[58].mxu0  ;;  %6165 = vmatprep.mubr.msk.bf16.mxu1 %vm799_vm2, %v754_v43  ;;  %v6682_v54 = vld [vmem:[%s10314_s4] ss:$0 sm:$0xff] }
 0x15e   :  { %v722_v62 = vmax.f32 %v642_v51, 0.0  ;;  %v645_v63 = vadd.f32 %v6100_v58, %v6520_v6  ;;  %v636_v7 = vpop.f32.mrb[59].mxu0  ;;  %6166 = vmatmul.mubr.msk.bf16.gmra.mrb[52].mxu1 %vm799_vm2, %v755_v39 }
 0x15f   :  { %v720_v10 = vmax.f32 %v634_v55, 0.0  ;;  %v637_v11 = vadd.f32 %v6520_v6, %v636_v7 }
 0x160   :  { %v723_v16 = vmax.f32 %v645_v63, 0.0 }
 0x161   :  { %v721_v22 = vmax.f32 %v637_v11, 0.0 }
 0x162   :  { %v757_v23 = vpack.c.bf16 %v723_v16, %v722_v62  ;;  %v1291_v16 = vld [vmem:[#allocation2 + $0x50] sm:$0xff] }
 0x163   :  { %v756_v24 = vpack.c.bf16 %v721_v22, %v720_v10  ;;  %v6103_v25 = vpop.f32.mrb[60].mxu0 }
 0x164   :  { %v658_v27 = vadd.f32 %v6103_v25, %v6520_v6  ;;  %v649_v28 = vpop.f32.mrb[61].mxu0  ;;  %v1292_v25 = vld [vmem:[#allocation2 + $0x58] sm:$0xff] }
 0x165   :  { %v650_v31 = vadd.f32 %v6520_v6, %v649_v28  ;;  %v6104_v32 = vpop.f32.mrb[62].mxu0  ;;  %6169 = vmatprep.mubr.msk.bf16.mxu1 %vm799_vm2, %v756_v24  ;;  %v1295_v24 = vld [vmem:[#allocation2 + $0x70] sm:$0xff] }
 0x166   :  { %v726_v33 = vmax.f32 %v658_v27, 0.0  ;;  %v661_v34 = vadd.f32 %v6104_v32, %v6520_v6  ;;  %v652_v35 = vpop.f32.mrb[63].mxu0  ;;  %6170 = vmatmul.mubr.msk.bf16.gmra.mrb[56].mxu1 %vm799_vm2, %v757_v23  ;;  %v1296_v27 = vld [vmem:[#allocation2 + $0x78] sm:$0xff] }
 0x167   :  { %v724_v36 = vmax.f32 %v650_v31, 0.0  ;;  %v653_v37 = vadd.f32 %v6520_v6, %v652_v35  ;;  %v6694_v35 = vcombine.high %v1292_v25, %v1296_v27 }
 0x168   :  { %v727_v39 = vmax.f32 %v661_v34, 0.0  ;;  %v6692_v34 = vcombine.high %v1291_v16, %v1295_v24 }
 0x169   :  { %v725_v43 = vmax.f32 %v653_v37, 0.0  ;;  %10758 = vst [vmem:[#allocation40_spill] sm:$0xff] %v6694_v35 }
 0x16a   :  { %v759_v47 = vpack.c.bf16 %v727_v39, %v726_v33  ;;  %10757 = vst [vmem:[#allocation39_spill] sm:$0xff] %v6692_v34  ;;  %v1303_v39 = vld [vmem:[#allocation2 + $0xb0] sm:$0xff] }
 0x16b   :  { %v758_v51 = vpack.c.bf16 %v725_v43, %v724_v36  ;;  %v1299_v36 = vld [vmem:[#allocation2 + $0x90] sm:$0xff]  ;;  %v1300_v43 = vld [vmem:[#allocation2 + $0x98] sm:$0xff] }
 0x16d   :  { %6173 = vmatprep.mubr.msk.bf16.mxu1 %vm799_vm2, %v758_v51 }
 0x16e   :  { %6174 = vmatmul.mubr.msk.bf16.gmra.mrb[60].mxu1 %vm799_vm2, %v759_v47  ;;  %v1304_v47 = vld [vmem:[#allocation2 + $0xb8] sm:$0xff] }
 0x16f   :  { %1750 = vmatprep.mubr.bf16.mxu1 %v10318_v18 }
 0x1c9   :  { %v6115_v55 = vpop.f32.mrb[0].mxu1 }
 0x1ca   :  { %v939_v58 = vadd.f32 %v6115_v55, %v6682_v54  ;;  %v930_v62 = vpop.f32.mrb[1].mxu1 }
 0x1cb   :  { %v931_v6 = vadd.f32 %v6682_v54, %v930_v62  ;;  %v6116_v63 = vpop.f32.mrb[2].mxu1 }
 0x1cc   :  { %v942_v7 = vadd.f32 %v6116_v63, %v6682_v54  ;;  %v933_v10 = vpop.f32.mrb[3].mxu1  ;;  %v1187_v22 = vmax.f32 %v939_v58, 0.0  ;;  %v6704_v63 = vcombine.low %v1292_v25, %v1296_v27  ;;  %v1312_v25 = vld [vmem:[#allocation2 + $0xf8] sm:$0xff] }
 0x1cd   :  { %v934_v11 = vadd.f32 %v6682_v54, %v933_v10  ;;  %v1185_v28 = vmax.f32 %v931_v6, 0.0  ;;  %v6702_v6 = vcombine.low %v1291_v16, %v1295_v24  ;;  %v1311_v16 = vld [vmem:[#allocation2 + $0xf0] sm:$0xff]  ;;  %v1308_v24 = vld [vmem:[#allocation2 + $0xd8] sm:$0xff] }
 0x1ce   :  { %v1188_v23 = vmax.f32 %v942_v7, 0.0  ;;  %10760 = vst [vmem:[#allocation42_spill] sm:$0xff] %v6704_v63 }
 0x1cf   :  { %v1186_v31 = vmax.f32 %v934_v11, 0.0  ;;  %10759 = vst [vmem:[#allocation41_spill] sm:$0xff] %v6702_v6 }
 0x1d0   :  { %v6688_v32 = vpack.c.bf16 %v1188_v23, %v1187_v22  ;;  %v6709_v22 = vcombine.high %v1299_v36, %v1303_v39  ;;  %v6711_v23 = vcombine.high %v1300_v43, %v1304_v47 }
 0x1d1   :  { %v6690_v33 = vpack.c.bf16 %v1186_v31, %v1185_v28  ;;  %v6119_v37 = vpop.f32.mrb[4].mxu1  ;;  %v1307_v28 = vld [vmem:[#allocation2 + $0xd0] sm:$0xff] }
 0x1d2   :  { %v955_v51 = vadd.f32 %v6119_v37, %v6682_v54  ;;  %v946_v55 = vpop.f32.mrb[5].mxu1  ;;  %10761 = vst [vmem:[#allocation43_spill] sm:$0xff] %v6709_v22  ;;  %10762 = vst [vmem:[#allocation44_spill] sm:$0xff] %v6711_v23 }
 0x1d3   :  { %1698 = vmatmul.mubr.bf16.vlgmr.msra.gmra.mrb[64].mxu0 %v6690_v33  ;;  %1751 = vmatmul.mubr.bf16.vlgmr.msra.gmra.mrb[64].mxu1 %v6690_v33  ;;  %v947_v58 = vadd.f32 %v6682_v54, %v946_v55  ;;  %v6120_v62 = vpop.f32.mrb[6].mxu1  ;;  %v6718_v55 = vcombine.low %v1299_v36, %v1303_v39  ;;  %v1320_v36 = vld [vmem:[#allocation2 + $0x138] sm:$0xff] }
 0x1d4   :  { %1772 = vmatpush1.bf16.msra.mxu0 %v6651_v14  ;;  %1825 = vmatpush1.bf16.msra.mxu1 %v6655_v20  ;;  %v1191_v7 = vmax.f32 %v955_v51, 0.0  ;;  %v958_v10 = vadd.f32 %v6120_v62, %v6682_v54  ;;  %v949_v11 = vpop.f32.mrb[7].mxu1  ;;  %v6720_v62 = vcombine.low %v1300_v43, %v1304_v47  ;;  %v1335_v20 = vld [vmem:[#allocation2 + $0x1b0] sm:$0xff] }
 0x1d5   :  { %1773 = vmatprep.subr.bf16.mxu0 %v6692_v34  ;;  %1826 = vmatprep.subr.bf16.mxu1 %v6694_v35  ;;  %v1189_v31 = vmax.f32 %v947_v58, 0.0  ;;  %v950_v37 = vadd.f32 %v6682_v54, %v949_v11  ;;  %10763 = vst [vmem:[#allocation45_spill] sm:$0xff] %v6718_v55  ;;  %v6726_v11 = vcombine.high %v1307_v28, %v1311_v16  ;;  %v1319_v35 = vld [vmem:[#allocation2 + $0x130] sm:$0xff] }
 0x1d6   :  { %1707 = vmatprep.mubr.bf16.mxu0 %v10318_v18  ;;  %1760 = vmatprep.mubr.bf16.mxu1 %v10318_v18  ;;  %v1192_v27 = vmax.f32 %v958_v10, 0.0  ;;  %10764 = vst [vmem:[#allocation46_spill] sm:$0xff] %v6720_v62  ;;  %v6728_v18 = vcombine.high %v1308_v24, %v1312_v25  ;;  %v1315_v10 = vld [vmem:[#allocation2 + $0x110] sm:$0xff] }
 0x1d7   :  { %v1190_v51 = vmax.f32 %v950_v37, 0.0  ;;  %10766 = vst [vmem:[#allocation48_spill] sm:$0xff] %v6726_v11 }
 0x1d8   :  { %1774 = vmatpush1.bf16.msra.mxu0 %v6702_v6  ;;  %1827 = vmatpush1.bf16.msra.mxu1 %v6704_v63  ;;  %v6722_v58 = vpack.c.bf16 %v1192_v27, %v1191_v7  ;;  %10767 = vst [vmem:[#allocation49_spill] sm:$0xff] %v6728_v18  ;;  %v1316_v63 = vld [vmem:[#allocation2 + $0x118] sm:$0xff]  ;;  %v6740_v27 = vcombine.low %v1308_v24, %v1312_v25  ;;  %v10772_v25 = vmov 0  }
 0x1d9   :  { %1775 = vmatprep.subr.bf16.mxu0 %v6709_v22  ;;  %1828 = vmatprep.subr.bf16.mxu1 %v6711_v23  ;;  %v6730_v37 = vpack.c.bf16 %v1190_v51, %v1189_v31  ;;  %v6123_v6 = vpop.f32.mrb[8].mxu1  ;;  %v6738_v31 = vcombine.low %v1307_v28, %v1311_v16  ;;  %v6745_v23 = vcombine.high %v1315_v10, %v1319_v35  ;;  %v1323_v22 = vld [vmem:[#allocation2 + $0x150] sm:$0xff]  ;;  %v1324_v16 = vld [vmem:[#allocation2 + $0x158] sm:$0xff] }
 0x1da   :  { %10765 = vst [vmem:[#allocation47_spill] sm:$0xff] %v6722_v58  ;;  %v971_v39 = vadd.f32 %v6123_v6, %v6682_v54  ;;  %v962_v43 = vpop.f32.mrb[9].mxu1  ;;  %10769 = vst [vmem:[#allocation51_spill] sm:$0xff] %v6740_v27  ;;  %v1327_v28 = vld [vmem:[#allocation2 + $0x170] sm:$0xff]  ;;  %v1328_v24 = vld [vmem:[#allocation2 + $0x178] sm:$0xff] }
 0x1db   :  { %1708 = vmatmul.mubr.bf16.gmra.mrb[68].mxu0 %v6688_v32  ;;  %1761 = vmatmul.mubr.bf16.gmra.mrb[68].mxu1 %v6688_v32  ;;  %v963_v47 = vadd.f32 %v6682_v54, %v962_v43  ;;  %v6124_v7 = vpop.f32.mrb[10].mxu1  ;;  %10768 = vst [vmem:[#allocation50_spill] sm:$0xff] %v6738_v31  ;;  %10770 = vst [vmem:[#allocation52_spill] sm:$0xff] %v6745_v23  ;;  %v6747_v43 = vcombine.high %v1316_v63, %v1320_v36 }
 0x1dc   :  { %1776 = vmatpush1.bf16.msra.mxu0 %v6718_v55  ;;  %1829 = vmatpush1.bf16.msra.mxu1 %v6720_v62  ;;  %v1195_v51 = vmax.f32 %v971_v39, 0.0  ;;  %v974_v58 = vadd.f32 %v6124_v7, %v6682_v54  ;;  %v965_v6 = vpop.f32.mrb[11].mxu1  ;;  %v6764_v34 = vcombine.high %v1324_v16, %v1328_v24 }
 0x1dd   :  { %1777 = vmatprep.subr.bf16.mxu0 %v6726_v11  ;;  %1830 = vmatprep.subr.bf16.mxu1 %v6728_v18  ;;  %10771 = vst [vmem:[#allocation53_spill] sm:$0xff] %v6747_v43  ;;  %v1193_v55 = vmax.f32 %v963_v47, 0.0  ;;  %v966_v62 = vadd.f32 %v6682_v54, %v965_v6  ;;  %v6754_v18 = vcombine.low %v1315_v10, %v1319_v35  ;;  %v1336_v35 = vld [vmem:[#allocation2 + $0x1b8] sm:$0xff] }
 0x1de   :  { %1803 = vmatprep.mubr.bf16.mxu0 %v10772_v25  ;;  %1856 = vmatprep.mubr.bf16.mxu1 %v10772_v25  ;;  %v1196_v39 = vmax.f32 %v974_v58, 0.0  ;;  %v6756_v11 = vcombine.low %v1316_v63, %v1320_v36  ;;  %v6762_v6 = vcombine.high %v1323_v22, %v1327_v28  ;;  %10777 = vst [vmem:[#allocation58_spill] sm:$0xff] %v6764_v34  ;;  %v1331_v58 = vld [vmem:[#allocation2 + $0x190] sm:$0xff] }
 0x1df   :  { %v1194_v7 = vmax.f32 %v966_v62, 0.0  ;;  %10773 = vst [vmem:[#allocation54_spill] sm:$0xff] %v6754_v18 }
 0x1e0   :  { %1778 = vmatpush1.bf16.msra.mxu0 %v6738_v31  ;;  %1831 = vmatpush1.bf16.msra.mxu1 %v6740_v27  ;;  %10774 = vst [vmem:[#allocation55_spill] sm:$0xff] %v6756_v11  ;;  %v6758_v47 = vpack.c.bf16 %v1196_v39, %v1195_v51  ;;  %10776 = vst [vmem:[#allocation57_spill] sm:$0xff] %v6762_v6  ;;  %v1332_v27 = vld [vmem:[#allocation2 + $0x198] sm:$0xff]  ;;  %v6772_v39 = vcombine.low %v1323_v22, %v1327_v28  ;;  %v1343_v22 = vld [vmem:[#allocation2 + $0x1f0] sm:$0xff] }
 0x1e1   :  { %1779 = vmatprep.subr.bf16.mxu0 %v6745_v23  ;;  %1832 = vmatprep.subr.bf16.mxu1 %v6747_v43  ;;  %v6766_v62 = vpack.c.bf16 %v1194_v7, %v1193_v55  ;;  %v6127_v31 = vpop.f32.mrb[12].mxu1  ;;  %v1339_v43 = vld [vmem:[#allocation2 + $0x1d0] sm:$0xff]  ;;  %v1340_v28 = vld [vmem:[#allocation2 + $0x1d8] sm:$0xff] }
 0x1e2   :  { %10775 = vst [vmem:[#allocation56_spill] sm:$0xff] %v6758_v47  ;;  %v987_v63 = vadd.f32 %v6127_v31, %v6682_v54  ;;  %v978_v10 = vpop.f32.mrb[13].mxu1  ;;  %10779 = vst [vmem:[#allocation60_spill] sm:$0xff] %v6772_v39  ;;  %v6774_v47 = vcombine.low %v1324_v16, %v1328_v24  ;;  %v6779_v31 = vcombine.high %v1331_v58, %v1335_v20  ;;  %v1344_v16 = vld [vmem:[#allocation2 + $0x1f8] sm:$0xff] }
 0x1e3   :  { %10778 = vst [vmem:[#allocation59_spill] sm:$0xff] %v6766_v62  ;;  %v979_v36 = vadd.f32 %v6682_v54, %v978_v10  ;;  %v6128_v51 = vpop.f32.mrb[14].mxu1  ;;  %v6781_v10 = vcombine.high %v1332_v27, %v1336_v35 }
 0x1e4   :  { %1780 = vmatpush1.bf16.msra.mxu0 %v6754_v18  ;;  %1833 = vmatpush1.bf16.msra.mxu1 %v6756_v11  ;;  %10780 = vst [vmem:[#allocation61_spill] sm:$0xff] %v6774_v47  ;;  %v1199_v55 = vmax.f32 %v987_v63, 0.0  ;;  %v990_v7 = vadd.f32 %v6128_v51, %v6682_v54  ;;  %v981_v62 = vpop.f32.mrb[15].mxu1  ;;  %v6786_v51 = vcombine.low %v1331_v58, %v1335_v20 }
 0x1e5   :  { %1781 = vmatprep.subr.bf16.mxu0 %v6762_v6  ;;  %1834 = vmatprep.subr.bf16.mxu1 %v6764_v34  ;;  %10781 = vst [vmem:[#allocation62_spill] sm:$0xff] %v6781_v10  ;;  %v1197_v18 = vmax.f32 %v979_v36, 0.0  ;;  %v982_v11 = vadd.f32 %v6682_v54, %v981_v62  ;;  %v6788_v34 = vcombine.low %v1332_v27, %v1336_v35 }
 0x1e6   :  { %v1200_v24 = vmax.f32 %v990_v7, 0.0  ;;  %10782 = vst [vmem:[#allocation63_spill] sm:$0xff] %v6786_v51  ;;  %v6794_v62 = vcombine.high %v1339_v43, %v1343_v22  ;;  %v6796_v36 = vcombine.high %v1340_v28, %v1344_v16  ;;  %v6804_v58 = vcombine.low %v1339_v43, %v1343_v22 }
 0x1e7   :  { %v1198_v63 = vmax.f32 %v982_v11, 0.0  ;;  %10783 = vst [vmem:[#allocation64_spill] sm:$0xff] %v6788_v34  ;;  %v6806_v35 = vcombine.low %v1340_v28, %v1344_v16 }
 0x1e8   :  { %1782 = vmatpush1.bf16.msra.mxu0 %v6772_v39  ;;  %1835 = vmatpush1.bf16.msra.mxu1 %v6774_v47  ;;  %v6790_v6 = vpack.c.bf16 %v1200_v24, %v1199_v55  ;;  %10785 = vst [vmem:[#allocation66_spill] sm:$0xff] %v6794_v62  ;;  %10786 = vst [vmem:[#allocation67_spill] sm:$0xff] %v6796_v36 }
 0x1e9   :  { %1783 = vmatprep.subr.bf16.mxu0 %v6779_v31  ;;  %1836 = vmatprep.subr.bf16.mxu1 %v6781_v10  ;;  %v6798_v7 = vpack.c.bf16 %v1198_v63, %v1197_v18  ;;  %v6131_v11 = vpop.f32.mrb[16].mxu1  ;;  %10788 = vst [vmem:[#allocation69_spill] sm:$0xff] %v6806_v35 }
 0x1ea   :  { %10784 = vst [vmem:[#allocation65_spill] sm:$0xff] %v6790_v6  ;;  %v1003_v39 = vadd.f32 %v6131_v11, %v6682_v54  ;;  %v994_v47 = vpop.f32.mrb[17].mxu1 }
 0x1eb   :  { %10787 = vst [vmem:[#allocation68_spill] sm:$0xff] %v6798_v7  ;;  %v995_v20 = vadd.f32 %v6682_v54, %v994_v47  ;;  %v6132_v27 = vpop.f32.mrb[18].mxu1 }
 0x1ec   :  { %1784 = vmatpush1.bf16.msra.mxu0 %v6786_v51  ;;  %1837 = vmatpush1.bf16.msra.mxu1 %v6788_v34  ;;  %v1203_v55 = vmax.f32 %v1003_v39, 0.0  ;;  %v1006_v24 = vadd.f32 %v6132_v27, %v6682_v54  ;;  %v997_v18 = vpop.f32.mrb[19].mxu1 }
 0x1ed   :  { %1785 = vmatprep.subr.bf16.mxu0 %v6794_v62  ;;  %1838 = vmatprep.subr.bf16.mxu1 %v6796_v36  ;;  %v1201_v63 = vmax.f32 %v995_v20, 0.0  ;;  %v998_v47 = vadd.f32 %v6682_v54, %v997_v18 }
 0x1ee   :  { %v1204_v11 = vmax.f32 %v1006_v24, 0.0 }
 0x1ef   :  { %v1202_v6 = vmax.f32 %v998_v47, 0.0 }
 0x1f0   :  { %1786 = vmatpush1.bf16.msra.mxu0 %v6804_v58  ;;  %1839 = vmatpush1.bf16.msra.mxu1 %v6806_v35  ;;  %v6814_v43 = vpack.c.bf16 %v1204_v11, %v1203_v55 }
 0x1f1   :  { %1877 = vmatprep.subr.bf16.mxu0 %v6457_v38  ;;  %1930 = vmatprep.subr.bf16.mxu1 %v6460_v40  ;;  %v6818_v39 = vpack.c.bf16 %v1202_v6, %v1201_v63  ;;  %v6135_v22 = vpop.f32.mrb[20].mxu1 }
 0x1f2   :  { %10789 = vst [vmem:[#allocation70_spill] sm:$0xff] %v6814_v43  ;;  %v1019_v28 = vadd.f32 %v6135_v22, %v6682_v54  ;;  %v1010_v16 = vpop.f32.mrb[21].mxu1  ;;  %v10803_v43 = vld [vmem:[#allocation42_spill] sm:$0xff] }
 0x1f3   :  { %10790 = vst [vmem:[#allocation71_spill] sm:$0xff] %v6818_v39  ;;  %1804 = vmatmul.mubr.bf16.vlgmr.msra.gmra.mrb[72].mxu0 %v6690_v33  ;;  %1857 = vmatmul.mubr.bf16.vlgmr.msra.gmra.mrb[72].mxu1 %v6690_v33  ;;  %v1011_v20 = vadd.f32 %v6682_v54, %v1010_v16  ;;  %v6136_v27 = vpop.f32.mrb[22].mxu1  ;;  %v10806_v39 = vld [vmem:[#allocation44_spill] sm:$0xff] }
 0x1f4   :  { %1878 = vmatpush1.bf16.msra.mxu0 %v6463_v41  ;;  %1931 = vmatpush1.bf16.msra.mxu1 %v6465_v42  ;;  %v1207_v55 = vmax.f32 %v1019_v28, 0.0  ;;  %v1022_v24 = vadd.f32 %v6136_v27, %v6682_v54  ;;  %v1013_v6 = vpop.f32.mrb[23].mxu1 }
 0x1f5   :  { %1879 = vmatprep.subr.bf16.mxu0 %v6481_v48  ;;  %1932 = vmatprep.subr.bf16.mxu1 %v6533_v30  ;;  %v1205_v18 = vmax.f32 %v1011_v20, 0.0  ;;  %v1014_v63 = vadd.f32 %v6682_v54, %v1013_v6 }
 0x1f6   :  { %1813 = vmatprep.mubr.bf16.mxu0 %v10772_v25  ;;  %1866 = vmatprep.mubr.bf16.mxu1 %v10772_v25  ;;  %v1208_v33 = vmax.f32 %v1022_v24, 0.0 }
 0x1f7   :  { %v1206_v47 = vmax.f32 %v1014_v63, 0.0 }
 0x1f8   :  { %1880 = vmatpush1.bf16.msra.mxu0 %v6484_v49  ;;  %1933 = vmatpush1.bf16.msra.mxu1 %v6541_v44  ;;  %v6834_v11 = vpack.c.bf16 %v1208_v33, %v1207_v55 }
 0x1f9   :  { %1881 = vmatprep.subr.bf16.mxu0 %v6487_v52  ;;  %1934 = vmatprep.subr.bf16.mxu1 %v6544_v46  ;;  %v6838_v22 = vpack.c.bf16 %v1206_v47, %v1205_v18  ;;  %v6139_v28 = vpop.f32.mrb[24].mxu1 }
 0x1fa   :  { %10791 = vst [vmem:[#allocation72_spill] sm:$0xff] %v6834_v11  ;;  %v1035_v16 = vadd.f32 %v6139_v28, %v6682_v54  ;;  %v1026_v20 = vpop.f32.mrb[25].mxu1 }
 0x1fb   :  { %10792 = vst [vmem:[#allocation73_spill] sm:$0xff] %v6838_v22  ;;  %1814 = vmatmul.mubr.bf16.gmra.mrb[76].mxu0 %v6688_v32  ;;  %1867 = vmatmul.mubr.bf16.gmra.mrb[76].mxu1 %v6688_v32  ;;  %v1027_v27 = vadd.f32 %v6682_v54, %v1026_v20  ;;  %v6140_v24 = vpop.f32.mrb[26].mxu1  ;;  %v10802_v22 = vld [vmem:[#allocation41_spill] sm:$0xff] }
 0x1fc   :  { %1882 = vmatpush1.bf16.msra.mxu0 %v6490_v53  ;;  %1935 = vmatpush1.bf16.msra.mxu1 %v6547_v59  ;;  %v1211_v55 = vmax.f32 %v1035_v16, 0.0  ;;  %v1038_v6 = vadd.f32 %v6140_v24, %v6682_v54  ;;  %v1029_v18 = vpop.f32.mrb[27].mxu1 }
 0x1fd   :  { %1883 = vmatprep.subr.bf16.mxu0 %v6493_v56  ;;  %1936 = vmatprep.subr.bf16.mxu1 %v6551_v2  ;;  %v1209_v63 = vmax.f32 %v1027_v27, 0.0  ;;  %v1030_v33 = vadd.f32 %v6682_v54, %v1029_v18 }
 0x1fe   :  { %1909 = vmatprep.mubr.bf16.mxu0 %v10772_v25  ;;  %1962 = vmatprep.mubr.bf16.mxu1 %v10772_v25  ;;  %v1212_v32 = vmax.f32 %v1038_v6, 0.0 }
 0x1ff   :  { %v1210_v47 = vmax.f32 %v1030_v33, 0.0 }
 0x200   :  { %1884 = vmatpush1.bf16.msra.mxu0 %v6496_v57  ;;  %1937 = vmatpush1.bf16.msra.mxu1 %v6559_v17  ;;  %v6854_v28 = vpack.c.bf16 %v1212_v32, %v1211_v55 }
 0x201   :  { %1885 = vmatprep.subr.bf16.mxu0 %v6499_v60  ;;  %1938 = vmatprep.subr.bf16.mxu1 %v6562_v19  ;;  %v6858_v16 = vpack.c.bf16 %v1210_v47, %v1209_v63  ;;  %v6143_v20 = vpop.f32.mrb[28].mxu1 }
 0x202   :  { %10793 = vst [vmem:[#allocation74_spill] sm:$0xff] %v6854_v28  ;;  %v1051_v27 = vadd.f32 %v6143_v20, %v6682_v54  ;;  %v1042_v24 = vpop.f32.mrb[29].mxu1 }
 0x203   :  { %10794 = vst [vmem:[#allocation75_spill] sm:$0xff] %v6858_v16  ;;  %v1043_v18 = vadd.f32 %v6682_v54, %v1042_v24  ;;  %v6144_v6 = vpop.f32.mrb[30].mxu1 }
 0x204   :  { %1886 = vmatpush1.bf16.msra.mxu0 %v6502_v61  ;;  %1939 = vmatpush1.bf16.msra.mxu1 %v6565_v26  ;;  %v1215_v33 = vmax.f32 %v1051_v27, 0.0  ;;  %v1054_v55 = vadd.f32 %v6144_v6, %v6682_v54  ;;  %v1045_v32 = vpop.f32.mrb[31].mxu1 }
 0x205   :  { %1887 = vmatprep.subr.bf16.mxu0 %v6505_v0  ;;  %1940 = vmatprep.subr.bf16.mxu1 %v6569_v29  ;;  %v1213_v63 = vmax.f32 %v1043_v18, 0.0  ;;  %v1046_v47 = vadd.f32 %v6682_v54, %v1045_v32 }
 0x206   :  { %v1216_v20 = vmax.f32 %v1054_v55, 0.0 }
 0x207   :  { %v1214_v28 = vmax.f32 %v1046_v47, 0.0 }
 0x208   :  { %1888 = vmatpush1.bf16.msra.mxu0 %v6508_v1  ;;  %1941 = vmatpush1.bf16.msra.mxu1 %v6577_v45  ;;  %v6870_v24 = vpack.c.bf16 %v1216_v20, %v1215_v33 }
 0x209   :  { %1889 = vmatprep.subr.bf16.mxu0 %v6511_v4  ;;  %1942 = vmatprep.subr.bf16.mxu1 %v6580_v50  ;;  %v6874_v27 = vpack.c.bf16 %v1214_v28, %v1213_v63  ;;  %v6147_v6 = vpop.f32.mrb[32].mxu1 }
 0x20a   :  { %10795 = vst [vmem:[#allocation76_spill] sm:$0xff] %v6870_v24  ;;  %v1067_v16 = vadd.f32 %v6147_v6, %v6682_v54  ;;  %v1058_v18 = vpop.f32.mrb[33].mxu1 }
 0x20b   :  { %10796 = vst [vmem:[#allocation77_spill] sm:$0xff] %v6874_v27  ;;  %v1059_v32 = vadd.f32 %v6682_v54, %v1058_v18  ;;  %v6148_v55 = vpop.f32.mrb[34].mxu1 }
 0x20c   :  { %1890 = vmatpush1.bf16.msra.mxu0 %v6514_v5  ;;  %1943 = vmatpush1.bf16.msra.mxu1 %v6583_v3  ;;  %v1219_v47 = vmax.f32 %v1067_v16, 0.0  ;;  %v1070_v33 = vadd.f32 %v6148_v55, %v6682_v54  ;;  %v1061_v20 = vpop.f32.mrb[35].mxu1 }
 0x20d   :  { %1891 = vmatprep.subr.bf16.mxu0 %v6523_v12  ;;  %1944 = vmatprep.subr.bf16.mxu1 %v6587_v9  ;;  %v1217_v28 = vmax.f32 %v1059_v32, 0.0  ;;  %v1062_v63 = vadd.f32 %v6682_v54, %v1061_v20 }
 0x20e   :  { %v1220_v6 = vmax.f32 %v1070_v33, 0.0 }
 0x20f   :  { %v1218_v24 = vmax.f32 %v1062_v63, 0.0 }
 0x210   :  { %1892 = vmatpush1.bf16.msra.mxu0 %v6526_v15  ;;  %1945 = vmatpush1.bf16.msra.mxu1 %v6595_v21  ;;  %v6886_v18 = vpack.c.bf16 %v1220_v6, %v1219_v47  ;;  %v10799_v47 = vld [vmem:[#allocation38_spill] sm:$0xff] }
 0x211   :  { %1983 = vmatprep.subr.bf16.mxu0 %v6647_v8  ;;  %2036 = vmatprep.subr.bf16.mxu1 %v6649_v13  ;;  %v6890_v16 = vpack.c.bf16 %v1218_v24, %v1217_v28  ;;  %v6151_v55 = vpop.f32.mrb[36].mxu1  ;;  %v10800_v28 = vld [vmem:[#allocation39_spill] sm:$0xff] }
 0x212   :  { %10797 = vst [vmem:[#allocation78_spill] sm:$0xff] %v6886_v18  ;;  %v1083_v27 = vadd.f32 %v6151_v55, %v6682_v54  ;;  %v1074_v32 = vpop.f32.mrb[37].mxu1  ;;  %v10801_v18 = vld [vmem:[#allocation40_spill] sm:$0xff] }
 0x213   :  { %10798 = vst [vmem:[#allocation79_spill] sm:$0xff] %v6890_v16  ;;  %1910 = vmatmul.mubr.bf16.vlgmr.msra.gmra.mrb[80].mxu0 %v6730_v37  ;;  %1963 = vmatmul.mubr.bf16.vlgmr.msra.gmra.mrb[80].mxu1 %v6730_v37  ;;  %v1075_v33 = vadd.f32 %v6682_v54, %v1074_v32  ;;  %v6152_v20 = vpop.f32.mrb[38].mxu1 }
 0x214   :  { %1984 = vmatpush1.bf16.msra.mxu0 %v6651_v14  ;;  %2037 = vmatpush1.bf16.msra.mxu1 %v10799_v47  ;;  %v1223_v63 = vmax.f32 %v1083_v27, 0.0  ;;  %v1086_v6 = vadd.f32 %v6152_v20, %v6682_v54  ;;  %v1077_v24 = vpop.f32.mrb[39].mxu1  ;;  %v10805_v20 = vld [vmem:[#allocation43_spill] sm:$0xff] }
 0x215   :  { %1985 = vmatprep.subr.bf16.mxu0 %v10800_v28  ;;  %2038 = vmatprep.subr.bf16.mxu1 %v10801_v18  ;;  %v1221_v55 = vmax.f32 %v1075_v33, 0.0  ;;  %v1078_v16 = vadd.f32 %v6682_v54, %v1077_v24  ;;  %v10808_v28 = vld [vmem:[#allocation47_spill] sm:$0xff] }
 0x216   :  { %1919 = vmatprep.mubr.bf16.mxu0 %v10772_v25  ;;  %1972 = vmatprep.mubr.bf16.mxu1 %v10772_v25  ;;  %v1224_v32 = vmax.f32 %v1086_v6, 0.0 }
 0x217   :  { %v1222_v11 = vmax.f32 %v1078_v16, 0.0 }
 0x218   :  { %1986 = vmatpush1.bf16.msra.mxu0 %v10802_v22  ;;  %2039 = vmatpush1.bf16.msra.mxu1 %v10803_v43  ;;  %v6906_v27 = vpack.c.bf16 %v1224_v32, %v1223_v63  ;;  %v10809_v43 = vld [vmem:[#allocation45_spill] sm:$0xff]  ;;  %v10810_v63 = vld [vmem:[#allocation46_spill] sm:$0xff] }
 0x219   :  { %1987 = vmatprep.subr.bf16.mxu0 %v10805_v20  ;;  %2040 = vmatprep.subr.bf16.mxu1 %v10806_v39  ;;  %v6910_v7 = vpack.c.bf16 %v1222_v11, %v1221_v55  ;;  %v6155_v33 = vpop.f32.mrb[40].mxu1  ;;  %v10811_v55 = vld [vmem:[#allocation48_spill] sm:$0xff] }
 0x21a   :  { %10804 = vst [vmem:[#allocation80_spill] sm:$0xff] %v6906_v27  ;;  %v1099_v24 = vadd.f32 %v6155_v33, %v6682_v54  ;;  %v1090_v18 = vpop.f32.mrb[41].mxu1 }
 0x21b   :  { %10807 = vst [vmem:[#allocation81_spill] sm:$0xff] %v6910_v7  ;;  %1920 = vmatmul.mubr.bf16.gmra.mrb[84].mxu0 %v10808_v28  ;;  %1973 = vmatmul.mubr.bf16.gmra.mrb[84].mxu1 %v10808_v28  ;;  %v1091_v16 = vadd.f32 %v6682_v54, %v1090_v18  ;;  %v6156_v6 = vpop.f32.mrb[42].mxu1  ;;  %v10812_v7 = vld [vmem:[#allocation49_spill] sm:$0xff] }
 0x21c   :  { %1988 = vmatpush1.bf16.msra.mxu0 %v10809_v43  ;;  %2041 = vmatpush1.bf16.msra.mxu1 %v10810_v63  ;;  %v1227_v32 = vmax.f32 %v1099_v24, 0.0  ;;  %v1102_v27 = vadd.f32 %v6156_v6, %v6682_v54  ;;  %v1093_v11 = vpop.f32.mrb[43].mxu1  ;;  %v10813_v43 = vld [vmem:[#allocation50_spill] sm:$0xff]  ;;  %v10814_v63 = vld [vmem:[#allocation51_spill] sm:$0xff]  ;;  %v10816_v6 = vld [vmem:[#allocation53_spill] sm:$0xff] }
 0x21d   :  { %1989 = vmatprep.subr.bf16.mxu0 %v10811_v55  ;;  %2042 = vmatprep.subr.bf16.mxu1 %v10812_v7  ;;  %v1225_v33 = vmax.f32 %v1091_v16, 0.0  ;;  %v1094_v39 = vadd.f32 %v6682_v54, %v1093_v11 }
 0x21e   :  { %2015 = vmatprep.mubr.bf16.mxu0 %v10772_v25  ;;  %2068 = vmatprep.mubr.bf16.mxu1 %v10772_v25  ;;  %v1228_v18 = vmax.f32 %v1102_v27, 0.0 }
 0x21f   :  { %v1226_v20 = vmax.f32 %v1094_v39, 0.0  ;;  %v10818_v39 = vld [vmem:[#allocation54_spill] sm:$0xff] }
 0x220   :  { %1990 = vmatpush1.bf16.msra.mxu0 %v10813_v43  ;;  %2043 = vmatpush1.bf16.msra.mxu1 %v10814_v63  ;;  %v6926_v24 = vpack.c.bf16 %v1228_v18, %v1227_v32  ;;  %v10819_v43 = vld [vmem:[#allocation55_spill] sm:$0xff] }
 0x221   :  { %1991 = vmatprep.subr.bf16.mxu0 %v6745_v23  ;;  %2044 = vmatprep.subr.bf16.mxu1 %v10816_v6  ;;  %v6930_v7 = vpack.c.bf16 %v1226_v20, %v1225_v33  ;;  %v6159_v16 = vpop.f32.mrb[44].mxu1  ;;  %v10821_v6 = vld [vmem:[#allocation58_spill] sm:$0xff]  ;;  %v10822_v23 = vld [vmem:[#allocation60_spill] sm:$0xff] }
 0x222   :  { %10815 = vst [vmem:[#allocation47_spill] sm:$0xff] %v6926_v24  ;;  %v1115_v11 = vadd.f32 %v6159_v16, %v6682_v54  ;;  %v1106_v55 = vpop.f32.mrb[45].mxu1  ;;  %v10820_v24 = vld [vmem:[#allocation57_spill] sm:$0xff] }
 0x223   :  { %10817 = vst [vmem:[#allocation82_spill] sm:$0xff] %v6930_v7  ;;  %v1107_v22 = vadd.f32 %v6682_v54, %v1106_v55  ;;  %v6160_v27 = vpop.f32.mrb[46].mxu1  ;;  %v10823_v55 = vld [vmem:[#allocation61_spill] sm:$0xff] }
 0x224   :  { %1992 = vmatpush1.bf16.msra.mxu0 %v10818_v39  ;;  %2045 = vmatpush1.bf16.msra.mxu1 %v10819_v43  ;;  %v1231_v63 = vmax.f32 %v1115_v11, 0.0  ;;  %v1118_v32 = vadd.f32 %v6160_v27, %v6682_v54  ;;  %v1109_v18 = vpop.f32.mrb[47].mxu1 }
 0x225   :  { %1993 = vmatprep.subr.bf16.mxu0 %v10820_v24  ;;  %2046 = vmatprep.subr.bf16.mxu1 %v10821_v6  ;;  %v1229_v20 = vmax.f32 %v1107_v22, 0.0  ;;  %v1110_v33 = vadd.f32 %v6682_v54, %v1109_v18 }
 0x226   :  { %v1232_v16 = vmax.f32 %v1118_v32, 0.0 }
 0x227   :  { %v1230_v7 = vmax.f32 %v1110_v33, 0.0 }
 0x228   :  { %1994 = vmatpush1.bf16.msra.mxu0 %v10822_v23  ;;  %2047 = vmatpush1.bf16.msra.mxu1 %v10823_v55  ;;  %v6942_v39 = vpack.c.bf16 %v1232_v16, %v1231_v63 }
 0x229   :  { %1995 = vmatprep.subr.bf16.mxu0 %v6779_v31  ;;  %2048 = vmatprep.subr.bf16.mxu1 %v6781_v10  ;;  %v6946_v11 = vpack.c.bf16 %v1230_v7, %v1229_v20  ;;  %v6163_v27 = vpop.f32.mrb[48].mxu1 }
 0x22a   :  { %10824 = vst [vmem:[#allocation83_spill] sm:$0xff] %v6942_v39  ;;  %v1131_v6 = vadd.f32 %v6163_v27, %v6682_v54  ;;  %v1122_v22 = vpop.f32.mrb[49].mxu1 }
 0x22b   :  { %10825 = vst [vmem:[#allocation84_spill] sm:$0xff] %v6946_v11  ;;  %v1123_v18 = vadd.f32 %v6682_v54, %v1122_v22  ;;  %v6164_v32 = vpop.f32.mrb[50].mxu1 }
 0x22c   :  { %1996 = vmatpush1.bf16.msra.mxu0 %v6786_v51  ;;  %2049 = vmatpush1.bf16.msra.mxu1 %v6788_v34  ;;  %v1235_v33 = vmax.f32 %v1131_v6, 0.0  ;;  %v1134_v63 = vadd.f32 %v6164_v32, %v6682_v54  ;;  %v1125_v16 = vpop.f32.mrb[51].mxu1 }
 0x22d   :  { %1997 = vmatprep.subr.bf16.mxu0 %v6794_v62  ;;  %2050 = vmatprep.subr.bf16.mxu1 %v6796_v36  ;;  %v1233_v7 = vmax.f32 %v1123_v18, 0.0  ;;  %v1126_v20 = vadd.f32 %v6682_v54, %v1125_v16 }
 0x22e   :  { %v1236_v27 = vmax.f32 %v1134_v63, 0.0 }
 0x22f   :  { %v1234_v39 = vmax.f32 %v1126_v20, 0.0 }
 0x230   :  { %1998 = vmatpush1.bf16.msra.mxu0 %v6804_v58  ;;  %2051 = vmatpush1.bf16.msra.mxu1 %v6806_v35  ;;  %v6958_v22 = vpack.c.bf16 %v1236_v27, %v1235_v33 }
 0x231   :  { %2121 = vmatprep.subr.bf16.mxu0 %v6457_v38  ;;  %2174 = vmatprep.subr.bf16.mxu1 %v6460_v40  ;;  %v6962_v6 = vpack.c.bf16 %v1234_v39, %v1233_v7  ;;  %v6167_v32 = vpop.f32.mrb[52].mxu1 }
 0x232   :  { %10826 = vst [vmem:[#allocation85_spill] sm:$0xff] %v6958_v22  ;;  %v1147_v11 = vadd.f32 %v6167_v32, %v6682_v54  ;;  %v1138_v18 = vpop.f32.mrb[53].mxu1  ;;  %v10847_v22 = vld [vmem:[#allocation51_spill] sm:$0xff] }
 0x233   :  { %10827 = vst [vmem:[#allocation86_spill] sm:$0xff] %v6962_v6  ;;  %2016 = vmatmul.mubr.bf16.vlgmr.msra.gmra.mrb[88].mxu0 %v6730_v37  ;;  %2069 = vmatmul.mubr.bf16.vlgmr.msra.gmra.mrb[88].mxu1 %v6730_v37  ;;  %v1139_v63 = vadd.f32 %v6682_v54, %v1138_v18  ;;  %v6168_v16 = vpop.f32.mrb[54].mxu1  ;;  %v10848_v6 = vld [vmem:[#allocation52_spill] sm:$0xff] }
 0x234   :  { %2122 = vmatpush1.bf16.msra.mxu0 %v6463_v41  ;;  %2175 = vmatpush1.bf16.msra.mxu1 %v6465_v42  ;;  %v1239_v33 = vmax.f32 %v1147_v11, 0.0  ;;  %v1150_v20 = vadd.f32 %v6168_v16, %v6682_v54  ;;  %v1141_v39 = vpop.f32.mrb[55].mxu1 }
 0x235   :  { %2123 = vmatprep.subr.bf16.mxu0 %v6481_v48  ;;  %2176 = vmatprep.subr.bf16.mxu1 %v6533_v30  ;;  %v1237_v7 = vmax.f32 %v1139_v63, 0.0  ;;  %v1142_v27 = vadd.f32 %v6682_v54, %v1141_v39 }
 0x236   :  { %2025 = vmatprep.mubr.bf16.mxu0 %v10772_v25  ;;  %2078 = vmatprep.mubr.bf16.mxu1 %v10772_v25  ;;  %v1240_v37 = vmax.f32 %v1150_v20, 0.0 }
 0x237   :  { %v1238_v32 = vmax.f32 %v1142_v27, 0.0 }
 0x238   :  { %2124 = vmatpush1.bf16.msra.mxu0 %v6484_v49  ;;  %2177 = vmatpush1.bf16.msra.mxu1 %v6541_v44  ;;  %v6978_v11 = vpack.c.bf16 %v1240_v37, %v1239_v33 }
 0x239   :  { %2125 = vmatprep.subr.bf16.mxu0 %v6487_v52  ;;  %2178 = vmatprep.subr.bf16.mxu1 %v6544_v46  ;;  %v6982_v18 = vpack.c.bf16 %v1238_v32, %v1237_v7  ;;  %v6171_v63 = vpop.f32.mrb[56].mxu1 }
 0x23a   :  { %10828 = vst [vmem:[#allocation87_spill] sm:$0xff] %v6978_v11  ;;  %v1163_v16 = vadd.f32 %v6171_v63, %v6682_v54  ;;  %v1154_v39 = vpop.f32.mrb[57].mxu1 }
 0x23b   :  { %10829 = vst [vmem:[#allocation88_spill] sm:$0xff] %v6982_v18  ;;  %2026 = vmatmul.mubr.bf16.gmra.mrb[92].mxu0 %v10808_v28  ;;  %2079 = vmatmul.mubr.bf16.gmra.mrb[92].mxu1 %v10808_v28  ;;  %v1155_v20 = vadd.f32 %v6682_v54, %v1154_v39  ;;  %v6172_v27 = vpop.f32.mrb[58].mxu1 }
 0x23c   :  { %2126 = vmatpush1.bf16.msra.mxu0 %v6490_v53  ;;  %2179 = vmatpush1.bf16.msra.mxu1 %v6547_v59  ;;  %v1243_v33 = vmax.f32 %v1163_v16, 0.0  ;;  %v1166_v37 = vadd.f32 %v6172_v27, %v6682_v54  ;;  %v1157_v7 = vpop.f32.mrb[59].mxu1 }
 0x23d   :  { %2127 = vmatprep.subr.bf16.mxu0 %v6493_v56  ;;  %2180 = vmatprep.subr.bf16.mxu1 %v6551_v2  ;;  %v1241_v32 = vmax.f32 %v1155_v20, 0.0  ;;  %v1158_v63 = vadd.f32 %v6682_v54, %v1157_v7 }
 0x23e   :  { %2153 = vmatprep.mubr.bf16.mxu0 %v10772_v25  ;;  %2206 = vmatprep.mubr.bf16.mxu1 %v10772_v25  ;;  %v1244_v28 = vmax.f32 %v1166_v37, 0.0 }
 0x23f   :  { %v1242_v39 = vmax.f32 %v1158_v63, 0.0 }
 0x240   :  { %2128 = vmatpush1.bf16.msra.mxu0 %v6496_v57  ;;  %2181 = vmatpush1.bf16.msra.mxu1 %v6559_v17  ;;  %v6998_v16 = vpack.c.bf16 %v1244_v28, %v1243_v33 }
 0x241   :  { %2129 = vmatprep.subr.bf16.mxu0 %v6499_v60  ;;  %2182 = vmatprep.subr.bf16.mxu1 %v6562_v19  ;;  %v7002_v27 = vpack.c.bf16 %v1242_v39, %v1241_v32  ;;  %v6175_v20 = vpop.f32.mrb[60].mxu1 }
 0x242   :  { %10830 = vst [vmem:[#allocation89_spill] sm:$0xff] %v6998_v16  ;;  %v1179_v7 = vadd.f32 %v6175_v20, %v6682_v54  ;;  %v1170_v11 = vpop.f32.mrb[61].mxu1 }
 0x243   :  { %10831 = vst [vmem:[#allocation90_spill] sm:$0xff] %v7002_v27  ;;  %v1171_v18 = vadd.f32 %v6682_v54, %v1170_v11  ;;  %v6176_v37 = vpop.f32.mrb[62].mxu1  ;;  %v10846_v27 = vld [vmem:[#allocation50_spill] sm:$0xff] }
 0x244   :  { %2130 = vmatpush1.bf16.msra.mxu0 %v6502_v61  ;;  %2183 = vmatpush1.bf16.msra.mxu1 %v6565_v26  ;;  %v1247_v63 = vmax.f32 %v1179_v7, 0.0  ;;  %v1182_v33 = vadd.f32 %v6176_v37, %v6682_v54  ;;  %v1173_v28 = vpop.f32.mrb[63].mxu1  ;;  %v10837_v37 = vld [vmem:[#allocation41_spill] sm:$0xff] }
 0x245   :  { %2131 = vmatprep.subr.bf16.mxu0 %v6505_v0  ;;  %2184 = vmatprep.subr.bf16.mxu1 %v6569_v29  ;;  %v1245_v32 = vmax.f32 %v1171_v18, 0.0  ;;  %v1174_v39 = vadd.f32 %v6682_v54, %v1173_v28  ;;  %v10834_v54 = vld [vmem:[#allocation59_spill] sm:$0xff]  ;;  %v10840_v28 = vld [vmem:[#allocation44_spill] sm:$0xff] }
 0x246   :  { %v1248_v20 = vmax.f32 %v1182_v33, 0.0  ;;  %v10835_v18 = vld [vmem:[#allocation39_spill] sm:$0xff] }
 0x247   :  { %v1246_v16 = vmax.f32 %v1174_v39, 0.0  ;;  %v10839_v33 = vld [vmem:[#allocation43_spill] sm:$0xff]  ;;  %v10842_v39 = vld [vmem:[#allocation45_spill] sm:$0xff] }
 0x248   :  { %2132 = vmatpush1.bf16.msra.mxu0 %v6508_v1  ;;  %2185 = vmatpush1.bf16.msra.mxu1 %v6577_v45  ;;  %v7014_v11 = vpack.c.bf16 %v1248_v20, %v1247_v63  ;;  %v10838_v63 = vld [vmem:[#allocation42_spill] sm:$0xff] }
 0x249   :  { %2133 = vmatprep.subr.bf16.mxu0 %v6511_v4  ;;  %2186 = vmatprep.subr.bf16.mxu1 %v6580_v50  ;;  %v7018_v7 = vpack.c.bf16 %v1246_v16, %v1245_v32  ;;  %v10836_v16 = vld [vmem:[#allocation40_spill] sm:$0xff]  ;;  %v10843_v20 = vld [vmem:[#allocation46_spill] sm:$0xff] }
 0x24a   :  { %10832 = vst [vmem:[#allocation91_spill] sm:$0xff] %v7014_v11  ;;  %v10841_v32 = vld [vmem:[#allocation56_spill] sm:$0xff] }
 0x24b   :  { %10833 = vst [vmem:[#allocation92_spill] sm:$0xff] %v7018_v7  ;;  %v10844_v11 = vld [vmem:[#allocation48_spill] sm:$0xff]  ;;  %v10845_v7 = vld [vmem:[#allocation49_spill] sm:$0xff] }
 0x24c   :  { %2134 = vmatpush1.bf16.msra.mxu0 %v6514_v5  ;;  %2187 = vmatpush1.bf16.msra.mxu1 %v6583_v3 }
 0x24d   :  { %2135 = vmatprep.subr.bf16.mxu0 %v6523_v12  ;;  %2188 = vmatprep.subr.bf16.mxu1 %v6587_v9 }
 0x250   :  { %2136 = vmatpush1.bf16.msra.mxu0 %v6526_v15  ;;  %2189 = vmatpush1.bf16.msra.mxu1 %v6595_v21 }
 0x251   :  { %2227 = vmatprep.subr.bf16.mxu0 %v6647_v8  ;;  %2280 = vmatprep.subr.bf16.mxu1 %v6649_v13 }
 0x253   :  { %2154 = vmatmul.mubr.bf16.vlgmr.msra.gmra.mrb[96].mxu0 %v10834_v54  ;;  %2207 = vmatmul.mubr.bf16.vlgmr.msra.gmra.mrb[96].mxu1 %v10834_v54 }
 0x254   :  { %2228 = vmatpush1.bf16.msra.mxu0 %v6651_v14  ;;  %2281 = vmatpush1.bf16.msra.mxu1 %v10799_v47 }
 0x255   :  { %2229 = vmatprep.subr.bf16.mxu0 %v10835_v18  ;;  %2282 = vmatprep.subr.bf16.mxu1 %v10836_v16 }
 0x256   :  { %2163 = vmatprep.mubr.bf16.mxu0 %v10772_v25  ;;  %2216 = vmatprep.mubr.bf16.mxu1 %v10772_v25 }
 0x258   :  { %2230 = vmatpush1.bf16.msra.mxu0 %v10837_v37  ;;  %2283 = vmatpush1.bf16.msra.mxu1 %v10838_v63 }
 0x259   :  { %2231 = vmatprep.subr.bf16.mxu0 %v10839_v33  ;;  %2284 = vmatprep.subr.bf16.mxu1 %v10840_v28  ;;  %v10849_v28 = vld [vmem:[#allocation53_spill] sm:$0xff]  ;;  %v10850_v33 = vld [vmem:[#allocation54_spill] sm:$0xff] }
 0x25b   :  { %2164 = vmatmul.mubr.bf16.gmra.mrb[100].mxu0 %v10841_v32  ;;  %2217 = vmatmul.mubr.bf16.gmra.mrb[100].mxu1 %v10841_v32 }
 0x25c   :  { %2232 = vmatpush1.bf16.msra.mxu0 %v10842_v39  ;;  %2285 = vmatpush1.bf16.msra.mxu1 %v10843_v20 }
 0x25d   :  { %2233 = vmatprep.subr.bf16.mxu0 %v10844_v11  ;;  %2286 = vmatprep.subr.bf16.mxu1 %v10845_v7  ;;  %v10851_v11 = vld [vmem:[#allocation58_spill] sm:$0xff] }
 0x25e   :  { %2259 = vmatprep.mubr.bf16.mxu0 %v10772_v25  ;;  %2312 = vmatprep.mubr.bf16.mxu1 %v10772_v25 }
 0x260   :  { %2234 = vmatpush1.bf16.msra.mxu0 %v10846_v27  ;;  %2287 = vmatpush1.bf16.msra.mxu1 %v10847_v22 }
 0x261   :  { %2235 = vmatprep.subr.bf16.mxu0 %v10848_v6  ;;  %2288 = vmatprep.subr.bf16.mxu1 %v10849_v28 }
 0x264   :  { %2236 = vmatpush1.bf16.msra.mxu0 %v10850_v33  ;;  %2289 = vmatpush1.bf16.msra.mxu1 %v10819_v43 }
 0x265   :  { %2237 = vmatprep.subr.bf16.mxu0 %v10820_v24  ;;  %2290 = vmatprep.subr.bf16.mxu1 %v10851_v11 }
 0x268   :  { %2238 = vmatpush1.bf16.msra.mxu0 %v10822_v23  ;;  %2291 = vmatpush1.bf16.msra.mxu1 %v10823_v55 }
 0x269   :  { %2239 = vmatprep.subr.bf16.mxu0 %v6779_v31  ;;  %2292 = vmatprep.subr.bf16.mxu1 %v6781_v10 }
 0x26c   :  { %2240 = vmatpush1.bf16.msra.mxu0 %v6786_v51  ;;  %2293 = vmatpush1.bf16.msra.mxu1 %v6788_v34 }
 0x26d   :  { %2241 = vmatprep.subr.bf16.mxu0 %v6794_v62  ;;  %2294 = vmatprep.subr.bf16.mxu1 %v6796_v36 }
 0x270   :  { %2242 = vmatpush1.bf16.msra.mxu0 %v6804_v58  ;;  %2295 = vmatpush1.bf16.msra.mxu1 %v6806_v35 }
 0x271   :  { %2365 = vmatprep.subr.bf16.mxu0 %v6457_v38  ;;  %2418 = vmatprep.subr.bf16.mxu1 %v6460_v40 }
 0x273   :  { %2260 = vmatmul.mubr.bf16.vlgmr.msra.gmra.mrb[104].mxu0 %v10834_v54  ;;  %2313 = vmatmul.mubr.bf16.vlgmr.msra.gmra.mrb[104].mxu1 %v10834_v54  ;;  %v10852_v54 = vld [vmem:[#allocation68_spill] sm:$0xff] }
 0x274   :  { %2366 = vmatpush1.bf16.msra.mxu0 %v6463_v41  ;;  %2419 = vmatpush1.bf16.msra.mxu1 %v6465_v42 }
 0x275   :  { %2367 = vmatprep.subr.bf16.mxu0 %v6481_v48  ;;  %2420 = vmatprep.subr.bf16.mxu1 %v6533_v30 }
 0x276   :  { %2269 = vmatprep.mubr.bf16.mxu0 %v10772_v25  ;;  %2322 = vmatprep.mubr.bf16.mxu1 %v10772_v25 }
 0x278   :  { %2368 = vmatpush1.bf16.msra.mxu0 %v6484_v49  ;;  %2421 = vmatpush1.bf16.msra.mxu1 %v6541_v44 }
 0x279   :  { %2369 = vmatprep.subr.bf16.mxu0 %v6487_v52  ;;  %2422 = vmatprep.subr.bf16.mxu1 %v6544_v46 }
 0x27b   :  { %2270 = vmatmul.mubr.bf16.gmra.mrb[108].mxu0 %v10841_v32  ;;  %2323 = vmatmul.mubr.bf16.gmra.mrb[108].mxu1 %v10841_v32  ;;  %v10853_v32 = vld [vmem:[#allocation43_spill] sm:$0xff] }
 0x27c   :  { %2370 = vmatpush1.bf16.msra.mxu0 %v6490_v53  ;;  %2423 = vmatpush1.bf16.msra.mxu1 %v6547_v59 }
 0x27d   :  { %2371 = vmatprep.subr.bf16.mxu0 %v6493_v56  ;;  %2424 = vmatprep.subr.bf16.mxu1 %v6551_v2 }
 0x27e   :  { %2397 = vmatprep.mubr.bf16.mxu0 %v10772_v25  ;;  %2450 = vmatprep.mubr.bf16.mxu1 %v10772_v25 }
 0x280   :  { %2372 = vmatpush1.bf16.msra.mxu0 %v6496_v57  ;;  %2425 = vmatpush1.bf16.msra.mxu1 %v6559_v17 }
 0x281   :  { %2373 = vmatprep.subr.bf16.mxu0 %v6499_v60  ;;  %2426 = vmatprep.subr.bf16.mxu1 %v6562_v19 }
 0x284   :  { %2374 = vmatpush1.bf16.msra.mxu0 %v6502_v61  ;;  %2427 = vmatpush1.bf16.msra.mxu1 %v6565_v26 }
 0x285   :  { %2375 = vmatprep.subr.bf16.mxu0 %v6505_v0  ;;  %2428 = vmatprep.subr.bf16.mxu1 %v6569_v29 }
 0x288   :  { %2376 = vmatpush1.bf16.msra.mxu0 %v6508_v1  ;;  %2429 = vmatpush1.bf16.msra.mxu1 %v6577_v45 }
 0x289   :  { %2377 = vmatprep.subr.bf16.mxu0 %v6511_v4  ;;  %2430 = vmatprep.subr.bf16.mxu1 %v6580_v50 }
 0x28c   :  { %2378 = vmatpush1.bf16.msra.mxu0 %v6514_v5  ;;  %2431 = vmatpush1.bf16.msra.mxu1 %v6583_v3 }
 0x28d   :  { %2379 = vmatprep.subr.bf16.mxu0 %v6523_v12  ;;  %2432 = vmatprep.subr.bf16.mxu1 %v6587_v9 }
 0x290   :  { %2380 = vmatpush1.bf16.msra.mxu0 %v6526_v15  ;;  %2433 = vmatpush1.bf16.msra.mxu1 %v6595_v21 }
 0x291   :  { %2471 = vmatprep.subr.bf16.mxu0 %v6647_v8  ;;  %2524 = vmatprep.subr.bf16.mxu1 %v6649_v13  ;;  %v10854_v13 = vld [vmem:[#allocation44_spill] sm:$0xff]  ;;  %v10855_v8 = vld [vmem:[#allocation65_spill] sm:$0xff] }
 0x293   :  { %2398 = vmatmul.mubr.bf16.vlgmr.msra.gmra.mrb[112].mxu0 %v10852_v54  ;;  %2451 = vmatmul.mubr.bf16.vlgmr.msra.gmra.mrb[112].mxu1 %v10852_v54 }
 0x294   :  { %2472 = vmatpush1.bf16.msra.mxu0 %v6651_v14  ;;  %2525 = vmatpush1.bf16.msra.mxu1 %v10799_v47 }
 0x295   :  { %2473 = vmatprep.subr.bf16.mxu0 %v10835_v18  ;;  %2526 = vmatprep.subr.bf16.mxu1 %v10836_v16  ;;  %v10856_v16 = vld [vmem:[#allocation48_spill] sm:$0xff] }
 0x296   :  { %2407 = vmatprep.mubr.bf16.mxu0 %v10772_v25  ;;  %2460 = vmatprep.mubr.bf16.mxu1 %v10772_v25 }
 0x298   :  { %2474 = vmatpush1.bf16.msra.mxu0 %v10837_v37  ;;  %2527 = vmatpush1.bf16.msra.mxu1 %v10838_v63 }
 0x299   :  { %2475 = vmatprep.subr.bf16.mxu0 %v10853_v32  ;;  %2528 = vmatprep.subr.bf16.mxu1 %v10854_v13 }
 0x29b   :  { %2408 = vmatmul.mubr.bf16.gmra.mrb[116].mxu0 %v10855_v8  ;;  %2461 = vmatmul.mubr.bf16.gmra.mrb[116].mxu1 %v10855_v8 }
 0x29c   :  { %2476 = vmatpush1.bf16.msra.mxu0 %v10842_v39  ;;  %2529 = vmatpush1.bf16.msra.mxu1 %v10843_v20 }
 0x29d   :  { %2477 = vmatprep.subr.bf16.mxu0 %v10856_v16  ;;  %2530 = vmatprep.subr.bf16.mxu1 %v10845_v7 }
 0x29e   :  { %2503 = vmatprep.mubr.bf16.mxu0 %v10772_v25  ;;  %2556 = vmatprep.mubr.bf16.mxu1 %v10772_v25 }
 0x2a0   :  { %2478 = vmatpush1.bf16.msra.mxu0 %v10846_v27  ;;  %2531 = vmatpush1.bf16.msra.mxu1 %v10847_v22 }
 0x2a1   :  { %2479 = vmatprep.subr.bf16.mxu0 %v10848_v6  ;;  %2532 = vmatprep.subr.bf16.mxu1 %v10849_v28 }
 0x2a4   :  { %2480 = vmatpush1.bf16.msra.mxu0 %v10850_v33  ;;  %2533 = vmatpush1.bf16.msra.mxu1 %v10819_v43 }
 0x2a5   :  { %2481 = vmatprep.subr.bf16.mxu0 %v10820_v24  ;;  %2534 = vmatprep.subr.bf16.mxu1 %v10851_v11 }
 0x2a6   :  { %v7136_v7 = vpop.f32.mrb[64].mxu0  ;;  %v7138_v16 = vpop.f32.mrb[64].mxu1 }
 0x2a7   :  { %10857 = vst [vmem:[#allocation59_spill] sm:$0xff] %v7136_v7  ;;  %10858 = vst [vmem:[#allocation56_spill] sm:$0xff] %v7138_v16  ;;  %v7140_v20 = vpop.f32.mrb[65].mxu0  ;;  %v7142_v27 = vpop.f32.mrb[65].mxu1 }
 0x2a8   :  { %10859 = vst [vmem:[#allocation68_spill] sm:$0xff] %v7142_v27  ;;  %2482 = vmatpush1.bf16.msra.mxu0 %v10822_v23  ;;  %2535 = vmatpush1.bf16.msra.mxu1 %v10823_v55  ;;  %v7146_v28 = vpop.f32.mrb[66].mxu0  ;;  %v7148_v33 = vpop.f32.mrb[66].mxu1  ;;  %v10902_v27 = vld [vmem:[#allocation63_spill] sm:$0xff] }
 0x2a9   :  { %10860 = vst [vmem:[#allocation65_spill] sm:$0xff] %v7146_v28  ;;  %10861 = vst [vmem:[#allocation93_spill] sm:$0xff] %v7148_v33  ;;  %v7150_v43 = vpop.f32.mrb[67].mxu0  ;;  %v7152_v24 = vpop.f32.mrb[67].mxu1  ;;  %2483 = vmatprep.subr.bf16.mxu0 %v6779_v31  ;;  %2536 = vmatprep.subr.bf16.mxu1 %v6781_v10 }
 0x2aa   :  { %10862 = vst [vmem:[#allocation94_spill] sm:$0xff] %v7150_v43  ;;  %10863 = vst [vmem:[#allocation95_spill] sm:$0xff] %v7152_v24 }
 0x2ac   :  { %2484 = vmatpush1.bf16.msra.mxu0 %v6786_v51  ;;  %2537 = vmatpush1.bf16.msra.mxu1 %v6788_v34 }
 0x2ad   :  { %2485 = vmatprep.subr.bf16.mxu0 %v6794_v62  ;;  %2538 = vmatprep.subr.bf16.mxu1 %v6796_v36 }
 0x2ae   :  { %v7160_v55 = vpop.f32.mrb[68].mxu0  ;;  %v7162_v28 = vpop.f32.mrb[68].mxu1 }
 0x2af   :  { %v7164_v33 = vpop.f32.mrb[69].mxu0  ;;  %v7166_v43 = vpop.f32.mrb[69].mxu1 }
 0x2b0   :  { %2486 = vmatpush1.bf16.msra.mxu0 %v6804_v58  ;;  %2539 = vmatpush1.bf16.msra.mxu1 %v6806_v35  ;;  %v7170_v24 = vpop.f32.mrb[70].mxu0  ;;  %v7172_v51 = vpop.f32.mrb[70].mxu1  ;;  %v10898_v16 = vld [vmem:[#allocation93_spill] sm:$0xff] }
 0x2b1   :  { %v7174_v34 = vpop.f32.mrb[71].mxu0  ;;  %v7176_v62 = vpop.f32.mrb[71].mxu1  ;;  %2609 = vmatprep.subr.bf16.mxu0 %v6457_v38  ;;  %2662 = vmatprep.subr.bf16.mxu1 %v6460_v40 }
 0x2b3   :  { %2504 = vmatmul.mubr.bf16.vlgmr.msra.gmra.mrb[120].mxu0 %v10852_v54  ;;  %2557 = vmatmul.mubr.bf16.vlgmr.msra.gmra.mrb[120].mxu1 %v10852_v54 }
 0x2b4   :  { %2610 = vmatpush1.bf16.msra.mxu0 %v6463_v41  ;;  %2663 = vmatpush1.bf16.msra.mxu1 %v6465_v42 }
 0x2b5   :  { %2611 = vmatprep.subr.bf16.mxu0 %v6481_v48  ;;  %2664 = vmatprep.subr.bf16.mxu1 %v6533_v30 }
 0x2b6   :  { %2513 = vmatprep.mubr.bf16.mxu0 %v10772_v25  ;;  %2566 = vmatprep.mubr.bf16.mxu1 %v10772_v25 }
 0x2b8   :  { %2612 = vmatpush1.bf16.msra.mxu0 %v6484_v49  ;;  %2665 = vmatpush1.bf16.msra.mxu1 %v6541_v44 }
 0x2b9   :  { %2613 = vmatprep.subr.bf16.mxu0 %v6487_v52  ;;  %2666 = vmatprep.subr.bf16.mxu1 %v6544_v46 }
 0x2bb   :  { %2514 = vmatmul.mubr.bf16.gmra.mrb[124].mxu0 %v10855_v8  ;;  %2567 = vmatmul.mubr.bf16.gmra.mrb[124].mxu1 %v10855_v8 }
 0x2bc   :  { %2614 = vmatpush1.bf16.msra.mxu0 %v6490_v53  ;;  %2667 = vmatpush1.bf16.msra.mxu1 %v6547_v59 }
 0x2bd   :  { %2615 = vmatprep.subr.bf16.mxu0 %v6493_v56  ;;  %2668 = vmatprep.subr.bf16.mxu1 %v6551_v2 }
 0x2be   :  { %2641 = vmatprep.mubr.bf16.mxu0 %v10772_v25  ;;  %2694 = vmatprep.mubr.bf16.mxu1 %v10772_v25 }
 0x2c0   :  { %2616 = vmatpush1.bf16.msra.mxu0 %v6496_v57  ;;  %2669 = vmatpush1.bf16.msra.mxu1 %v6559_v17 }
 0x2c1   :  { %2617 = vmatprep.subr.bf16.mxu0 %v6499_v60  ;;  %2670 = vmatprep.subr.bf16.mxu1 %v6562_v19 }
 0x2c4   :  { %2618 = vmatpush1.bf16.msra.mxu0 %v6502_v61  ;;  %2671 = vmatpush1.bf16.msra.mxu1 %v6565_v26 }
 0x2c5   :  { %2619 = vmatprep.subr.bf16.mxu0 %v6505_v0  ;;  %2672 = vmatprep.subr.bf16.mxu1 %v6569_v29 }
 0x2c6   :  { %v7208_v8 = vpop.f32.mrb[72].mxu0  ;;  %v7210_v54 = vpop.f32.mrb[72].mxu1 }
 0x2c7   :  { %10864 = vst [vmem:[#allocation96_spill] sm:$0xff] %v7208_v8  ;;  %10865 = vst [vmem:[#allocation97_spill] sm:$0xff] %v7210_v54  ;;  %v7212_v2 = vpop.f32.mrb[73].mxu0  ;;  %v7214_v57 = vpop.f32.mrb[73].mxu1 }
 0x2c8   :  { %v7216_v17 = vpop.f32.mrb[74].mxu0  ;;  %v7218_v60 = vpop.f32.mrb[74].mxu1  ;;  %2620 = vmatpush1.bf16.msra.mxu0 %v6508_v1  ;;  %2673 = vmatpush1.bf16.msra.mxu1 %v6577_v45 }
 0x2c9   :  { %10866 = vst [vmem:[#allocation98_spill] sm:$0xff] %v7216_v17  ;;  %10867 = vst [vmem:[#allocation99_spill] sm:$0xff] %v7218_v60  ;;  %v7222_v26 = vpop.f32.mrb[75].mxu0  ;;  %v7224_v0 = vpop.f32.mrb[75].mxu1  ;;  %2621 = vmatprep.subr.bf16.mxu0 %v6511_v4  ;;  %2674 = vmatprep.subr.bf16.mxu1 %v6580_v50 }
 0x2ca   :  { %10868 = vst [vmem:[#allocation100_spill] sm:$0xff] %v7222_v26  ;;  %10869 = vst [vmem:[#allocation101_spill] sm:$0xff] %v7224_v0 }
 0x2cc   :  { %2622 = vmatpush1.bf16.msra.mxu0 %v6514_v5  ;;  %2675 = vmatpush1.bf16.msra.mxu1 %v6583_v3 }
 0x2cd   :  { %2623 = vmatprep.subr.bf16.mxu0 %v6523_v12  ;;  %2676 = vmatprep.subr.bf16.mxu1 %v6587_v9  ;;  %v10878_v9 = vld [vmem:[#allocation35_spill] sm:$0xff] }
 0x2ce   :  { %v7232_v60 = vpop.f32.mrb[76].mxu0  ;;  %v7234_v17 = vpop.f32.mrb[76].mxu1 }
 0x2cf   :  { %10870 = vst [vmem:[#allocation102_spill] sm:$0xff] %v7232_v60  ;;  %10871 = vst [vmem:[#allocation103_spill] sm:$0xff] %v7234_v17  ;;  %v7236_v45 = vpop.f32.mrb[77].mxu0  ;;  %v7238_v26 = vpop.f32.mrb[77].mxu1  ;;  %v10879_v60 = vld [vmem:[#allocation36_spill] sm:$0xff]  ;;  %v10880_v17 = vld [vmem:[#allocation71_spill] sm:$0xff] }
 0x2d0   :  { %10872 = vst [vmem:[#allocation104_spill] sm:$0xff] %v7236_v45  ;;  %10873 = vst [vmem:[#allocation105_spill] sm:$0xff] %v7238_v26  ;;  %v7240_v0 = vpop.f32.mrb[78].mxu0  ;;  %v7242_v4 = vpop.f32.mrb[78].mxu1  ;;  %2624 = vmatpush1.bf16.msra.mxu0 %v6526_v15  ;;  %2677 = vmatpush1.bf16.msra.mxu1 %v6595_v21 }
 0x2d1   :  { %10874 = vst [vmem:[#allocation106_spill] sm:$0xff] %v7240_v0  ;;  %10875 = vst [vmem:[#allocation107_spill] sm:$0xff] %v7242_v4  ;;  %v7246_v3 = vpop.f32.mrb[79].mxu0  ;;  %v7248_v12 = vpop.f32.mrb[79].mxu1  ;;  %2715 = vmatprep.subr.bf16.mxu0 %v10878_v9  ;;  %2768 = vmatprep.subr.bf16.mxu1 %v10879_v60  ;;  %v10881_v4 = vld [vmem:[#allocation40_spill] sm:$0xff] }
 0x2d2   :  { %10876 = vst [vmem:[#allocation108_spill] sm:$0xff] %v7246_v3  ;;  %10877 = vst [vmem:[#allocation109_spill] sm:$0xff] %v7248_v12  ;;  %v10882_v12 = vld [vmem:[#allocation70_spill] sm:$0xff] }
 0x2d3   :  { %2642 = vmatmul.mubr.bf16.vlgmr.msra.gmra.mrb[128].mxu0 %v10880_v17  ;;  %2695 = vmatmul.mubr.bf16.vlgmr.msra.gmra.mrb[128].mxu1 %v10880_v17 }
 0x2d4   :  { %2716 = vmatpush1.bf16.msra.mxu0 %v6651_v14  ;;  %2769 = vmatpush1.bf16.msra.mxu1 %v10799_v47  ;;  %v10885_v47 = vld [vmem:[#allocation49_spill] sm:$0xff] }
 0x2d5   :  { %2717 = vmatprep.subr.bf16.mxu0 %v10835_v18  ;;  %2770 = vmatprep.subr.bf16.mxu1 %v10881_v4  ;;  %v10883_v18 = vld [vmem:[#allocation46_spill] sm:$0xff]  ;;  %v10884_v4 = vld [vmem:[#allocation48_spill] sm:$0xff] }
 0x2d6   :  { %2651 = vmatprep.mubr.bf16.mxu0 %v10772_v25  ;;  %2704 = vmatprep.mubr.bf16.mxu1 %v10772_v25 }
 0x2d8   :  { %2718 = vmatpush1.bf16.msra.mxu0 %v10837_v37  ;;  %2771 = vmatpush1.bf16.msra.mxu1 %v10838_v63  ;;  %v10886_v63 = vld [vmem:[#allocation50_spill] sm:$0xff] }
 0x2d9   :  { %2719 = vmatprep.subr.bf16.mxu0 %v10853_v32  ;;  %2772 = vmatprep.subr.bf16.mxu1 %v10854_v13  ;;  %v10887_v13 = vld [vmem:[#allocation53_spill] sm:$0xff]  ;;  %v10888_v32 = vld [vmem:[#allocation54_spill] sm:$0xff] }
 0x2db   :  { %2652 = vmatmul.mubr.bf16.gmra.mrb[132].mxu0 %v10882_v12  ;;  %2705 = vmatmul.mubr.bf16.gmra.mrb[132].mxu1 %v10882_v12 }
 0x2dc   :  { %2720 = vmatpush1.bf16.msra.mxu0 %v10842_v39  ;;  %2773 = vmatpush1.bf16.msra.mxu1 %v10883_v18  ;;  %v10889_v39 = vld [vmem:[#allocation55_spill] sm:$0xff]  ;;  %v10890_v18 = vld [vmem:[#allocation57_spill] sm:$0xff] }
 0x2dd   :  { %2721 = vmatprep.subr.bf16.mxu0 %v10884_v4  ;;  %2774 = vmatprep.subr.bf16.mxu1 %v10885_v47 }
 0x2de   :  { %2747 = vmatprep.mubr.bf16.mxu0 %v10772_v25  ;;  %2800 = vmatprep.mubr.bf16.mxu1 %v10772_v25 }
 0x2e0   :  { %2722 = vmatpush1.bf16.msra.mxu0 %v10886_v63  ;;  %2775 = vmatpush1.bf16.msra.mxu1 %v10847_v22  ;;  %v10896_v63 = vld [vmem:[#allocation61_spill] sm:$0xff] }
 0x2e1   :  { %2723 = vmatprep.subr.bf16.mxu0 %v10848_v6  ;;  %2776 = vmatprep.subr.bf16.mxu1 %v10887_v13  ;;  %v10897_v6 = vld [vmem:[#allocation65_spill] sm:$0xff] }
 0x2e4   :  { %2724 = vmatpush1.bf16.msra.mxu0 %v10888_v32  ;;  %2777 = vmatpush1.bf16.msra.mxu1 %v10889_v39 }
 0x2e5   :  { %2725 = vmatprep.subr.bf16.mxu0 %v10890_v18  ;;  %2778 = vmatprep.subr.bf16.mxu1 %v10851_v11  ;;  %v10900_v11 = vld [vmem:[#allocation94_spill] sm:$0xff] }
 0x2e6   :  { %v7280_v47 = vpop.f32.mrb[80].mxu0  ;;  %v7282_v4 = vpop.f32.mrb[80].mxu1 }
 0x2e7   :  { %10891 = vst [vmem:[#allocation71_spill] sm:$0xff] %v7280_v47  ;;  %10892 = vst [vmem:[#allocation70_spill] sm:$0xff] %v7282_v4  ;;  %v7288_v22 = vpop.f32.mrb[81].mxu0  ;;  %v7290_v13 = vpop.f32.mrb[81].mxu1  ;;  %v10903_v4 = vld [vmem:[#allocation64_spill] sm:$0xff] }
 0x2e8   :  { %10893 = vst [vmem:[#allocation110_spill] sm:$0xff] %v7290_v13  ;;  %v7296_v18 = vpop.f32.mrb[82].mxu0  ;;  %v7298_v32 = vpop.f32.mrb[82].mxu1  ;;  %2726 = vmatpush1.bf16.msra.mxu0 %v10822_v23  ;;  %2779 = vmatpush1.bf16.msra.mxu1 %v10896_v63  ;;  %v10901_v23 = vld [vmem:[#allocation95_spill] sm:$0xff] }
 0x2e9   :  { %10894 = vst [vmem:[#allocation111_spill] sm:$0xff] %v7296_v18  ;;  %10895 = vst [vmem:[#allocation112_spill] sm:$0xff] %v7298_v32  ;;  %v7306_v7 = vpop.f32.mrb[83].mxu0  ;;  %v7308_v39 = vpop.f32.mrb[83].mxu1  ;;  %2727 = vmatprep.subr.bf16.mxu0 %v6779_v31  ;;  %2780 = vmatprep.subr.bf16.mxu1 %v6781_v10  ;;  %v10904_v18 = vld [vmem:[#allocation66_spill] sm:$0xff]  ;;  %v10909_v10 = vld [vmem:[#allocation13_spill] sm:$0xff] }
 0x2ea   :  { %10899 = vst [vmem:[#allocation65_spill] sm:$0xff] %v7306_v7  ;;  %v10911_v13 = vld [vmem:[#allocation15_spill] sm:$0xff] }
 0x2ec   :  { %2728 = vmatpush1.bf16.msra.mxu0 %v10902_v27  ;;  %2781 = vmatpush1.bf16.msra.mxu1 %v10903_v4 }
 0x2ed   :  { %2729 = vmatprep.subr.bf16.mxu0 %v10904_v18  ;;  %2782 = vmatprep.subr.bf16.mxu1 %v6796_v36  ;;  %v10908_v36 = vld [vmem:[#allocation26_spill] sm:$0xff] }
 0x2ee   :  { %v7320_v47 = vpop.f32.mrb[84].mxu0  ;;  %v7322_v32 = vpop.f32.mrb[84].mxu1 }
 0x2ef   :  { %10905 = vst [vmem:[#allocation93_spill] sm:$0xff] %v7322_v32  ;;  %v7328_v7 = vpop.f32.mrb[85].mxu0  ;;  %v7330_v63 = vpop.f32.mrb[85].mxu1  ;;  %v10967_v26 = vld [vmem:[#allocation110_spill] sm:$0xff] }
 0x2f0   :  { %v7336_v18 = vpop.f32.mrb[86].mxu0  ;;  %v7338_v27 = vpop.f32.mrb[86].mxu1  ;;  %2730 = vmatpush1.bf16.msra.mxu0 %v6804_v58  ;;  %2783 = vmatpush1.bf16.msra.mxu1 %v6806_v35  ;;  %v10907_v35 = vld [vmem:[#allocation12_spill] sm:$0xff] }
 0x2f1   :  { %v7346_v32 = vpop.f32.mrb[87].mxu0  ;;  %v7348_v4 = vpop.f32.mrb[87].mxu1  ;;  %2853 = vmatprep.subr.bf16.mxu0 %v6457_v38  ;;  %2906 = vmatprep.subr.bf16.mxu1 %v6460_v40 }
 0x2f3   :  { %2748 = vmatmul.mubr.bf16.vlgmr.msra.gmra.mrb[136].mxu0 %v10880_v17  ;;  %2801 = vmatmul.mubr.bf16.vlgmr.msra.gmra.mrb[136].mxu1 %v10880_v17  ;;  %v10906_v17 = vld [vmem:[#allocation25_spill] sm:$0xff] }
 0x2f4   :  { %2854 = vmatpush1.bf16.msra.mxu0 %v6463_v41  ;;  %2907 = vmatpush1.bf16.msra.mxu1 %v6465_v42 }
 0x2f5   :  { %2855 = vmatprep.subr.bf16.mxu0 %v6481_v48  ;;  %2908 = vmatprep.subr.bf16.mxu1 %v6533_v30 }
 0x2f6   :  { %2757 = vmatprep.mubr.bf16.mxu0 %v10772_v25  ;;  %2810 = vmatprep.mubr.bf16.mxu1 %v10772_v25 }
 0x2f8   :  { %2856 = vmatpush1.bf16.msra.mxu0 %v6484_v49  ;;  %2909 = vmatpush1.bf16.msra.mxu1 %v6541_v44 }
 0x2f9   :  { %2857 = vmatprep.subr.bf16.mxu0 %v6487_v52  ;;  %2910 = vmatprep.subr.bf16.mxu1 %v6544_v46 }
 0x2fb   :  { %2758 = vmatmul.mubr.bf16.gmra.mrb[140].mxu0 %v10882_v12  ;;  %2811 = vmatmul.mubr.bf16.gmra.mrb[140].mxu1 %v10882_v12  ;;  %v10910_v12 = vld [vmem:[#allocation28_spill] sm:$0xff] }
 0x2fc   :  { %2858 = vmatpush1.bf16.msra.mxu0 %v6490_v53  ;;  %2911 = vmatpush1.bf16.msra.mxu1 %v6547_v59 }
 0x2fd   :  { %2859 = vmatprep.subr.bf16.mxu0 %v6493_v56  ;;  %2912 = vmatprep.subr.bf16.mxu1 %v10906_v17 }
 0x2fe   :  { %2885 = vmatprep.mubr.bf16.mxu0 %v10772_v25  ;;  %2938 = vmatprep.mubr.bf16.mxu1 %v10772_v25 }
 0x300   :  { %2860 = vmatpush1.bf16.msra.mxu0 %v10907_v35  ;;  %2913 = vmatpush1.bf16.msra.mxu1 %v10908_v36  ;;  %v10918_v35 = vld [vmem:[#allocation30_spill] sm:$0xff] }
 0x301   :  { %2861 = vmatprep.subr.bf16.mxu0 %v10909_v10  ;;  %2914 = vmatprep.subr.bf16.mxu1 %v6562_v19  ;;  %v10919_v10 = vld [vmem:[#allocation98_spill] sm:$0xff] }
 0x304   :  { %2862 = vmatpush1.bf16.msra.mxu0 %v6502_v61  ;;  %2915 = vmatpush1.bf16.msra.mxu1 %v10910_v12 }
 0x305   :  { %2863 = vmatprep.subr.bf16.mxu0 %v10911_v13  ;;  %2916 = vmatprep.subr.bf16.mxu1 %v6569_v29 }
 0x306   :  { %v7384_v17 = vpop.f32.mrb[88].mxu0  ;;  %v7386_v56 = vpop.f32.mrb[88].mxu1 }
 0x307   :  { %10912 = vst [vmem:[#allocation94_spill] sm:$0xff] %v7384_v17  ;;  %10913 = vst [vmem:[#allocation95_spill] sm:$0xff] %v7386_v56  ;;  %v7392_v36 = vpop.f32.mrb[89].mxu0  ;;  %v7394_v19 = vpop.f32.mrb[89].mxu1  ;;  %v10925_v56 = vld [vmem:[#allocation32_spill] sm:$0xff]  ;;  %v10927_v17 = vld [vmem:[#allocation33_spill] sm:$0xff] }
 0x308   :  { %10914 = vst [vmem:[#allocation113_spill] sm:$0xff] %v7392_v36  ;;  %10915 = vst [vmem:[#allocation114_spill] sm:$0xff] %v7394_v19  ;;  %v7400_v13 = vpop.f32.mrb[90].mxu0  ;;  %v7402_v61 = vpop.f32.mrb[90].mxu1  ;;  %2864 = vmatpush1.bf16.msra.mxu0 %v6508_v1  ;;  %2917 = vmatpush1.bf16.msra.mxu1 %v10918_v35  ;;  %v10922_v36 = vld [vmem:[#allocation17_spill] sm:$0xff] }
 0x309   :  { %10916 = vst [vmem:[#allocation115_spill] sm:$0xff] %v7400_v13  ;;  %10917 = vst [vmem:[#allocation116_spill] sm:$0xff] %v7402_v61  ;;  %v7410_v8 = vpop.f32.mrb[91].mxu0  ;;  %v7412_v12 = vpop.f32.mrb[91].mxu1  ;;  %2865 = vmatprep.subr.bf16.mxu0 %v10922_v36  ;;  %2918 = vmatprep.subr.bf16.mxu1 %v6580_v50  ;;  %v10924_v1 = vld [vmem:[#allocation101_spill] sm:$0xff]  ;;  %v10926_v13 = vld [vmem:[#allocation19_spill] sm:$0xff] }
 0x30a   :  { %10921 = vst [vmem:[#allocation98_spill] sm:$0xff] %v7410_v8  ;;  %v10929_v50 = vld [vmem:[#allocation102_spill] sm:$0xff]  ;;  %v10941_v8 = vld [vmem:[#allocation39_spill] sm:$0xff] }
 0x30c   :  { %2866 = vmatpush1.bf16.msra.mxu0 %v6514_v5  ;;  %2919 = vmatpush1.bf16.msra.mxu1 %v10925_v56 }
 0x30d   :  { %2867 = vmatprep.subr.bf16.mxu0 %v10926_v13  ;;  %2920 = vmatprep.subr.bf16.mxu1 %v10927_v17  ;;  %v10943_v17 = vld [vmem:[#allocation42_spill] sm:$0xff] }
 0x30e   :  { %v7424_v61 = vpop.f32.mrb[92].mxu0  ;;  %v7426_v54 = vpop.f32.mrb[92].mxu1 }
 0x30f   :  { %10928 = vst [vmem:[#allocation101_spill] sm:$0xff] %v7426_v54  ;;  %v7432_v29 = vpop.f32.mrb[93].mxu0  ;;  %v7434_v35 = vpop.f32.mrb[93].mxu1  ;;  %v10940_v54 = vld [vmem:[#allocation38_spill] sm:$0xff] }
 0x310   :  { %10931 = vst [vmem:[#allocation102_spill] sm:$0xff] %v7432_v29  ;;  %10932 = vst [vmem:[#allocation117_spill] sm:$0xff] %v7434_v35  ;;  %v7440_v13 = vpop.f32.mrb[94].mxu0  ;;  %v7442_v5 = vpop.f32.mrb[94].mxu1  ;;  %2868 = vmatpush1.bf16.msra.mxu0 %v6526_v15  ;;  %2921 = vmatpush1.bf16.msra.mxu1 %v6595_v21  ;;  %v10939_v35 = vld [vmem:[#allocation73_spill] sm:$0xff]  ;;  %v10944_v21 = vld [vmem:[#allocation43_spill] sm:$0xff] }
 0x311   :  { %10933 = vst [vmem:[#allocation118_spill] sm:$0xff] %v7440_v13  ;;  %10934 = vst [vmem:[#allocation119_spill] sm:$0xff] %v7442_v5  ;;  %v7450_v19 = vpop.f32.mrb[95].mxu0  ;;  %v7452_v56 = vpop.f32.mrb[95].mxu1  ;;  %2959 = vmatprep.subr.bf16.mxu0 %v10878_v9  ;;  %3012 = vmatprep.subr.bf16.mxu1 %v10879_v60  ;;  %v10942_v5 = vld [vmem:[#allocation40_spill] sm:$0xff]  ;;  %v10959_v60 = vld [vmem:[#allocation59_spill] sm:$0xff] }
 0x312   :  { %10936 = vst [vmem:[#allocation120_spill] sm:$0xff] %v7450_v19  ;;  %10937 = vst [vmem:[#allocation121_spill] sm:$0xff] %v7452_v56  ;;  %v10945_v56 = vld [vmem:[#allocation44_spill] sm:$0xff]  ;;  %v10955_v19 = vld [vmem:[#allocation54_spill] sm:$0xff] }
 0x313   :  { %2886 = vmatmul.mubr.bf16.vlgmr.msra.gmra.mrb[144].mxu0 %v10939_v35  ;;  %2939 = vmatmul.mubr.bf16.vlgmr.msra.gmra.mrb[144].mxu1 %v10939_v35  ;;  %v10946_v15 = vld [vmem:[#allocation72_spill] sm:$0xff]  ;;  %v10960_v9 = vld [vmem:[#allocation71_spill] sm:$0xff]  ;;  %v10963_v13 = vld [vmem:[#allocation70_spill] sm:$0xff] }
 0x314   :  { %2960 = vmatpush1.bf16.msra.mxu0 %v6651_v14  ;;  %3013 = vmatpush1.bf16.msra.mxu1 %v10940_v54  ;;  %v10947_v54 = vld [vmem:[#allocation45_spill] sm:$0xff]  ;;  %v10961_v36 = vmax.f32 %v10959_v60, %v10960_v9 }
 0x315   :  { %2961 = vmatprep.subr.bf16.mxu0 %v10941_v8  ;;  %3014 = vmatprep.subr.bf16.mxu1 %v10942_v5  ;;  %v10948_v8 = vld [vmem:[#allocation46_spill] sm:$0xff]  ;;  %v10949_v5 = vld [vmem:[#allocation48_spill] sm:$0xff]  ;;  %v10950_v14 = vld [vmem:[#allocation49_spill] sm:$0xff] }
 0x316   :  { %2895 = vmatprep.mubr.bf16.mxu0 %v10772_v25  ;;  %2948 = vmatprep.mubr.bf16.mxu1 %v10772_v25 }
 0x318   :  { %2962 = vmatpush1.bf16.msra.mxu0 %v10837_v37  ;;  %3015 = vmatpush1.bf16.msra.mxu1 %v10943_v17  ;;  %v10951_v17 = vld [vmem:[#allocation50_spill] sm:$0xff]  ;;  %v10954_v37 = vld [vmem:[#allocation53_spill] sm:$0xff] }
 0x319   :  { %2963 = vmatprep.subr.bf16.mxu0 %v10944_v21  ;;  %3016 = vmatprep.subr.bf16.mxu1 %v10945_v56  ;;  %v10952_v21 = vld [vmem:[#allocation51_spill] sm:$0xff]  ;;  %v10953_v56 = vld [vmem:[#allocation52_spill] sm:$0xff] }
 0x31b   :  { %2896 = vmatmul.mubr.bf16.gmra.mrb[148].mxu0 %v10946_v15  ;;  %2949 = vmatmul.mubr.bf16.gmra.mrb[148].mxu1 %v10946_v15 }
 0x31c   :  { %2964 = vmatpush1.bf16.msra.mxu0 %v10947_v54  ;;  %3017 = vmatpush1.bf16.msra.mxu1 %v10948_v8  ;;  %v10956_v54 = vld [vmem:[#allocation55_spill] sm:$0xff]  ;;  %v10957_v8 = vld [vmem:[#allocation57_spill] sm:$0xff] }
 0x31d   :  { %2965 = vmatprep.subr.bf16.mxu0 %v10949_v5  ;;  %3018 = vmatprep.subr.bf16.mxu1 %v10950_v14  ;;  %v10958_v5 = vld [vmem:[#allocation58_spill] sm:$0xff] }
 0x31e   :  { %2991 = vmatprep.mubr.bf16.mxu0 %v10772_v25  ;;  %3044 = vmatprep.mubr.bf16.mxu1 %v10772_v25 }
 0x320   :  { %2966 = vmatpush1.bf16.msra.mxu0 %v10951_v17  ;;  %3019 = vmatpush1.bf16.msra.mxu1 %v10952_v21  ;;  %v10962_v21 = vld [vmem:[#allocation56_spill] sm:$0xff] }
 0x321   :  { %2967 = vmatprep.subr.bf16.mxu0 %v10953_v56  ;;  %3020 = vmatprep.subr.bf16.mxu1 %v10954_v37  ;;  %v10964_v56 = vmax.f32 %v10962_v21, %v10963_v13  ;;  %v10973_v13 = vld [vmem:[#allocation112_spill] sm:$0xff] }
 0x324   :  { %2968 = vmatpush1.bf16.msra.mxu0 %v10955_v19  ;;  %3021 = vmatpush1.bf16.msra.mxu1 %v10956_v54  ;;  %v10965_v54 = vmax.f32 %v7140_v20, %v7288_v22  ;;  %v10974_v22 = vmax.f32 %v10898_v16, %v10973_v13  ;;  %v10981_v16 = vld [vmem:[#allocation64_spill] sm:$0xff] }
 0x325   :  { %2969 = vmatprep.subr.bf16.mxu0 %v10957_v8  ;;  %3022 = vmatprep.subr.bf16.mxu1 %v10958_v5  ;;  %v10966_v5 = vld [vmem:[#allocation68_spill] sm:$0xff] }
 0x326   :  { %v2155_v14 = vpop.f32.mrb[96].mxu0  ;;  %v2208_v3 = vpop.f32.mrb[96].mxu1  ;;  %v10968_v29 = vmax.f32 %v10966_v5, %v10967_v26  ;;  %v10977_v26 = vld [vmem:[#allocation65_spill] sm:$0xff] }
 0x327   :  { %v7491_v17 = vmax.f32 %v10961_v36, %v2155_v14  ;;  %v7496_v0 = vmax.f32 %v10964_v56, %v2208_v3  ;;  %v2157_v37 = vpop.f32.mrb[97].mxu0  ;;  %v2210_v19 = vpop.f32.mrb[97].mxu1  ;;  %v10969_v14 = vld [vmem:[#allocation60_spill] sm:$0xff]  ;;  %v10970_v36 = vld [vmem:[#allocation61_spill] sm:$0xff]  ;;  %v10971_v56 = vld [vmem:[#allocation111_spill] sm:$0xff] }
 0x328   :  { %v7501_v8 = vmax.f32 %v10965_v54, %v2157_v37  ;;  %v7506_v45 = vmax.f32 %v10968_v29, %v2210_v19  ;;  %v2159_v60 = vpop.f32.mrb[98].mxu0  ;;  %v2212_v9 = vpop.f32.mrb[98].mxu1  ;;  %2970 = vmatpush1.bf16.msra.mxu0 %v10969_v14  ;;  %3023 = vmatpush1.bf16.msra.mxu1 %v10970_v36  ;;  %v10972_v3 = vmax.f32 %v10897_v6, %v10971_v56  ;;  %v10976_v19 = vld [vmem:[#allocation62_spill] sm:$0xff]  ;;  %v10980_v56 = vld [vmem:[#allocation63_spill] sm:$0xff] }
 0x329   :  { %v7518_v37 = vmax.f32 %v10974_v22, %v2212_v9  ;;  %v2161_v20 = vpop.f32.mrb[99].mxu0  ;;  %v2214_v5 = vpop.f32.mrb[99].mxu1  ;;  %2971 = vmatprep.subr.bf16.mxu0 %v6779_v31  ;;  %3024 = vmatprep.subr.bf16.mxu1 %v10976_v19  ;;  %v10978_v29 = vmax.f32 %v10900_v11, %v10977_v26  ;;  %v10979_v6 = vmax.f32 %v10901_v23, %v7308_v39  ;;  %v10982_v9 = vld [vmem:[#allocation66_spill] sm:$0xff]  ;;  %v10985_v26 = vld [vmem:[#allocation93_spill] sm:$0xff] }
 0x32a   :  { %v7513_v21 = vmax.f32 %v10972_v3, %v2159_v60  ;;  %v10983_v3 = vld [vmem:[#allocation67_spill] sm:$0xff]  ;;  %v10984_v11 = vmax.f32 %v7160_v55, %v7320_v47  ;;  %v10986_v23 = vmax.f32 %v7162_v28, %v10985_v26  ;;  %v10990_v28 = vmax.f32 %v7170_v24, %v7336_v18 }
 0x32b   :  { %10975 = vst [vmem:[#allocation73_spill] sm:$0xff] %v7518_v37  ;;  %v7525_v54 = vmax.f32 %v10978_v29, %v2161_v20  ;;  %v7530_v60 = vmax.f32 %v10979_v6, %v2214_v5  ;;  %v10987_v6 = vmax.f32 %v7164_v33, %v7328_v7  ;;  %v10991_v7 = vmax.f32 %v7172_v51, %v7338_v27  ;;  %v10996_v51 = vld [vmem:[#allocation12_spill] sm:$0xff]  ;;  %v10999_v27 = vld [vmem:[#allocation27_spill] sm:$0xff] }
 0x32c   :  { %2972 = vmatpush1.bf16.msra.mxu0 %v10980_v56  ;;  %3025 = vmatpush1.bf16.msra.mxu1 %v10981_v16  ;;  %v10993_v24 = vmax.f32 %v7176_v62, %v7348_v4  ;;  %v10994_v4 = vld [vmem:[#allocation11_spill] sm:$0xff]  ;;  %v10997_v62 = vld [vmem:[#allocation26_spill] sm:$0xff] }
 0x32d   :  { %2973 = vmatprep.subr.bf16.mxu0 %v10982_v9  ;;  %3026 = vmatprep.subr.bf16.mxu1 %v10983_v3  ;;  %v10988_v3 = vmax.f32 %v7166_v43, %v7330_v63  ;;  %v10992_v63 = vmax.f32 %v7174_v34, %v7346_v32  ;;  %v10995_v34 = vld [vmem:[#allocation25_spill] sm:$0xff]  ;;  %v11001_v32 = vld [vmem:[#allocation28_spill] sm:$0xff]  ;;  %v11002_v26 = vld [vmem:[#allocation15_spill] sm:$0xff] }
 0x32e   :  { %v2165_v13 = vpop.f32.mrb[100].mxu0  ;;  %v2218_v22 = vpop.f32.mrb[100].mxu1 }
 0x32f   :  { %v7539_v20 = vmax.f32 %v10984_v11, %v2165_v13  ;;  %v7544_v39 = vmax.f32 %v10986_v23, %v2218_v22  ;;  %v2167_v5 = vpop.f32.mrb[101].mxu0  ;;  %v2220_v29 = vpop.f32.mrb[101].mxu1  ;;  %v10989_v13 = vld [vmem:[#allocation69_spill] sm:$0xff] }
 0x330   :  { %v7549_v9 = vmax.f32 %v10987_v6, %v2167_v5  ;;  %v7554_v16 = vmax.f32 %v10988_v3, %v2220_v29  ;;  %v2169_v47 = vpop.f32.mrb[102].mxu0  ;;  %v2222_v55 = vpop.f32.mrb[102].mxu1  ;;  %2974 = vmatpush1.bf16.msra.mxu0 %v6804_v58  ;;  %3027 = vmatpush1.bf16.msra.mxu1 %v10989_v13  ;;  %v11003_v23 = vld [vmem:[#allocation29_spill] sm:$0xff]  ;;  %v11004_v6 = vld [vmem:[#allocation96_spill] sm:$0xff] }
 0x331   :  { %v7561_v22 = vmax.f32 %v10990_v28, %v2169_v47  ;;  %v7566_v33 = vmax.f32 %v10991_v7, %v2222_v55  ;;  %v2171_v11 = vpop.f32.mrb[103].mxu0  ;;  %v2224_v43 = vpop.f32.mrb[103].mxu1  ;;  %3097 = vmatprep.subr.bf16.mxu0 %v6457_v38  ;;  %3150 = vmatprep.subr.bf16.mxu1 %v6460_v40  ;;  %v11005_v47 = vld [vmem:[#allocation94_spill] sm:$0xff]  ;;  %v11007_v7 = vld [vmem:[#allocation97_spill] sm:$0xff] }
 0x332   :  { %v7573_v3 = vmax.f32 %v10992_v63, %v2171_v11  ;;  %v7578_v18 = vmax.f32 %v10993_v24, %v2224_v43  ;;  %v11006_v55 = vmax.f32 %v11004_v6, %v11005_v47  ;;  %v11008_v11 = vld [vmem:[#allocation95_spill] sm:$0xff]  ;;  %v11017_v47 = vld [vmem:[#allocation16_spill] sm:$0xff] }
 0x333   :  { %2992 = vmatmul.mubr.bf16.vlgmr.msra.gmra.mrb[152].mxu0 %v10939_v35  ;;  %3045 = vmatmul.mubr.bf16.vlgmr.msra.gmra.mrb[152].mxu1 %v10939_v35  ;;  %v10998_v35 = vld [vmem:[#allocation13_spill] sm:$0xff]  ;;  %v11009_v43 = vmax.f32 %v11007_v7, %v11008_v11 }
 0x334   :  { %3098 = vmatpush1.bf16.msra.mxu0 %v6463_v41  ;;  %3151 = vmatpush1.bf16.msra.mxu1 %v6465_v42 }
 0x335   :  { %3099 = vmatprep.subr.bf16.mxu0 %v6481_v48  ;;  %3152 = vmatprep.subr.bf16.mxu1 %v6533_v30 }
 0x336   :  { %3001 = vmatprep.mubr.bf16.mxu0 %v10772_v25  ;;  %3054 = vmatprep.mubr.bf16.mxu1 %v10772_v25 }
 0x338   :  { %3100 = vmatpush1.bf16.msra.mxu0 %v6484_v49  ;;  %3153 = vmatpush1.bf16.msra.mxu1 %v6541_v44 }
 0x339   :  { %3101 = vmatprep.subr.bf16.mxu0 %v6487_v52  ;;  %3154 = vmatprep.subr.bf16.mxu1 %v6544_v46 }
 0x33b   :  { %3002 = vmatmul.mubr.bf16.gmra.mrb[156].mxu0 %v10946_v15  ;;  %3055 = vmatmul.mubr.bf16.gmra.mrb[156].mxu1 %v10946_v15  ;;  %v11000_v15 = vld [vmem:[#allocation14_spill] sm:$0xff] }
 0x33c   :  { %3102 = vmatpush1.bf16.msra.mxu0 %v6490_v53  ;;  %3155 = vmatpush1.bf16.msra.mxu1 %v6547_v59 }
 0x33d   :  { %3103 = vmatprep.subr.bf16.mxu0 %v10994_v4  ;;  %3156 = vmatprep.subr.bf16.mxu1 %v10995_v34 }
 0x33e   :  { %3129 = vmatprep.mubr.bf16.mxu0 %v10772_v25  ;;  %3182 = vmatprep.mubr.bf16.mxu1 %v10772_v25 }
 0x340   :  { %3104 = vmatpush1.bf16.msra.mxu0 %v10996_v51  ;;  %3157 = vmatpush1.bf16.msra.mxu1 %v10997_v62 }
 0x341   :  { %3105 = vmatprep.subr.bf16.mxu0 %v10998_v35  ;;  %3158 = vmatprep.subr.bf16.mxu1 %v10999_v27 }
 0x344   :  { %3106 = vmatpush1.bf16.msra.mxu0 %v11000_v15  ;;  %3159 = vmatpush1.bf16.msra.mxu1 %v11001_v32  ;;  %v11011_v32 = vld [vmem:[#allocation113_spill] sm:$0xff] }
 0x345   :  { %3107 = vmatprep.subr.bf16.mxu0 %v11002_v26  ;;  %3160 = vmatprep.subr.bf16.mxu1 %v11003_v23  ;;  %v11012_v27 = vmax.f32 %v7212_v2, %v11011_v32  ;;  %v11014_v23 = vld [vmem:[#allocation114_spill] sm:$0xff]  ;;  %v11022_v2 = vld [vmem:[#allocation116_spill] sm:$0xff] }
 0x346   :  { %v2261_v5 = vpop.f32.mrb[104].mxu0  ;;  %v2314_v29 = vpop.f32.mrb[104].mxu1  ;;  %v11015_v35 = vmax.f32 %v7214_v57, %v11014_v23  ;;  %v11027_v23 = vld [vmem:[#allocation100_spill] sm:$0xff] }
 0x347   :  { %v7611_v28 = vmax.f32 %v11006_v55, %v2261_v5  ;;  %v7616_v63 = vmax.f32 %v11009_v43, %v2314_v29  ;;  %v2263_v24 = vpop.f32.mrb[105].mxu0  ;;  %v2316_v15 = vpop.f32.mrb[105].mxu1  ;;  %v11018_v55 = vld [vmem:[#allocation30_spill] sm:$0xff]  ;;  %v11019_v29 = vld [vmem:[#allocation115_spill] sm:$0xff] }
 0x348   :  { %v7621_v26 = vmax.f32 %v11012_v27, %v2263_v24  ;;  %v7626_v62 = vmax.f32 %v11015_v35, %v2316_v15  ;;  %v2265_v6 = vpop.f32.mrb[106].mxu0  ;;  %v2318_v5 = vpop.f32.mrb[106].mxu1  ;;  %3108 = vmatpush1.bf16.msra.mxu0 %v11017_v47  ;;  %3161 = vmatpush1.bf16.msra.mxu1 %v11018_v55  ;;  %v11020_v7 = vmax.f32 %v10919_v10, %v11019_v29  ;;  %v11021_v43 = vld [vmem:[#allocation99_spill] sm:$0xff]  ;;  %v11025_v35 = vld [vmem:[#allocation17_spill] sm:$0xff]  ;;  %v11028_v47 = vld [vmem:[#allocation98_spill] sm:$0xff] }
 0x349   :  { %11010 = vst [vmem:[#allocation72_spill] sm:$0xff] %v7616_v63  ;;  %v11023_v27 = vmax.f32 %v11021_v43, %v11022_v2  ;;  %v2267_v24 = vpop.f32.mrb[107].mxu0  ;;  %v2320_v57 = vpop.f32.mrb[107].mxu1  ;;  %3109 = vmatprep.subr.bf16.mxu0 %v11025_v35  ;;  %v11026_v15 = vld [vmem:[#allocation31_spill] sm:$0xff]  ;;  %v11031_v10 = vmax.f32 %v10924_v1, %v7412_v12  ;;  %v11033_v29 = vld [vmem:[#allocation18_spill] sm:$0xff]  ;;  %v11036_v43 = vld [vmem:[#allocation33_spill] sm:$0xff] }
 0x34a   :  { %11013 = vst [vmem:[#allocation59_spill] sm:$0xff] %v7621_v26  ;;  %11016 = vst [vmem:[#allocation71_spill] sm:$0xff] %v7626_v62  ;;  %v7633_v11 = vmax.f32 %v11020_v7, %v2265_v6  ;;  %3162 = vmatprep.subr.bf16.mxu1 %v11026_v15  ;;  %v11029_v62 = vmax.f32 %v11027_v23, %v11028_v47  ;;  %v11035_v7 = vld [vmem:[#allocation19_spill] sm:$0xff]  ;;  %v11037_v47 = vmax.f32 %v10929_v50, %v7424_v61  ;;  %v11039_v23 = vld [vmem:[#allocation101_spill] sm:$0xff] }
 0x34b   :  { %v7638_v32 = vmax.f32 %v11023_v27, %v2318_v5  ;;  %v7650_v6 = vmax.f32 %v11031_v10, %v2320_v57  ;;  %v11034_v5 = vld [vmem:[#allocation32_spill] sm:$0xff]  ;;  %v11120_v26 = vld [vmem:[#allocation18_spill] sm:$0xff] }
 0x34c   :  { %v7645_v55 = vmax.f32 %v11029_v62, %v2267_v24  ;;  %3110 = vmatpush1.bf16.msra.mxu0 %v11033_v29  ;;  %3163 = vmatpush1.bf16.msra.mxu1 %v11034_v5  ;;  %v11038_v24 = vld [vmem:[#allocation103_spill] sm:$0xff]  ;;  %v11042_v29 = vld [vmem:[#allocation104_spill] sm:$0xff]  ;;  %v11043_v5 = vld [vmem:[#allocation102_spill] sm:$0xff] }
 0x34d   :  { %11024 = vst [vmem:[#allocation56_spill] sm:$0xff] %v7638_v32  ;;  %11032 = vst [vmem:[#allocation68_spill] sm:$0xff] %v7650_v6  ;;  %3111 = vmatprep.subr.bf16.mxu0 %v11035_v7  ;;  %3164 = vmatprep.subr.bf16.mxu1 %v11036_v43  ;;  %v11040_v1 = vmax.f32 %v11038_v24, %v11039_v23  ;;  %v11044_v6 = vmax.f32 %v11042_v29, %v11043_v5  ;;  %v11046_v43 = vld [vmem:[#allocation105_spill] sm:$0xff]  ;;  %v11053_v24 = vld [vmem:[#allocation118_spill] sm:$0xff] }
 0x34e   :  { %11030 = vst [vmem:[#allocation70_spill] sm:$0xff] %v7645_v55  ;;  %v2271_v2 = vpop.f32.mrb[108].mxu0  ;;  %v2324_v27 = vpop.f32.mrb[108].mxu1  ;;  %v11047_v55 = vld [vmem:[#allocation117_spill] sm:$0xff]  ;;  %v11056_v29 = vld [vmem:[#allocation119_spill] sm:$0xff] }
 0x34f   :  { %v7659_v62 = vmax.f32 %v11037_v47, %v2271_v2  ;;  %v7664_v12 = vmax.f32 %v11040_v1, %v2324_v27  ;;  %v2273_v57 = vpop.f32.mrb[109].mxu0  ;;  %v2326_v10 = vpop.f32.mrb[109].mxu1  ;;  %v11048_v15 = vmax.f32 %v11046_v43, %v11047_v55  ;;  %v11050_v2 = vld [vmem:[#allocation20_spill] sm:$0xff]  ;;  %v11051_v47 = vld [vmem:[#allocation34_spill] sm:$0xff] }
 0x350   :  { %v7669_v7 = vmax.f32 %v11044_v6, %v2273_v57  ;;  %v2275_v61 = vpop.f32.mrb[110].mxu0  ;;  %v2328_v50 = vpop.f32.mrb[110].mxu1  ;;  %3112 = vmatpush1.bf16.msra.mxu0 %v11050_v2  ;;  %3165 = vmatpush1.bf16.msra.mxu1 %v11051_v47  ;;  %v11052_v27 = vld [vmem:[#allocation106_spill] sm:$0xff]  ;;  %v11060_v43 = vld [vmem:[#allocation36_spill] sm:$0xff] }
 0x351   :  { %11041 = vst [vmem:[#allocation110_spill] sm:$0xff] %v7664_v12  ;;  %v7674_v35 = vmax.f32 %v11048_v15, %v2326_v10  ;;  %v11054_v23 = vmax.f32 %v11052_v27, %v11053_v24  ;;  %v11055_v12 = vld [vmem:[#allocation107_spill] sm:$0xff]  ;;  %v2277_v57 = vpop.f32.mrb[111].mxu0  ;;  %v2330_v55 = vpop.f32.mrb[111].mxu1  ;;  %3256 = vmatprep.subr.bf16.mxu1 %v11060_v43  ;;  %v11061_v10 = vld [vmem:[#allocation108_spill] sm:$0xff]  ;;  %v11066_v27 = vld [vmem:[#allocation121_spill] sm:$0xff] }
 0x352   :  { %11045 = vst [vmem:[#allocation60_spill] sm:$0xff] %v7669_v7  ;;  %v11057_v6 = vmax.f32 %v11055_v12, %v11056_v29  ;;  %v11059_v15 = vld [vmem:[#allocation35_spill] sm:$0xff]  ;;  %v11062_v2 = vld [vmem:[#allocation120_spill] sm:$0xff]  ;;  %v11065_v7 = vld [vmem:[#allocation109_spill] sm:$0xff] }
 0x353   :  { %11049 = vst [vmem:[#allocation111_spill] sm:$0xff] %v7674_v35  ;;  %v7681_v1 = vmax.f32 %v11054_v23, %v2275_v61  ;;  %3203 = vmatprep.subr.bf16.mxu0 %v11059_v15  ;;  %v11063_v35 = vmax.f32 %v11061_v10, %v11062_v2  ;;  %v11067_v61 = vmax.f32 %v11065_v7, %v11066_v27  ;;  %v11069_v23 = vld [vmem:[#allocation75_spill] sm:$0xff]  ;;  %v11070_v12 = vld [vmem:[#allocation37_spill] sm:$0xff]  ;;  %v11075_v7 = vld [vmem:[#allocation42_spill] sm:$0xff] }
 0x354   :  { %v7686_v5 = vmax.f32 %v11057_v6, %v2328_v50  ;;  %3130 = vmatmul.mubr.bf16.vlgmr.msra.gmra.mrb[160].mxu0 %v11069_v23  ;;  %3183 = vmatmul.mubr.bf16.vlgmr.msra.gmra.mrb[160].mxu1 %v11069_v23  ;;  %v11071_v50 = vld [vmem:[#allocation38_spill] sm:$0xff]  ;;  %v11072_v29 = vld [vmem:[#allocation39_spill] sm:$0xff]  ;;  %v11073_v6 = vld [vmem:[#allocation40_spill] sm:$0xff] }
 0x355   :  { %v7693_v47 = vmax.f32 %v11063_v35, %v2277_v57  ;;  %v7698_v24 = vmax.f32 %v11067_v61, %v2330_v55  ;;  %3204 = vmatpush1.bf16.msra.mxu0 %v11070_v12  ;;  %3257 = vmatpush1.bf16.msra.mxu1 %v11071_v50  ;;  %v11074_v35 = vld [vmem:[#allocation41_spill] sm:$0xff]  ;;  %v11076_v2 = vld [vmem:[#allocation43_spill] sm:$0xff]  ;;  %v11077_v57 = vld [vmem:[#allocation44_spill] sm:$0xff] }
 0x356   :  { %11058 = vst [vmem:[#allocation112_spill] sm:$0xff] %v7686_v5  ;;  %3205 = vmatprep.subr.bf16.mxu0 %v11072_v29  ;;  %3258 = vmatprep.subr.bf16.mxu1 %v11073_v6  ;;  %v11078_v55 = vld [vmem:[#allocation74_spill] sm:$0xff]  ;;  %v11079_v10 = vld [vmem:[#allocation45_spill] sm:$0xff]  ;;  %v11081_v61 = vld [vmem:[#allocation48_spill] sm:$0xff] }
 0x357   :  { %11064 = vst [vmem:[#allocation65_spill] sm:$0xff] %v7693_v47  ;;  %11068 = vst [vmem:[#allocation93_spill] sm:$0xff] %v7698_v24  ;;  %3139 = vmatprep.mubr.bf16.mxu0 %v10772_v25  ;;  %3192 = vmatprep.mubr.bf16.mxu1 %v10772_v25  ;;  %v11080_v27 = vld [vmem:[#allocation46_spill] sm:$0xff]  ;;  %v11082_v6 = vld [vmem:[#allocation49_spill] sm:$0xff] }
 0x358   :  { %v11087_v29 = vld [vmem:[#allocation54_spill] sm:$0xff]  ;;  %v11142_v24 = vld [vmem:[#allocation76_spill] sm:$0xff] }
 0x359   :  { %3206 = vmatpush1.bf16.msra.mxu0 %v11074_v35  ;;  %3259 = vmatpush1.bf16.msra.mxu1 %v11075_v7  ;;  %v11083_v7 = vld [vmem:[#allocation50_spill] sm:$0xff]  ;;  %v11086_v35 = vld [vmem:[#allocation53_spill] sm:$0xff] }
 0x35a   :  { %3207 = vmatprep.subr.bf16.mxu0 %v11076_v2  ;;  %3260 = vmatprep.subr.bf16.mxu1 %v11077_v57  ;;  %v11084_v2 = vld [vmem:[#allocation51_spill] sm:$0xff]  ;;  %v11085_v57 = vld [vmem:[#allocation52_spill] sm:$0xff]  ;;  %v11151_v47 = vld [vmem:[#allocation54_spill] sm:$0xff] }
 0x35c   :  { %3140 = vmatmul.mubr.bf16.gmra.mrb[164].mxu0 %v11078_v55  ;;  %3193 = vmatmul.mubr.bf16.gmra.mrb[164].mxu1 %v11078_v55 }
 0x35d   :  { %3208 = vmatpush1.bf16.msra.mxu0 %v11079_v10  ;;  %3261 = vmatpush1.bf16.msra.mxu1 %v11080_v27  ;;  %v11088_v10 = vld [vmem:[#allocation55_spill] sm:$0xff]  ;;  %v11089_v27 = vld [vmem:[#allocation57_spill] sm:$0xff] }
 0x35e   :  { %3209 = vmatprep.subr.bf16.mxu0 %v11081_v61  ;;  %3262 = vmatprep.subr.bf16.mxu1 %v11082_v6  ;;  %v11090_v61 = vld [vmem:[#allocation58_spill] sm:$0xff] }
 0x35f   :  { %3235 = vmatprep.mubr.bf16.mxu0 %v10772_v25  ;;  %3288 = vmatprep.mubr.bf16.mxu1 %v10772_v25 }
 0x361   :  { %3210 = vmatpush1.bf16.msra.mxu0 %v11083_v7  ;;  %3263 = vmatpush1.bf16.msra.mxu1 %v11084_v2  ;;  %v11097_v7 = vld [vmem:[#allocation67_spill] sm:$0xff] }
 0x362   :  { %3211 = vmatprep.subr.bf16.mxu0 %v11085_v57  ;;  %3264 = vmatprep.subr.bf16.mxu1 %v11086_v35  ;;  %v11095_v57 = vld [vmem:[#allocation64_spill] sm:$0xff] }
 0x365   :  { %3212 = vmatpush1.bf16.msra.mxu0 %v11087_v29  ;;  %3265 = vmatpush1.bf16.msra.mxu1 %v11088_v10 }
 0x366   :  { %3213 = vmatprep.subr.bf16.mxu0 %v11089_v27  ;;  %3266 = vmatprep.subr.bf16.mxu1 %v11090_v61  ;;  %v7728_v6 = vpop.f32.mrb[112].mxu0  ;;  %v7730_v50 = vpop.f32.mrb[112].mxu1  ;;  %v11104_v61 = vld [vmem:[#allocation15_spill] sm:$0xff] }
 0x367   :  { %11091 = vst [vmem:[#allocation96_spill] sm:$0xff] %v7730_v50  ;;  %v7736_v2 = vpop.f32.mrb[113].mxu0  ;;  %v7738_v35 = vpop.f32.mrb[113].mxu1 }
 0x368   :  { %v7744_v27 = vpop.f32.mrb[114].mxu0  ;;  %v7746_v29 = vpop.f32.mrb[114].mxu1 }
 0x369   :  { %11092 = vst [vmem:[#allocation94_spill] sm:$0xff] %v7744_v27  ;;  %11093 = vst [vmem:[#allocation97_spill] sm:$0xff] %v7746_v29  ;;  %3214 = vmatpush1.bf16.msra.mxu0 %v10969_v14  ;;  %3267 = vmatpush1.bf16.msra.mxu1 %v10970_v36  ;;  %v7754_v50 = vpop.f32.mrb[115].mxu0  ;;  %v7756_v10 = vpop.f32.mrb[115].mxu1  ;;  %v11096_v27 = vld [vmem:[#allocation66_spill] sm:$0xff] }
 0x36a   :  { %11094 = vst [vmem:[#allocation95_spill] sm:$0xff] %v7754_v50  ;;  %3215 = vmatprep.subr.bf16.mxu0 %v6779_v31  ;;  %3268 = vmatprep.subr.bf16.mxu1 %v10976_v19  ;;  %v11103_v19 = vld [vmem:[#allocation28_spill] sm:$0xff] }
 0x36d   :  { %3216 = vmatpush1.bf16.msra.mxu0 %v10980_v56  ;;  %3269 = vmatpush1.bf16.msra.mxu1 %v11095_v57 }
 0x36e   :  { %3217 = vmatprep.subr.bf16.mxu0 %v11096_v27  ;;  %3270 = vmatprep.subr.bf16.mxu1 %v11097_v7  ;;  %v7768_v29 = vpop.f32.mrb[116].mxu0  ;;  %v7770_v37 = vpop.f32.mrb[116].mxu1  ;;  %v11101_v7 = vld [vmem:[#allocation27_spill] sm:$0xff] }
 0x36f   :  { %11098 = vst [vmem:[#allocation113_spill] sm:$0xff] %v7770_v37  ;;  %v7776_v50 = vpop.f32.mrb[117].mxu0  ;;  %v7778_v36 = vpop.f32.mrb[117].mxu1 }
 0x370   :  { %v7784_v27 = vpop.f32.mrb[118].mxu0  ;;  %v7786_v56 = vpop.f32.mrb[118].mxu1 }
 0x371   :  { %3218 = vmatpush1.bf16.msra.mxu0 %v6804_v58  ;;  %3271 = vmatpush1.bf16.msra.mxu1 %v10989_v13  ;;  %v7794_v37 = vpop.f32.mrb[119].mxu0  ;;  %v7796_v57 = vpop.f32.mrb[119].mxu1  ;;  %v11100_v13 = vld [vmem:[#allocation13_spill] sm:$0xff] }
 0x372   :  { %3341 = vmatprep.subr.bf16.mxu0 %v6457_v38  ;;  %3394 = vmatprep.subr.bf16.mxu1 %v6460_v40 }
 0x374   :  { %3236 = vmatmul.mubr.bf16.vlgmr.msra.gmra.mrb[168].mxu0 %v11069_v23  ;;  %3289 = vmatmul.mubr.bf16.vlgmr.msra.gmra.mrb[168].mxu1 %v11069_v23  ;;  %v11099_v23 = vld [vmem:[#allocation26_spill] sm:$0xff] }
 0x375   :  { %3342 = vmatpush1.bf16.msra.mxu0 %v6463_v41  ;;  %3395 = vmatpush1.bf16.msra.mxu1 %v6465_v42 }
 0x376   :  { %3343 = vmatprep.subr.bf16.mxu0 %v6481_v48  ;;  %3396 = vmatprep.subr.bf16.mxu1 %v6533_v30 }
 0x377   :  { %3245 = vmatprep.mubr.bf16.mxu0 %v10772_v25  ;;  %3298 = vmatprep.mubr.bf16.mxu1 %v10772_v25 }
 0x379   :  { %3344 = vmatpush1.bf16.msra.mxu0 %v6484_v49  ;;  %3397 = vmatpush1.bf16.msra.mxu1 %v6541_v44 }
 0x37a   :  { %3345 = vmatprep.subr.bf16.mxu0 %v6487_v52  ;;  %3398 = vmatprep.subr.bf16.mxu1 %v6544_v46  ;;  %v11112_v46 = vld [vmem:[#allocation16_spill] sm:$0xff] }
 0x37c   :  { %3246 = vmatmul.mubr.bf16.gmra.mrb[172].mxu0 %v11078_v55  ;;  %3299 = vmatmul.mubr.bf16.gmra.mrb[172].mxu1 %v11078_v55  ;;  %v11102_v55 = vld [vmem:[#allocation14_spill] sm:$0xff] }
 0x37d   :  { %3346 = vmatpush1.bf16.msra.mxu0 %v6490_v53  ;;  %3399 = vmatpush1.bf16.msra.mxu1 %v6547_v59 }
 0x37e   :  { %3347 = vmatprep.subr.bf16.mxu0 %v10994_v4  ;;  %3400 = vmatprep.subr.bf16.mxu1 %v10995_v34  ;;  %v11105_v4 = vld [vmem:[#allocation29_spill] sm:$0xff] }
 0x37f   :  { %3373 = vmatprep.mubr.bf16.mxu0 %v10772_v25  ;;  %3426 = vmatprep.mubr.bf16.mxu1 %v10772_v25 }
 0x381   :  { %3348 = vmatpush1.bf16.msra.mxu0 %v10996_v51  ;;  %3401 = vmatpush1.bf16.msra.mxu1 %v11099_v23  ;;  %v11113_v51 = vld [vmem:[#allocation30_spill] sm:$0xff] }
 0x382   :  { %3349 = vmatprep.subr.bf16.mxu0 %v11100_v13  ;;  %3402 = vmatprep.subr.bf16.mxu1 %v11101_v7  ;;  %v11121_v13 = vld [vmem:[#allocation32_spill] sm:$0xff] }
 0x385   :  { %3350 = vmatpush1.bf16.msra.mxu0 %v11102_v55  ;;  %3403 = vmatpush1.bf16.msra.mxu1 %v11103_v19 }
 0x386   :  { %3351 = vmatprep.subr.bf16.mxu0 %v11104_v61  ;;  %3404 = vmatprep.subr.bf16.mxu1 %v11105_v4  ;;  %v7832_v34 = vpop.f32.mrb[120].mxu0  ;;  %v7834_v59 = vpop.f32.mrb[120].mxu1  ;;  %v11117_v4 = vld [vmem:[#allocation31_spill] sm:$0xff] }
 0x387   :  { %11106 = vst [vmem:[#allocation114_spill] sm:$0xff] %v7834_v59  ;;  %v7840_v23 = vpop.f32.mrb[121].mxu0  ;;  %v7842_v7 = vpop.f32.mrb[121].mxu1  ;;  %v11123_v59 = vld [vmem:[#allocation33_spill] sm:$0xff] }
 0x388   :  { %11107 = vst [vmem:[#allocation115_spill] sm:$0xff] %v7840_v23  ;;  %11108 = vst [vmem:[#allocation99_spill] sm:$0xff] %v7842_v7  ;;  %v7848_v55 = vpop.f32.mrb[122].mxu0  ;;  %v7850_v53 = vpop.f32.mrb[122].mxu1  ;;  %v11116_v23 = vld [vmem:[#allocation17_spill] sm:$0xff] }
 0x389   :  { %11110 = vst [vmem:[#allocation116_spill] sm:$0xff] %v7848_v55  ;;  %11111 = vst [vmem:[#allocation100_spill] sm:$0xff] %v7850_v53  ;;  %3352 = vmatpush1.bf16.msra.mxu0 %v11112_v46  ;;  %3405 = vmatpush1.bf16.msra.mxu1 %v11113_v51  ;;  %v7858_v63 = vpop.f32.mrb[123].mxu0  ;;  %v7860_v19 = vpop.f32.mrb[123].mxu1  ;;  %v11122_v55 = vld [vmem:[#allocation19_spill] sm:$0xff] }
 0x38a   :  { %11114 = vst [vmem:[#allocation98_spill] sm:$0xff] %v7858_v63  ;;  %11115 = vst [vmem:[#allocation103_spill] sm:$0xff] %v7860_v19  ;;  %3353 = vmatprep.subr.bf16.mxu0 %v11116_v23  ;;  %3406 = vmatprep.subr.bf16.mxu1 %v11117_v4  ;;  %v11130_v23 = vld [vmem:[#allocation20_spill] sm:$0xff]  ;;  %v11131_v4 = vld [vmem:[#allocation34_spill] sm:$0xff] }
 0x38b   :  { %v11136_v63 = vld [vmem:[#allocation39_spill] sm:$0xff] }
 0x38d   :  { %3354 = vmatpush1.bf16.msra.mxu0 %v11120_v26  ;;  %3407 = vmatpush1.bf16.msra.mxu1 %v11121_v13  ;;  %v11126_v13 = vld [vmem:[#allocation60_spill] sm:$0xff] }
 0x38e   :  { %3355 = vmatprep.subr.bf16.mxu0 %v11122_v55  ;;  %3408 = vmatprep.subr.bf16.mxu1 %v11123_v59  ;;  %v7872_v53 = vpop.f32.mrb[124].mxu0  ;;  %v7874_v32 = vpop.f32.mrb[124].mxu1  ;;  %v11127_v55 = vld [vmem:[#allocation111_spill] sm:$0xff]  ;;  %v11138_v59 = vld [vmem:[#allocation41_spill] sm:$0xff] }
 0x38f   :  { %11124 = vst [vmem:[#allocation101_spill] sm:$0xff] %v7874_v32  ;;  %v7880_v7 = vpop.f32.mrb[125].mxu0  ;;  %v7882_v51 = vpop.f32.mrb[125].mxu1  ;;  %v11135_v32 = vld [vmem:[#allocation38_spill] sm:$0xff] }
 0x390   :  { %v7888_v19 = vpop.f32.mrb[126].mxu0  ;;  %v7890_v46 = vpop.f32.mrb[126].mxu1 }
 0x391   :  { %11128 = vst [vmem:[#allocation104_spill] sm:$0xff] %v7888_v19  ;;  %11129 = vst [vmem:[#allocation102_spill] sm:$0xff] %v7890_v46  ;;  %3356 = vmatpush1.bf16.msra.mxu0 %v11130_v23  ;;  %3409 = vmatpush1.bf16.msra.mxu1 %v11131_v4  ;;  %v7898_v61 = vpop.f32.mrb[127].mxu0  ;;  %v7900_v26 = vpop.f32.mrb[127].mxu1  ;;  %v11134_v23 = vld [vmem:[#allocation77_spill] sm:$0xff]  ;;  %v11137_v46 = vld [vmem:[#allocation40_spill] sm:$0xff] }
 0x392   :  { %11132 = vst [vmem:[#allocation105_spill] sm:$0xff] %v7898_v61  ;;  %11133 = vst [vmem:[#allocation117_spill] sm:$0xff] %v7900_v26  ;;  %3447 = vmatprep.subr.bf16.mxu0 %v11059_v15  ;;  %3500 = vmatprep.subr.bf16.mxu1 %v11060_v43  ;;  %v11139_v61 = vld [vmem:[#allocation42_spill] sm:$0xff]  ;;  %v11140_v4 = vld [vmem:[#allocation43_spill] sm:$0xff]  ;;  %v11155_v15 = vmax.f32 %v7491_v17, %v7728_v6 }
 0x393   :  { %v11141_v26 = vld [vmem:[#allocation44_spill] sm:$0xff] }
 0x394   :  { %3374 = vmatmul.mubr.bf16.vlgmr.msra.gmra.mrb[176].mxu0 %v11134_v23  ;;  %3427 = vmatmul.mubr.bf16.vlgmr.msra.gmra.mrb[176].mxu1 %v11134_v23 }
 0x395   :  { %3448 = vmatpush1.bf16.msra.mxu0 %v11070_v12  ;;  %3501 = vmatpush1.bf16.msra.mxu1 %v11135_v32  ;;  %v11143_v32 = vld [vmem:[#allocation45_spill] sm:$0xff] }
 0x396   :  { %3449 = vmatprep.subr.bf16.mxu0 %v11136_v63  ;;  %3502 = vmatprep.subr.bf16.mxu1 %v11137_v46  ;;  %v11144_v63 = vld [vmem:[#allocation46_spill] sm:$0xff]  ;;  %v11145_v46 = vld [vmem:[#allocation48_spill] sm:$0xff]  ;;  %v11146_v12 = vld [vmem:[#allocation49_spill] sm:$0xff] }
 0x397   :  { %3383 = vmatprep.mubr.bf16.mxu0 %v10772_v25  ;;  %3436 = vmatprep.mubr.bf16.mxu1 %v10772_v25 }
 0x399   :  { %3450 = vmatpush1.bf16.msra.mxu0 %v11138_v59  ;;  %3503 = vmatpush1.bf16.msra.mxu1 %v11139_v61  ;;  %v11147_v61 = vld [vmem:[#allocation50_spill] sm:$0xff]  ;;  %v11150_v59 = vld [vmem:[#allocation53_spill] sm:$0xff] }
 0x39a   :  { %3451 = vmatprep.subr.bf16.mxu0 %v11140_v4  ;;  %3504 = vmatprep.subr.bf16.mxu1 %v11141_v26  ;;  %v11148_v4 = vld [vmem:[#allocation51_spill] sm:$0xff]  ;;  %v11149_v26 = vld [vmem:[#allocation52_spill] sm:$0xff] }
 0x39c   :  { %3384 = vmatmul.mubr.bf16.gmra.mrb[180].mxu0 %v11142_v24  ;;  %3437 = vmatmul.mubr.bf16.gmra.mrb[180].mxu1 %v11142_v24 }
 0x39d   :  { %3452 = vmatpush1.bf16.msra.mxu0 %v11143_v32  ;;  %3505 = vmatpush1.bf16.msra.mxu1 %v11144_v63  ;;  %v11152_v32 = vld [vmem:[#allocation55_spill] sm:$0xff]  ;;  %v11153_v63 = vld [vmem:[#allocation57_spill] sm:$0xff] }
 0x39e   :  { %3453 = vmatprep.subr.bf16.mxu0 %v11145_v46  ;;  %3506 = vmatprep.subr.bf16.mxu1 %v11146_v12  ;;  %v11154_v46 = vld [vmem:[#allocation58_spill] sm:$0xff] }
 0x39f   :  { %3479 = vmatprep.mubr.bf16.mxu0 %v10772_v25  ;;  %3532 = vmatprep.mubr.bf16.mxu1 %v10772_v25 }
 0x3a1   :  { %3454 = vmatpush1.bf16.msra.mxu0 %v11147_v61  ;;  %3507 = vmatpush1.bf16.msra.mxu1 %v11148_v4  ;;  %v11156_v4 = vld [vmem:[#allocation96_spill] sm:$0xff] }
 0x3a2   :  { %3455 = vmatprep.subr.bf16.mxu0 %v11149_v26  ;;  %3508 = vmatprep.subr.bf16.mxu1 %v11150_v59  ;;  %v11157_v26 = vmax.f32 %v7496_v0, %v11156_v4  ;;  %v11161_v0 = vld [vmem:[#allocation94_spill] sm:$0xff] }
 0x3a3   :  { %v11162_v4 = vmax.f32 %v7513_v21, %v11161_v0  ;;  %v11170_v21 = vmax.f32 %v7530_v60, %v7756_v10  ;;  %v11171_v0 = vld [vmem:[#allocation63_spill] sm:$0xff] }
 0x3a5   :  { %3456 = vmatpush1.bf16.msra.mxu0 %v11151_v47  ;;  %3509 = vmatpush1.bf16.msra.mxu1 %v11152_v32  ;;  %v11158_v32 = vmax.f32 %v7501_v8, %v7736_v2  ;;  %v11164_v8 = vld [vmem:[#allocation97_spill] sm:$0xff] }
 0x3a6   :  { %3457 = vmatprep.subr.bf16.mxu0 %v11153_v63  ;;  %3510 = vmatprep.subr.bf16.mxu1 %v11154_v46  ;;  %v2643_v12 = vpop.f32.mrb[128].mxu0  ;;  %v2696_v43 = vpop.f32.mrb[128].mxu1  ;;  %v11159_v46 = vmax.f32 %v7506_v45, %v7738_v35 }
 0x3a7   :  { %v7939_v61 = vmax.f32 %v11155_v15, %v2643_v12  ;;  %v7944_v5 = vmax.f32 %v11157_v26, %v2696_v43  ;;  %v2645_v59 = vpop.f32.mrb[129].mxu0  ;;  %v2698_v47 = vpop.f32.mrb[129].mxu1  ;;  %v11160_v12 = vld [vmem:[#allocation61_spill] sm:$0xff] }
 0x3a8   :  { %v7949_v63 = vmax.f32 %v11158_v32, %v2645_v59  ;;  %v7954_v19 = vmax.f32 %v11159_v46, %v2698_v47  ;;  %v2647_v17 = vpop.f32.mrb[130].mxu0  ;;  %v2700_v15 = vpop.f32.mrb[130].mxu1  ;;  %v11163_v43 = vld [vmem:[#allocation73_spill] sm:$0xff]  ;;  %v11167_v46 = vld [vmem:[#allocation62_spill] sm:$0xff]  ;;  %v11168_v47 = vld [vmem:[#allocation95_spill] sm:$0xff] }
 0x3a9   :  { %3458 = vmatpush1.bf16.msra.mxu0 %v10969_v14  ;;  %3511 = vmatpush1.bf16.msra.mxu1 %v11160_v12  ;;  %v7961_v26 = vmax.f32 %v11162_v4, %v2647_v17  ;;  %v11165_v59 = vmax.f32 %v11163_v43, %v11164_v8  ;;  %v2649_v6 = vpop.f32.mrb[131].mxu0  ;;  %v2702_v45 = vpop.f32.mrb[131].mxu1  ;;  %v11169_v35 = vmax.f32 %v7525_v54, %v11168_v47  ;;  %v11173_v4 = vld [vmem:[#allocation66_spill] sm:$0xff]  ;;  %v11174_v43 = vld [vmem:[#allocation67_spill] sm:$0xff]  ;;  %v11176_v47 = vld [vmem:[#allocation113_spill] sm:$0xff] }
 0x3aa   :  { %3459 = vmatprep.subr.bf16.mxu0 %v6779_v31  ;;  %3512 = vmatprep.subr.bf16.mxu1 %v11167_v46  ;;  %v7978_v17 = vmax.f32 %v11170_v21, %v2702_v45  ;;  %v11175_v54 = vmax.f32 %v7539_v20, %v7768_v29  ;;  %v11177_v60 = vmax.f32 %v7544_v39, %v11176_v47  ;;  %v11192_v47 = vld [vmem:[#allocation13_spill] sm:$0xff] }
 0x3ab   :  { %v7966_v32 = vmax.f32 %v11165_v59, %v2700_v15  ;;  %v7973_v2 = vmax.f32 %v11169_v35, %v2649_v6  ;;  %v11172_v15 = vld [vmem:[#allocation64_spill] sm:$0xff]  ;;  %v11178_v21 = vmax.f32 %v7549_v9, %v7776_v50  ;;  %v11181_v39 = vmax.f32 %v7561_v22, %v7784_v27 }
 0x3ac   :  { %v11182_v9 = vmax.f32 %v7566_v33, %v7786_v56  ;;  %v11184_v22 = vmax.f32 %v7578_v18, %v7796_v57  ;;  %v11186_v56 = vld [vmem:[#allocation10_spill] sm:$0xff]  ;;  %v11187_v33 = vld [vmem:[#allocation24_spill] sm:$0xff]  ;;  %v11189_v18 = vld [vmem:[#allocation25_spill] sm:$0xff] }
 0x3ad   :  { %11166 = vst [vmem:[#allocation106_spill] sm:$0xff] %v7966_v32  ;;  %3460 = vmatpush1.bf16.msra.mxu0 %v11171_v0  ;;  %3513 = vmatpush1.bf16.msra.mxu1 %v11172_v15  ;;  %v11190_v57 = vld [vmem:[#allocation12_spill] sm:$0xff] }
 0x3ae   :  { %3461 = vmatprep.subr.bf16.mxu0 %v11173_v4  ;;  %3514 = vmatprep.subr.bf16.mxu1 %v11174_v43  ;;  %v2653_v8 = vpop.f32.mrb[132].mxu0  ;;  %v2706_v59 = vpop.f32.mrb[132].mxu1  ;;  %v11179_v43 = vmax.f32 %v7554_v16, %v7778_v36  ;;  %v11183_v16 = vmax.f32 %v7573_v3, %v7794_v37  ;;  %v11185_v37 = vld [vmem:[#allocation23_spill] sm:$0xff] }
 0x3af   :  { %v7987_v6 = vmax.f32 %v11175_v54, %v2653_v8  ;;  %v7992_v10 = vmax.f32 %v11177_v60, %v2706_v59  ;;  %v2655_v45 = vpop.f32.mrb[133].mxu0  ;;  %v2708_v35 = vpop.f32.mrb[133].mxu1  ;;  %v11180_v8 = vld [vmem:[#allocation69_spill] sm:$0xff]  ;;  %v11188_v3 = vld [vmem:[#allocation11_spill] sm:$0xff] }
 0x3b0   :  { %v7997_v4 = vmax.f32 %v11178_v21, %v2655_v45  ;;  %v8002_v15 = vmax.f32 %v11179_v43, %v2708_v35  ;;  %v2657_v20 = vpop.f32.mrb[134].mxu0  ;;  %v2710_v29 = vpop.f32.mrb[134].mxu1  ;;  %v11193_v60 = vld [vmem:[#allocation27_spill] sm:$0xff]  ;;  %v11195_v45 = vld [vmem:[#allocation28_spill] sm:$0xff]  ;;  %v11197_v21 = vld [vmem:[#allocation29_spill] sm:$0xff] }
 0x3b1   :  { %3462 = vmatpush1.bf16.msra.mxu0 %v6804_v58  ;;  %3515 = vmatpush1.bf16.msra.mxu1 %v11180_v8  ;;  %v8009_v59 = vmax.f32 %v11181_v39, %v2657_v20  ;;  %v8014_v50 = vmax.f32 %v11182_v9, %v2710_v29  ;;  %v2659_v54 = vpop.f32.mrb[135].mxu0  ;;  %v2712_v36 = vpop.f32.mrb[135].mxu1  ;;  %v11196_v35 = vld [vmem:[#allocation15_spill] sm:$0xff]  ;;  %v11198_v39 = vmax.f32 %v7611_v28, %v7832_v34 }
 0x3b2   :  { %3585 = vmatprep.subr.bf16.mxu0 %v6457_v38  ;;  %3638 = vmatprep.subr.bf16.mxu1 %v6460_v40  ;;  %v8021_v43 = vmax.f32 %v11183_v16, %v2659_v54  ;;  %v8026_v27 = vmax.f32 %v11184_v22, %v2712_v36  ;;  %v11199_v54 = vld [vmem:[#allocation72_spill] sm:$0xff]  ;;  %v11200_v36 = vld [vmem:[#allocation114_spill] sm:$0xff] }
 0x3b3   :  { %v11201_v16 = vmax.f32 %v11199_v54, %v11200_v36 }
 0x3b4   :  { %3480 = vmatmul.mubr.bf16.vlgmr.msra.gmra.mrb[184].mxu0 %v11134_v23  ;;  %3533 = vmatmul.mubr.bf16.vlgmr.msra.gmra.mrb[184].mxu1 %v11134_v23  ;;  %v11191_v23 = vld [vmem:[#allocation26_spill] sm:$0xff] }
 0x3b5   :  { %3586 = vmatpush1.bf16.msra.mxu0 %v6463_v41  ;;  %3639 = vmatpush1.bf16.msra.mxu1 %v6465_v42 }
 0x3b6   :  { %3587 = vmatprep.subr.bf16.mxu0 %v6481_v48  ;;  %3640 = vmatprep.subr.bf16.mxu1 %v6533_v30 }
 0x3b7   :  { %3489 = vmatprep.mubr.bf16.mxu0 %v10772_v25  ;;  %3542 = vmatprep.mubr.bf16.mxu1 %v10772_v25 }
 0x3b9   :  { %3588 = vmatpush1.bf16.msra.mxu0 %v6484_v49  ;;  %3641 = vmatpush1.bf16.msra.mxu1 %v6541_v44 }
 0x3ba   :  { %3589 = vmatprep.subr.bf16.mxu0 %v6487_v52  ;;  %3642 = vmatprep.subr.bf16.mxu1 %v11185_v37 }
 0x3bc   :  { %3490 = vmatmul.mubr.bf16.gmra.mrb[188].mxu0 %v11142_v24  ;;  %3543 = vmatmul.mubr.bf16.gmra.mrb[188].mxu1 %v11142_v24  ;;  %v11194_v24 = vld [vmem:[#allocation14_spill] sm:$0xff] }
 0x3bd   :  { %3590 = vmatpush1.bf16.msra.mxu0 %v11186_v56  ;;  %3643 = vmatpush1.bf16.msra.mxu1 %v11187_v33 }
 0x3be   :  { %3591 = vmatprep.subr.bf16.mxu0 %v11188_v3  ;;  %3644 = vmatprep.subr.bf16.mxu1 %v11189_v18 }
 0x3bf   :  { %3617 = vmatprep.mubr.bf16.mxu0 %v10772_v25  ;;  %3670 = vmatprep.mubr.bf16.mxu1 %v10772_v25 }
 0x3c1   :  { %3592 = vmatpush1.bf16.msra.mxu0 %v11190_v57  ;;  %3645 = vmatpush1.bf16.msra.mxu1 %v11191_v23  ;;  %v11208_v57 = vld [vmem:[#allocation99_spill] sm:$0xff] }
 0x3c2   :  { %3593 = vmatprep.subr.bf16.mxu0 %v11192_v47  ;;  %3646 = vmatprep.subr.bf16.mxu1 %v11193_v60  ;;  %v11203_v47 = vld [vmem:[#allocation59_spill] sm:$0xff] }
 0x3c5   :  { %3594 = vmatpush1.bf16.msra.mxu0 %v11194_v24  ;;  %3647 = vmatpush1.bf16.msra.mxu1 %v11195_v45  ;;  %v11204_v45 = vld [vmem:[#allocation115_spill] sm:$0xff] }
 0x3c6   :  { %3595 = vmatprep.subr.bf16.mxu0 %v11196_v35  ;;  %3648 = vmatprep.subr.bf16.mxu1 %v11197_v21  ;;  %v2749_v20 = vpop.f32.mrb[136].mxu0  ;;  %v2802_v29 = vpop.f32.mrb[136].mxu1  ;;  %v11205_v23 = vmax.f32 %v11203_v47, %v11204_v45  ;;  %v11207_v21 = vld [vmem:[#allocation71_spill] sm:$0xff]  ;;  %v11216_v47 = vld [vmem:[#allocation100_spill] sm:$0xff] }
 0x3c7   :  { %v8059_v9 = vmax.f32 %v11198_v39, %v2749_v20  ;;  %v8064_v22 = vmax.f32 %v11201_v16, %v2802_v29  ;;  %v2751_v60 = vpop.f32.mrb[137].mxu0  ;;  %v2804_v24 = vpop.f32.mrb[137].mxu1  ;;  %v11209_v18 = vmax.f32 %v11207_v21, %v11208_v57  ;;  %v11211_v20 = vld [vmem:[#allocation16_spill] sm:$0xff]  ;;  %v11212_v39 = vld [vmem:[#allocation30_spill] sm:$0xff] }
 0x3c8   :  { %v8069_v35 = vmax.f32 %v11205_v23, %v2751_v60  ;;  %v2753_v34 = vpop.f32.mrb[138].mxu0  ;;  %v2806_v28 = vpop.f32.mrb[138].mxu1  ;;  %v11213_v29 = vld [vmem:[#allocation116_spill] sm:$0xff]  ;;  %v11221_v21 = vld [vmem:[#allocation70_spill] sm:$0xff] }
 0x3c9   :  { %11202 = vst [vmem:[#allocation118_spill] sm:$0xff] %v8064_v22  ;;  %v8074_v3 = vmax.f32 %v11209_v18, %v2804_v24  ;;  %3596 = vmatpush1.bf16.msra.mxu0 %v11211_v20  ;;  %3649 = vmatpush1.bf16.msra.mxu1 %v11212_v39  ;;  %v11214_v54 = vmax.f32 %v7633_v11, %v11213_v29  ;;  %v11215_v16 = vld [vmem:[#allocation56_spill] sm:$0xff]  ;;  %v2755_v45 = vpop.f32.mrb[139].mxu0  ;;  %v2808_v57 = vpop.f32.mrb[139].mxu1  ;;  %v11219_v18 = vld [vmem:[#allocation17_spill] sm:$0xff]  ;;  %v11220_v24 = vld [vmem:[#allocation31_spill] sm:$0xff] }
 0x3ca   :  { %11206 = vst [vmem:[#allocation107_spill] sm:$0xff] %v8069_v35  ;;  %v11217_v23 = vmax.f32 %v11215_v16, %v11216_v47  ;;  %3597 = vmatprep.subr.bf16.mxu0 %v11219_v18  ;;  %3650 = vmatprep.subr.bf16.mxu1 %v11220_v24  ;;  %v11222_v20 = vld [vmem:[#allocation98_spill] sm:$0xff]  ;;  %v11225_v35 = vld [vmem:[#allocation68_spill] sm:$0xff]  ;;  %v11226_v11 = vld [vmem:[#allocation103_spill] sm:$0xff] }
 0x3cb   :  { %11210 = vst [vmem:[#allocation119_spill] sm:$0xff] %v8074_v3  ;;  %v8081_v36 = vmax.f32 %v11214_v54, %v2753_v34  ;;  %v11223_v3 = vmax.f32 %v11221_v21, %v11222_v20  ;;  %v11227_v34 = vmax.f32 %v11225_v35, %v11226_v11  ;;  %v11229_v54 = vld [vmem:[#allocation18_spill] sm:$0xff]  ;;  %v11231_v16 = vld [vmem:[#allocation19_spill] sm:$0xff]  ;;  %v11232_v47 = vld [vmem:[#allocation33_spill] sm:$0xff]  ;;  %v11233_v20 = vmax.f32 %v7659_v62, %v7872_v53 }
 0x3cc   :  { %v8086_v60 = vmax.f32 %v11217_v23, %v2806_v28  ;;  %v11230_v28 = vld [vmem:[#allocation32_spill] sm:$0xff]  ;;  %v11235_v21 = vld [vmem:[#allocation101_spill] sm:$0xff] }
 0x3cd   :  { %v8093_v39 = vmax.f32 %v11223_v3, %v2755_v45  ;;  %v8098_v29 = vmax.f32 %v11227_v34, %v2808_v57  ;;  %3598 = vmatpush1.bf16.msra.mxu0 %v11229_v54  ;;  %3651 = vmatpush1.bf16.msra.mxu1 %v11230_v28  ;;  %v11234_v45 = vld [vmem:[#allocation110_spill] sm:$0xff]  ;;  %v11238_v28 = vmax.f32 %v11126_v13, %v7880_v7 }
 0x3ce   :  { %11218 = vst [vmem:[#allocation108_spill] sm:$0xff] %v8086_v60  ;;  %3599 = vmatprep.subr.bf16.mxu0 %v11231_v16  ;;  %3652 = vmatprep.subr.bf16.mxu1 %v11232_v47  ;;  %v2759_v23 = vpop.f32.mrb[140].mxu0  ;;  %v2812_v24 = vpop.f32.mrb[140].mxu1  ;;  %v11236_v35 = vmax.f32 %v11234_v45, %v11235_v21  ;;  %v11240_v47 = vmax.f32 %v11127_v55, %v7882_v51  ;;  %v11247_v13 = vld [vmem:[#allocation102_spill] sm:$0xff]  ;;  %v11250_v55 = vld [vmem:[#allocation35_spill] sm:$0xff] }
 0x3cf   :  { %11224 = vst [vmem:[#allocation120_spill] sm:$0xff] %v8093_v39  ;;  %11228 = vst [vmem:[#allocation109_spill] sm:$0xff] %v8098_v29  ;;  %v8107_v3 = vmax.f32 %v11233_v20, %v2759_v23  ;;  %v2761_v11 = vpop.f32.mrb[141].mxu0  ;;  %v2814_v34 = vpop.f32.mrb[141].mxu1  ;;  %v11242_v23 = vld [vmem:[#allocation20_spill] sm:$0xff]  ;;  %v11243_v20 = vld [vmem:[#allocation34_spill] sm:$0xff] }
 0x3d0   :  { %v8112_v57 = vmax.f32 %v11236_v35, %v2812_v24  ;;  %v8117_v16 = vmax.f32 %v11238_v28, %v2761_v11  ;;  %v8122_v54 = vmax.f32 %v11240_v47, %v2814_v34  ;;  %v2763_v53 = vpop.f32.mrb[142].mxu0  ;;  %v2816_v62 = vpop.f32.mrb[142].mxu1  ;;  %v11244_v24 = vld [vmem:[#allocation104_spill] sm:$0xff]  ;;  %v11252_v34 = vld [vmem:[#allocation65_spill] sm:$0xff] }
 0x3d1   :  { %3600 = vmatpush1.bf16.msra.mxu0 %v11242_v23  ;;  %3653 = vmatpush1.bf16.msra.mxu1 %v11243_v20  ;;  %v11245_v45 = vmax.f32 %v7681_v1, %v11244_v24  ;;  %v11246_v35 = vld [vmem:[#allocation112_spill] sm:$0xff]  ;;  %v2765_v11 = vpop.f32.mrb[143].mxu0  ;;  %v2818_v51 = vpop.f32.mrb[143].mxu1  ;;  %v11253_v23 = vld [vmem:[#allocation105_spill] sm:$0xff] }
 0x3d2   :  { %11237 = vst [vmem:[#allocation121_spill] sm:$0xff] %v8112_v57  ;;  %11239 = vst [vmem:[#allocation75_spill] sm:$0xff] %v8117_v16  ;;  %v11248_v7 = vmax.f32 %v11246_v35, %v11247_v13  ;;  %3691 = vmatprep.subr.bf16.mxu0 %v11250_v55  ;;  %v11251_v47 = vld [vmem:[#allocation36_spill] sm:$0xff]  ;;  %v11256_v16 = vld [vmem:[#allocation93_spill] sm:$0xff] }
 0x3d3   :  { %11241 = vst [vmem:[#allocation74_spill] sm:$0xff] %v8122_v54  ;;  %v8129_v21 = vmax.f32 %v11245_v45, %v2763_v53  ;;  %3744 = vmatprep.subr.bf16.mxu1 %v11251_v47  ;;  %v11254_v54 = vmax.f32 %v11252_v34, %v11253_v23  ;;  %v11257_v1 = vld [vmem:[#allocation117_spill] sm:$0xff]  ;;  %v11260_v45 = vld [vmem:[#allocation79_spill] sm:$0xff]  ;;  %v11262_v35 = vld [vmem:[#allocation38_spill] sm:$0xff] }
 0x3d4   :  { %v8134_v28 = vmax.f32 %v11248_v7, %v2816_v62  ;;  %v11258_v53 = vmax.f32 %v11256_v16, %v11257_v1  ;;  %3618 = vmatmul.mubr.bf16.vlgmr.msra.gmra.mrb[192].mxu0 %v11260_v45  ;;  %3671 = vmatmul.mubr.bf16.vlgmr.msra.gmra.mrb[192].mxu1 %v11260_v45  ;;  %v11261_v62 = vld [vmem:[#allocation37_spill] sm:$0xff]  ;;  %v11263_v13 = vld [vmem:[#allocation39_spill] sm:$0xff]  ;;  %v11264_v7 = vld [vmem:[#allocation40_spill] sm:$0xff] }
 0x3d5   :  { %v8141_v20 = vmax.f32 %v11254_v54, %v2765_v11  ;;  %3692 = vmatpush1.bf16.msra.mxu0 %v11261_v62  ;;  %3745 = vmatpush1.bf16.msra.mxu1 %v11262_v35  ;;  %v11265_v54 = vld [vmem:[#allocation41_spill] sm:$0xff]  ;;  %v11266_v16 = vld [vmem:[#allocation42_spill] sm:$0xff]  ;;  %v11267_v23 = vld [vmem:[#allocation43_spill] sm:$0xff] }
 0x3d6   :  { %11249 = vst [vmem:[#allocation60_spill] sm:$0xff] %v8134_v28  ;;  %v8146_v24 = vmax.f32 %v11258_v53, %v2818_v51  ;;  %3693 = vmatprep.subr.bf16.mxu0 %v11263_v13  ;;  %3746 = vmatprep.subr.bf16.mxu1 %v11264_v7  ;;  %v11268_v11 = vld [vmem:[#allocation44_spill] sm:$0xff]  ;;  %v11269_v51 = vld [vmem:[#allocation78_spill] sm:$0xff]  ;;  %v11270_v34 = vld [vmem:[#allocation45_spill] sm:$0xff] }
 0x3d7   :  { %11255 = vst [vmem:[#allocation111_spill] sm:$0xff] %v8141_v20  ;;  %3627 = vmatprep.mubr.bf16.mxu0 %v10772_v25  ;;  %3680 = vmatprep.mubr.bf16.mxu1 %v10772_v25  ;;  %v11271_v1 = vld [vmem:[#allocation46_spill] sm:$0xff]  ;;  %v11272_v53 = vld [vmem:[#allocation48_spill] sm:$0xff]  ;;  %v11273_v7 = vld [vmem:[#allocation49_spill] sm:$0xff] }
 0x3d8   :  { %11259 = vst [vmem:[#allocation77_spill] sm:$0xff] %v8146_v24  ;;  %v11278_v13 = vld [vmem:[#allocation54_spill] sm:$0xff]  ;;  %v11320_v39 = vld [vmem:[#allocation20_spill] sm:$0xff] }
 0x3d9   :  { %3694 = vmatpush1.bf16.msra.mxu0 %v11265_v54  ;;  %3747 = vmatpush1.bf16.msra.mxu1 %v11266_v16  ;;  %v11274_v16 = vld [vmem:[#allocation50_spill] sm:$0xff]  ;;  %v11277_v54 = vld [vmem:[#allocation53_spill] sm:$0xff]  ;;  %v11332_v24 = vld [vmem:[#allocation80_spill] sm:$0xff] }
 0x3da   :  { %3695 = vmatprep.subr.bf16.mxu0 %v11267_v23  ;;  %3748 = vmatprep.subr.bf16.mxu1 %v11268_v11  ;;  %v11275_v23 = vld [vmem:[#allocation51_spill] sm:$0xff]  ;;  %v11276_v11 = vld [vmem:[#allocation52_spill] sm:$0xff]  ;;  %v11341_v20 = vld [vmem:[#allocation54_spill] sm:$0xff] }
 0x3dc   :  { %3628 = vmatmul.mubr.bf16.gmra.mrb[196].mxu0 %v11269_v51  ;;  %3681 = vmatmul.mubr.bf16.gmra.mrb[196].mxu1 %v11269_v51 }
 0x3dd   :  { %3696 = vmatpush1.bf16.msra.mxu0 %v11270_v34  ;;  %3749 = vmatpush1.bf16.msra.mxu1 %v11271_v1  ;;  %v11279_v34 = vld [vmem:[#allocation55_spill] sm:$0xff]  ;;  %v11280_v1 = vld [vmem:[#allocation57_spill] sm:$0xff] }
 0x3de   :  { %3697 = vmatprep.subr.bf16.mxu0 %v11272_v53  ;;  %3750 = vmatprep.subr.bf16.mxu1 %v11273_v7  ;;  %v11281_v53 = vld [vmem:[#allocation58_spill] sm:$0xff] }
 0x3df   :  { %3723 = vmatprep.mubr.bf16.mxu0 %v10772_v25  ;;  %3776 = vmatprep.mubr.bf16.mxu1 %v10772_v25 }
 0x3e1   :  { %3698 = vmatpush1.bf16.msra.mxu0 %v11274_v16  ;;  %3751 = vmatpush1.bf16.msra.mxu1 %v11275_v23  ;;  %v11288_v16 = vld [vmem:[#allocation67_spill] sm:$0xff] }
 0x3e2   :  { %3699 = vmatprep.subr.bf16.mxu0 %v11276_v11  ;;  %3752 = vmatprep.subr.bf16.mxu1 %v11277_v54  ;;  %v11286_v11 = vld [vmem:[#allocation64_spill] sm:$0xff] }
 0x3e5   :  { %3700 = vmatpush1.bf16.msra.mxu0 %v11278_v13  ;;  %3753 = vmatpush1.bf16.msra.mxu1 %v11279_v34 }
 0x3e6   :  { %3701 = vmatprep.subr.bf16.mxu0 %v11280_v1  ;;  %3754 = vmatprep.subr.bf16.mxu1 %v11281_v53  ;;  %v8176_v7 = vpop.f32.mrb[144].mxu0  ;;  %v8178_v35 = vpop.f32.mrb[144].mxu1  ;;  %v11294_v53 = vld [vmem:[#allocation13_spill] sm:$0xff] }
 0x3e7   :  { %11282 = vst [vmem:[#allocation76_spill] sm:$0xff] %v8178_v35  ;;  %v8184_v23 = vpop.f32.mrb[145].mxu0  ;;  %v8186_v54 = vpop.f32.mrb[145].mxu1 }
 0x3e8   :  { %v8192_v1 = vpop.f32.mrb[146].mxu0  ;;  %v8194_v13 = vpop.f32.mrb[146].mxu1 }
 0x3e9   :  { %11283 = vst [vmem:[#allocation96_spill] sm:$0xff] %v8192_v1  ;;  %11284 = vst [vmem:[#allocation94_spill] sm:$0xff] %v8194_v13  ;;  %3702 = vmatpush1.bf16.msra.mxu0 %v10969_v14  ;;  %3755 = vmatpush1.bf16.msra.mxu1 %v11160_v12  ;;  %v8202_v35 = vpop.f32.mrb[147].mxu0  ;;  %v8204_v34 = vpop.f32.mrb[147].mxu1  ;;  %v11287_v1 = vld [vmem:[#allocation66_spill] sm:$0xff] }
 0x3ea   :  { %11285 = vst [vmem:[#allocation73_spill] sm:$0xff] %v8202_v35  ;;  %3703 = vmatprep.subr.bf16.mxu0 %v6779_v31  ;;  %3756 = vmatprep.subr.bf16.mxu1 %v11167_v46  ;;  %v11293_v46 = vld [vmem:[#allocation26_spill] sm:$0xff] }
 0x3ed   :  { %3704 = vmatpush1.bf16.msra.mxu0 %v11171_v0  ;;  %3757 = vmatpush1.bf16.msra.mxu1 %v11286_v11 }
 0x3ee   :  { %3705 = vmatprep.subr.bf16.mxu0 %v11287_v1  ;;  %3758 = vmatprep.subr.bf16.mxu1 %v11288_v16  ;;  %v8216_v13 = vpop.f32.mrb[148].mxu0  ;;  %v8218_v32 = vpop.f32.mrb[148].mxu1  ;;  %v11292_v16 = vld [vmem:[#allocation12_spill] sm:$0xff] }
 0x3ef   :  { %11289 = vst [vmem:[#allocation97_spill] sm:$0xff] %v8218_v32  ;;  %v8224_v35 = vpop.f32.mrb[149].mxu0  ;;  %v8226_v12 = vpop.f32.mrb[149].mxu1 }
 0x3f0   :  { %v8232_v1 = vpop.f32.mrb[150].mxu0  ;;  %v8234_v0 = vpop.f32.mrb[150].mxu1 }
 0x3f1   :  { %3706 = vmatpush1.bf16.msra.mxu0 %v6804_v58  ;;  %3759 = vmatpush1.bf16.msra.mxu1 %v11180_v8  ;;  %v8242_v32 = vpop.f32.mrb[151].mxu0  ;;  %v8244_v11 = vpop.f32.mrb[151].mxu1  ;;  %v11291_v8 = vld [vmem:[#allocation25_spill] sm:$0xff] }
 0x3f2   :  { %3829 = vmatprep.subr.bf16.mxu0 %v6457_v38  ;;  %3882 = vmatprep.subr.bf16.mxu1 %v6460_v40 }
 0x3f4   :  { %3724 = vmatmul.mubr.bf16.vlgmr.msra.gmra.mrb[200].mxu0 %v11260_v45  ;;  %3777 = vmatmul.mubr.bf16.vlgmr.msra.gmra.mrb[200].mxu1 %v11260_v45  ;;  %v11290_v45 = vld [vmem:[#allocation11_spill] sm:$0xff] }
 0x3f5   :  { %3830 = vmatpush1.bf16.msra.mxu0 %v6463_v41  ;;  %3883 = vmatpush1.bf16.msra.mxu1 %v6465_v42 }
 0x3f6   :  { %3831 = vmatprep.subr.bf16.mxu0 %v6481_v48  ;;  %3884 = vmatprep.subr.bf16.mxu1 %v6533_v30  ;;  %v11306_v30 = vld [vmem:[#allocation16_spill] sm:$0xff] }
 0x3f7   :  { %3733 = vmatprep.mubr.bf16.mxu0 %v10772_v25  ;;  %3786 = vmatprep.mubr.bf16.mxu1 %v10772_v25 }
 0x3f9   :  { %3832 = vmatpush1.bf16.msra.mxu0 %v6484_v49  ;;  %3885 = vmatpush1.bf16.msra.mxu1 %v6541_v44 }
 0x3fa   :  { %3833 = vmatprep.subr.bf16.mxu0 %v6487_v52  ;;  %3886 = vmatprep.subr.bf16.mxu1 %v11185_v37  ;;  %v11295_v37 = vld [vmem:[#allocation27_spill] sm:$0xff] }
 0x3fc   :  { %3734 = vmatmul.mubr.bf16.gmra.mrb[204].mxu0 %v11269_v51  ;;  %3787 = vmatmul.mubr.bf16.gmra.mrb[204].mxu1 %v11269_v51  ;;  %v11296_v51 = vld [vmem:[#allocation14_spill] sm:$0xff] }
 0x3fd   :  { %3834 = vmatpush1.bf16.msra.mxu0 %v11186_v56  ;;  %3887 = vmatpush1.bf16.msra.mxu1 %v11187_v33  ;;  %v11297_v56 = vld [vmem:[#allocation28_spill] sm:$0xff]  ;;  %v11298_v33 = vld [vmem:[#allocation15_spill] sm:$0xff] }
 0x3fe   :  { %3835 = vmatprep.subr.bf16.mxu0 %v11290_v45  ;;  %3888 = vmatprep.subr.bf16.mxu1 %v11291_v8  ;;  %v11299_v45 = vld [vmem:[#allocation29_spill] sm:$0xff] }
 0x3ff   :  { %3861 = vmatprep.mubr.bf16.mxu0 %v10772_v25  ;;  %3914 = vmatprep.mubr.bf16.mxu1 %v10772_v25 }
 0x401   :  { %3836 = vmatpush1.bf16.msra.mxu0 %v11292_v16  ;;  %3889 = vmatpush1.bf16.msra.mxu1 %v11293_v46  ;;  %v11307_v16 = vld [vmem:[#allocation30_spill] sm:$0xff] }
 0x402   :  { %3837 = vmatprep.subr.bf16.mxu0 %v11294_v53  ;;  %3890 = vmatprep.subr.bf16.mxu1 %v11295_v37  ;;  %v11312_v53 = vld [vmem:[#allocation32_spill] sm:$0xff] }
 0x405   :  { %3838 = vmatpush1.bf16.msra.mxu0 %v11296_v51  ;;  %3891 = vmatpush1.bf16.msra.mxu1 %v11297_v56  ;;  %v11302_v56 = vld [vmem:[#allocation107_spill] sm:$0xff] }
 0x406   :  { %3839 = vmatprep.subr.bf16.mxu0 %v11298_v33  ;;  %3892 = vmatprep.subr.bf16.mxu1 %v11299_v45  ;;  %v8280_v8 = vpop.f32.mrb[152].mxu0  ;;  %v8282_v52 = vpop.f32.mrb[152].mxu1  ;;  %v11303_v33 = vld [vmem:[#allocation119_spill] sm:$0xff] }
 0x407   :  { %11300 = vst [vmem:[#allocation95_spill] sm:$0xff] %v8282_v52  ;;  %v8288_v46 = vpop.f32.mrb[153].mxu0  ;;  %v8290_v37 = vpop.f32.mrb[153].mxu1  ;;  %v11310_v45 = vld [vmem:[#allocation31_spill] sm:$0xff]  ;;  %v11314_v52 = vld [vmem:[#allocation33_spill] sm:$0xff] }
 0x408   :  { %11301 = vst [vmem:[#allocation113_spill] sm:$0xff] %v8290_v37  ;;  %v8296_v44 = vpop.f32.mrb[154].mxu0  ;;  %v8298_v49 = vpop.f32.mrb[154].mxu1  ;;  %v11326_v37 = vld [vmem:[#allocation39_spill] sm:$0xff] }
 0x409   :  { %11304 = vst [vmem:[#allocation72_spill] sm:$0xff] %v8296_v44  ;;  %11305 = vst [vmem:[#allocation114_spill] sm:$0xff] %v8298_v49  ;;  %3840 = vmatpush1.bf16.msra.mxu0 %v11306_v30  ;;  %3893 = vmatpush1.bf16.msra.mxu1 %v11307_v16  ;;  %v8306_v22 = vpop.f32.mrb[155].mxu0  ;;  %v8308_v51 = vpop.f32.mrb[155].mxu1  ;;  %v11311_v30 = vld [vmem:[#allocation18_spill] sm:$0xff]  ;;  %v11313_v44 = vld [vmem:[#allocation19_spill] sm:$0xff] }
 0x40a   :  { %11308 = vst [vmem:[#allocation59_spill] sm:$0xff] %v8306_v22  ;;  %11309 = vst [vmem:[#allocation115_spill] sm:$0xff] %v8308_v51  ;;  %3841 = vmatprep.subr.bf16.mxu0 %v11219_v18  ;;  %3894 = vmatprep.subr.bf16.mxu1 %v11310_v45  ;;  %v11321_v45 = vld [vmem:[#allocation34_spill] sm:$0xff] }
 0x40d   :  { %3842 = vmatpush1.bf16.msra.mxu0 %v11311_v30  ;;  %3895 = vmatpush1.bf16.msra.mxu1 %v11312_v53  ;;  %v11316_v53 = vld [vmem:[#allocation75_spill] sm:$0xff] }
 0x40e   :  { %3843 = vmatprep.subr.bf16.mxu0 %v11313_v44  ;;  %3896 = vmatprep.subr.bf16.mxu1 %v11314_v52  ;;  %v8320_v49 = vpop.f32.mrb[156].mxu0  ;;  %v8322_v60 = vpop.f32.mrb[156].mxu1  ;;  %v11317_v44 = vld [vmem:[#allocation74_spill] sm:$0xff]  ;;  %v11328_v52 = vld [vmem:[#allocation41_spill] sm:$0xff] }
 0x40f   :  { %11315 = vst [vmem:[#allocation71_spill] sm:$0xff] %v8322_v60  ;;  %v8328_v22 = vpop.f32.mrb[157].mxu0  ;;  %v8330_v16 = vpop.f32.mrb[157].mxu1  ;;  %v11325_v60 = vld [vmem:[#allocation38_spill] sm:$0xff] }
 0x410   :  { %v8336_v51 = vpop.f32.mrb[158].mxu0  ;;  %v8338_v29 = vpop.f32.mrb[158].mxu1 }
 0x411   :  { %11318 = vst [vmem:[#allocation99_spill] sm:$0xff] %v8336_v51  ;;  %11319 = vst [vmem:[#allocation116_spill] sm:$0xff] %v8338_v29  ;;  %3844 = vmatpush1.bf16.msra.mxu0 %v11320_v39  ;;  %3897 = vmatpush1.bf16.msra.mxu1 %v11321_v45  ;;  %v8346_v57 = vpop.f32.mrb[159].mxu0  ;;  %v8348_v30 = vpop.f32.mrb[159].mxu1  ;;  %v11324_v39 = vld [vmem:[#allocation81_spill] sm:$0xff]  ;;  %v11327_v29 = vld [vmem:[#allocation40_spill] sm:$0xff] }
 0x412   :  { %11322 = vst [vmem:[#allocation56_spill] sm:$0xff] %v8346_v57  ;;  %11323 = vst [vmem:[#allocation100_spill] sm:$0xff] %v8348_v30  ;;  %3935 = vmatprep.subr.bf16.mxu0 %v11250_v55  ;;  %3988 = vmatprep.subr.bf16.mxu1 %v11251_v47  ;;  %v11329_v57 = vld [vmem:[#allocation42_spill] sm:$0xff]  ;;  %v11330_v45 = vld [vmem:[#allocation43_spill] sm:$0xff]  ;;  %v11345_v55 = vmax.f32 %v7939_v61, %v8176_v7 }
 0x413   :  { %v11331_v30 = vld [vmem:[#allocation44_spill] sm:$0xff]  ;;  %v11353_v7 = vld [vmem:[#allocation106_spill] sm:$0xff] }
 0x414   :  { %3862 = vmatmul.mubr.bf16.vlgmr.msra.gmra.mrb[208].mxu0 %v11324_v39  ;;  %3915 = vmatmul.mubr.bf16.vlgmr.msra.gmra.mrb[208].mxu1 %v11324_v39 }
 0x415   :  { %3936 = vmatpush1.bf16.msra.mxu0 %v11261_v62  ;;  %3989 = vmatpush1.bf16.msra.mxu1 %v11325_v60  ;;  %v11333_v60 = vld [vmem:[#allocation45_spill] sm:$0xff] }
 0x416   :  { %3937 = vmatprep.subr.bf16.mxu0 %v11326_v37  ;;  %3990 = vmatprep.subr.bf16.mxu1 %v11327_v29  ;;  %v11334_v37 = vld [vmem:[#allocation46_spill] sm:$0xff]  ;;  %v11335_v29 = vld [vmem:[#allocation48_spill] sm:$0xff]  ;;  %v11336_v62 = vld [vmem:[#allocation49_spill] sm:$0xff] }
 0x417   :  { %3871 = vmatprep.mubr.bf16.mxu0 %v10772_v25  ;;  %3924 = vmatprep.mubr.bf16.mxu1 %v10772_v25 }
 0x419   :  { %3938 = vmatpush1.bf16.msra.mxu0 %v11328_v52  ;;  %3991 = vmatpush1.bf16.msra.mxu1 %v11329_v57  ;;  %v11337_v57 = vld [vmem:[#allocation50_spill] sm:$0xff]  ;;  %v11340_v52 = vld [vmem:[#allocation53_spill] sm:$0xff] }
 0x41a   :  { %3939 = vmatprep.subr.bf16.mxu0 %v11330_v45  ;;  %3992 = vmatprep.subr.bf16.mxu1 %v11331_v30  ;;  %v11338_v45 = vld [vmem:[#allocation51_spill] sm:$0xff]  ;;  %v11339_v30 = vld [vmem:[#allocation52_spill] sm:$0xff] }
 0x41c   :  { %3872 = vmatmul.mubr.bf16.gmra.mrb[212].mxu0 %v11332_v24  ;;  %3925 = vmatmul.mubr.bf16.gmra.mrb[212].mxu1 %v11332_v24 }
 0x41d   :  { %3940 = vmatpush1.bf16.msra.mxu0 %v11333_v60  ;;  %3993 = vmatpush1.bf16.msra.mxu1 %v11334_v37  ;;  %v11342_v60 = vld [vmem:[#allocation55_spill] sm:$0xff]  ;;  %v11343_v37 = vld [vmem:[#allocation57_spill] sm:$0xff] }
 0x41e   :  { %3941 = vmatprep.subr.bf16.mxu0 %v11335_v29  ;;  %3994 = vmatprep.subr.bf16.mxu1 %v11336_v62  ;;  %v11344_v29 = vld [vmem:[#allocation58_spill] sm:$0xff] }
 0x41f   :  { %3967 = vmatprep.mubr.bf16.mxu0 %v10772_v25  ;;  %4020 = vmatprep.mubr.bf16.mxu1 %v10772_v25 }
 0x421   :  { %3942 = vmatpush1.bf16.msra.mxu0 %v11337_v57  ;;  %3995 = vmatpush1.bf16.msra.mxu1 %v11338_v45  ;;  %v11346_v45 = vld [vmem:[#allocation76_spill] sm:$0xff] }
 0x422   :  { %3943 = vmatprep.subr.bf16.mxu0 %v11339_v30  ;;  %3996 = vmatprep.subr.bf16.mxu1 %v11340_v52  ;;  %v11347_v30 = vmax.f32 %v7944_v5, %v11346_v45 }
 0x425   :  { %3944 = vmatpush1.bf16.msra.mxu0 %v11341_v20  ;;  %3997 = vmatpush1.bf16.msra.mxu1 %v11342_v60  ;;  %v11348_v60 = vmax.f32 %v7949_v63, %v8184_v23  ;;  %v11354_v63 = vld [vmem:[#allocation94_spill] sm:$0xff] }
 0x426   :  { %3945 = vmatprep.subr.bf16.mxu0 %v11343_v37  ;;  %3998 = vmatprep.subr.bf16.mxu1 %v11344_v29  ;;  %v11349_v29 = vmax.f32 %v7954_v19, %v8186_v54 }
 0x427   :  { %v3131_v62 = vpop.f32.mrb[160].mxu0  ;;  %v3184_v47 = vpop.f32.mrb[160].mxu1 }
 0x428   :  { %v8387_v57 = vmax.f32 %v11345_v55, %v3131_v62  ;;  %v8392_v28 = vmax.f32 %v11347_v30, %v3184_v47  ;;  %v3133_v52 = vpop.f32.mrb[161].mxu0  ;;  %v3186_v20 = vpop.f32.mrb[161].mxu1  ;;  %v11350_v62 = vld [vmem:[#allocation61_spill] sm:$0xff]  ;;  %v11351_v30 = vld [vmem:[#allocation96_spill] sm:$0xff] }
 0x429   :  { %v8397_v37 = vmax.f32 %v11348_v60, %v3133_v52  ;;  %v8402_v51 = vmax.f32 %v11349_v29, %v3186_v20  ;;  %v3135_v61 = vpop.f32.mrb[162].mxu0  ;;  %v3188_v55 = vpop.f32.mrb[162].mxu1  ;;  %3946 = vmatpush1.bf16.msra.mxu0 %v10969_v14  ;;  %3999 = vmatpush1.bf16.msra.mxu1 %v11350_v62  ;;  %v11352_v5 = vmax.f32 %v7961_v26, %v11351_v30  ;;  %v11357_v29 = vld [vmem:[#allocation62_spill] sm:$0xff]  ;;  %v11358_v20 = vld [vmem:[#allocation73_spill] sm:$0xff]  ;;  %v11361_v30 = vld [vmem:[#allocation63_spill] sm:$0xff] }
 0x42a   :  { %v11355_v52 = vmax.f32 %v11353_v7, %v11354_v63  ;;  %v3137_v23 = vpop.f32.mrb[163].mxu0  ;;  %v3190_v19 = vpop.f32.mrb[163].mxu1  ;;  %3947 = vmatprep.subr.bf16.mxu0 %v6779_v31  ;;  %4000 = vmatprep.subr.bf16.mxu1 %v11357_v29  ;;  %v11359_v54 = vmax.f32 %v7973_v2, %v11358_v20  ;;  %v11360_v26 = vmax.f32 %v7978_v17, %v8204_v34  ;;  %v11364_v7 = vld [vmem:[#allocation67_spill] sm:$0xff]  ;;  %v11366_v20 = vld [vmem:[#allocation97_spill] sm:$0xff] }
 0x42b   :  { %v8409_v47 = vmax.f32 %v11352_v5, %v3135_v61  ;;  %v11363_v5 = vld [vmem:[#allocation66_spill] sm:$0xff]  ;;  %v11365_v2 = vmax.f32 %v7987_v6, %v8216_v13  ;;  %v11367_v17 = vmax.f32 %v7992_v10, %v11366_v20  ;;  %v11371_v10 = vmax.f32 %v8009_v59, %v8232_v1  ;;  %v11382_v20 = vld [vmem:[#allocation11_spill] sm:$0xff] }
 0x42c   :  { %v8414_v60 = vmax.f32 %v11355_v52, %v3188_v55  ;;  %v8421_v45 = vmax.f32 %v11359_v54, %v3137_v23  ;;  %v8426_v61 = vmax.f32 %v11360_v26, %v3190_v19  ;;  %v11362_v55 = vld [vmem:[#allocation64_spill] sm:$0xff]  ;;  %v11368_v26 = vmax.f32 %v7997_v4, %v8224_v35 }
 0x42d   :  { %3948 = vmatpush1.bf16.msra.mxu0 %v11361_v30  ;;  %4001 = vmatpush1.bf16.msra.mxu1 %v11362_v55  ;;  %v11372_v4 = vmax.f32 %v8014_v50, %v8234_v0  ;;  %v11374_v59 = vmax.f32 %v8026_v27, %v8244_v11  ;;  %v11375_v0 = vld [vmem:[#allocation21_spill] sm:$0xff]  ;;  %v11377_v50 = vld [vmem:[#allocation22_spill] sm:$0xff]  ;;  %v11379_v27 = vld [vmem:[#allocation23_spill] sm:$0xff] }
 0x42e   :  { %11356 = vst [vmem:[#allocation17_spill] sm:$0xff] %v8414_v60  ;;  %3949 = vmatprep.subr.bf16.mxu0 %v11363_v5  ;;  %4002 = vmatprep.subr.bf16.mxu1 %v11364_v7  ;;  %v11369_v7 = vmax.f32 %v8002_v15, %v8226_v12  ;;  %v11373_v15 = vmax.f32 %v8021_v43, %v8242_v32  ;;  %v11376_v32 = vld [vmem:[#allocation8_spill] sm:$0xff]  ;;  %v11378_v43 = vld [vmem:[#allocation9_spill] sm:$0xff] }
 0x42f   :  { %v3141_v63 = vpop.f32.mrb[164].mxu0  ;;  %v3194_v52 = vpop.f32.mrb[164].mxu1  ;;  %v11381_v11 = vld [vmem:[#allocation24_spill] sm:$0xff] }
 0x430   :  { %v8435_v23 = vmax.f32 %v11365_v2, %v3141_v63  ;;  %v8440_v34 = vmax.f32 %v11367_v17, %v3194_v52  ;;  %v3143_v19 = vpop.f32.mrb[165].mxu0  ;;  %v3196_v54 = vpop.f32.mrb[165].mxu1  ;;  %v11370_v63 = vld [vmem:[#allocation69_spill] sm:$0xff] }
 0x431   :  { %v8445_v5 = vmax.f32 %v11368_v26, %v3143_v19  ;;  %v8450_v55 = vmax.f32 %v11369_v7, %v3196_v54  ;;  %v3145_v6 = vpop.f32.mrb[166].mxu0  ;;  %v3198_v13 = vpop.f32.mrb[166].mxu1  ;;  %3950 = vmatpush1.bf16.msra.mxu0 %v6804_v58  ;;  %4003 = vmatpush1.bf16.msra.mxu1 %v11370_v63  ;;  %v11383_v17 = vld [vmem:[#allocation25_spill] sm:$0xff]  ;;  %v11384_v19 = vld [vmem:[#allocation12_spill] sm:$0xff]  ;;  %v11385_v54 = vld [vmem:[#allocation26_spill] sm:$0xff] }
 0x432   :  { %v8457_v52 = vmax.f32 %v11371_v10, %v3145_v6  ;;  %v8462_v35 = vmax.f32 %v11372_v4, %v3198_v13  ;;  %v3147_v2 = vpop.f32.mrb[167].mxu0  ;;  %v3200_v12 = vpop.f32.mrb[167].mxu1  ;;  %4073 = vmatprep.subr.bf16.mxu0 %v6457_v38  ;;  %4126 = vmatprep.subr.bf16.mxu1 %v6460_v40  ;;  %v11386_v26 = vld [vmem:[#allocation13_spill] sm:$0xff]  ;;  %v11387_v6 = vld [vmem:[#allocation27_spill] sm:$0xff]  ;;  %v11389_v13 = vld [vmem:[#allocation28_spill] sm:$0xff] }
 0x433   :  { %v8469_v7 = vmax.f32 %v11373_v15, %v3147_v2  ;;  %v8474_v1 = vmax.f32 %v11374_v59, %v3200_v12  ;;  %v11390_v10 = vld [vmem:[#allocation15_spill] sm:$0xff]  ;;  %v11391_v4 = vld [vmem:[#allocation29_spill] sm:$0xff]  ;;  %v11392_v15 = vmax.f32 %v8059_v9, %v8280_v8 }
 0x434   :  { %3968 = vmatmul.mubr.bf16.vlgmr.msra.gmra.mrb[216].mxu0 %v11324_v39  ;;  %4021 = vmatmul.mubr.bf16.vlgmr.msra.gmra.mrb[216].mxu1 %v11324_v39  ;;  %v11380_v39 = vld [vmem:[#allocation10_spill] sm:$0xff] }
 0x435   :  { %4074 = vmatpush1.bf16.msra.mxu0 %v6463_v41  ;;  %4127 = vmatpush1.bf16.msra.mxu1 %v6465_v42 }
 0x436   :  { %4075 = vmatprep.subr.bf16.mxu0 %v6481_v48  ;;  %4128 = vmatprep.subr.bf16.mxu1 %v11375_v0 }
 0x437   :  { %3977 = vmatprep.mubr.bf16.mxu0 %v10772_v25  ;;  %4030 = vmatprep.mubr.bf16.mxu1 %v10772_v25 }
 0x439   :  { %4076 = vmatpush1.bf16.msra.mxu0 %v11376_v32  ;;  %4129 = vmatpush1.bf16.msra.mxu1 %v11377_v50 }
 0x43a   :  { %4077 = vmatprep.subr.bf16.mxu0 %v11378_v43  ;;  %4130 = vmatprep.subr.bf16.mxu1 %v11379_v27 }
 0x43c   :  { %3978 = vmatmul.mubr.bf16.gmra.mrb[220].mxu0 %v11332_v24  ;;  %4031 = vmatmul.mubr.bf16.gmra.mrb[220].mxu1 %v11332_v24  ;;  %v11388_v24 = vld [vmem:[#allocation14_spill] sm:$0xff] }
 0x43d   :  { %4078 = vmatpush1.bf16.msra.mxu0 %v11380_v39  ;;  %4131 = vmatpush1.bf16.msra.mxu1 %v11381_v11 }
 0x43e   :  { %4079 = vmatprep.subr.bf16.mxu0 %v11382_v20  ;;  %4132 = vmatprep.subr.bf16.mxu1 %v11383_v17 }
 0x43f   :  { %4105 = vmatprep.mubr.bf16.mxu0 %v10772_v25  ;;  %4158 = vmatprep.mubr.bf16.mxu1 %v10772_v25 }
 0x441   :  { %4080 = vmatpush1.bf16.msra.mxu0 %v11384_v19  ;;  %4133 = vmatpush1.bf16.msra.mxu1 %v11385_v54  ;;  %v11393_v54 = vld [vmem:[#allocation118_spill] sm:$0xff]  ;;  %v11394_v19 = vld [vmem:[#allocation95_spill] sm:$0xff] }
 0x442   :  { %4081 = vmatprep.subr.bf16.mxu0 %v11386_v26  ;;  %4134 = vmatprep.subr.bf16.mxu1 %v11387_v6  ;;  %v11395_v26 = vmax.f32 %v11393_v54, %v11394_v19  ;;  %v11403_v19 = vld [vmem:[#allocation72_spill] sm:$0xff] }
 0x443   :  { %v11404_v54 = vmax.f32 %v8081_v36, %v11403_v19  ;;  %v11415_v36 = vld [vmem:[#allocation115_spill] sm:$0xff] }
 0x445   :  { %4082 = vmatpush1.bf16.msra.mxu0 %v11388_v24  ;;  %4135 = vmatpush1.bf16.msra.mxu1 %v11389_v13  ;;  %v11397_v13 = vmax.f32 %v11302_v56, %v8288_v46  ;;  %v11406_v46 = vld [vmem:[#allocation114_spill] sm:$0xff] }
 0x446   :  { %4083 = vmatprep.subr.bf16.mxu0 %v11390_v10  ;;  %4136 = vmatprep.subr.bf16.mxu1 %v11391_v4  ;;  %v11398_v4 = vld [vmem:[#allocation113_spill] sm:$0xff] }
 0x447   :  { %v3237_v2 = vpop.f32.mrb[168].mxu0  ;;  %v3290_v12 = vpop.f32.mrb[168].mxu1  ;;  %v11399_v20 = vmax.f32 %v11303_v33, %v11398_v4  ;;  %v11411_v4 = vld [vmem:[#allocation59_spill] sm:$0xff] }
 0x448   :  { %v8507_v59 = vmax.f32 %v11392_v15, %v3237_v2  ;;  %v8512_v17 = vmax.f32 %v11395_v26, %v3290_v12  ;;  %v3239_v6 = vpop.f32.mrb[169].mxu0  ;;  %v3292_v24 = vpop.f32.mrb[169].mxu1  ;;  %v11401_v2 = vld [vmem:[#allocation16_spill] sm:$0xff]  ;;  %v11402_v15 = vld [vmem:[#allocation30_spill] sm:$0xff] }
 0x449   :  { %v8517_v10 = vmax.f32 %v11397_v13, %v3239_v6  ;;  %v8522_v11 = vmax.f32 %v11399_v20, %v3292_v24  ;;  %v3241_v8 = vpop.f32.mrb[170].mxu0  ;;  %v3294_v9 = vpop.f32.mrb[170].mxu1  ;;  %4084 = vmatpush1.bf16.msra.mxu0 %v11401_v2  ;;  %4137 = vmatpush1.bf16.msra.mxu1 %v11402_v15  ;;  %v11405_v12 = vld [vmem:[#allocation108_spill] sm:$0xff]  ;;  %v11409_v20 = vld [vmem:[#allocation31_spill] sm:$0xff] }
 0x44a   :  { %11396 = vst [vmem:[#allocation70_spill] sm:$0xff] %v8512_v17  ;;  %v8529_v26 = vmax.f32 %v11404_v54, %v3241_v8  ;;  %v11407_v56 = vmax.f32 %v11405_v12, %v11406_v46  ;;  %v3243_v13 = vpop.f32.mrb[171].mxu0  ;;  %v3296_v33 = vpop.f32.mrb[171].mxu1  ;;  %4085 = vmatprep.subr.bf16.mxu0 %v11219_v18  ;;  %4138 = vmatprep.subr.bf16.mxu1 %v11409_v20  ;;  %v11410_v24 = vld [vmem:[#allocation120_spill] sm:$0xff]  ;;  %v11418_v54 = vld [vmem:[#allocation18_spill] sm:$0xff]  ;;  %v11420_v12 = vld [vmem:[#allocation19_spill] sm:$0xff] }
 0x44b   :  { %11400 = vst [vmem:[#allocation98_spill] sm:$0xff] %v8522_v11  ;;  %v11412_v2 = vmax.f32 %v11410_v24, %v11411_v4  ;;  %v11414_v11 = vld [vmem:[#allocation109_spill] sm:$0xff]  ;;  %v11422_v24 = vmax.f32 %v8107_v3, %v8320_v49  ;;  %v11424_v4 = vld [vmem:[#allocation71_spill] sm:$0xff] }
 0x44c   :  { %v8534_v6 = vmax.f32 %v11407_v56, %v3294_v9  ;;  %v11416_v8 = vmax.f32 %v11414_v11, %v11415_v36  ;;  %v11419_v9 = vld [vmem:[#allocation32_spill] sm:$0xff]  ;;  %v11421_v46 = vld [vmem:[#allocation33_spill] sm:$0xff] }
 0x44d   :  { %v8541_v15 = vmax.f32 %v11412_v2, %v3243_v13  ;;  %4086 = vmatpush1.bf16.msra.mxu0 %v11418_v54  ;;  %4139 = vmatpush1.bf16.msra.mxu1 %v11419_v9  ;;  %v11423_v13 = vld [vmem:[#allocation121_spill] sm:$0xff]  ;;  %v11427_v9 = vmax.f32 %v11316_v53, %v8328_v22  ;;  %v11436_v22 = vld [vmem:[#allocation116_spill] sm:$0xff] }
 0x44e   :  { %11408 = vst [vmem:[#allocation68_spill] sm:$0xff] %v8534_v6  ;;  %v8546_v19 = vmax.f32 %v11416_v8, %v3296_v33  ;;  %4087 = vmatprep.subr.bf16.mxu0 %v11420_v12  ;;  %4140 = vmatprep.subr.bf16.mxu1 %v11421_v46  ;;  %v11425_v11 = vmax.f32 %v11423_v13, %v11424_v4 }
 0x44f   :  { %11413 = vst [vmem:[#allocation103_spill] sm:$0xff] %v8541_v15  ;;  %v3247_v56 = vpop.f32.mrb[172].mxu0  ;;  %v3300_v20 = vpop.f32.mrb[172].mxu1  ;;  %v11429_v46 = vmax.f32 %v11317_v44, %v8330_v16  ;;  %v11439_v16 = vld [vmem:[#allocation35_spill] sm:$0xff]  ;;  %v11509_v15 = vld [vmem:[#allocation20_spill] sm:$0xff] }
 0x450   :  { %11417 = vst [vmem:[#allocation110_spill] sm:$0xff] %v8546_v19  ;;  %v8555_v2 = vmax.f32 %v11422_v24, %v3247_v56  ;;  %v8560_v33 = vmax.f32 %v11425_v11, %v3300_v20  ;;  %v3249_v36 = vpop.f32.mrb[173].mxu0  ;;  %v3302_v8 = vpop.f32.mrb[173].mxu1  ;;  %v11431_v56 = vld [vmem:[#allocation20_spill] sm:$0xff]  ;;  %v11432_v24 = vld [vmem:[#allocation34_spill] sm:$0xff]  ;;  %v11433_v20 = vld [vmem:[#allocation99_spill] sm:$0xff] }
 0x451   :  { %v8565_v12 = vmax.f32 %v11427_v9, %v3249_v36  ;;  %v8570_v54 = vmax.f32 %v11429_v46, %v3302_v8  ;;  %v3251_v49 = vpop.f32.mrb[174].mxu0  ;;  %v3304_v3 = vpop.f32.mrb[174].mxu1  ;;  %4088 = vmatpush1.bf16.msra.mxu0 %v11431_v56  ;;  %4141 = vmatpush1.bf16.msra.mxu1 %v11432_v24  ;;  %v11434_v13 = vmax.f32 %v8129_v21, %v11433_v20  ;;  %v11435_v11 = vld [vmem:[#allocation60_spill] sm:$0xff]  ;;  %v11441_v8 = vld [vmem:[#allocation111_spill] sm:$0xff] }
 0x452   :  { %11426 = vst [vmem:[#allocation101_spill] sm:$0xff] %v8560_v33  ;;  %v11437_v53 = vmax.f32 %v11435_v11, %v11436_v22  ;;  %v3253_v36 = vpop.f32.mrb[175].mxu0  ;;  %v3306_v44 = vpop.f32.mrb[175].mxu1  ;;  %4179 = vmatprep.subr.bf16.mxu0 %v11439_v16  ;;  %v11440_v46 = vld [vmem:[#allocation36_spill] sm:$0xff]  ;;  %v11451_v11 = vld [vmem:[#allocation38_spill] sm:$0xff]  ;;  %v11452_v22 = vld [vmem:[#allocation39_spill] sm:$0xff] }
 0x453   :  { %11428 = vst [vmem:[#allocation104_spill] sm:$0xff] %v8565_v12  ;;  %11430 = vst [vmem:[#allocation112_spill] sm:$0xff] %v8570_v54  ;;  %v8577_v4 = vmax.f32 %v11434_v13, %v3251_v49  ;;  %4232 = vmatprep.subr.bf16.mxu1 %v11440_v46  ;;  %v11442_v56 = vld [vmem:[#allocation56_spill] sm:$0xff]  ;;  %v11445_v12 = vld [vmem:[#allocation77_spill] sm:$0xff] }
 0x454   :  { %v8582_v9 = vmax.f32 %v11437_v53, %v3304_v3  ;;  %v11443_v54 = vmax.f32 %v11441_v8, %v11442_v56  ;;  %v11446_v21 = vld [vmem:[#allocation100_spill] sm:$0xff]  ;;  %v11449_v13 = vld [vmem:[#allocation82_spill] sm:$0xff]  ;;  %v11450_v3 = vld [vmem:[#allocation37_spill] sm:$0xff] }
 0x455   :  { %v11447_v49 = vmax.f32 %v11445_v12, %v11446_v21  ;;  %4106 = vmatmul.mubr.bf16.vlgmr.msra.gmra.mrb[224].mxu0 %v11449_v13  ;;  %4159 = vmatmul.mubr.bf16.vlgmr.msra.gmra.mrb[224].mxu1 %v11449_v13  ;;  %v11453_v53 = vld [vmem:[#allocation40_spill] sm:$0xff]  ;;  %v11455_v12 = vld [vmem:[#allocation42_spill] sm:$0xff]  ;;  %v11456_v56 = vld [vmem:[#allocation43_spill] sm:$0xff] }
 0x456   :  { %11438 = vst [vmem:[#allocation102_spill] sm:$0xff] %v8582_v9  ;;  %v8589_v24 = vmax.f32 %v11443_v54, %v3253_v36  ;;  %4180 = vmatpush1.bf16.msra.mxu0 %v11450_v3  ;;  %4233 = vmatpush1.bf16.msra.mxu1 %v11451_v11  ;;  %v11454_v54 = vld [vmem:[#allocation41_spill] sm:$0xff]  ;;  %v11457_v36 = vld [vmem:[#allocation44_spill] sm:$0xff]  ;;  %v11460_v21 = vld [vmem:[#allocation46_spill] sm:$0xff] }
 0x457   :  { %v8594_v20 = vmax.f32 %v11447_v49, %v3306_v44  ;;  %4181 = vmatprep.subr.bf16.mxu0 %v11452_v22  ;;  %4234 = vmatprep.subr.bf16.mxu1 %v11453_v53  ;;  %v11458_v44 = vld [vmem:[#allocation47_spill] sm:$0xff]  ;;  %v11459_v8 = vld [vmem:[#allocation45_spill] sm:$0xff]  ;;  %v11461_v49 = vld [vmem:[#allocation48_spill] sm:$0xff] }
 0x458   :  { %11444 = vst [vmem:[#allocation65_spill] sm:$0xff] %v8589_v24  ;;  %4115 = vmatprep.mubr.bf16.mxu0 %v10772_v25  ;;  %4168 = vmatprep.mubr.bf16.mxu1 %v10772_v25  ;;  %v11462_v53 = vld [vmem:[#allocation49_spill] sm:$0xff]  ;;  %v11467_v22 = vld [vmem:[#allocation54_spill] sm:$0xff] }
 0x459   :  { %11448 = vst [vmem:[#allocation105_spill] sm:$0xff] %v8594_v20  ;;  %v11521_v20 = vld [vmem:[#allocation83_spill] sm:$0xff]  ;;  %v11530_v24 = vld [vmem:[#allocation54_spill] sm:$0xff] }
 0x45a   :  { %4182 = vmatpush1.bf16.msra.mxu0 %v11454_v54  ;;  %4235 = vmatpush1.bf16.msra.mxu1 %v11455_v12  ;;  %v11463_v12 = vld [vmem:[#allocation50_spill] sm:$0xff]  ;;  %v11466_v54 = vld [vmem:[#allocation53_spill] sm:$0xff] }
 0x45b   :  { %4183 = vmatprep.subr.bf16.mxu0 %v11456_v56  ;;  %4236 = vmatprep.subr.bf16.mxu1 %v11457_v36  ;;  %v11464_v56 = vld [vmem:[#allocation51_spill] sm:$0xff]  ;;  %v11465_v36 = vld [vmem:[#allocation52_spill] sm:$0xff] }
 0x45d   :  { %4116 = vmatmul.mubr.bf16.gmra.mrb[228].mxu0 %v11458_v44  ;;  %4169 = vmatmul.mubr.bf16.gmra.mrb[228].mxu1 %v11458_v44 }
 0x45e   :  { %4184 = vmatpush1.bf16.msra.mxu0 %v11459_v8  ;;  %4237 = vmatpush1.bf16.msra.mxu1 %v11460_v21  ;;  %v11468_v8 = vld [vmem:[#allocation55_spill] sm:$0xff]  ;;  %v11469_v21 = vld [vmem:[#allocation57_spill] sm:$0xff] }
 0x45f   :  { %4185 = vmatprep.subr.bf16.mxu0 %v11461_v49  ;;  %4238 = vmatprep.subr.bf16.mxu1 %v11462_v53  ;;  %v11470_v49 = vld [vmem:[#allocation58_spill] sm:$0xff] }
 0x460   :  { %4211 = vmatprep.mubr.bf16.mxu0 %v10772_v25  ;;  %4264 = vmatprep.mubr.bf16.mxu1 %v10772_v25 }
 0x462   :  { %4186 = vmatpush1.bf16.msra.mxu0 %v11463_v12  ;;  %4239 = vmatpush1.bf16.msra.mxu1 %v11464_v56  ;;  %v11477_v12 = vld [vmem:[#allocation67_spill] sm:$0xff] }
 0x463   :  { %4187 = vmatprep.subr.bf16.mxu0 %v11465_v36  ;;  %4240 = vmatprep.subr.bf16.mxu1 %v11466_v54  ;;  %v11475_v36 = vld [vmem:[#allocation64_spill] sm:$0xff] }
 0x466   :  { %4188 = vmatpush1.bf16.msra.mxu0 %v11467_v22  ;;  %4241 = vmatpush1.bf16.msra.mxu1 %v11468_v8 }
 0x467   :  { %4189 = vmatprep.subr.bf16.mxu0 %v11469_v21  ;;  %4242 = vmatprep.subr.bf16.mxu1 %v11470_v49  ;;  %v8624_v53 = vpop.f32.mrb[176].mxu0  ;;  %v8626_v11 = vpop.f32.mrb[176].mxu1  ;;  %v11483_v49 = vld [vmem:[#allocation26_spill] sm:$0xff] }
 0x468   :  { %11471 = vst [vmem:[#allocation93_spill] sm:$0xff] %v8626_v11  ;;  %v8632_v56 = vpop.f32.mrb[177].mxu0  ;;  %v8634_v54 = vpop.f32.mrb[177].mxu1 }
 0x469   :  { %v8640_v21 = vpop.f32.mrb[178].mxu0  ;;  %v8642_v22 = vpop.f32.mrb[178].mxu1 }
 0x46a   :  { %11472 = vst [vmem:[#allocation117_spill] sm:$0xff] %v8640_v21  ;;  %11473 = vst [vmem:[#allocation79_spill] sm:$0xff] %v8642_v22  ;;  %4190 = vmatpush1.bf16.msra.mxu0 %v10969_v14  ;;  %4243 = vmatpush1.bf16.msra.mxu1 %v11350_v62  ;;  %v8650_v11 = vpop.f32.mrb[179].mxu0  ;;  %v8652_v8 = vpop.f32.mrb[179].mxu1  ;;  %v11476_v21 = vld [vmem:[#allocation66_spill] sm:$0xff] }
 0x46b   :  { %11474 = vst [vmem:[#allocation78_spill] sm:$0xff] %v8650_v11  ;;  %4191 = vmatprep.subr.bf16.mxu0 %v6779_v31  ;;  %4244 = vmatprep.subr.bf16.mxu1 %v11357_v29  ;;  %v11482_v29 = vld [vmem:[#allocation12_spill] sm:$0xff] }
 0x46e   :  { %4192 = vmatpush1.bf16.msra.mxu0 %v11361_v30  ;;  %4245 = vmatpush1.bf16.msra.mxu1 %v11475_v36 }
 0x46f   :  { %4193 = vmatprep.subr.bf16.mxu0 %v11476_v21  ;;  %4246 = vmatprep.subr.bf16.mxu1 %v11477_v12  ;;  %v8664_v22 = vpop.f32.mrb[180].mxu0  ;;  %v8666_v60 = vpop.f32.mrb[180].mxu1  ;;  %v11481_v12 = vld [vmem:[#allocation25_spill] sm:$0xff] }
 0x470   :  { %11478 = vst [vmem:[#allocation107_spill] sm:$0xff] %v8666_v60  ;;  %v8672_v11 = vpop.f32.mrb[181].mxu0  ;;  %v8674_v62 = vpop.f32.mrb[181].mxu1 }
 0x471   :  { %v8680_v21 = vpop.f32.mrb[182].mxu0  ;;  %v8682_v30 = vpop.f32.mrb[182].mxu1 }
 0x472   :  { %4194 = vmatpush1.bf16.msra.mxu0 %v6804_v58  ;;  %4247 = vmatpush1.bf16.msra.mxu1 %v11370_v63  ;;  %v8690_v60 = vpop.f32.mrb[183].mxu0  ;;  %v8692_v36 = vpop.f32.mrb[183].mxu1  ;;  %v11480_v63 = vld [vmem:[#allocation11_spill] sm:$0xff] }
 0x473   :  { %4317 = vmatprep.subr.bf16.mxu0 %v6457_v38  ;;  %4370 = vmatprep.subr.bf16.mxu1 %v6460_v40 }
 0x475   :  { %4212 = vmatmul.mubr.bf16.vlgmr.msra.gmra.mrb[232].mxu0 %v11449_v13  ;;  %4265 = vmatmul.mubr.bf16.vlgmr.msra.gmra.mrb[232].mxu1 %v11449_v13  ;;  %v11479_v13 = vld [vmem:[#allocation24_spill] sm:$0xff] }
 0x476   :  { %4318 = vmatpush1.bf16.msra.mxu0 %v6463_v41  ;;  %4371 = vmatpush1.bf16.msra.mxu1 %v6465_v42 }
 0x477   :  { %4319 = vmatprep.subr.bf16.mxu0 %v6481_v48  ;;  %4372 = vmatprep.subr.bf16.mxu1 %v11375_v0  ;;  %v11495_v0 = vld [vmem:[#allocation16_spill] sm:$0xff] }
 0x478   :  { %4221 = vmatprep.mubr.bf16.mxu0 %v10772_v25  ;;  %4274 = vmatprep.mubr.bf16.mxu1 %v10772_v25 }
 0x47a   :  { %4320 = vmatpush1.bf16.msra.mxu0 %v11376_v32  ;;  %4373 = vmatpush1.bf16.msra.mxu1 %v11377_v50 }
 0x47b   :  { %4321 = vmatprep.subr.bf16.mxu0 %v11378_v43  ;;  %4374 = vmatprep.subr.bf16.mxu1 %v11379_v27  ;;  %v11484_v27 = vld [vmem:[#allocation13_spill] sm:$0xff]  ;;  %v11485_v43 = vld [vmem:[#allocation27_spill] sm:$0xff] }
 0x47d   :  { %4222 = vmatmul.mubr.bf16.gmra.mrb[236].mxu0 %v11458_v44  ;;  %4275 = vmatmul.mubr.bf16.gmra.mrb[236].mxu1 %v11458_v44  ;;  %v11486_v44 = vld [vmem:[#allocation14_spill] sm:$0xff] }
 0x47e   :  { %4322 = vmatpush1.bf16.msra.mxu0 %v11380_v39  ;;  %4375 = vmatpush1.bf16.msra.mxu1 %v11479_v13  ;;  %v11487_v39 = vld [vmem:[#allocation28_spill] sm:$0xff]  ;;  %v11488_v13 = vld [vmem:[#allocation15_spill] sm:$0xff] }
 0x47f   :  { %4323 = vmatprep.subr.bf16.mxu0 %v11480_v63  ;;  %4376 = vmatprep.subr.bf16.mxu1 %v11481_v12  ;;  %v11489_v63 = vld [vmem:[#allocation29_spill] sm:$0xff] }
 0x480   :  { %4349 = vmatprep.mubr.bf16.mxu0 %v10772_v25  ;;  %4402 = vmatprep.mubr.bf16.mxu1 %v10772_v25 }
 0x482   :  { %4324 = vmatpush1.bf16.msra.mxu0 %v11482_v29  ;;  %4377 = vmatpush1.bf16.msra.mxu1 %v11483_v49  ;;  %v11496_v29 = vld [vmem:[#allocation30_spill] sm:$0xff] }
 0x483   :  { %4325 = vmatprep.subr.bf16.mxu0 %v11484_v27  ;;  %4378 = vmatprep.subr.bf16.mxu1 %v11485_v43  ;;  %v11501_v27 = vld [vmem:[#allocation32_spill] sm:$0xff] }
 0x486   :  { %4326 = vmatpush1.bf16.msra.mxu0 %v11486_v44  ;;  %4379 = vmatpush1.bf16.msra.mxu1 %v11487_v39 }
 0x487   :  { %4327 = vmatprep.subr.bf16.mxu0 %v11488_v13  ;;  %4380 = vmatprep.subr.bf16.mxu1 %v11489_v63  ;;  %v8728_v12 = vpop.f32.mrb[184].mxu0  ;;  %v8730_v50 = vpop.f32.mrb[184].mxu1  ;;  %v11492_v13 = vld [vmem:[#allocation98_spill] sm:$0xff]  ;;  %v11499_v63 = vld [vmem:[#allocation31_spill] sm:$0xff] }
 0x488   :  { %11490 = vst [vmem:[#allocation119_spill] sm:$0xff] %v8730_v50  ;;  %v8736_v49 = vpop.f32.mrb[185].mxu0  ;;  %v8738_v43 = vpop.f32.mrb[185].mxu1  ;;  %v11503_v50 = vld [vmem:[#allocation33_spill] sm:$0xff] }
 0x489   :  { %11491 = vst [vmem:[#allocation75_spill] sm:$0xff] %v8738_v43  ;;  %v8744_v44 = vpop.f32.mrb[186].mxu0  ;;  %v8746_v32 = vpop.f32.mrb[186].mxu1  ;;  %v11515_v43 = vld [vmem:[#allocation39_spill] sm:$0xff] }
 0x48a   :  { %11493 = vst [vmem:[#allocation74_spill] sm:$0xff] %v8744_v44  ;;  %11494 = vst [vmem:[#allocation81_spill] sm:$0xff] %v8746_v32  ;;  %4328 = vmatpush1.bf16.msra.mxu0 %v11495_v0  ;;  %4381 = vmatpush1.bf16.msra.mxu1 %v11496_v29  ;;  %v8754_v17 = vpop.f32.mrb[187].mxu0  ;;  %v8756_v39 = vpop.f32.mrb[187].mxu1  ;;  %v11500_v0 = vld [vmem:[#allocation18_spill] sm:$0xff]  ;;  %v11502_v44 = vld [vmem:[#allocation19_spill] sm:$0xff] }
 0x48b   :  { %11497 = vst [vmem:[#allocation80_spill] sm:$0xff] %v8754_v17  ;;  %11498 = vst [vmem:[#allocation76_spill] sm:$0xff] %v8756_v39  ;;  %4329 = vmatprep.subr.bf16.mxu0 %v11219_v18  ;;  %4382 = vmatprep.subr.bf16.mxu1 %v11499_v63  ;;  %v11510_v63 = vld [vmem:[#allocation34_spill] sm:$0xff] }
 0x48e   :  { %4330 = vmatpush1.bf16.msra.mxu0 %v11500_v0  ;;  %4383 = vmatpush1.bf16.msra.mxu1 %v11501_v27  ;;  %v11505_v27 = vld [vmem:[#allocation104_spill] sm:$0xff] }
 0x48f   :  { %4331 = vmatprep.subr.bf16.mxu0 %v11502_v44  ;;  %4384 = vmatprep.subr.bf16.mxu1 %v11503_v50  ;;  %v8768_v32 = vpop.f32.mrb[188].mxu0  ;;  %v8770_v6 = vpop.f32.mrb[188].mxu1  ;;  %v11506_v44 = vld [vmem:[#allocation112_spill] sm:$0xff]  ;;  %v11517_v50 = vld [vmem:[#allocation41_spill] sm:$0xff] }
 0x490   :  { %11504 = vst [vmem:[#allocation96_spill] sm:$0xff] %v8770_v6  ;;  %v8776_v17 = vpop.f32.mrb[189].mxu0  ;;  %v8778_v29 = vpop.f32.mrb[189].mxu1  ;;  %v11514_v6 = vld [vmem:[#allocation38_spill] sm:$0xff] }
 0x491   :  { %v8784_v39 = vpop.f32.mrb[190].mxu0  ;;  %v8786_v19 = vpop.f32.mrb[190].mxu1 }
 0x492   :  { %11507 = vst [vmem:[#allocation106_spill] sm:$0xff] %v8784_v39  ;;  %11508 = vst [vmem:[#allocation94_spill] sm:$0xff] %v8786_v19  ;;  %4332 = vmatpush1.bf16.msra.mxu0 %v11509_v15  ;;  %4385 = vmatpush1.bf16.msra.mxu1 %v11510_v63  ;;  %v8794_v33 = vpop.f32.mrb[191].mxu0  ;;  %v8796_v0 = vpop.f32.mrb[191].mxu1  ;;  %v11513_v15 = vld [vmem:[#allocation84_spill] sm:$0xff]  ;;  %v11519_v63 = vld [vmem:[#allocation43_spill] sm:$0xff] }
 0x493   :  { %11511 = vst [vmem:[#allocation73_spill] sm:$0xff] %v8794_v33  ;;  %11512 = vst [vmem:[#allocation97_spill] sm:$0xff] %v8796_v0  ;;  %4423 = vmatprep.subr.bf16.mxu0 %v11439_v16  ;;  %4476 = vmatprep.subr.bf16.mxu1 %v11440_v46  ;;  %v11516_v19 = vld [vmem:[#allocation40_spill] sm:$0xff]  ;;  %v11518_v33 = vld [vmem:[#allocation42_spill] sm:$0xff]  ;;  %v11534_v16 = vmax.f32 %v8387_v57, %v8624_v53 }
 0x494   :  { %v11520_v0 = vld [vmem:[#allocation44_spill] sm:$0xff] }
 0x495   :  { %4350 = vmatmul.mubr.bf16.vlgmr.msra.gmra.mrb[240].mxu0 %v11513_v15  ;;  %4403 = vmatmul.mubr.bf16.vlgmr.msra.gmra.mrb[240].mxu1 %v11513_v15 }
 0x496   :  { %4424 = vmatpush1.bf16.msra.mxu0 %v11450_v3  ;;  %4477 = vmatpush1.bf16.msra.mxu1 %v11514_v6  ;;  %v11522_v6 = vld [vmem:[#allocation45_spill] sm:$0xff] }
 0x497   :  { %4425 = vmatprep.subr.bf16.mxu0 %v11515_v43  ;;  %4478 = vmatprep.subr.bf16.mxu1 %v11516_v19  ;;  %v11523_v43 = vld [vmem:[#allocation46_spill] sm:$0xff]  ;;  %v11524_v19 = vld [vmem:[#allocation48_spill] sm:$0xff]  ;;  %v11525_v3 = vld [vmem:[#allocation49_spill] sm:$0xff] }
 0x498   :  { %4359 = vmatprep.mubr.bf16.mxu0 %v10772_v25  ;;  %4412 = vmatprep.mubr.bf16.mxu1 %v10772_v25 }
 0x49a   :  { %4426 = vmatpush1.bf16.msra.mxu0 %v11517_v50  ;;  %4479 = vmatpush1.bf16.msra.mxu1 %v11518_v33  ;;  %v11526_v33 = vld [vmem:[#allocation50_spill] sm:$0xff]  ;;  %v11529_v50 = vld [vmem:[#allocation53_spill] sm:$0xff] }
 0x49b   :  { %4427 = vmatprep.subr.bf16.mxu0 %v11519_v63  ;;  %4480 = vmatprep.subr.bf16.mxu1 %v11520_v0  ;;  %v11527_v63 = vld [vmem:[#allocation51_spill] sm:$0xff]  ;;  %v11528_v0 = vld [vmem:[#allocation52_spill] sm:$0xff] }
 0x49d   :  { %4360 = vmatmul.mubr.bf16.gmra.mrb[244].mxu0 %v11521_v20  ;;  %4413 = vmatmul.mubr.bf16.gmra.mrb[244].mxu1 %v11521_v20 }
 0x49e   :  { %4428 = vmatpush1.bf16.msra.mxu0 %v11522_v6  ;;  %4481 = vmatpush1.bf16.msra.mxu1 %v11523_v43  ;;  %v11531_v6 = vld [vmem:[#allocation55_spill] sm:$0xff]  ;;  %v11532_v43 = vld [vmem:[#allocation57_spill] sm:$0xff] }
 0x49f   :  { %4429 = vmatprep.subr.bf16.mxu0 %v11524_v19  ;;  %4482 = vmatprep.subr.bf16.mxu1 %v11525_v3  ;;  %v11533_v19 = vld [vmem:[#allocation58_spill] sm:$0xff] }
 0x4a0   :  { %4455 = vmatprep.mubr.bf16.mxu0 %v10772_v25  ;;  %4508 = vmatprep.mubr.bf16.mxu1 %v10772_v25 }
 0x4a2   :  { %4430 = vmatpush1.bf16.msra.mxu0 %v11526_v33  ;;  %4483 = vmatpush1.bf16.msra.mxu1 %v11527_v63  ;;  %v11535_v63 = vld [vmem:[#allocation93_spill] sm:$0xff] }
 0x4a3   :  { %4431 = vmatprep.subr.bf16.mxu0 %v11528_v0  ;;  %4484 = vmatprep.subr.bf16.mxu1 %v11529_v50  ;;  %v11536_v0 = vmax.f32 %v8392_v28, %v11535_v63  ;;  %v11540_v28 = vld [vmem:[#allocation117_spill] sm:$0xff] }
 0x4a4   :  { %v11541_v63 = vmax.f32 %v8409_v47, %v11540_v28  ;;  %v11549_v47 = vmax.f32 %v8426_v61, %v8652_v8  ;;  %v11550_v28 = vld [vmem:[#allocation63_spill] sm:$0xff] }
 0x4a6   :  { %4432 = vmatpush1.bf16.msra.mxu0 %v11530_v24  ;;  %4485 = vmatpush1.bf16.msra.mxu1 %v11531_v6  ;;  %v11537_v6 = vmax.f32 %v8397_v37, %v8632_v56  ;;  %v11543_v37 = vld [vmem:[#allocation79_spill] sm:$0xff] }
 0x4a7   :  { %4433 = vmatprep.subr.bf16.mxu0 %v11532_v43  ;;  %4486 = vmatprep.subr.bf16.mxu1 %v11533_v19  ;;  %v3619_v3 = vpop.f32.mrb[192].mxu0  ;;  %v3672_v46 = vpop.f32.mrb[192].mxu1  ;;  %v11538_v19 = vmax.f32 %v8402_v51, %v8634_v54 }
 0x4a8   :  { %v8835_v33 = vmax.f32 %v11534_v16, %v3619_v3  ;;  %v8840_v9 = vmax.f32 %v11536_v0, %v3672_v46  ;;  %v3621_v50 = vpop.f32.mrb[193].mxu0  ;;  %v3674_v24 = vpop.f32.mrb[193].mxu1  ;;  %v11539_v3 = vld [vmem:[#allocation61_spill] sm:$0xff] }
 0x4a9   :  { %v8845_v43 = vmax.f32 %v11537_v6, %v3621_v50  ;;  %v8850_v39 = vmax.f32 %v11538_v19, %v3674_v24  ;;  %v3623_v57 = vpop.f32.mrb[194].mxu0  ;;  %v3676_v16 = vpop.f32.mrb[194].mxu1  ;;  %v11542_v46 = vld [vmem:[#allocation17_spill] sm:$0xff]  ;;  %v11546_v19 = vld [vmem:[#allocation62_spill] sm:$0xff] }
 0x4aa   :  { %4434 = vmatpush1.bf16.msra.mxu0 %v10969_v14  ;;  %4487 = vmatpush1.bf16.msra.mxu1 %v11539_v3  ;;  %v8857_v0 = vmax.f32 %v11541_v63, %v3623_v57  ;;  %v11544_v50 = vmax.f32 %v11542_v46, %v11543_v37  ;;  %v3625_v53 = vpop.f32.mrb[195].mxu0  ;;  %v3678_v51 = vpop.f32.mrb[195].mxu1  ;;  %v11547_v24 = vld [vmem:[#allocation78_spill] sm:$0xff]  ;;  %v11553_v46 = vld [vmem:[#allocation67_spill] sm:$0xff] }
 0x4ab   :  { %4435 = vmatprep.subr.bf16.mxu0 %v6779_v31  ;;  %4488 = vmatprep.subr.bf16.mxu1 %v11546_v19  ;;  %v11548_v54 = vmax.f32 %v8421_v45, %v11547_v24  ;;  %v8874_v57 = vmax.f32 %v11549_v47, %v3678_v51  ;;  %v11552_v63 = vld [vmem:[#allocation66_spill] sm:$0xff]  ;;  %v11554_v45 = vmax.f32 %v8435_v23, %v8664_v22  ;;  %v11555_v24 = vld [vmem:[#allocation107_spill] sm:$0xff] }
 0x4ac   :  { %v8862_v6 = vmax.f32 %v11544_v50, %v3676_v16  ;;  %v11551_v16 = vld [vmem:[#allocation64_spill] sm:$0xff]  ;;  %v11556_v61 = vmax.f32 %v8440_v34, %v11555_v24  ;;  %v11557_v47 = vmax.f32 %v8445_v5, %v8672_v11  ;;  %v11560_v34 = vmax.f32 %v8457_v52, %v8680_v21  ;;  %v11571_v24 = vld [vmem:[#allocation11_spill] sm:$0xff] }
 0x4ad   :  { %v8869_v56 = vmax.f32 %v11548_v54, %v3625_v53  ;;  %v11561_v5 = vmax.f32 %v8462_v35, %v8682_v30  ;;  %v11563_v52 = vmax.f32 %v8474_v1, %v8692_v36  ;;  %v11564_v30 = vld [vmem:[#allocation21_spill] sm:$0xff]  ;;  %v11566_v35 = vld [vmem:[#allocation22_spill] sm:$0xff]  ;;  %v11568_v1 = vld [vmem:[#allocation23_spill] sm:$0xff] }
 0x4ae   :  { %11545 = vst [vmem:[#allocation118_spill] sm:$0xff] %v8862_v6  ;;  %4436 = vmatpush1.bf16.msra.mxu0 %v11550_v28  ;;  %4489 = vmatpush1.bf16.msra.mxu1 %v11551_v16  ;;  %v11570_v36 = vld [vmem:[#allocation24_spill] sm:$0xff] }
 0x4af   :  { %4437 = vmatprep.subr.bf16.mxu0 %v11552_v63  ;;  %4490 = vmatprep.subr.bf16.mxu1 %v11553_v46  ;;  %v3629_v37 = vpop.f32.mrb[196].mxu0  ;;  %v3682_v50 = vpop.f32.mrb[196].mxu1  ;;  %v11558_v46 = vmax.f32 %v8450_v55, %v8674_v62  ;;  %v11562_v55 = vmax.f32 %v8469_v7, %v8690_v60  ;;  %v11565_v60 = vld [vmem:[#allocation8_spill] sm:$0xff]  ;;  %v11567_v7 = vld [vmem:[#allocation9_spill] sm:$0xff] }
 0x4b0   :  { %v8883_v53 = vmax.f32 %v11554_v45, %v3629_v37  ;;  %v8888_v8 = vmax.f32 %v11556_v61, %v3682_v50  ;;  %v3631_v51 = vpop.f32.mrb[197].mxu0  ;;  %v3684_v54 = vpop.f32.mrb[197].mxu1  ;;  %v11559_v37 = vld [vmem:[#allocation69_spill] sm:$0xff] }
 0x4b1   :  { %v8893_v63 = vmax.f32 %v11557_v47, %v3631_v51  ;;  %v8898_v16 = vmax.f32 %v11558_v46, %v3684_v54  ;;  %v3633_v23 = vpop.f32.mrb[198].mxu0  ;;  %v3686_v22 = vpop.f32.mrb[198].mxu1  ;;  %v11572_v61 = vld [vmem:[#allocation25_spill] sm:$0xff]  ;;  %v11573_v51 = vld [vmem:[#allocation12_spill] sm:$0xff]  ;;  %v11574_v54 = vld [vmem:[#allocation26_spill] sm:$0xff] }
 0x4b2   :  { %4438 = vmatpush1.bf16.msra.mxu0 %v6804_v58  ;;  %4491 = vmatpush1.bf16.msra.mxu1 %v11559_v37  ;;  %v8905_v50 = vmax.f32 %v11560_v34, %v3633_v23  ;;  %v8910_v11 = vmax.f32 %v11561_v5, %v3686_v22  ;;  %v3635_v45 = vpop.f32.mrb[199].mxu0  ;;  %v3688_v62 = vpop.f32.mrb[199].mxu1  ;;  %v11575_v47 = vld [vmem:[#allocation13_spill] sm:$0xff]  ;;  %v11576_v23 = vld [vmem:[#allocation27_spill] sm:$0xff]  ;;  %v11578_v22 = vld [vmem:[#allocation28_spill] sm:$0xff] }
 0x4b3   :  { %4561 = vmatprep.subr.bf16.mxu0 %v6457_v38  ;;  %4614 = vmatprep.subr.bf16.mxu1 %v6460_v40  ;;  %v8917_v46 = vmax.f32 %v11562_v55, %v3635_v45  ;;  %v8922_v21 = vmax.f32 %v11563_v52, %v3688_v62  ;;  %v11579_v34 = vld [vmem:[#allocation15_spill] sm:$0xff]  ;;  %v11580_v5 = vld [vmem:[#allocation29_spill] sm:$0xff]  ;;  %v11581_v55 = vmax.f32 %v8507_v59, %v8728_v12 }
 0x4b5   :  { %4456 = vmatmul.mubr.bf16.vlgmr.msra.gmra.mrb[248].mxu0 %v11513_v15  ;;  %4509 = vmatmul.mubr.bf16.vlgmr.msra.gmra.mrb[248].mxu1 %v11513_v15  ;;  %v11569_v15 = vld [vmem:[#allocation10_spill] sm:$0xff] }
 0x4b6   :  { %4562 = vmatpush1.bf16.msra.mxu0 %v6463_v41  ;;  %4615 = vmatpush1.bf16.msra.mxu1 %v6465_v42 }
 0x4b7   :  { %4563 = vmatprep.subr.bf16.mxu0 %v6481_v48  ;;  %4616 = vmatprep.subr.bf16.mxu1 %v11564_v30 }
 0x4b8   :  { %4465 = vmatprep.mubr.bf16.mxu0 %v10772_v25  ;;  %4518 = vmatprep.mubr.bf16.mxu1 %v10772_v25 }
 0x4ba   :  { %4564 = vmatpush1.bf16.msra.mxu0 %v11565_v60  ;;  %4617 = vmatpush1.bf16.msra.mxu1 %v11566_v35 }
 0x4bb   :  { %4565 = vmatprep.subr.bf16.mxu0 %v11567_v7  ;;  %4618 = vmatprep.subr.bf16.mxu1 %v11568_v1 }
 0x4bd   :  { %4466 = vmatmul.mubr.bf16.gmra.mrb[252].mxu0 %v11521_v20  ;;  %4519 = vmatmul.mubr.bf16.gmra.mrb[252].mxu1 %v11521_v20  ;;  %v11577_v20 = vld [vmem:[#allocation14_spill] sm:$0xff] }
 0x4be   :  { %4566 = vmatpush1.bf16.msra.mxu0 %v11569_v15  ;;  %4619 = vmatpush1.bf16.msra.mxu1 %v11570_v36 }
 0x4bf   :  { %4567 = vmatprep.subr.bf16.mxu0 %v11571_v24  ;;  %4620 = vmatprep.subr.bf16.mxu1 %v11572_v61 }
 0x4c0   :  { %4593 = vmatprep.mubr.bf16.mxu0 %v10772_v25  ;;  %4646 = vmatprep.mubr.bf16.mxu1 %v10772_v25 }
 0x4c2   :  { %4568 = vmatpush1.bf16.msra.mxu0 %v11573_v51  ;;  %4621 = vmatpush1.bf16.msra.mxu1 %v11574_v54  ;;  %v11582_v54 = vld [vmem:[#allocation70_spill] sm:$0xff]  ;;  %v11583_v51 = vld [vmem:[#allocation119_spill] sm:$0xff] }
 0x4c3   :  { %4569 = vmatprep.subr.bf16.mxu0 %v11575_v47  ;;  %4622 = vmatprep.subr.bf16.mxu1 %v11576_v23  ;;  %v11584_v47 = vmax.f32 %v11582_v54, %v11583_v51  ;;  %v11592_v51 = vld [vmem:[#allocation74_spill] sm:$0xff] }
 0x4c4   :  { %v11593_v54 = vmax.f32 %v8529_v26, %v11592_v51  ;;  %v11604_v26 = vld [vmem:[#allocation76_spill] sm:$0xff] }
 0x4c6   :  { %4570 = vmatpush1.bf16.msra.mxu0 %v11577_v20  ;;  %4623 = vmatpush1.bf16.msra.mxu1 %v11578_v22  ;;  %v11586_v22 = vmax.f32 %v8517_v10, %v8736_v49  ;;  %v11595_v10 = vld [vmem:[#allocation81_spill] sm:$0xff] }
 0x4c7   :  { %4571 = vmatprep.subr.bf16.mxu0 %v11579_v34  ;;  %4624 = vmatprep.subr.bf16.mxu1 %v11580_v5  ;;  %v3725_v45 = vpop.f32.mrb[200].mxu0  ;;  %v3778_v62 = vpop.f32.mrb[200].mxu1  ;;  %v11587_v5 = vld [vmem:[#allocation75_spill] sm:$0xff] }
 0x4c8   :  { %v8955_v52 = vmax.f32 %v11581_v55, %v3725_v45  ;;  %v8960_v61 = vmax.f32 %v11584_v47, %v3778_v62  ;;  %v3727_v23 = vpop.f32.mrb[201].mxu0  ;;  %v3780_v20 = vpop.f32.mrb[201].mxu1  ;;  %v11588_v24 = vmax.f32 %v11492_v13, %v11587_v5  ;;  %v11590_v45 = vld [vmem:[#allocation16_spill] sm:$0xff]  ;;  %v11591_v55 = vld [vmem:[#allocation30_spill] sm:$0xff] }
 0x4c9   :  { %v8965_v34 = vmax.f32 %v11586_v22, %v3727_v23  ;;  %v3729_v59 = vpop.f32.mrb[202].mxu0  ;;  %v3782_v12 = vpop.f32.mrb[202].mxu1  ;;  %v11594_v62 = vld [vmem:[#allocation68_spill] sm:$0xff] }
 0x4ca   :  { %11585 = vst [vmem:[#allocation95_spill] sm:$0xff] %v8960_v61  ;;  %v8970_v36 = vmax.f32 %v11588_v24, %v3780_v20  ;;  %4572 = vmatpush1.bf16.msra.mxu0 %v11590_v45  ;;  %4625 = vmatpush1.bf16.msra.mxu1 %v11591_v55  ;;  %v8977_v47 = vmax.f32 %v11593_v54, %v3729_v59  ;;  %v3731_v22 = vpop.f32.mrb[203].mxu0  ;;  %v3784_v13 = vpop.f32.mrb[203].mxu1  ;;  %v11598_v24 = vld [vmem:[#allocation31_spill] sm:$0xff]  ;;  %v11600_v5 = vld [vmem:[#allocation80_spill] sm:$0xff]  ;;  %v11607_v54 = vld [vmem:[#allocation18_spill] sm:$0xff] }
 0x4cb   :  { %v11596_v49 = vmax.f32 %v11594_v62, %v11595_v10  ;;  %4573 = vmatprep.subr.bf16.mxu0 %v11219_v18  ;;  %4626 = vmatprep.subr.bf16.mxu1 %v11598_v24  ;;  %v11599_v20 = vld [vmem:[#allocation103_spill] sm:$0xff]  ;;  %v11610_v10 = vld [vmem:[#allocation33_spill] sm:$0xff] }
 0x4cc   :  { %11589 = vst [vmem:[#allocation113_spill] sm:$0xff] %v8970_v36  ;;  %v11601_v45 = vmax.f32 %v11599_v20, %v11600_v5  ;;  %v11603_v36 = vld [vmem:[#allocation110_spill] sm:$0xff]  ;;  %v11609_v62 = vld [vmem:[#allocation19_spill] sm:$0xff]  ;;  %v11611_v20 = vmax.f32 %v8555_v2, %v8768_v32  ;;  %v11613_v5 = vld [vmem:[#allocation96_spill] sm:$0xff] }
 0x4cd   :  { %v8982_v23 = vmax.f32 %v11596_v49, %v3782_v12  ;;  %v11605_v59 = vmax.f32 %v11603_v36, %v11604_v26  ;;  %v11608_v12 = vld [vmem:[#allocation32_spill] sm:$0xff] }
 0x4ce   :  { %v8989_v55 = vmax.f32 %v11601_v45, %v3731_v22  ;;  %4574 = vmatpush1.bf16.msra.mxu0 %v11607_v54  ;;  %4627 = vmatpush1.bf16.msra.mxu1 %v11608_v12  ;;  %v11612_v22 = vld [vmem:[#allocation101_spill] sm:$0xff]  ;;  %v11616_v12 = vmax.f32 %v11505_v27, %v8776_v17  ;;  %v11625_v27 = vld [vmem:[#allocation94_spill] sm:$0xff] }
 0x4cf   :  { %11597 = vst [vmem:[#allocation72_spill] sm:$0xff] %v8982_v23  ;;  %v8994_v51 = vmax.f32 %v11605_v59, %v3784_v13  ;;  %4575 = vmatprep.subr.bf16.mxu0 %v11609_v62  ;;  %4628 = vmatprep.subr.bf16.mxu1 %v11610_v10  ;;  %v3735_v49 = vpop.f32.mrb[204].mxu0  ;;  %v3788_v24 = vpop.f32.mrb[204].mxu1  ;;  %v11614_v36 = vmax.f32 %v11612_v22, %v11613_v5 }
 0x4d0   :  { %11602 = vst [vmem:[#allocation108_spill] sm:$0xff] %v8989_v55  ;;  %v9003_v45 = vmax.f32 %v11611_v20, %v3735_v49  ;;  %v3737_v26 = vpop.f32.mrb[205].mxu0  ;;  %v3790_v59 = vpop.f32.mrb[205].mxu1  ;;  %v11618_v10 = vmax.f32 %v11506_v44, %v8778_v29  ;;  %v11620_v49 = vld [vmem:[#allocation20_spill] sm:$0xff]  ;;  %v11621_v20 = vld [vmem:[#allocation34_spill] sm:$0xff]  ;;  %v11628_v44 = vld [vmem:[#allocation35_spill] sm:$0xff] }
 0x4d1   :  { %11606 = vst [vmem:[#allocation114_spill] sm:$0xff] %v8994_v51  ;;  %v9008_v13 = vmax.f32 %v11614_v36, %v3788_v24  ;;  %v9013_v62 = vmax.f32 %v11616_v12, %v3737_v26  ;;  %v3739_v32 = vpop.f32.mrb[206].mxu0  ;;  %v3792_v2 = vpop.f32.mrb[206].mxu1  ;;  %v11622_v24 = vld [vmem:[#allocation106_spill] sm:$0xff]  ;;  %v11698_v55 = vld [vmem:[#allocation20_spill] sm:$0xff] }
 0x4d2   :  { %v9018_v54 = vmax.f32 %v11618_v10, %v3790_v59  ;;  %4576 = vmatpush1.bf16.msra.mxu0 %v11620_v49  ;;  %4629 = vmatpush1.bf16.msra.mxu1 %v11621_v20  ;;  %v11623_v22 = vmax.f32 %v8577_v4, %v11622_v24  ;;  %v11624_v36 = vld [vmem:[#allocation102_spill] sm:$0xff]  ;;  %v3741_v26 = vpop.f32.mrb[207].mxu0  ;;  %v3794_v29 = vpop.f32.mrb[207].mxu1  ;;  %v11629_v10 = vld [vmem:[#allocation36_spill] sm:$0xff]  ;;  %v11630_v59 = vld [vmem:[#allocation65_spill] sm:$0xff] }
 0x4d3   :  { %11615 = vst [vmem:[#allocation120_spill] sm:$0xff] %v9008_v13  ;;  %11617 = vst [vmem:[#allocation59_spill] sm:$0xff] %v9013_v62  ;;  %v11626_v17 = vmax.f32 %v11624_v36, %v11625_v27  ;;  %4667 = vmatprep.subr.bf16.mxu0 %v11628_v44  ;;  %4720 = vmatprep.subr.bf16.mxu1 %v11629_v10  ;;  %v11631_v49 = vld [vmem:[#allocation73_spill] sm:$0xff]  ;;  %v11640_v36 = vld [vmem:[#allocation38_spill] sm:$0xff] }
 0x4d4   :  { %11619 = vst [vmem:[#allocation109_spill] sm:$0xff] %v9018_v54  ;;  %v9025_v5 = vmax.f32 %v11623_v22, %v3739_v32  ;;  %v11632_v54 = vmax.f32 %v11630_v59, %v11631_v49  ;;  %v11634_v62 = vld [vmem:[#allocation105_spill] sm:$0xff]  ;;  %v11638_v22 = vld [vmem:[#allocation86_spill] sm:$0xff]  ;;  %v11641_v27 = vld [vmem:[#allocation39_spill] sm:$0xff] }
 0x4d5   :  { %v9030_v12 = vmax.f32 %v11626_v17, %v3792_v2  ;;  %v11635_v4 = vld [vmem:[#allocation97_spill] sm:$0xff]  ;;  %4594 = vmatmul.mubr.bf16.vlgmr.msra.gmra.mrb[0].mxu0 %v11638_v22  ;;  %4647 = vmatmul.mubr.bf16.vlgmr.msra.gmra.mrb[0].mxu1 %v11638_v22  ;;  %v11642_v17 = vld [vmem:[#allocation40_spill] sm:$0xff]  ;;  %v11645_v49 = vld [vmem:[#allocation43_spill] sm:$0xff] }
 0x4d6   :  { %v9037_v20 = vmax.f32 %v11632_v54, %v3741_v26  ;;  %v11636_v32 = vmax.f32 %v11634_v62, %v11635_v4  ;;  %v11639_v2 = vld [vmem:[#allocation37_spill] sm:$0xff]  ;;  %4721 = vmatpush1.bf16.msra.mxu1 %v11640_v36  ;;  %4603 = vmatprep.mubr.bf16.mxu0 %v10772_v25  ;;  %v11644_v62 = vld [vmem:[#allocation42_spill] sm:$0xff]  ;;  %v11646_v26 = vld [vmem:[#allocation44_spill] sm:$0xff] }
 0x4d7   :  { %11627 = vst [vmem:[#allocation115_spill] sm:$0xff] %v9030_v12  ;;  %4668 = vmatpush1.bf16.msra.mxu0 %v11639_v2  ;;  %4722 = vmatprep.subr.bf16.mxu1 %v11642_v17  ;;  %v11643_v54 = vld [vmem:[#allocation41_spill] sm:$0xff]  ;;  %v11649_v4 = vld [vmem:[#allocation46_spill] sm:$0xff] }
 0x4d8   :  { %11633 = vst [vmem:[#allocation121_spill] sm:$0xff] %v9037_v20  ;;  %v9042_v24 = vmax.f32 %v11636_v32, %v3794_v29  ;;  %4669 = vmatprep.subr.bf16.mxu0 %v11641_v27  ;;  %4656 = vmatprep.mubr.bf16.mxu1 %v10772_v25  ;;  %v11647_v29 = vld [vmem:[#allocation85_spill] sm:$0xff]  ;;  %v11650_v32 = vld [vmem:[#allocation48_spill] sm:$0xff]  ;;  %v11656_v27 = vld [vmem:[#allocation54_spill] sm:$0xff] }
 0x4d9   :  { %v11648_v59 = vld [vmem:[#allocation45_spill] sm:$0xff]  ;;  %v11719_v20 = vld [vmem:[#allocation54_spill] sm:$0xff] }
 0x4da   :  { %11637 = vst [vmem:[#allocation71_spill] sm:$0xff] %v9042_v24  ;;  %4723 = vmatpush1.bf16.msra.mxu1 %v11644_v62  ;;  %v11651_v17 = vld [vmem:[#allocation49_spill] sm:$0xff]  ;;  %v11652_v62 = vld [vmem:[#allocation50_spill] sm:$0xff]  ;;  %v11710_v24 = vld [vmem:[#allocation87_spill] sm:$0xff] }
 0x4db   :  { %4670 = vmatpush1.bf16.msra.mxu0 %v11643_v54  ;;  %4724 = vmatprep.subr.bf16.mxu1 %v11646_v26  ;;  %v11654_v26 = vld [vmem:[#allocation52_spill] sm:$0xff]  ;;  %v11655_v54 = vld [vmem:[#allocation53_spill] sm:$0xff] }
 0x4dc   :  { %4671 = vmatprep.subr.bf16.mxu0 %v11645_v49  ;;  %v11653_v49 = vld [vmem:[#allocation51_spill] sm:$0xff] }
 0x4dd   :  { %4604 = vmatmul.mubr.bf16.gmra.mrb[4].mxu0 %v11647_v29  ;;  %4657 = vmatmul.mubr.bf16.gmra.mrb[4].mxu1 %v11647_v29 }
 0x4de   :  { %4725 = vmatpush1.bf16.msra.mxu1 %v11649_v4  ;;  %4699 = vmatprep.mubr.bf16.mxu0 %v10772_v25  ;;  %v11658_v4 = vld [vmem:[#allocation57_spill] sm:$0xff] }
 0x4df   :  { %4672 = vmatpush1.bf16.msra.mxu0 %v11648_v59  ;;  %4726 = vmatprep.subr.bf16.mxu1 %v11651_v17  ;;  %v11657_v59 = vld [vmem:[#allocation55_spill] sm:$0xff] }
 0x4e0   :  { %4673 = vmatprep.subr.bf16.mxu0 %v11650_v32  ;;  %4752 = vmatprep.mubr.bf16.mxu1 %v10772_v25  ;;  %v11659_v32 = vld [vmem:[#allocation58_spill] sm:$0xff] }
 0x4e2   :  { %4727 = vmatpush1.bf16.msra.mxu1 %v11653_v49 }
 0x4e3   :  { %4674 = vmatpush1.bf16.msra.mxu0 %v11652_v62  ;;  %4728 = vmatprep.subr.bf16.mxu1 %v11655_v54  ;;  %v11666_v62 = vld [vmem:[#allocation67_spill] sm:$0xff] }
 0x4e4   :  { %4675 = vmatprep.subr.bf16.mxu0 %v11654_v26  ;;  %v11664_v26 = vld [vmem:[#allocation64_spill] sm:$0xff] }
 0x4e6   :  { %4729 = vmatpush1.bf16.msra.mxu1 %v11657_v59 }
 0x4e7   :  { %4676 = vmatpush1.bf16.msra.mxu0 %v11656_v27  ;;  %4730 = vmatprep.subr.bf16.mxu1 %v11659_v32  ;;  %v9072_v17 = vpop.f32.mrb[208].mxu0  ;;  %v9074_v36 = vpop.f32.mrb[208].mxu1  ;;  %v11672_v32 = vld [vmem:[#allocation26_spill] sm:$0xff] }
 0x4e8   :  { %4677 = vmatprep.subr.bf16.mxu0 %v11658_v4  ;;  %11660 = vst [vmem:[#allocation99_spill] sm:$0xff] %v9074_v36  ;;  %v9080_v49 = vpop.f32.mrb[209].mxu0  ;;  %v9082_v54 = vpop.f32.mrb[209].mxu1 }
 0x4e9   :  { %v9088_v4 = vpop.f32.mrb[210].mxu0  ;;  %v9090_v27 = vpop.f32.mrb[210].mxu1 }
 0x4ea   :  { %11661 = vst [vmem:[#allocation60_spill] sm:$0xff] %v9088_v4  ;;  %11662 = vst [vmem:[#allocation116_spill] sm:$0xff] %v9090_v27  ;;  %4731 = vmatpush1.bf16.msra.mxu1 %v11539_v3  ;;  %v9098_v36 = vpop.f32.mrb[211].mxu0  ;;  %v9100_v59 = vpop.f32.mrb[211].mxu1  ;;  %v11665_v4 = vld [vmem:[#allocation66_spill] sm:$0xff] }
 0x4eb   :  { %4678 = vmatpush1.bf16.msra.mxu0 %v10969_v14  ;;  %11663 = vst [vmem:[#allocation111_spill] sm:$0xff] %v9098_v36  ;;  %4732 = vmatprep.subr.bf16.mxu1 %v11546_v19  ;;  %v11671_v19 = vld [vmem:[#allocation12_spill] sm:$0xff] }
 0x4ec   :  { %4679 = vmatprep.subr.bf16.mxu0 %v6779_v31 }
 0x4ee   :  { %4733 = vmatpush1.bf16.msra.mxu1 %v11664_v26 }
 0x4ef   :  { %4680 = vmatpush1.bf16.msra.mxu0 %v11550_v28  ;;  %4734 = vmatprep.subr.bf16.mxu1 %v11666_v62  ;;  %v9112_v27 = vpop.f32.mrb[212].mxu0  ;;  %v9114_v6 = vpop.f32.mrb[212].mxu1  ;;  %v11670_v62 = vld [vmem:[#allocation25_spill] sm:$0xff] }
 0x4f0   :  { %4681 = vmatprep.subr.bf16.mxu0 %v11665_v4  ;;  %11667 = vst [vmem:[#allocation56_spill] sm:$0xff] %v9114_v6  ;;  %v9120_v36 = vpop.f32.mrb[213].mxu0  ;;  %v9122_v3 = vpop.f32.mrb[213].mxu1 }
 0x4f1   :  { %v9128_v4 = vpop.f32.mrb[214].mxu0  ;;  %v9130_v28 = vpop.f32.mrb[214].mxu1 }
 0x4f2   :  { %4735 = vmatpush1.bf16.msra.mxu1 %v11559_v37  ;;  %v9138_v6 = vpop.f32.mrb[215].mxu0  ;;  %v9140_v26 = vpop.f32.mrb[215].mxu1  ;;  %v11669_v37 = vld [vmem:[#allocation11_spill] sm:$0xff] }
 0x4f3   :  { %4682 = vmatpush1.bf16.msra.mxu0 %v6804_v58  ;;  %4858 = vmatprep.subr.bf16.mxu1 %v6460_v40 }
 0x4f4   :  { %4805 = vmatprep.subr.bf16.mxu0 %v6457_v38 }
 0x4f5   :  { %4753 = vmatmul.mubr.bf16.vlgmr.msra.gmra.mrb[8].mxu1 %v11638_v22 }
 0x4f6   :  { %4700 = vmatmul.mubr.bf16.vlgmr.msra.gmra.mrb[8].mxu0 %v11638_v22  ;;  %4859 = vmatpush1.bf16.msra.mxu1 %v6465_v42  ;;  %v11668_v22 = vld [vmem:[#allocation24_spill] sm:$0xff] }
 0x4f7   :  { %4806 = vmatpush1.bf16.msra.mxu0 %v6463_v41  ;;  %4860 = vmatprep.subr.bf16.mxu1 %v11564_v30  ;;  %v11684_v30 = vld [vmem:[#allocation16_spill] sm:$0xff] }
 0x4f8   :  { %4807 = vmatprep.subr.bf16.mxu0 %v6481_v48  ;;  %4709 = vmatprep.mubr.bf16.mxu0 %v10772_v25 }
 0x4f9   :  { %4762 = vmatprep.mubr.bf16.mxu1 %v10772_v25 }
 0x4fa   :  { %4861 = vmatpush1.bf16.msra.mxu1 %v11566_v35 }
 0x4fb   :  { %4808 = vmatpush1.bf16.msra.mxu0 %v11565_v60  ;;  %4862 = vmatprep.subr.bf16.mxu1 %v11568_v1  ;;  %v11673_v1 = vld [vmem:[#allocation13_spill] sm:$0xff] }
 0x4fc   :  { %4809 = vmatprep.subr.bf16.mxu0 %v11567_v7  ;;  %v11674_v7 = vld [vmem:[#allocation27_spill] sm:$0xff] }
 0x4fd   :  { %4763 = vmatmul.mubr.bf16.gmra.mrb[12].mxu1 %v11647_v29 }
 0x4fe   :  { %4710 = vmatmul.mubr.bf16.gmra.mrb[12].mxu0 %v11647_v29  ;;  %4863 = vmatpush1.bf16.msra.mxu1 %v11668_v22  ;;  %v11675_v29 = vld [vmem:[#allocation14_spill] sm:$0xff]  ;;  %v11677_v22 = vld [vmem:[#allocation15_spill] sm:$0xff] }
 0x4ff   :  { %4810 = vmatpush1.bf16.msra.mxu0 %v11569_v15  ;;  %4864 = vmatprep.subr.bf16.mxu1 %v11670_v62  ;;  %v11676_v15 = vld [vmem:[#allocation28_spill] sm:$0xff] }
 0x500   :  { %4811 = vmatprep.subr.bf16.mxu0 %v11669_v37  ;;  %4837 = vmatprep.mubr.bf16.mxu0 %v10772_v25  ;;  %v11678_v37 = vld [vmem:[#allocation29_spill] sm:$0xff] }
 0x501   :  { %4890 = vmatprep.mubr.bf16.mxu1 %v10772_v25 }
 0x502   :  { %4865 = vmatpush1.bf16.msra.mxu1 %v11672_v32 }
 0x503   :  { %4812 = vmatpush1.bf16.msra.mxu0 %v11671_v19  ;;  %4866 = vmatprep.subr.bf16.mxu1 %v11674_v7  ;;  %v11685_v19 = vld [vmem:[#allocation30_spill] sm:$0xff] }
 0x504   :  { %4813 = vmatprep.subr.bf16.mxu0 %v11673_v1  ;;  %v11690_v1 = vld [vmem:[#allocation32_spill] sm:$0xff] }
 0x506   :  { %4867 = vmatpush1.bf16.msra.mxu1 %v11676_v15 }
 0x507   :  { %4814 = vmatpush1.bf16.msra.mxu0 %v11675_v29  ;;  %4868 = vmatprep.subr.bf16.mxu1 %v11678_v37  ;;  %v9176_v62 = vpop.f32.mrb[216].mxu0  ;;  %v9178_v35 = vpop.f32.mrb[216].mxu1  ;;  %v11688_v37 = vld [vmem:[#allocation31_spill] sm:$0xff] }
 0x508   :  { %4815 = vmatprep.subr.bf16.mxu0 %v11677_v22  ;;  %11679 = vst [vmem:[#allocation77_spill] sm:$0xff] %v9178_v35  ;;  %v9184_v32 = vpop.f32.mrb[217].mxu0  ;;  %v9186_v7 = vpop.f32.mrb[217].mxu1  ;;  %v11681_v22 = vld [vmem:[#allocation113_spill] sm:$0xff] }
 0x509   :  { %11680 = vst [vmem:[#allocation100_spill] sm:$0xff] %v9186_v7  ;;  %v9192_v29 = vpop.f32.mrb[218].mxu0  ;;  %v9194_v60 = vpop.f32.mrb[218].mxu1  ;;  %v11692_v35 = vld [vmem:[#allocation33_spill] sm:$0xff]  ;;  %v11704_v7 = vld [vmem:[#allocation39_spill] sm:$0xff] }
 0x50a   :  { %11682 = vst [vmem:[#allocation82_spill] sm:$0xff] %v9192_v29  ;;  %11683 = vst [vmem:[#allocation47_spill] sm:$0xff] %v9194_v60  ;;  %4869 = vmatpush1.bf16.msra.mxu1 %v11685_v19  ;;  %v9202_v61 = vpop.f32.mrb[219].mxu0  ;;  %v9204_v15 = vpop.f32.mrb[219].mxu1  ;;  %v11691_v29 = vld [vmem:[#allocation19_spill] sm:$0xff] }
 0x50b   :  { %4816 = vmatpush1.bf16.msra.mxu0 %v11684_v30  ;;  %11686 = vst [vmem:[#allocation98_spill] sm:$0xff] %v9202_v61  ;;  %11687 = vst [vmem:[#allocation104_spill] sm:$0xff] %v9204_v15  ;;  %4870 = vmatprep.subr.bf16.mxu1 %v11688_v37  ;;  %v11689_v30 = vld [vmem:[#allocation18_spill] sm:$0xff] }
 0x50c   :  { %4817 = vmatprep.subr.bf16.mxu0 %v11219_v18  ;;  %v11699_v37 = vld [vmem:[#allocation34_spill] sm:$0xff] }
 0x50e   :  { %4871 = vmatpush1.bf16.msra.mxu1 %v11690_v1  ;;  %v11694_v1 = vld [vmem:[#allocation59_spill] sm:$0xff] }
 0x50f   :  { %4818 = vmatpush1.bf16.msra.mxu0 %v11689_v30  ;;  %4872 = vmatprep.subr.bf16.mxu1 %v11692_v35  ;;  %v9216_v60 = vpop.f32.mrb[220].mxu0  ;;  %v9218_v23 = vpop.f32.mrb[220].mxu1  ;;  %v11706_v35 = vld [vmem:[#allocation41_spill] sm:$0xff] }
 0x510   :  { %4819 = vmatprep.subr.bf16.mxu0 %v11691_v29  ;;  %11693 = vst [vmem:[#allocation112_spill] sm:$0xff] %v9218_v23  ;;  %v9224_v61 = vpop.f32.mrb[221].mxu0  ;;  %v9226_v19 = vpop.f32.mrb[221].mxu1  ;;  %v11695_v29 = vld [vmem:[#allocation109_spill] sm:$0xff]  ;;  %v11703_v23 = vld [vmem:[#allocation38_spill] sm:$0xff] }
 0x511   :  { %v9232_v15 = vpop.f32.mrb[222].mxu0  ;;  %v9234_v51 = vpop.f32.mrb[222].mxu1 }
 0x512   :  { %11696 = vst [vmem:[#allocation84_spill] sm:$0xff] %v9232_v15  ;;  %11697 = vst [vmem:[#allocation83_spill] sm:$0xff] %v9234_v51  ;;  %4873 = vmatpush1.bf16.msra.mxu1 %v11699_v37  ;;  %v9242_v13 = vpop.f32.mrb[223].mxu0  ;;  %v9244_v30 = vpop.f32.mrb[223].mxu1  ;;  %v11705_v51 = vld [vmem:[#allocation40_spill] sm:$0xff]  ;;  %v11708_v37 = vld [vmem:[#allocation43_spill] sm:$0xff] }
 0x513   :  { %4820 = vmatpush1.bf16.msra.mxu0 %v11698_v55  ;;  %11700 = vst [vmem:[#allocation93_spill] sm:$0xff] %v9242_v13  ;;  %11701 = vst [vmem:[#allocation117_spill] sm:$0xff] %v9244_v30  ;;  %4964 = vmatprep.subr.bf16.mxu1 %v11629_v10  ;;  %v11702_v55 = vld [vmem:[#allocation88_spill] sm:$0xff]  ;;  %v11707_v13 = vld [vmem:[#allocation42_spill] sm:$0xff] }
 0x514   :  { %4911 = vmatprep.subr.bf16.mxu0 %v11628_v44  ;;  %v11709_v30 = vld [vmem:[#allocation44_spill] sm:$0xff]  ;;  %v11723_v44 = vmax.f32 %v8835_v33, %v9072_v17 }
 0x515   :  { %4891 = vmatmul.mubr.bf16.vlgmr.msra.gmra.mrb[16].mxu1 %v11702_v55 }
 0x516   :  { %4838 = vmatmul.mubr.bf16.vlgmr.msra.gmra.mrb[16].mxu0 %v11702_v55  ;;  %4965 = vmatpush1.bf16.msra.mxu1 %v11703_v23  ;;  %v11711_v23 = vld [vmem:[#allocation45_spill] sm:$0xff] }
 0x517   :  { %4912 = vmatpush1.bf16.msra.mxu0 %v11639_v2  ;;  %4966 = vmatprep.subr.bf16.mxu1 %v11705_v51  ;;  %v11713_v51 = vld [vmem:[#allocation48_spill] sm:$0xff]  ;;  %v11714_v2 = vld [vmem:[#allocation49_spill] sm:$0xff] }
 0x518   :  { %4913 = vmatprep.subr.bf16.mxu0 %v11704_v7  ;;  %4847 = vmatprep.mubr.bf16.mxu0 %v10772_v25  ;;  %v11712_v7 = vld [vmem:[#allocation46_spill] sm:$0xff] }
 0x519   :  { %4900 = vmatprep.mubr.bf16.mxu1 %v10772_v25 }
 0x51a   :  { %4967 = vmatpush1.bf16.msra.mxu1 %v11707_v13  ;;  %v11715_v13 = vld [vmem:[#allocation50_spill] sm:$0xff] }
 0x51b   :  { %4914 = vmatpush1.bf16.msra.mxu0 %v11706_v35  ;;  %4968 = vmatprep.subr.bf16.mxu1 %v11709_v30  ;;  %v11717_v30 = vld [vmem:[#allocation52_spill] sm:$0xff]  ;;  %v11718_v35 = vld [vmem:[#allocation53_spill] sm:$0xff] }
 0x51c   :  { %4915 = vmatprep.subr.bf16.mxu0 %v11708_v37  ;;  %v11716_v37 = vld [vmem:[#allocation51_spill] sm:$0xff] }
 0x51d   :  { %4901 = vmatmul.mubr.bf16.gmra.mrb[20].mxu1 %v11710_v24 }
 0x51e   :  { %4848 = vmatmul.mubr.bf16.gmra.mrb[20].mxu0 %v11710_v24  ;;  %4969 = vmatpush1.bf16.msra.mxu1 %v11712_v7  ;;  %v11721_v7 = vld [vmem:[#allocation57_spill] sm:$0xff] }
 0x51f   :  { %4916 = vmatpush1.bf16.msra.mxu0 %v11711_v23  ;;  %4970 = vmatprep.subr.bf16.mxu1 %v11714_v2  ;;  %v11720_v23 = vld [vmem:[#allocation55_spill] sm:$0xff] }
 0x520   :  { %4917 = vmatprep.subr.bf16.mxu0 %v11713_v51  ;;  %4943 = vmatprep.mubr.bf16.mxu0 %v10772_v25  ;;  %v11722_v51 = vld [vmem:[#allocation58_spill] sm:$0xff] }
 0x521   :  { %4996 = vmatprep.mubr.bf16.mxu1 %v10772_v25 }
 0x522   :  { %4971 = vmatpush1.bf16.msra.mxu1 %v11716_v37  ;;  %v11724_v37 = vld [vmem:[#allocation99_spill] sm:$0xff] }
 0x523   :  { %4918 = vmatpush1.bf16.msra.mxu0 %v11715_v13  ;;  %4972 = vmatprep.subr.bf16.mxu1 %v11718_v35 }
 0x524   :  { %4919 = vmatprep.subr.bf16.mxu0 %v11717_v30  ;;  %v11725_v30 = vmax.f32 %v8840_v9, %v11724_v37  ;;  %v11729_v9 = vld [vmem:[#allocation60_spill] sm:$0xff] }
 0x525   :  { %v11730_v37 = vmax.f32 %v8857_v0, %v11729_v9  ;;  %v11738_v0 = vmax.f32 %v8874_v57, %v9100_v59  ;;  %v11739_v9 = vld [vmem:[#allocation63_spill] sm:$0xff] }
 0x526   :  { %4973 = vmatpush1.bf16.msra.mxu1 %v11720_v23  ;;  %v11726_v23 = vmax.f32 %v8845_v43, %v9080_v49  ;;  %v11732_v43 = vld [vmem:[#allocation116_spill] sm:$0xff] }
 0x527   :  { %4920 = vmatpush1.bf16.msra.mxu0 %v11719_v20  ;;  %4974 = vmatprep.subr.bf16.mxu1 %v11722_v51  ;;  %v11727_v51 = vmax.f32 %v8850_v39, %v9082_v54 }
 0x528   :  { %4921 = vmatprep.subr.bf16.mxu0 %v11721_v7  ;;  %v4107_v2 = vpop.f32.mrb[224].mxu0  ;;  %v4160_v10 = vpop.f32.mrb[224].mxu1 }
 0x529   :  { %v9283_v13 = vmax.f32 %v11723_v44, %v4107_v2  ;;  %v9288_v12 = vmax.f32 %v11725_v30, %v4160_v10  ;;  %v4109_v35 = vpop.f32.mrb[225].mxu0  ;;  %v4162_v20 = vpop.f32.mrb[225].mxu1  ;;  %v11728_v2 = vld [vmem:[#allocation61_spill] sm:$0xff]  ;;  %v11731_v10 = vld [vmem:[#allocation118_spill] sm:$0xff] }
 0x52a   :  { %v9293_v7 = vmax.f32 %v11726_v23, %v4109_v35  ;;  %v9298_v15 = vmax.f32 %v11727_v51, %v4162_v20  ;;  %v4111_v33 = vpop.f32.mrb[226].mxu0  ;;  %v4164_v44 = vpop.f32.mrb[226].mxu1  ;;  %4975 = vmatpush1.bf16.msra.mxu1 %v11728_v2  ;;  %v11733_v35 = vmax.f32 %v11731_v10, %v11732_v43  ;;  %v11735_v51 = vld [vmem:[#allocation62_spill] sm:$0xff]  ;;  %v11736_v20 = vld [vmem:[#allocation111_spill] sm:$0xff] }
 0x52b   :  { %4922 = vmatpush1.bf16.msra.mxu0 %v10969_v14  ;;  %v9305_v30 = vmax.f32 %v11730_v37, %v4111_v33  ;;  %v4113_v17 = vpop.f32.mrb[227].mxu0  ;;  %v4166_v39 = vpop.f32.mrb[227].mxu1  ;;  %4976 = vmatprep.subr.bf16.mxu1 %v11735_v51  ;;  %v11737_v54 = vmax.f32 %v8869_v56, %v11736_v20  ;;  %v11741_v37 = vld [vmem:[#allocation66_spill] sm:$0xff]  ;;  %v11742_v10 = vld [vmem:[#allocation67_spill] sm:$0xff]  ;;  %v11743_v56 = vmax.f32 %v8883_v53, %v9112_v27  ;;  %v11744_v20 = vld [vmem:[#allocation56_spill] sm:$0xff] }
 0x52c   :  { %v9310_v23 = vmax.f32 %v11733_v35, %v4164_v44  ;;  %4923 = vmatprep.subr.bf16.mxu0 %v6779_v31  ;;  %v9322_v33 = vmax.f32 %v11738_v0, %v4166_v39  ;;  %v11740_v44 = vld [vmem:[#allocation64_spill] sm:$0xff]  ;;  %v11745_v57 = vmax.f32 %v8888_v8, %v11744_v20  ;;  %v11746_v0 = vmax.f32 %v8893_v63, %v9120_v36  ;;  %v11760_v20 = vld [vmem:[#allocation11_spill] sm:$0xff] }
 0x52d   :  { %v9317_v49 = vmax.f32 %v11737_v54, %v4113_v17  ;;  %v11749_v8 = vmax.f32 %v8905_v50, %v9128_v4  ;;  %v11750_v63 = vmax.f32 %v8910_v11, %v9130_v28  ;;  %v11752_v50 = vmax.f32 %v8922_v21, %v9140_v26  ;;  %v11753_v28 = vld [vmem:[#allocation21_spill] sm:$0xff]  ;;  %v11755_v11 = vld [vmem:[#allocation22_spill] sm:$0xff]  ;;  %v11757_v21 = vld [vmem:[#allocation23_spill] sm:$0xff] }
 0x52e   :  { %11734 = vst [vmem:[#allocation17_spill] sm:$0xff] %v9310_v23  ;;  %4977 = vmatpush1.bf16.msra.mxu1 %v11740_v44  ;;  %v11759_v26 = vld [vmem:[#allocation24_spill] sm:$0xff] }
 0x52f   :  { %4924 = vmatpush1.bf16.msra.mxu0 %v11739_v9  ;;  %4978 = vmatprep.subr.bf16.mxu1 %v11742_v10  ;;  %v11747_v10 = vmax.f32 %v8898_v16, %v9122_v3  ;;  %v11751_v16 = vmax.f32 %v8917_v46, %v9138_v6  ;;  %v11754_v6 = vld [vmem:[#allocation8_spill] sm:$0xff]  ;;  %v11756_v46 = vld [vmem:[#allocation9_spill] sm:$0xff] }
 0x530   :  { %4925 = vmatprep.subr.bf16.mxu0 %v11741_v37  ;;  %v4117_v43 = vpop.f32.mrb[228].mxu0  ;;  %v4170_v35 = vpop.f32.mrb[228].mxu1 }
 0x531   :  { %v9331_v17 = vmax.f32 %v11743_v56, %v4117_v43  ;;  %v9336_v59 = vmax.f32 %v11745_v57, %v4170_v35  ;;  %v4119_v39 = vpop.f32.mrb[229].mxu0  ;;  %v4172_v54 = vpop.f32.mrb[229].mxu1  ;;  %v11748_v43 = vld [vmem:[#allocation69_spill] sm:$0xff] }
 0x532   :  { %v9341_v37 = vmax.f32 %v11746_v0, %v4119_v39  ;;  %v9346_v44 = vmax.f32 %v11747_v10, %v4172_v54  ;;  %v4121_v53 = vpop.f32.mrb[230].mxu0  ;;  %v4174_v27 = vpop.f32.mrb[230].mxu1  ;;  %4979 = vmatpush1.bf16.msra.mxu1 %v11748_v43  ;;  %v11761_v57 = vld [vmem:[#allocation25_spill] sm:$0xff]  ;;  %v11762_v39 = vld [vmem:[#allocation12_spill] sm:$0xff]  ;;  %v11763_v54 = vld [vmem:[#allocation26_spill] sm:$0xff] }
 0x533   :  { %4926 = vmatpush1.bf16.msra.mxu0 %v6804_v58  ;;  %v9353_v35 = vmax.f32 %v11749_v8, %v4121_v53  ;;  %v9358_v36 = vmax.f32 %v11750_v63, %v4174_v27  ;;  %v4123_v56 = vpop.f32.mrb[231].mxu0  ;;  %v4176_v3 = vpop.f32.mrb[231].mxu1  ;;  %5102 = vmatprep.subr.bf16.mxu1 %v6460_v40  ;;  %v11764_v0 = vld [vmem:[#allocation13_spill] sm:$0xff]  ;;  %v11765_v53 = vld [vmem:[#allocation27_spill] sm:$0xff]  ;;  %v11767_v27 = vld [vmem:[#allocation28_spill] sm:$0xff] }
 0x534   :  { %5049 = vmatprep.subr.bf16.mxu0 %v6457_v38  ;;  %v9365_v10 = vmax.f32 %v11751_v16, %v4123_v56  ;;  %v9370_v4 = vmax.f32 %v11752_v50, %v4176_v3  ;;  %v11768_v8 = vld [vmem:[#allocation15_spill] sm:$0xff]  ;;  %v11769_v63 = vld [vmem:[#allocation29_spill] sm:$0xff]  ;;  %v11770_v16 = vmax.f32 %v8955_v52, %v9176_v62 }
 0x535   :  { %4997 = vmatmul.mubr.bf16.vlgmr.msra.gmra.mrb[24].mxu1 %v11702_v55 }
 0x536   :  { %4944 = vmatmul.mubr.bf16.vlgmr.msra.gmra.mrb[24].mxu0 %v11702_v55  ;;  %5103 = vmatpush1.bf16.msra.mxu1 %v6465_v42  ;;  %v11758_v55 = vld [vmem:[#allocation10_spill] sm:$0xff] }
 0x537   :  { %5050 = vmatpush1.bf16.msra.mxu0 %v6463_v41  ;;  %5104 = vmatprep.subr.bf16.mxu1 %v11753_v28 }
 0x538   :  { %5051 = vmatprep.subr.bf16.mxu0 %v6481_v48  ;;  %4953 = vmatprep.mubr.bf16.mxu0 %v10772_v25 }
 0x539   :  { %5006 = vmatprep.mubr.bf16.mxu1 %v10772_v25 }
 0x53a   :  { %5105 = vmatpush1.bf16.msra.mxu1 %v11755_v11 }
 0x53b   :  { %5052 = vmatpush1.bf16.msra.mxu0 %v11754_v6  ;;  %5106 = vmatprep.subr.bf16.mxu1 %v11757_v21 }
 0x53c   :  { %5053 = vmatprep.subr.bf16.mxu0 %v11756_v46 }
 0x53d   :  { %5007 = vmatmul.mubr.bf16.gmra.mrb[28].mxu1 %v11710_v24 }
 0x53e   :  { %4954 = vmatmul.mubr.bf16.gmra.mrb[28].mxu0 %v11710_v24  ;;  %5107 = vmatpush1.bf16.msra.mxu1 %v11759_v26  ;;  %v11766_v24 = vld [vmem:[#allocation14_spill] sm:$0xff] }
 0x53f   :  { %5054 = vmatpush1.bf16.msra.mxu0 %v11758_v55  ;;  %5108 = vmatprep.subr.bf16.mxu1 %v11761_v57 }
 0x540   :  { %5055 = vmatprep.subr.bf16.mxu0 %v11760_v20  ;;  %5081 = vmatprep.mubr.bf16.mxu0 %v10772_v25 }
 0x541   :  { %5134 = vmatprep.mubr.bf16.mxu1 %v10772_v25 }
 0x542   :  { %5109 = vmatpush1.bf16.msra.mxu1 %v11763_v54  ;;  %v11771_v54 = vld [vmem:[#allocation95_spill] sm:$0xff] }
 0x543   :  { %5056 = vmatpush1.bf16.msra.mxu0 %v11762_v39  ;;  %5110 = vmatprep.subr.bf16.mxu1 %v11765_v53  ;;  %v11772_v39 = vld [vmem:[#allocation77_spill] sm:$0xff] }
 0x544   :  { %5057 = vmatprep.subr.bf16.mxu0 %v11764_v0  ;;  %v11773_v0 = vmax.f32 %v11771_v54, %v11772_v39  ;;  %v11780_v39 = vld [vmem:[#allocation82_spill] sm:$0xff] }
 0x545   :  { %v11781_v54 = vmax.f32 %v8977_v47, %v11780_v39  ;;  %v11790_v47 = vld [vmem:[#allocation104_spill] sm:$0xff] }
 0x546   :  { %5111 = vmatpush1.bf16.msra.mxu1 %v11767_v27  ;;  %v11774_v27 = vmax.f32 %v8965_v34, %v9184_v32  ;;  %v11783_v34 = vld [vmem:[#allocation47_spill] sm:$0xff] }
 0x547   :  { %5058 = vmatpush1.bf16.msra.mxu0 %v11766_v24  ;;  %5112 = vmatprep.subr.bf16.mxu1 %v11769_v63  ;;  %v11775_v63 = vld [vmem:[#allocation100_spill] sm:$0xff] }
 0x548   :  { %5059 = vmatprep.subr.bf16.mxu0 %v11768_v8  ;;  %v4213_v56 = vpop.f32.mrb[232].mxu0  ;;  %v4266_v3 = vpop.f32.mrb[232].mxu1  ;;  %v11776_v20 = vmax.f32 %v11681_v22, %v11775_v63  ;;  %v11787_v63 = vld [vmem:[#allocation98_spill] sm:$0xff] }
 0x549   :  { %v9403_v50 = vmax.f32 %v11770_v16, %v4213_v56  ;;  %v9408_v57 = vmax.f32 %v11773_v0, %v4266_v3  ;;  %v4215_v53 = vpop.f32.mrb[233].mxu0  ;;  %v4268_v24 = vpop.f32.mrb[233].mxu1  ;;  %v11778_v56 = vld [vmem:[#allocation16_spill] sm:$0xff]  ;;  %v11779_v16 = vld [vmem:[#allocation30_spill] sm:$0xff] }
 0x54a   :  { %v9413_v8 = vmax.f32 %v11774_v27, %v4215_v53  ;;  %v9418_v26 = vmax.f32 %v11776_v20, %v4268_v24  ;;  %v4217_v52 = vpop.f32.mrb[234].mxu0  ;;  %v4270_v62 = vpop.f32.mrb[234].mxu1  ;;  %5113 = vmatpush1.bf16.msra.mxu1 %v11779_v16  ;;  %v11782_v3 = vld [vmem:[#allocation72_spill] sm:$0xff]  ;;  %v11785_v20 = vld [vmem:[#allocation31_spill] sm:$0xff] }
 0x54b   :  { %5060 = vmatpush1.bf16.msra.mxu0 %v11778_v56  ;;  %v9425_v0 = vmax.f32 %v11781_v54, %v4217_v52  ;;  %v11784_v32 = vmax.f32 %v11782_v3, %v11783_v34  ;;  %v4219_v27 = vpop.f32.mrb[235].mxu0  ;;  %v4272_v22 = vpop.f32.mrb[235].mxu1  ;;  %5114 = vmatprep.subr.bf16.mxu1 %v11785_v20  ;;  %v11786_v24 = vld [vmem:[#allocation108_spill] sm:$0xff]  ;;  %v11793_v54 = vld [vmem:[#allocation18_spill] sm:$0xff]  ;;  %v11795_v3 = vld [vmem:[#allocation19_spill] sm:$0xff] }
 0x54c   :  { %11777 = vst [vmem:[#allocation79_spill] sm:$0xff] %v9418_v26  ;;  %5061 = vmatprep.subr.bf16.mxu0 %v11219_v18  ;;  %v11788_v56 = vmax.f32 %v11786_v24, %v11787_v63  ;;  %v11789_v26 = vld [vmem:[#allocation114_spill] sm:$0xff]  ;;  %v11796_v34 = vld [vmem:[#allocation33_spill] sm:$0xff]  ;;  %v11797_v24 = vmax.f32 %v9003_v45, %v9216_v60  ;;  %v11799_v63 = vld [vmem:[#allocation112_spill] sm:$0xff] }
 0x54d   :  { %v9430_v53 = vmax.f32 %v11784_v32, %v4270_v62  ;;  %v11791_v52 = vmax.f32 %v11789_v26, %v11790_v47  ;;  %v11794_v62 = vld [vmem:[#allocation32_spill] sm:$0xff] }
 0x54e   :  { %v9437_v16 = vmax.f32 %v11788_v56, %v4219_v27  ;;  %5115 = vmatpush1.bf16.msra.mxu1 %v11794_v62  ;;  %v11798_v27 = vld [vmem:[#allocation120_spill] sm:$0xff]  ;;  %v11802_v62 = vmax.f32 %v11694_v1, %v9224_v61  ;;  %v11811_v1 = vld [vmem:[#allocation83_spill] sm:$0xff] }
 0x54f   :  { %v9442_v39 = vmax.f32 %v11791_v52, %v4272_v22  ;;  %5062 = vmatpush1.bf16.msra.mxu0 %v11793_v54  ;;  %5116 = vmatprep.subr.bf16.mxu1 %v11796_v34  ;;  %v11800_v26 = vmax.f32 %v11798_v27, %v11799_v63  ;;  %v11804_v34 = vmax.f32 %v11695_v29, %v9226_v19  ;;  %v11814_v29 = vld [vmem:[#allocation35_spill] sm:$0xff] }
 0x550   :  { %5063 = vmatprep.subr.bf16.mxu0 %v11795_v3  ;;  %v4223_v32 = vpop.f32.mrb[236].mxu0  ;;  %v4276_v20 = vpop.f32.mrb[236].mxu1 }
 0x551   :  { %11792 = vst [vmem:[#allocation78_spill] sm:$0xff] %v9442_v39  ;;  %v9451_v56 = vmax.f32 %v11797_v24, %v4223_v32  ;;  %v9456_v22 = vmax.f32 %v11800_v26, %v4276_v20  ;;  %v4225_v47 = vpop.f32.mrb[237].mxu0  ;;  %v4278_v52 = vpop.f32.mrb[237].mxu1  ;;  %v11806_v32 = vld [vmem:[#allocation20_spill] sm:$0xff]  ;;  %v11807_v24 = vld [vmem:[#allocation34_spill] sm:$0xff]  ;;  %v11810_v26 = vld [vmem:[#allocation115_spill] sm:$0xff] }
 0x552   :  { %v9461_v3 = vmax.f32 %v11802_v62, %v4225_v47  ;;  %v9466_v54 = vmax.f32 %v11804_v34, %v4278_v52  ;;  %v4227_v60 = vpop.f32.mrb[238].mxu0  ;;  %v4280_v45 = vpop.f32.mrb[238].mxu1  ;;  %5117 = vmatpush1.bf16.msra.mxu1 %v11807_v24  ;;  %v11808_v20 = vld [vmem:[#allocation84_spill] sm:$0xff]  ;;  %v11812_v61 = vmax.f32 %v11810_v26, %v11811_v1  ;;  %v11816_v52 = vld [vmem:[#allocation121_spill] sm:$0xff]  ;;  %v11826_v26 = vld [vmem:[#allocation38_spill] sm:$0xff] }
 0x553   :  { %11801 = vst [vmem:[#allocation107_spill] sm:$0xff] %v9456_v22  ;;  %5064 = vmatpush1.bf16.msra.mxu0 %v11806_v32  ;;  %v11809_v27 = vmax.f32 %v9025_v5, %v11808_v20  ;;  %v4229_v47 = vpop.f32.mrb[239].mxu0  ;;  %v4282_v19 = vpop.f32.mrb[239].mxu1  ;;  %v11815_v34 = vld [vmem:[#allocation36_spill] sm:$0xff]  ;;  %v11817_v32 = vld [vmem:[#allocation93_spill] sm:$0xff]  ;;  %v11827_v1 = vld [vmem:[#allocation39_spill] sm:$0xff] }
 0x554   :  { %11803 = vst [vmem:[#allocation70_spill] sm:$0xff] %v9461_v3  ;;  %11805 = vst [vmem:[#allocation119_spill] sm:$0xff] %v9466_v54  ;;  %v9478_v62 = vmax.f32 %v11812_v61, %v4280_v45  ;;  %5155 = vmatprep.subr.bf16.mxu0 %v11814_v29  ;;  %5208 = vmatprep.subr.bf16.mxu1 %v11815_v34  ;;  %v11818_v54 = vmax.f32 %v11816_v52, %v11817_v32  ;;  %v11820_v3 = vld [vmem:[#allocation71_spill] sm:$0xff]  ;;  %v11821_v5 = vld [vmem:[#allocation117_spill] sm:$0xff] }
 0x555   :  { %v9473_v63 = vmax.f32 %v11809_v27, %v4227_v60  ;;  %v11822_v60 = vmax.f32 %v11820_v3, %v11821_v5  ;;  %v11824_v27 = vld [vmem:[#allocation90_spill] sm:$0xff]  ;;  %v11825_v45 = vld [vmem:[#allocation37_spill] sm:$0xff]  ;;  %v11828_v61 = vld [vmem:[#allocation40_spill] sm:$0xff] }
 0x556   :  { %11813 = vst [vmem:[#allocation75_spill] sm:$0xff] %v9478_v62  ;;  %v9485_v24 = vmax.f32 %v11818_v54, %v4229_v47  ;;  %5082 = vmatmul.mubr.bf16.vlgmr.msra.gmra.mrb[32].mxu0 %v11824_v27  ;;  %5135 = vmatmul.mubr.bf16.vlgmr.msra.gmra.mrb[32].mxu1 %v11824_v27  ;;  %v11829_v54 = vld [vmem:[#allocation41_spill] sm:$0xff]  ;;  %v11830_v3 = vld [vmem:[#allocation42_spill] sm:$0xff]  ;;  %v11831_v32 = vld [vmem:[#allocation43_spill] sm:$0xff] }
 0x557   :  { %v9490_v20 = vmax.f32 %v11822_v60, %v4282_v19  ;;  %5156 = vmatpush1.bf16.msra.mxu0 %v11825_v45  ;;  %5209 = vmatpush1.bf16.msra.mxu1 %v11826_v26  ;;  %v11832_v47 = vld [vmem:[#allocation44_spill] sm:$0xff]  ;;  %v11833_v19 = vld [vmem:[#allocation89_spill] sm:$0xff]  ;;  %v11835_v5 = vld [vmem:[#allocation46_spill] sm:$0xff] }
 0x558   :  { %11819 = vst [vmem:[#allocation74_spill] sm:$0xff] %v9485_v24  ;;  %5157 = vmatprep.subr.bf16.mxu0 %v11827_v1  ;;  %5210 = vmatprep.subr.bf16.mxu1 %v11828_v61  ;;  %v11834_v52 = vld [vmem:[#allocation45_spill] sm:$0xff]  ;;  %v11836_v60 = vld [vmem:[#allocation48_spill] sm:$0xff]  ;;  %v11842_v1 = vld [vmem:[#allocation54_spill] sm:$0xff] }
 0x559   :  { %11823 = vst [vmem:[#allocation68_spill] sm:$0xff] %v9490_v20  ;;  %5091 = vmatprep.mubr.bf16.mxu0 %v10772_v25  ;;  %5144 = vmatprep.mubr.bf16.mxu1 %v10772_v25  ;;  %v11837_v61 = vld [vmem:[#allocation49_spill] sm:$0xff]  ;;  %v11902_v20 = vld [vmem:[#allocation54_spill] sm:$0xff] }
 0x55b   :  { %5158 = vmatpush1.bf16.msra.mxu0 %v11829_v54  ;;  %5211 = vmatpush1.bf16.msra.mxu1 %v11830_v3  ;;  %v11838_v3 = vld [vmem:[#allocation50_spill] sm:$0xff]  ;;  %v11841_v54 = vld [vmem:[#allocation53_spill] sm:$0xff] }
 0x55c   :  { %5159 = vmatprep.subr.bf16.mxu0 %v11831_v32  ;;  %5212 = vmatprep.subr.bf16.mxu1 %v11832_v47  ;;  %v11839_v32 = vld [vmem:[#allocation51_spill] sm:$0xff]  ;;  %v11840_v47 = vld [vmem:[#allocation52_spill] sm:$0xff] }
 0x55e   :  { %5092 = vmatmul.mubr.bf16.gmra.mrb[36].mxu0 %v11833_v19  ;;  %5145 = vmatmul.mubr.bf16.gmra.mrb[36].mxu1 %v11833_v19 }
 0x55f   :  { %5160 = vmatpush1.bf16.msra.mxu0 %v11834_v52  ;;  %5213 = vmatpush1.bf16.msra.mxu1 %v11835_v5  ;;  %v11843_v52 = vld [vmem:[#allocation55_spill] sm:$0xff]  ;;  %v11844_v5 = vld [vmem:[#allocation57_spill] sm:$0xff] }
 0x560   :  { %5161 = vmatprep.subr.bf16.mxu0 %v11836_v60  ;;  %5214 = vmatprep.subr.bf16.mxu1 %v11837_v61  ;;  %v11845_v60 = vld [vmem:[#allocation58_spill] sm:$0xff] }
 0x561   :  { %5187 = vmatprep.mubr.bf16.mxu0 %v10772_v25  ;;  %5240 = vmatprep.mubr.bf16.mxu1 %v10772_v25 }
 0x563   :  { %5162 = vmatpush1.bf16.msra.mxu0 %v11838_v3  ;;  %5215 = vmatpush1.bf16.msra.mxu1 %v11839_v32  ;;  %v11852_v3 = vld [vmem:[#allocation67_spill] sm:$0xff] }
 0x564   :  { %5163 = vmatprep.subr.bf16.mxu0 %v11840_v47  ;;  %5216 = vmatprep.subr.bf16.mxu1 %v11841_v54  ;;  %v11850_v47 = vld [vmem:[#allocation64_spill] sm:$0xff] }
 0x567   :  { %5164 = vmatpush1.bf16.msra.mxu0 %v11842_v1  ;;  %5217 = vmatpush1.bf16.msra.mxu1 %v11843_v52 }
 0x568   :  { %5165 = vmatprep.subr.bf16.mxu0 %v11844_v5  ;;  %5218 = vmatprep.subr.bf16.mxu1 %v11845_v60  ;;  %v9520_v61 = vpop.f32.mrb[240].mxu0  ;;  %v9522_v26 = vpop.f32.mrb[240].mxu1 }
 0x569   :  { %11846 = vst [vmem:[#allocation81_spill] sm:$0xff] %v9522_v26  ;;  %v9528_v32 = vpop.f32.mrb[241].mxu0  ;;  %v9530_v54 = vpop.f32.mrb[241].mxu1  ;;  %v11906_v24 = vmax.f32 %v9283_v13, %v9520_v61  ;;  %v11911_v61 = vld [vmem:[#allocation61_spill] sm:$0xff] }
 0x56a   :  { %v9536_v5 = vpop.f32.mrb[242].mxu0  ;;  %v9538_v1 = vpop.f32.mrb[242].mxu1 }
 0x56b   :  { %11847 = vst [vmem:[#allocation103_spill] sm:$0xff] %v9536_v5  ;;  %11848 = vst [vmem:[#allocation80_spill] sm:$0xff] %v9538_v1  ;;  %5166 = vmatpush1.bf16.msra.mxu0 %v10969_v14  ;;  %5219 = vmatpush1.bf16.msra.mxu1 %v11728_v2  ;;  %v9546_v26 = vpop.f32.mrb[243].mxu0  ;;  %v9548_v52 = vpop.f32.mrb[243].mxu1  ;;  %v11851_v5 = vld [vmem:[#allocation66_spill] sm:$0xff] }
 0x56c   :  { %11849 = vst [vmem:[#allocation110_spill] sm:$0xff] %v9546_v26  ;;  %5167 = vmatprep.subr.bf16.mxu0 %v6779_v31  ;;  %5220 = vmatprep.subr.bf16.mxu1 %v11735_v51  ;;  %v11874_v51 = vld [vmem:[#allocation19_spill] sm:$0xff] }
 0x56f   :  { %5168 = vmatpush1.bf16.msra.mxu0 %v11739_v9  ;;  %5221 = vmatpush1.bf16.msra.mxu1 %v11850_v47 }
 0x570   :  { %5169 = vmatprep.subr.bf16.mxu0 %v11851_v5  ;;  %5222 = vmatprep.subr.bf16.mxu1 %v11852_v3  ;;  %v9560_v1 = vpop.f32.mrb[244].mxu0  ;;  %v9562_v23 = vpop.f32.mrb[244].mxu1 }
 0x571   :  { %11853 = vst [vmem:[#allocation76_spill] sm:$0xff] %v9562_v23  ;;  %v9568_v26 = vpop.f32.mrb[245].mxu0  ;;  %v9570_v2 = vpop.f32.mrb[245].mxu1 }
 0x572   :  { %v9576_v5 = vpop.f32.mrb[246].mxu0  ;;  %v9578_v9 = vpop.f32.mrb[246].mxu1 }
 0x573   :  { %5170 = vmatpush1.bf16.msra.mxu0 %v6804_v58  ;;  %5223 = vmatpush1.bf16.msra.mxu1 %v11748_v43  ;;  %v9586_v23 = vpop.f32.mrb[247].mxu0  ;;  %v9588_v47 = vpop.f32.mrb[247].mxu1 }
 0x574   :  { %5293 = vmatprep.subr.bf16.mxu0 %v6457_v38  ;;  %5346 = vmatprep.subr.bf16.mxu1 %v6460_v40  ;;  %v11854_v38 = vld [vmem:[#allocation24_spill] sm:$0xff]  ;;  %v11855_v40 = vld [vmem:[#allocation11_spill] sm:$0xff] }
 0x576   :  { %5188 = vmatmul.mubr.bf16.vlgmr.msra.gmra.mrb[40].mxu0 %v11824_v27  ;;  %5241 = vmatmul.mubr.bf16.vlgmr.msra.gmra.mrb[40].mxu1 %v11824_v27 }
 0x577   :  { %5294 = vmatpush1.bf16.msra.mxu0 %v6463_v41  ;;  %5347 = vmatpush1.bf16.msra.mxu1 %v6465_v42  ;;  %v11856_v41 = vld [vmem:[#allocation25_spill] sm:$0xff]  ;;  %v11857_v42 = vld [vmem:[#allocation12_spill] sm:$0xff] }
 0x578   :  { %5295 = vmatprep.subr.bf16.mxu0 %v6481_v48  ;;  %5348 = vmatprep.subr.bf16.mxu1 %v11753_v28  ;;  %v11858_v48 = vld [vmem:[#allocation26_spill] sm:$0xff]  ;;  %v11859_v28 = vld [vmem:[#allocation13_spill] sm:$0xff] }
 0x579   :  { %5197 = vmatprep.mubr.bf16.mxu0 %v10772_v25  ;;  %5250 = vmatprep.mubr.bf16.mxu1 %v10772_v25 }
 0x57b   :  { %5296 = vmatpush1.bf16.msra.mxu0 %v11754_v6  ;;  %5349 = vmatpush1.bf16.msra.mxu1 %v11755_v11  ;;  %v11860_v6 = vld [vmem:[#allocation27_spill] sm:$0xff]  ;;  %v11861_v11 = vld [vmem:[#allocation14_spill] sm:$0xff] }
 0x57c   :  { %5297 = vmatprep.subr.bf16.mxu0 %v11756_v46  ;;  %5350 = vmatprep.subr.bf16.mxu1 %v11757_v21  ;;  %v11862_v46 = vld [vmem:[#allocation28_spill] sm:$0xff]  ;;  %v11863_v21 = vld [vmem:[#allocation15_spill] sm:$0xff] }
 0x57e   :  { %5198 = vmatmul.mubr.bf16.gmra.mrb[44].mxu0 %v11833_v19  ;;  %5251 = vmatmul.mubr.bf16.gmra.mrb[44].mxu1 %v11833_v19 }
 0x57f   :  { %5298 = vmatpush1.bf16.msra.mxu0 %v11758_v55  ;;  %5351 = vmatpush1.bf16.msra.mxu1 %v11854_v38  ;;  %v11864_v55 = vld [vmem:[#allocation29_spill] sm:$0xff] }
 0x580   :  { %5299 = vmatprep.subr.bf16.mxu0 %v11855_v40  ;;  %5352 = vmatprep.subr.bf16.mxu1 %v11856_v41  ;;  %v11873_v40 = vld [vmem:[#allocation32_spill] sm:$0xff]  ;;  %v11875_v38 = vld [vmem:[#allocation33_spill] sm:$0xff] }
 0x581   :  { %5325 = vmatprep.mubr.bf16.mxu0 %v10772_v25  ;;  %5378 = vmatprep.mubr.bf16.mxu1 %v10772_v25 }
 0x583   :  { %5300 = vmatpush1.bf16.msra.mxu0 %v11857_v42  ;;  %5353 = vmatpush1.bf16.msra.mxu1 %v11858_v48 }
 0x584   :  { %5301 = vmatprep.subr.bf16.mxu0 %v11859_v28  ;;  %5354 = vmatprep.subr.bf16.mxu1 %v11860_v6  ;;  %v11865_v28 = vld [vmem:[#allocation79_spill] sm:$0xff] }
 0x585   :  { %v11871_v6 = vld [vmem:[#allocation31_spill] sm:$0xff] }
 0x587   :  { %5302 = vmatpush1.bf16.msra.mxu0 %v11861_v11  ;;  %5355 = vmatpush1.bf16.msra.mxu1 %v11862_v46 }
 0x588   :  { %5303 = vmatprep.subr.bf16.mxu0 %v11863_v21  ;;  %5356 = vmatprep.subr.bf16.mxu1 %v11864_v55  ;;  %v9624_v27 = vpop.f32.mrb[248].mxu0  ;;  %v9626_v19 = vpop.f32.mrb[248].mxu1  ;;  %v11867_v21 = vld [vmem:[#allocation16_spill] sm:$0xff]  ;;  %v11868_v55 = vld [vmem:[#allocation30_spill] sm:$0xff] }
 0x589   :  { %v9632_v41 = vpop.f32.mrb[249].mxu0  ;;  %v9634_v42 = vpop.f32.mrb[249].mxu1 }
 0x58a   :  { %v9640_v11 = vpop.f32.mrb[250].mxu0  ;;  %v9642_v46 = vpop.f32.mrb[250].mxu1 }
 0x58b   :  { %11866 = vst [vmem:[#allocation101_spill] sm:$0xff] %v9642_v46  ;;  %5304 = vmatpush1.bf16.msra.mxu0 %v11867_v21  ;;  %5357 = vmatpush1.bf16.msra.mxu1 %v11868_v55  ;;  %v9650_v43 = vpop.f32.mrb[251].mxu0  ;;  %v9652_v48 = vpop.f32.mrb[251].mxu1  ;;  %v11872_v55 = vld [vmem:[#allocation18_spill] sm:$0xff] }
 0x58c   :  { %11869 = vst [vmem:[#allocation96_spill] sm:$0xff] %v9650_v43  ;;  %11870 = vst [vmem:[#allocation106_spill] sm:$0xff] %v9652_v48  ;;  %5305 = vmatprep.subr.bf16.mxu0 %v11219_v18  ;;  %5358 = vmatprep.subr.bf16.mxu1 %v11871_v6  ;;  %v11881_v43 = vld [vmem:[#allocation20_spill] sm:$0xff]  ;;  %v11882_v18 = vld [vmem:[#allocation34_spill] sm:$0xff] }
 0x58d   :  { %v11887_v6 = vld [vmem:[#allocation39_spill] sm:$0xff] }
 0x58f   :  { %5306 = vmatpush1.bf16.msra.mxu0 %v11872_v55  ;;  %5359 = vmatpush1.bf16.msra.mxu1 %v11873_v40  ;;  %v11877_v40 = vld [vmem:[#allocation70_spill] sm:$0xff] }
 0x590   :  { %5307 = vmatprep.subr.bf16.mxu0 %v11874_v51  ;;  %5360 = vmatprep.subr.bf16.mxu1 %v11875_v38  ;;  %v9664_v60 = vpop.f32.mrb[252].mxu0  ;;  %v9666_v46 = vpop.f32.mrb[252].mxu1  ;;  %v11878_v51 = vld [vmem:[#allocation119_spill] sm:$0xff]  ;;  %v11892_v38 = vld [vmem:[#allocation44_spill] sm:$0xff] }
 0x591   :  { %11876 = vst [vmem:[#allocation102_spill] sm:$0xff] %v9666_v46  ;;  %v9672_v3 = vpop.f32.mrb[253].mxu0  ;;  %v9674_v21 = vpop.f32.mrb[253].mxu1  ;;  %v11886_v46 = vld [vmem:[#allocation38_spill] sm:$0xff] }
 0x592   :  { %v9680_v48 = vpop.f32.mrb[254].mxu0  ;;  %v9682_v39 = vpop.f32.mrb[254].mxu1 }
 0x593   :  { %11879 = vst [vmem:[#allocation94_spill] sm:$0xff] %v9680_v48  ;;  %11880 = vst [vmem:[#allocation65_spill] sm:$0xff] %v9682_v39  ;;  %5308 = vmatpush1.bf16.msra.mxu0 %v11881_v43  ;;  %5361 = vmatpush1.bf16.msra.mxu1 %v11882_v18  ;;  %v9690_v22 = vpop.f32.mrb[255].mxu0  ;;  %v9692_v55 = vpop.f32.mrb[255].mxu1  ;;  %v11885_v18 = vld [vmem:[#allocation92_spill] sm:$0xff]  ;;  %v11891_v43 = vld [vmem:[#allocation43_spill] sm:$0xff] }
 0x594   :  { %11883 = vst [vmem:[#allocation73_spill] sm:$0xff] %v9690_v22  ;;  %11884 = vst [vmem:[#allocation105_spill] sm:$0xff] %v9692_v55  ;;  %5399 = vmatprep.subr.bf16.mxu0 %v11814_v29  ;;  %5452 = vmatprep.subr.bf16.mxu1 %v11815_v34  ;;  %v11888_v39 = vld [vmem:[#allocation40_spill] sm:$0xff]  ;;  %v11889_v29 = vld [vmem:[#allocation41_spill] sm:$0xff] }
 0x595   :  { %v11890_v34 = vld [vmem:[#allocation42_spill] sm:$0xff]  ;;  %v11893_v55 = vld [vmem:[#allocation91_spill] sm:$0xff] }
 0x596   :  { %5326 = vmatmul.mubr.bf16.vlgmr.msra.gmra.mrb[48].mxu0 %v11885_v18  ;;  %5379 = vmatmul.mubr.bf16.vlgmr.msra.gmra.mrb[48].mxu1 %v11885_v18 }
 0x597   :  { %5400 = vmatpush1.bf16.msra.mxu0 %v11825_v45  ;;  %5453 = vmatpush1.bf16.msra.mxu1 %v11886_v46  ;;  %v11894_v45 = vld [vmem:[#allocation45_spill] sm:$0xff]  ;;  %v11895_v46 = vld [vmem:[#allocation46_spill] sm:$0xff] }
 0x598   :  { %5401 = vmatprep.subr.bf16.mxu0 %v11887_v6  ;;  %5454 = vmatprep.subr.bf16.mxu1 %v11888_v39  ;;  %v11896_v39 = vld [vmem:[#allocation48_spill] sm:$0xff]  ;;  %v11897_v6 = vld [vmem:[#allocation49_spill] sm:$0xff] }
 0x599   :  { %5335 = vmatprep.mubr.bf16.mxu0 %v10772_v25  ;;  %5388 = vmatprep.mubr.bf16.mxu1 %v10772_v25 }
 0x59b   :  { %5402 = vmatpush1.bf16.msra.mxu0 %v11889_v29  ;;  %5455 = vmatpush1.bf16.msra.mxu1 %v11890_v34  ;;  %v11898_v29 = vld [vmem:[#allocation50_spill] sm:$0xff]  ;;  %v11901_v34 = vld [vmem:[#allocation53_spill] sm:$0xff] }
 0x59c   :  { %5403 = vmatprep.subr.bf16.mxu0 %v11891_v43  ;;  %5456 = vmatprep.subr.bf16.mxu1 %v11892_v38  ;;  %v11899_v43 = vld [vmem:[#allocation51_spill] sm:$0xff]  ;;  %v11900_v38 = vld [vmem:[#allocation52_spill] sm:$0xff] }
 0x59e   :  { %5336 = vmatmul.mubr.bf16.gmra.mrb[52].mxu0 %v11893_v55  ;;  %5389 = vmatmul.mubr.bf16.gmra.mrb[52].mxu1 %v11893_v55 }
 0x59f   :  { %5404 = vmatpush1.bf16.msra.mxu0 %v11894_v45  ;;  %5457 = vmatpush1.bf16.msra.mxu1 %v11895_v46  ;;  %v11903_v45 = vld [vmem:[#allocation55_spill] sm:$0xff]  ;;  %v11904_v46 = vld [vmem:[#allocation57_spill] sm:$0xff] }
 0x5a0   :  { %5405 = vmatprep.subr.bf16.mxu0 %v11896_v39  ;;  %5458 = vmatprep.subr.bf16.mxu1 %v11897_v6  ;;  %v11905_v39 = vld [vmem:[#allocation58_spill] sm:$0xff] }
 0x5a1   :  { %5431 = vmatprep.mubr.bf16.mxu0 %v10772_v25  ;;  %5484 = vmatprep.mubr.bf16.mxu1 %v10772_v25 }
 0x5a3   :  { %5406 = vmatpush1.bf16.msra.mxu0 %v11898_v29  ;;  %5459 = vmatpush1.bf16.msra.mxu1 %v11899_v43  ;;  %v11907_v43 = vld [vmem:[#allocation81_spill] sm:$0xff] }
 0x5a4   :  { %5407 = vmatprep.subr.bf16.mxu0 %v11900_v38  ;;  %5460 = vmatprep.subr.bf16.mxu1 %v11901_v34  ;;  %v11908_v38 = vmax.f32 %v9288_v12, %v11907_v43  ;;  %v11912_v12 = vld [vmem:[#allocation103_spill] sm:$0xff]  ;;  %v11914_v43 = vld [vmem:[#allocation17_spill] sm:$0xff] }
 0x5a7   :  { %5408 = vmatpush1.bf16.msra.mxu0 %v11902_v20  ;;  %5461 = vmatpush1.bf16.msra.mxu1 %v11903_v45  ;;  %v11909_v45 = vmax.f32 %v9293_v7, %v9528_v32  ;;  %v11915_v7 = vld [vmem:[#allocation80_spill] sm:$0xff] }
 0x5a8   :  { %5409 = vmatprep.subr.bf16.mxu0 %v11904_v46  ;;  %5462 = vmatprep.subr.bf16.mxu1 %v11905_v39  ;;  %v4595_v6 = vpop.f32.mrb[0].mxu0  ;;  %v4648_v22 = vpop.f32.mrb[0].mxu1  ;;  %v11910_v39 = vmax.f32 %v9298_v15, %v9530_v54  ;;  %v11916_v32 = vmax.f32 %v11914_v43, %v11915_v7  ;;  %v11917_v54 = vld [vmem:[#allocation62_spill] sm:$0xff]  ;;  %v11926_v7 = vld [vmem:[#allocation76_spill] sm:$0xff] }
 0x5a9   :  { %v9731_v29 = vmax.f32 %v11906_v24, %v4595_v6  ;;  %v9736_v62 = vmax.f32 %v11908_v38, %v4648_v22  ;;  %v4597_v34 = vpop.f32.mrb[1].mxu0  ;;  %v4650_v20 = vpop.f32.mrb[1].mxu1  ;;  %v11913_v22 = vmax.f32 %v9305_v30, %v11912_v12  ;;  %v11920_v30 = vmax.f32 %v9322_v33, %v9548_v52  ;;  %v11924_v12 = vld [vmem:[#allocation67_spill] sm:$0xff] }
 0x5aa   :  { %v9741_v46 = vmax.f32 %v11909_v45, %v4597_v34  ;;  %v9746_v48 = vmax.f32 %v11910_v39, %v4650_v20  ;;  %v4599_v13 = vpop.f32.mrb[2].mxu0  ;;  %v4652_v24 = vpop.f32.mrb[2].mxu1  ;;  %v11927_v33 = vmax.f32 %v9336_v59, %v11926_v7  ;;  %v11931_v59 = vmax.f32 %v9353_v35, %v9576_v5 }
 0x5ab   :  { %5410 = vmatpush1.bf16.msra.mxu0 %v10969_v14  ;;  %5463 = vmatpush1.bf16.msra.mxu1 %v11911_v61  ;;  %v9753_v6 = vmax.f32 %v11913_v22, %v4599_v13  ;;  %v9758_v38 = vmax.f32 %v11916_v32, %v4652_v24  ;;  %v4601_v34 = vpop.f32.mrb[3].mxu0  ;;  %v4654_v15 = vpop.f32.mrb[3].mxu1  ;;  %v11918_v14 = vld [vmem:[#allocation110_spill] sm:$0xff]  ;;  %v11921_v13 = vld [vmem:[#allocation63_spill] sm:$0xff]  ;;  %v11922_v24 = vld [vmem:[#allocation64_spill] sm:$0xff]  ;;  %v11935_v35 = vmax.f32 %v9403_v50, %v9624_v27 }
 0x5ac   :  { %5411 = vmatprep.subr.bf16.mxu0 %v6779_v31  ;;  %5464 = vmatprep.subr.bf16.mxu1 %v11917_v54  ;;  %v11919_v20 = vmax.f32 %v9317_v49, %v11918_v14  ;;  %v9770_v39 = vmax.f32 %v11920_v30, %v4654_v15  ;;  %v11923_v61 = vld [vmem:[#allocation66_spill] sm:$0xff]  ;;  %v11925_v49 = vmax.f32 %v9331_v17, %v9560_v1  ;;  %v11930_v30 = vld [vmem:[#allocation69_spill] sm:$0xff] }
 0x5ad   :  { %v11928_v15 = vmax.f32 %v9341_v37, %v9568_v26  ;;  %v11929_v14 = vmax.f32 %v9346_v44, %v9570_v2  ;;  %v11932_v37 = vmax.f32 %v9358_v36, %v9578_v9  ;;  %v11933_v44 = vmax.f32 %v9365_v10, %v9586_v23 }
 0x5ae   :  { %v9765_v45 = vmax.f32 %v11919_v20, %v4601_v34  ;;  %v11936_v10 = vmax.f32 %v9408_v57, %v9626_v19  ;;  %v11940_v19 = vld [vmem:[#allocation101_spill] sm:$0xff] }
 0x5af   :  { %5412 = vmatpush1.bf16.msra.mxu0 %v11921_v13  ;;  %5465 = vmatpush1.bf16.msra.mxu1 %v11922_v24 }
 0x5b0   :  { %5413 = vmatprep.subr.bf16.mxu0 %v11923_v61  ;;  %5466 = vmatprep.subr.bf16.mxu1 %v11924_v12  ;;  %v4605_v31 = vpop.f32.mrb[4].mxu0  ;;  %v4658_v22 = vpop.f32.mrb[4].mxu1 }
 0x5b1   :  { %v9779_v43 = vmax.f32 %v11925_v49, %v4605_v31  ;;  %v9784_v52 = vmax.f32 %v11927_v33, %v4658_v22  ;;  %v4607_v32 = vpop.f32.mrb[5].mxu0  ;;  %v4660_v34 = vpop.f32.mrb[5].mxu1  ;;  %v11939_v22 = vmax.f32 %v9425_v0, %v9640_v11  ;;  %v11941_v49 = vmax.f32 %v9430_v53, %v11940_v19  ;;  %v11942_v33 = vld [vmem:[#allocation96_spill] sm:$0xff]  ;;  %v11967_v19 = vld [vmem:[#allocation105_spill] sm:$0xff] }
 0x5b2   :  { %v9789_v54 = vmax.f32 %v11928_v15, %v4607_v32  ;;  %v9794_v20 = vmax.f32 %v11929_v14, %v4660_v34  ;;  %v4609_v17 = vpop.f32.mrb[6].mxu0  ;;  %v4662_v1 = vpop.f32.mrb[6].mxu1  ;;  %v11943_v32 = vmax.f32 %v9437_v16, %v11942_v33  ;;  %v11945_v34 = vld [vmem:[#allocation106_spill] sm:$0xff] }
 0x5b3   :  { %5414 = vmatpush1.bf16.msra.mxu0 %v6804_v58  ;;  %5467 = vmatpush1.bf16.msra.mxu1 %v11930_v30  ;;  %v9801_v13 = vmax.f32 %v11931_v59, %v4609_v17  ;;  %v9806_v26 = vmax.f32 %v11932_v37, %v4662_v1  ;;  %v4611_v24 = vpop.f32.mrb[7].mxu0  ;;  %v4664_v2 = vpop.f32.mrb[7].mxu1  ;;  %v11934_v58 = vmax.f32 %v9370_v4, %v9588_v47  ;;  %v11949_v1 = vld [vmem:[#allocation107_spill] sm:$0xff]  ;;  %v11950_v30 = vld [vmem:[#allocation102_spill] sm:$0xff] }
 0x5b4   :  { %v9811_v61 = vmax.f32 %v11933_v44, %v4611_v24  ;;  %v11948_v17 = vmax.f32 %v9451_v56, %v9664_v60  ;;  %v11951_v59 = vmax.f32 %v11949_v1, %v11950_v30 }
 0x5b5   :  { %v9816_v12 = vmax.f32 %v11934_v58, %v4664_v2  ;;  %v11953_v2 = vmax.f32 %v11877_v40, %v9672_v3  ;;  %v11955_v58 = vmax.f32 %v11878_v51, %v9674_v21  ;;  %v11966_v51 = vld [vmem:[#allocation68_spill] sm:$0xff] }
 0x5b6   :  { %5432 = vmatmul.mubr.bf16.vlgmr.msra.gmra.mrb[56].mxu0 %v11885_v18  ;;  %5485 = vmatmul.mubr.bf16.vlgmr.msra.gmra.mrb[56].mxu1 %v11885_v18 }
 0x5b7   :  { %5441 = vmatprep.mubr.bf16.mxu0 %v10772_v25  ;;  %5494 = vmatprep.mubr.bf16.mxu1 %v10772_v25  ;;  %v11937_v25 = vmax.f32 %v9413_v8, %v9632_v41 }
 0x5be   :  { %5442 = vmatmul.mubr.bf16.gmra.mrb[60].mxu0 %v11893_v55  ;;  %5495 = vmatmul.mubr.bf16.gmra.mrb[60].mxu1 %v11893_v55  ;;  %v11938_v55 = vmax.f32 %v11865_v28, %v9634_v42  ;;  %v11944_v28 = vld [vmem:[#allocation78_spill] sm:$0xff] }
 0x5bf   :  { %v11946_v15 = vmax.f32 %v11944_v28, %v11945_v34 }
 0x5c8   :  { %v4754_v9 = vpop.f32.mrb[8].mxu1 }
 0x5c9   :  { %v4701_v23 = vpop.f32.mrb[8].mxu0  ;;  %v9832_v4 = vmax.f32 %v11936_v10, %v4754_v9  ;;  %v4756_v5 = vpop.f32.mrb[9].mxu1  ;;  %v11957_v9 = vld [vmem:[#allocation94_spill] sm:$0xff] }
 0x5ca   :  { %v9827_v36 = vmax.f32 %v11935_v35, %v4701_v23  ;;  %v4703_v47 = vpop.f32.mrb[9].mxu0  ;;  %v9842_v31 = vmax.f32 %v11938_v55, %v4756_v5  ;;  %v4758_v27 = vpop.f32.mrb[10].mxu1  ;;  %v11958_v35 = vmax.f32 %v9473_v63, %v11957_v9  ;;  %v11960_v5 = vld [vmem:[#allocation65_spill] sm:$0xff] }
 0x5cb   :  { %v9837_v18 = vmax.f32 %v11937_v25, %v4703_v47  ;;  %v4705_v50 = vpop.f32.mrb[10].mxu0  ;;  %v9852_v7 = vmax.f32 %v11941_v49, %v4758_v27  ;;  %v4760_v41 = vpop.f32.mrb[11].mxu1  ;;  %v11959_v47 = vld [vmem:[#allocation75_spill] sm:$0xff]  ;;  %v11964_v27 = vld [vmem:[#allocation73_spill] sm:$0xff]  ;;  %v11968_v49 = vmax.f32 %v11966_v51, %v11967_v19 }
 0x5cc   :  { %v9847_v57 = vmax.f32 %v11939_v22, %v4705_v50  ;;  %v4707_v8 = vpop.f32.mrb[11].mxu0  ;;  %v9862_v14 = vmax.f32 %v11946_v15, %v4760_v41  ;;  %v11961_v25 = vmax.f32 %v11959_v47, %v11960_v5  ;;  %v11963_v50 = vld [vmem:[#allocation74_spill] sm:$0xff] }
 0x5cd   :  { %v9857_v42 = vmax.f32 %v11943_v32, %v4707_v8  ;;  %v11965_v22 = vmax.f32 %v11963_v50, %v11964_v27 }
 0x5ce   :  { %11947 = vst [vmem:[#allocation97_spill] sm:$0xff] %v9862_v14 }
 0x5d0   :  { %v4764_v11 = vpop.f32.mrb[12].mxu1 }
 0x5d1   :  { %v4711_v0 = vpop.f32.mrb[12].mxu0  ;;  %v9872_v37 = vmax.f32 %v11951_v59, %v4764_v11  ;;  %v4766_v24 = vpop.f32.mrb[13].mxu1 }
 0x5d2   :  { %v9867_v53 = vmax.f32 %v11948_v17, %v4711_v0  ;;  %v4713_v16 = vpop.f32.mrb[13].mxu0  ;;  %v9882_v23 = vmax.f32 %v11955_v58, %v4766_v24  ;;  %v4768_v60 = vpop.f32.mrb[14].mxu1 }
 0x5d3   :  { %11952 = vst [vmem:[#allocation86_spill] sm:$0xff] %v9872_v37  ;;  %v9877_v44 = vmax.f32 %v11953_v2, %v4713_v16  ;;  %v4715_v56 = vpop.f32.mrb[14].mxu0  ;;  %v9892_v55 = vmax.f32 %v11961_v25, %v4768_v60  ;;  %v4770_v40 = vpop.f32.mrb[15].mxu1 }
 0x5d4   :  { %11956 = vst [vmem:[#allocation113_spill] sm:$0xff] %v9882_v23  ;;  %v9887_v10 = vmax.f32 %v11958_v35, %v4715_v56  ;;  %v4717_v3 = vpop.f32.mrb[15].mxu0  ;;  %v9902_v8 = vmax.f32 %v11968_v49, %v4770_v40 }
 0x5d5   :  { %11954 = vst [vmem:[#allocation85_spill] sm:$0xff] %v9877_v44  ;;  %11962 = vst [vmem:[#allocation59_spill] sm:$0xff] %v9892_v55  ;;  %v9897_v21 = vmax.f32 %v11965_v22, %v4717_v3 }
 0x5e8   :  { %v9906_v41 = vpop.f32.mrb[16].mxu1 }
 0x5e9   :  { %v9904_v63 = vpop.f32.mrb[16].mxu0  ;;  %v9914_v34 = vpop.f32.mrb[17].mxu1  ;;  %v11977_v27 = vmax.f32 %v9736_v62, %v9906_v41 }
 0x5ea   :  { %v9912_v28 = vpop.f32.mrb[17].mxu0  ;;  %v9922_v17 = vpop.f32.mrb[18].mxu1  ;;  %v11979_v49 = vmax.f32 %v9746_v48, %v9914_v34 }
 0x5eb   :  { %v9920_v11 = vpop.f32.mrb[18].mxu0  ;;  %v9930_v16 = vpop.f32.mrb[19].mxu1  ;;  %v11978_v19 = vmax.f32 %v9741_v46, %v9912_v28 }
 0x5ec   :  { %v9928_v59 = vpop.f32.mrb[19].mxu0 }
 0x5f0   :  { %v9938_v56 = vpop.f32.mrb[20].mxu1 }
 0x5f1   :  { %v9936_v58 = vpop.f32.mrb[20].mxu0  ;;  %v9946_v47 = vpop.f32.mrb[21].mxu1 }
 0x5f2   :  { %v9944_v35 = vpop.f32.mrb[21].mxu0  ;;  %v9954_v40 = vpop.f32.mrb[22].mxu1 }
 0x5f3   :  { %v9952_v3 = vpop.f32.mrb[22].mxu0  ;;  %v9962_v51 = vpop.f32.mrb[23].mxu1 }
 0x5f4   :  { %v9960_v22 = vpop.f32.mrb[23].mxu0 }
 0x608   :  { %v9970_v5 = vpop.f32.mrb[24].mxu1 }
 0x609   :  { %v9968_v25 = vpop.f32.mrb[24].mxu0  ;;  %v9978_v60 = vpop.f32.mrb[25].mxu1 }
 0x60a   :  { %v9976_v9 = vpop.f32.mrb[25].mxu0  ;;  %v9986_v24 = vpop.f32.mrb[26].mxu1 }
 0x60b   :  { %v9984_v2 = vpop.f32.mrb[26].mxu0  ;;  %v9994_v1 = vpop.f32.mrb[27].mxu1 }
 0x60c   :  { %v9992_v30 = vpop.f32.mrb[27].mxu0  ;;  %11969 = vst [vmem:[#allocation109_spill] sm:$0xff] %v9994_v1 }
 0x610   :  { %v10002_v15 = vpop.f32.mrb[28].mxu1 }
 0x611   :  { %v10000_v0 = vpop.f32.mrb[28].mxu0  ;;  %11970 = vst [vmem:[#allocation88_spill] sm:$0xff] %v10002_v15  ;;  %v10010_v33 = vpop.f32.mrb[29].mxu1 }
 0x612   :  { %v10008_v32 = vpop.f32.mrb[29].mxu0  ;;  %11972 = vst [vmem:[#allocation99_spill] sm:$0xff] %v10010_v33  ;;  %v10018_v14 = vpop.f32.mrb[30].mxu1 }
 0x613   :  { %11971 = vst [vmem:[#allocation87_spill] sm:$0xff] %v10008_v32  ;;  %v10016_v1 = vpop.f32.mrb[30].mxu0  ;;  %11973 = vst [vmem:[#allocation60_spill] sm:$0xff] %v10018_v14  ;;  %v10026_v37 = vpop.f32.mrb[31].mxu1  ;;  %v11976_v32 = vmax.f32 %v9731_v29, %v9904_v63 }
 0x614   :  { %v10024_v15 = vpop.f32.mrb[31].mxu0  ;;  %11975 = vst [vmem:[#allocation116_spill] sm:$0xff] %v10026_v37 }
 0x615   :  { %11974 = vst [vmem:[#allocation118_spill] sm:$0xff] %v10024_v15 }
 0x629   :  { %v5083_v33 = vpop.f32.mrb[32].mxu0  ;;  %v5136_v23 = vpop.f32.mrb[32].mxu1 }
 0x62a   :  { %v10035_v44 = vmax.f32 %v11976_v32, %v5083_v33  ;;  %v10040_v50 = vmax.f32 %v11977_v27, %v5136_v23  ;;  %v5085_v14 = vpop.f32.mrb[33].mxu0  ;;  %v5138_v55 = vpop.f32.mrb[33].mxu1  ;;  %v11980_v33 = vmax.f32 %v9753_v6, %v9920_v11  ;;  %v11981_v23 = vmax.f32 %v9758_v38, %v9922_v17 }
 0x62b   :  { %v10045_v15 = vmax.f32 %v11978_v19, %v5085_v14  ;;  %v10050_v37 = vmax.f32 %v11979_v49, %v5138_v55  ;;  %v5087_v29 = vpop.f32.mrb[34].mxu0  ;;  %v5140_v63 = vpop.f32.mrb[34].mxu1  ;;  %v11982_v32 = vmax.f32 %v9765_v45, %v9928_v59  ;;  %v11983_v55 = vmax.f32 %v9770_v39, %v9930_v16 }
 0x62c   :  { %v10055_v62 = vmax.f32 %v11980_v33, %v5087_v29  ;;  %v10060_v41 = vmax.f32 %v11981_v23, %v5140_v63  ;;  %v5089_v46 = vpop.f32.mrb[35].mxu0  ;;  %v5142_v14 = vpop.f32.mrb[35].mxu1  ;;  %v11984_v11 = vmax.f32 %v9779_v43, %v9936_v58  ;;  %v11985_v17 = vmax.f32 %v9784_v52, %v9938_v56 }
 0x62d   :  { %v10065_v48 = vmax.f32 %v11982_v32, %v5089_v46  ;;  %v10070_v28 = vmax.f32 %v11983_v55, %v5142_v14  ;;  %v11986_v19 = vmax.f32 %v9789_v54, %v9944_v35  ;;  %v11987_v16 = vmax.f32 %v9794_v20, %v9946_v47 }
 0x62e   :  { %v11988_v29 = vmax.f32 %v9801_v13, %v9952_v3  ;;  %v11989_v56 = vmax.f32 %v9806_v26, %v9954_v40  ;;  %v11990_v33 = vmax.f32 %v9811_v61, %v9960_v22  ;;  %v11991_v47 = vmax.f32 %v9816_v12, %v9962_v51 }
 0x62f   :  { %v11992_v46 = vmax.f32 %v9827_v36, %v9968_v25  ;;  %v11993_v40 = vmax.f32 %v9832_v4, %v9970_v5  ;;  %v11994_v32 = vmax.f32 %v9837_v18, %v9976_v9  ;;  %v11995_v51 = vmax.f32 %v9842_v31, %v9978_v60  ;;  %v11999_v60 = vld [vmem:[#allocation97_spill] sm:$0xff] }
 0x630   :  { %v11997_v5 = vmax.f32 %v9852_v7, %v9986_v24  ;;  %v12003_v24 = vld [vmem:[#allocation86_spill] sm:$0xff] }
 0x631   :  { %v5093_v6 = vpop.f32.mrb[36].mxu0  ;;  %v5146_v34 = vpop.f32.mrb[36].mxu1 }
 0x632   :  { %v10075_v38 = vmax.f32 %v11984_v11, %v5093_v6  ;;  %v10080_v27 = vmax.f32 %v11985_v17, %v5146_v34  ;;  %v5095_v45 = vpop.f32.mrb[37].mxu0  ;;  %v5148_v59 = vpop.f32.mrb[37].mxu1  ;;  %v11996_v6 = vmax.f32 %v9847_v57, %v9984_v2  ;;  %v11998_v11 = vmax.f32 %v9857_v42, %v9992_v30  ;;  %v12000_v17 = vld [vmem:[#allocation109_spill] sm:$0xff] }
 0x633   :  { %v10085_v39 = vmax.f32 %v11986_v19, %v5095_v45  ;;  %v10090_v49 = vmax.f32 %v11987_v16, %v5148_v59  ;;  %v5097_v43 = vpop.f32.mrb[38].mxu0  ;;  %v5150_v58 = vpop.f32.mrb[38].mxu1  ;;  %v12001_v45 = vmax.f32 %v11999_v60, %v12000_v17  ;;  %v12002_v19 = vmax.f32 %v9867_v53, %v10000_v0  ;;  %v12004_v16 = vld [vmem:[#allocation88_spill] sm:$0xff] }
 0x634   :  { %v10095_v52 = vmax.f32 %v11988_v29, %v5097_v43  ;;  %v10100_v63 = vmax.f32 %v11989_v56, %v5150_v58  ;;  %v5099_v54 = vpop.f32.mrb[39].mxu0  ;;  %v5152_v35 = vpop.f32.mrb[39].mxu1  ;;  %v12005_v43 = vmax.f32 %v12003_v24, %v12004_v16  ;;  %v12006_v29 = vld [vmem:[#allocation85_spill] sm:$0xff]  ;;  %v12007_v56 = vld [vmem:[#allocation87_spill] sm:$0xff] }
 0x635   :  { %v10105_v20 = vmax.f32 %v11990_v33, %v5099_v54  ;;  %v10110_v23 = vmax.f32 %v11991_v47, %v5152_v35  ;;  %v12008_v54 = vmax.f32 %v12006_v29, %v12007_v56  ;;  %v12009_v33 = vld [vmem:[#allocation113_spill] sm:$0xff]  ;;  %v12010_v47 = vld [vmem:[#allocation99_spill] sm:$0xff] }
 0x649   :  { %v5189_v13 = vpop.f32.mrb[40].mxu0  ;;  %v5242_v3 = vpop.f32.mrb[40].mxu1 }
 0x64a   :  { %v10115_v26 = vmax.f32 %v11992_v46, %v5189_v13  ;;  %v10120_v14 = vmax.f32 %v11993_v40, %v5242_v3  ;;  %v5191_v61 = vpop.f32.mrb[41].mxu0  ;;  %v5244_v22 = vpop.f32.mrb[41].mxu1  ;;  %v12011_v13 = vmax.f32 %v12009_v33, %v12010_v47  ;;  %v12012_v46 = vmax.f32 %v9887_v10, %v10016_v1 }
 0x64b   :  { %v10125_v12 = vmax.f32 %v11994_v32, %v5191_v61  ;;  %v10130_v55 = vmax.f32 %v11995_v51, %v5244_v22  ;;  %v5193_v36 = vpop.f32.mrb[42].mxu0  ;;  %v5246_v25 = vpop.f32.mrb[42].mxu1  ;;  %v12013_v61 = vld [vmem:[#allocation59_spill] sm:$0xff]  ;;  %v12014_v22 = vld [vmem:[#allocation60_spill] sm:$0xff]  ;;  %v5539_v10 = vlaneseq }
 0x64c   :  { %v10135_v4 = vmax.f32 %v11996_v6, %v5193_v36  ;;  %v10140_v34 = vmax.f32 %v11997_v5, %v5246_v25  ;;  %v5195_v18 = vpop.f32.mrb[43].mxu0  ;;  %v5248_v9 = vpop.f32.mrb[43].mxu1  ;;  %v12015_v32 = vmax.f32 %v12013_v61, %v12014_v22  ;;  %v12016_v6 = vld [vmem:[#allocation118_spill] sm:$0xff] }
 0x64d   :  { %v10145_v31 = vmax.f32 %v11998_v11, %v5195_v18  ;;  %v10150_v59 = vmax.f32 %v12001_v45, %v5248_v9  ;;  %v12017_v5 = vmax.f32 %v9897_v21, %v12016_v6  ;;  %v12018_v9 = vld [vmem:[#allocation116_spill] sm:$0xff]  ;;  %v10192_v1 = vshrl.u32 %v5539_v10, 7 }
 0x64e   :  { %v12019_v11 = vmax.f32 %v9902_v8, %v12018_v9 }
 0x64f   :  { %v5541_v17 = vsub.s32 0, %v10192_v1  ;;  %v5549_v45 = vsub.s32 2, %v10192_v1  ;;  %v5545_v21 = vsub.s32 1, %v10192_v1 }
 0x651   :  { %v5199_v57 = vpop.f32.mrb[44].mxu0  ;;  %v5252_v2 = vpop.f32.mrb[44].mxu1 }
 0x652   :  { %v10155_v7 = vmax.f32 %v12002_v19, %v5199_v57  ;;  %v10160_v58 = vmax.f32 %v12005_v43, %v5252_v2  ;;  %v5201_v42 = vpop.f32.mrb[45].mxu0  ;;  %v5254_v30 = vpop.f32.mrb[45].mxu1  ;;  %v10199_v57 = vld [vmem:[%s10316_s6] sm:$0xff]  ;;  %v5553_v2 = vsub.s32 3, %v10192_v1  ;;  %s6271_s6 = smov [#allocation5]  }
 0x653   :  { %v10165_v35 = vmax.f32 %v12008_v54, %v5201_v42  ;;  %v10170_v3 = vmax.f32 %v12011_v13, %v5254_v30  ;;  %v5203_v53 = vpop.f32.mrb[46].mxu0  ;;  %v5256_v0 = vpop.f32.mrb[46].mxu1  ;;  %v10204_v8 = vrot.slane %v10199_v57, %v5541_v17  ;;  %v10207_v19 = vrot.slane %v10199_v57, %v5549_v45  ;;  %s5760_s21 = sshll.u32 %s6271_s6, 4  ;;  %s5761_s21 = int_to_ptr.vmem [resolvable:$true] %s5760_s21 }
 0x654   :  { %v10175_v40 = vmax.f32 %v12012_v46, %v5203_v53  ;;  %v10180_v51 = vmax.f32 %v12015_v32, %v5256_v0  ;;  %v5205_v36 = vpop.f32.mrb[47].mxu0  ;;  %v5258_v25 = vpop.f32.mrb[47].mxu1  ;;  %v10210_v43 = vrot.slane %v10199_v57, %v5545_v21  ;;  %v10213_v42 = vrot.slane %v10199_v57, %v5553_v2  ;;  %s6241_s1 = scalar_lea.vmem %s5761_s21, 2048  ;;  %p6246_p9 = scmp.lt.s32.totalorder %s5761_s21, %s5761_s21 }
 0x655   :  { %v10185_v18 = vmax.f32 %v12017_v5, %v5205_v36  ;;  %v10190_v60 = vmax.f32 %v12019_v11, %v5258_v25  ;;  %p6242_p8 = scmp.ne.s32.totalorder %s5761_s21, %s6241_s1  ;;  %p6247_p10 = scmp.lt.s32.totalorder %s6241_s1, %s6241_s1 }
 0x657   :  { %p6248_p11 = por %p6247_p10, %p6246_p9 }
 0x659   :  { %p6249_p12 = pnand %p6248_p11, %p6242_p8 }
 0x669   :  { %v5327_v24 = vpop.f32.mrb[48].mxu0  ;;  %v5380_v16 = vpop.f32.mrb[48].mxu1 }
 0x66a   :  { %v5505_v30 = vmax.f32 %v10035_v44, %v5327_v24  ;;  %v5507_v29 = vmax.f32 %v10040_v50, %v5380_v16  ;;  %v5329_v56 = vpop.f32.mrb[49].mxu0  ;;  %v5382_v54 = vpop.f32.mrb[49].mxu1 }
 0x66b   :  { %v5506_v33 = vmax.f32 %v10045_v15, %v5329_v56  ;;  %v5508_v47 = vmax.f32 %v10050_v37, %v5382_v54  ;;  %v5331_v13 = vpop.f32.mrb[50].mxu0  ;;  %v5384_v53 = vpop.f32.mrb[50].mxu1 }
 0x66c   :  { %v5579_v0 = vadd.f32 %v10204_v8, %v5505_v30  ;;  %v5581_v46 = vadd.f32 %v10207_v19, %v5507_v29  ;;  %v5513_v61 = vmax.f32 %v10055_v62, %v5331_v13  ;;  %v5515_v22 = vmax.f32 %v10060_v41, %v5384_v53  ;;  %v5333_v32 = vpop.f32.mrb[51].mxu0  ;;  %v5386_v44 = vpop.f32.mrb[51].mxu1 }
 0x66d   :  { %v5580_v50 = vadd.f32 %v10210_v43, %v5506_v33  ;;  %v5582_v36 = vadd.f32 %v10213_v42, %v5508_v47  ;;  %v5514_v15 = vmax.f32 %v10065_v48, %v5333_v32  ;;  %v5516_v37 = vmax.f32 %v10070_v28, %v5386_v44 }
 0x66e   :  { %v5611_v25 = vmax.f32 %v5579_v0, 0.0  ;;  %v5613_v6 = vmax.f32 %v5581_v46, 0.0  ;;  %v5587_v5 = vadd.f32 %v10204_v8, %v5513_v61  ;;  %v5589_v9 = vadd.f32 %v10207_v19, %v5515_v22 }
 0x66f   :  { %v5612_v11 = vmax.f32 %v5580_v50, 0.0  ;;  %v5614_v62 = vmax.f32 %v5582_v36, 0.0  ;;  %v5588_v41 = vadd.f32 %v10210_v43, %v5514_v15  ;;  %v5590_v10 = vadd.f32 %v10213_v42, %v5516_v37 }
 0x670   :  { %v5619_v17 = vmax.f32 %v5587_v5, 0.0  ;;  %v5621_v45 = vmax.f32 %v5589_v9, 0.0 }
 0x671   :  { %v5954_v21 = vpack.c.bf16 %v5612_v11, %v5611_v25  ;;  %v5955_v2 = vpack.c.bf16 %v5614_v62, %v5613_v6  ;;  %v5620_v24 = vmax.f32 %v5588_v41, 0.0  ;;  %v5622_v48 = vmax.f32 %v5590_v10, 0.0  ;;  %v5337_v16 = vpop.f32.mrb[52].mxu0  ;;  %v5390_v28 = vpop.f32.mrb[52].mxu1 }
 0x672   :  { %v5521_v30 = vmax.f32 %v10075_v38, %v5337_v16  ;;  %v5523_v29 = vmax.f32 %v10080_v27, %v5390_v28  ;;  %v5339_v56 = vpop.f32.mrb[53].mxu0  ;;  %v5392_v54 = vpop.f32.mrb[53].mxu1 }
 0x673   :  { %5739 = vst [vmem:[#allocation5] sm:$0xff] %v5954_v21  ;;  %5740 = vst [vmem:[#allocation5 + $0x8] sm:$0xff] %v5955_v2  ;;  %v5958_v33 = vpack.c.bf16 %v5620_v24, %v5619_v17  ;;  %v5959_v47 = vpack.c.bf16 %v5622_v48, %v5621_v45  ;;  %v5522_v13 = vmax.f32 %v10085_v39, %v5339_v56  ;;  %v5341_v0 = vpop.f32.mrb[54].mxu0  ;;  %v5394_v46 = vpop.f32.mrb[54].mxu1 }
 0x674   :  { %v5524_v53 = vmax.f32 %v10090_v49, %v5392_v54  ;;  %v5595_v61 = vadd.f32 %v10204_v8, %v5521_v30  ;;  %v5597_v22 = vadd.f32 %v10207_v19, %v5523_v29  ;;  %v5529_v38 = vmax.f32 %v10095_v52, %v5341_v0  ;;  %v5343_v32 = vpop.f32.mrb[55].mxu0  ;;  %v5396_v44 = vpop.f32.mrb[55].mxu1 }
 0x675   :  { %v5531_v27 = vmax.f32 %v10100_v63, %v5394_v46  ;;  %5743 = vst [vmem:[#allocation5 + $0x20] sm:$0xff] %v5958_v33  ;;  %5744 = vst [vmem:[#allocation5 + $0x28] sm:$0xff] %v5959_v47  ;;  %v5596_v50 = vadd.f32 %v10210_v43, %v5522_v13  ;;  %v5530_v49 = vmax.f32 %v10105_v20, %v5343_v32 }
 0x676   :  { %v5598_v39 = vadd.f32 %v10213_v42, %v5524_v53  ;;  %v5532_v36 = vmax.f32 %v10110_v23, %v5396_v44  ;;  %v5627_v15 = vmax.f32 %v5595_v61, 0.0  ;;  %v5629_v37 = vmax.f32 %v5597_v22, 0.0 }
 0x677   :  { %v5603_v25 = vadd.f32 %v10204_v8, %v5529_v38  ;;  %v5605_v52 = vadd.f32 %v10207_v19, %v5531_v27  ;;  %v5628_v6 = vmax.f32 %v5596_v50, 0.0  ;;  %v5604_v5 = vadd.f32 %v10210_v43, %v5530_v49 }
 0x678   :  { %v5630_v63 = vmax.f32 %v5598_v39, 0.0  ;;  %v5606_v9 = vadd.f32 %v10213_v42, %v5532_v36  ;;  %v5557_v8 = vsub.s32 4, %v10192_v1  ;;  %v5565_v19 = vsub.s32 6, %v10192_v1 }
 0x679   :  { %v5635_v11 = vmax.f32 %v5603_v25, 0.0  ;;  %v5637_v62 = vmax.f32 %v5605_v52, 0.0  ;;  %v5962_v41 = vpack.c.bf16 %v5628_v6, %v5627_v15  ;;  %v5636_v17 = vmax.f32 %v5604_v5, 0.0 }
 0x67a   :  { %v5963_v10 = vpack.c.bf16 %v5630_v63, %v5629_v37  ;;  %v5638_v20 = vmax.f32 %v5606_v9, 0.0  ;;  %v5561_v43 = vsub.s32 5, %v10192_v1  ;;  %v5569_v42 = vsub.s32 7, %v10192_v1 }
 0x67b   :  { %5747 = vst [vmem:[#allocation5 + $0x40] sm:$0xff] %v5962_v41  ;;  %v5966_v23 = vpack.c.bf16 %v5636_v17, %v5635_v11  ;;  %v10252_v21 = vrot.slane %v10199_v57, %v5557_v8  ;;  %v10255_v2 = vrot.slane %v10199_v57, %v5565_v19 }
 0x67c   :  { %5748 = vst [vmem:[#allocation5 + $0x48] sm:$0xff] %v5963_v10  ;;  %v5967_v45 = vpack.c.bf16 %v5638_v20, %v5637_v62  ;;  %v10258_v16 = vrot.slane %v10199_v57, %v5561_v43  ;;  %v10261_v28 = vrot.slane %v10199_v57, %v5569_v42 }
 0x67d   :  { %5751 = vst [vmem:[#allocation5 + $0x60] sm:$0xff] %v5966_v23 }
 0x67e   :  { %5752 = vst [vmem:[#allocation5 + $0x68] sm:$0xff] %v5967_v45 }
 0x689   :  { %v5433_v24 = vpop.f32.mrb[56].mxu0  ;;  %v5486_v48 = vpop.f32.mrb[56].mxu1 }
 0x68a   :  { %v5509_v30 = vmax.f32 %v10115_v26, %v5433_v24  ;;  %v5511_v29 = vmax.f32 %v10120_v14, %v5486_v48  ;;  %v5435_v56 = vpop.f32.mrb[57].mxu0  ;;  %v5488_v1 = vpop.f32.mrb[57].mxu1 }
 0x68b   :  { %v5510_v54 = vmax.f32 %v10125_v12, %v5435_v56  ;;  %v5512_v33 = vmax.f32 %v10130_v55, %v5488_v1  ;;  %v5437_v47 = vpop.f32.mrb[58].mxu0  ;;  %v5490_v13 = vpop.f32.mrb[58].mxu1 }
 0x68c   :  { %v5583_v53 = vadd.f32 %v10252_v21, %v5509_v30  ;;  %v5585_v0 = vadd.f32 %v10255_v2, %v5511_v29  ;;  %v5517_v46 = vmax.f32 %v10135_v4, %v5437_v47  ;;  %v5519_v57 = vmax.f32 %v10140_v34, %v5490_v13  ;;  %v5439_v61 = vpop.f32.mrb[59].mxu0  ;;  %v5492_v26 = vpop.f32.mrb[59].mxu1 }
 0x68d   :  { %v5584_v14 = vadd.f32 %v10258_v16, %v5510_v54  ;;  %v5586_v22 = vadd.f32 %v10261_v28, %v5512_v33  ;;  %v5518_v12 = vmax.f32 %v10145_v31, %v5439_v61  ;;  %v5520_v55 = vmax.f32 %v10150_v59, %v5492_v26 }
 0x68e   :  { %v5615_v38 = vmax.f32 %v5583_v53, 0.0  ;;  %v5617_v27 = vmax.f32 %v5585_v0, 0.0  ;;  %v5591_v32 = vadd.f32 %v10252_v21, %v5517_v46  ;;  %v5593_v44 = vadd.f32 %v10255_v2, %v5519_v57 }
 0x68f   :  { %v5616_v50 = vmax.f32 %v5584_v14, 0.0  ;;  %v5618_v4 = vmax.f32 %v5586_v22, 0.0  ;;  %v5592_v34 = vadd.f32 %v10258_v16, %v5518_v12  ;;  %v5594_v39 = vadd.f32 %v10261_v28, %v5520_v55 }
 0x690   :  { %v5623_v49 = vmax.f32 %v5591_v32, 0.0  ;;  %v5625_v36 = vmax.f32 %v5593_v44, 0.0 }
 0x691   :  { %v5956_v15 = vpack.c.bf16 %v5616_v50, %v5615_v38  ;;  %v5957_v37 = vpack.c.bf16 %v5618_v4, %v5617_v27  ;;  %v5624_v25 = vmax.f32 %v5592_v34, 0.0  ;;  %v5626_v31 = vmax.f32 %v5594_v39, 0.0  ;;  %v5443_v52 = vpop.f32.mrb[60].mxu0  ;;  %v5496_v59 = vpop.f32.mrb[60].mxu1 }
 0x692   :  { %v5525_v6 = vmax.f32 %v10155_v7, %v5443_v52  ;;  %v5527_v63 = vmax.f32 %v10160_v58, %v5496_v59  ;;  %v5445_v5 = vpop.f32.mrb[61].mxu0  ;;  %v5498_v9 = vpop.f32.mrb[61].mxu1 }
 0x693   :  { %5741 = vst [vmem:[#allocation5 + $0x10] sm:$0xff] %v5956_v15  ;;  %5742 = vst [vmem:[#allocation5 + $0x18] sm:$0xff] %v5957_v37  ;;  %v5960_v11 = vpack.c.bf16 %v5624_v25, %v5623_v49  ;;  %v5961_v62 = vpack.c.bf16 %v5626_v31, %v5625_v36  ;;  %v5526_v41 = vmax.f32 %v10165_v35, %v5445_v5  ;;  %v5447_v17 = vpop.f32.mrb[62].mxu0  ;;  %v5500_v20 = vpop.f32.mrb[62].mxu1 }
 0x694   :  { %v5528_v10 = vmax.f32 %v10170_v3, %v5498_v9  ;;  %v5599_v23 = vadd.f32 %v10252_v21, %v5525_v6  ;;  %v5601_v45 = vadd.f32 %v10255_v2, %v5527_v63  ;;  %v5533_v7 = vmax.f32 %v10175_v40, %v5447_v17  ;;  %v5449_v8 = vpop.f32.mrb[63].mxu0  ;;  %v5502_v19 = vpop.f32.mrb[63].mxu1 }
 0x695   :  { %v5535_v58 = vmax.f32 %v10180_v51, %v5500_v20  ;;  %5745 = vst [vmem:[#allocation5 + $0x30] sm:$0xff] %v5960_v11  ;;  %5746 = vst [vmem:[#allocation5 + $0x38] sm:$0xff] %v5961_v62  ;;  %v5600_v43 = vadd.f32 %v10258_v16, %v5526_v41  ;;  %v5534_v3 = vmax.f32 %v10185_v18, %v5449_v8 }
 0x696   :  { %v5602_v35 = vadd.f32 %v10261_v28, %v5528_v10  ;;  %v5536_v42 = vmax.f32 %v10190_v60, %v5502_v19  ;;  %v5631_v24 = vmax.f32 %v5599_v23, 0.0  ;;  %v5633_v48 = vmax.f32 %v5601_v45, 0.0 }
 0x697   :  { %v5607_v30 = vadd.f32 %v10252_v21, %v5533_v7  ;;  %v5609_v40 = vadd.f32 %v10255_v2, %v5535_v58  ;;  %v5632_v29 = vmax.f32 %v5600_v43, 0.0  ;;  %v5608_v56 = vadd.f32 %v10258_v16, %v5534_v3 }
 0x698   :  { %v5634_v51 = vmax.f32 %v5602_v35, 0.0  ;;  %v5610_v1 = vadd.f32 %v10261_v28, %v5536_v42 }
 0x699   :  { %v5639_v54 = vmax.f32 %v5607_v30, 0.0  ;;  %v5641_v33 = vmax.f32 %v5609_v40, 0.0  ;;  %v5964_v47 = vpack.c.bf16 %v5632_v29, %v5631_v24  ;;  %v5640_v13 = vmax.f32 %v5608_v56, 0.0 }
 0x69a   :  { %v5965_v18 = vpack.c.bf16 %v5634_v51, %v5633_v48  ;;  %v5642_v60 = vmax.f32 %v5610_v1, 0.0 }
 0x69b   :  { %5749 = vst [vmem:[#allocation5 + $0x50] sm:$0xff] %v5964_v47  ;;  %v5968_v53 = vpack.c.bf16 %v5640_v13, %v5639_v54 }
 0x69c   :  { %5750 = vst [vmem:[#allocation5 + $0x58] sm:$0xff] %v5965_v18  ;;  %v5969_v21 = vpack.c.bf16 %v5642_v60, %v5641_v33 }
 0x69d   :  { %5753 = vst [vmem:[#allocation5 + $0x70] sm:$0xff] %v5968_v53 }
 0x69e   :  { %5754 = vst [vmem:[#allocation5 + $0x78] sm:$0xff] %v5969_v21 }
 0x69f   :  { %6252 = shalt.err (!%p6249_p12)
}
 0x6a0   :  { %s6253_s24 = scalar_lea.hbm %s10317_s7, 2048 }
 0x6a1   :  { %p6254_p13 = scmp.ne.s32.totalorder %s10317_s7, %s6253_s24  ;;  %p6257_p0 = scmp.lt.u32.totalorder %s6253_s24, %s10317_s7 }
 0x6a3   :  { %p6259_p1 = pnand %p6257_p0, %p6254_p13 }
 0x6a5   :  { %6262 = shalt.err (!%p6259_p1)
}
 0x6a6   :  { %5766 = dma.vmem_to_hbm [thread:$0]  %s5761_s21, 2048, %s10317_s7, [#allocation4], %s6268_s11, %s6268_s11, %s6269_s12  }
 0x6a7   :  { %6265 = dma.done.wait [#allocation4], 2048  }
 0x6a8   :  { %6266 = vsyncadd [#allocation4], 4294965248 }
 0x6a9   :  { %5770 = vsyncpa [#allocation3], 1 }
 0x6aa   :  { %5771 = vsyncpa [#allocation4], 1 }

</bundles_post_ra>
